<compile_context>
chip_gen: v5e
topology: v5e:2x2
jax: 0.10.0
libtpu: 0.0.40
codegen_flags: <defaults>
</compile_context>

<pallas_src>
import functools
import math

import jax
import jax.numpy as jnp
from jax import lax
from jax.experimental import pallas as pl
from jax.experimental.pallas import tpu as pltpu

NUM_HEADS = 4
NUM_BLOCKS = 2
LN_EPS = 1e-8
NEG_INF = -1e30


def _layernorm(x, gamma, beta):
    """LayerNorm over the last axis of a 2-D [N, D] tensor, in f32."""
    mu = jnp.mean(x, axis=-1, keepdims=True)
    var = jnp.mean((x - mu) ** 2, axis=-1, keepdims=True)
    return (x - mu) * lax.rsqrt(var + LN_EPS) * gamma[None, :] + beta[None, :]


def sasrec_kernel(
    x_ref,                    # [BT, S, D] f32   contextual input tile
    aln_g_ref, aln_b_ref,     # [NB, D] f32      attention layernorm
    wq_ref, bq_ref,           # [NB, D, D] bf16, [NB, D] f32    Q projection
    wkv_ref, bkv_ref,         # [NB, D, 2D] bf16, [NB, 2D] f32  fused K/V proj
    wo_ref, bo_ref,           # [NB, D, D] bf16, [NB, D] f32    out projection
    fln_g_ref, fln_b_ref,     # [NB, D] f32      forward layernorm
    w1_ref, b1_ref,           # [NB, D, D] bf16, [NB, D] f32    conv1 (1x1)
    w2_ref, b2_ref,           # [NB, D, D] bf16, [NB, D] f32    conv2 (1x1)
    lln_g_ref, lln_b_ref,     # [1, D] f32       last layernorm
    pos_ref, neg_ref,         # [BT, S, D] f32   pos / neg item embeddings
    out_ref,                  # [BT, 2*S] f32    packed [pos | neg] logits
    *, num_blocks, num_heads,
):
    BT, S, D = x_ref.shape
    NT = BT * S
    H = num_heads
    Dh = D // H
    scale = 1.0 / math.sqrt(Dh)

    # Additive causal-mask bias (strict upper triangle disallowed), built once.
    row = lax.broadcasted_iota(jnp.int32, (S, S), 0)
    col = lax.broadcasted_iota(jnp.int32, (S, S), 1)
    mask_bias = jnp.where(col > row, NEG_INF, 0.0).astype(jnp.float32)[None]

    def split_heads(t):  # [NT, D] f32 -> [H*BT, S, Dh] bf16
        parts = [t[:, h * Dh:(h + 1) * Dh] for h in range(H)]
        th = jnp.stack(parts, axis=0)              # [H, NT, Dh]
        return th.reshape(H * BT, S, Dh).astype(jnp.bfloat16)

    x = x_ref[...].reshape(NT, D).astype(jnp.float32)

    for blk in range(num_blocks):
        # ----- self-attention sub-layer (query = LN(x); key/value = x) -----
        q_in = _layernorm(x, aln_g_ref[blk], aln_b_ref[blk])

        q = jnp.dot(q_in.astype(jnp.bfloat16), wq_ref[blk],
                    preferred_element_type=jnp.float32) + bq_ref[blk][None, :]
        q = q * scale                                # fold 1/sqrt(Dh) into q
        kv = jnp.dot(x.astype(jnp.bfloat16), wkv_ref[blk],
                     preferred_element_type=jnp.float32) + bkv_ref[blk][None, :]
        k = kv[:, 0:D]
        v = kv[:, D:2 * D]

        qh = split_heads(q)                          # [H*BT, S, Dh] bf16
        kh = split_heads(k)
        vh = split_heads(v)

        s = jnp.einsum('bqd,bkd->bqk', qh, kh,
                       preferred_element_type=jnp.float32) + mask_bias
        m = jnp.max(s, axis=-1, keepdims=True)
        p = jnp.exp(s - m)
        inv = pl.reciprocal(jnp.sum(p, axis=-1, keepdims=True), approx=True)
        p = (p * inv).astype(jnp.bfloat16)
        ctx_h = jnp.einsum('bqk,bkd->bqd', p, vh,
                           preferred_element_type=jnp.float32)  # [H*BT, S, Dh]
        ctx_h = ctx_h.reshape(H, NT, Dh)
        ctx = jnp.concatenate([ctx_h[h] for h in range(H)], axis=-1)  # [NT, D]

        attn_out = (jnp.dot(ctx.astype(jnp.bfloat16), wo_ref[blk],
                            preferred_element_type=jnp.float32)
                    + bo_ref[blk][None, :])
        x = attn_out + q_in    # residual adds the LayerNorm'd query (as in reference)

        # ----- point-wise feed-forward sub-layer (1x1 convs, no residual) ---
        hf = _layernorm(x, fln_g_ref[blk], fln_b_ref[blk])
        h1 = jnp.maximum(
            jnp.dot(hf.astype(jnp.bfloat16), w1_ref[blk],
                    preferred_element_type=jnp.float32) + b1_ref[blk][None, :],
            0.0)
        x = jnp.dot(h1.astype(jnp.bfloat16), w2_ref[blk],
                    preferred_element_type=jnp.float32) + b2_ref[blk][None, :]

    x = _layernorm(x, lln_g_ref[0], lln_b_ref[0]).reshape(BT, S, D)

    pos_logits = jnp.sum(x * pos_ref[...], axis=-1)   # [BT, S] f32
    neg_logits = jnp.sum(x * neg_ref[...], axis=-1)
    # single lane-contiguous store: [pos | neg]
    out_ref[...] = jnp.concatenate([pos_logits, neg_logits], axis=-1)


def init_params(key, num_products, embedding_dims, sequence_size, num_blocks):
    """Parameters stored in PyTorch layout ([out, in] weight matrices)."""
    D = embedding_dims
    ks = jax.random.split(key, 10)
    prod_emb = jax.random.normal(ks[0], (num_products + 1, D), jnp.float32) * 0.02
    prod_emb = prod_emb.at[0].set(0.0)          # padding_idx=0
    position_emb = jax.random.normal(ks[1], (sequence_size + 1, D), jnp.float32) * 0.02
    position_emb = position_emb.at[0].set(0.0)  # padding_idx=0
    params = dict(
        product_emb=prod_emb,
        position_emb=position_emb,
        aln_g=jnp.ones((num_blocks, D), jnp.float32),
        aln_b=jnp.zeros((num_blocks, D), jnp.float32),
        wqkv=jax.random.normal(ks[2], (num_blocks, 3 * D, D), jnp.float32) * 0.05,
        bqkv=jnp.zeros((num_blocks, 3 * D), jnp.float32),
        wo=jax.random.normal(ks[3], (num_blocks, D, D), jnp.float32) * 0.05,
        bo=jnp.zeros((num_blocks, D), jnp.float32),
        fln_g=jnp.ones((num_blocks, D), jnp.float32),
        fln_b=jnp.zeros((num_blocks, D), jnp.float32),
        w1=jax.random.normal(ks[4], (num_blocks, D, D), jnp.float32) * 0.05,
        b1=jax.random.normal(ks[5], (num_blocks, D), jnp.float32) * 0.01,
        w2=jax.random.normal(ks[6], (num_blocks, D, D), jnp.float32) * 0.05,
        b2=jax.random.normal(ks[7], (num_blocks, D), jnp.float32) * 0.01,
        lln_g=jnp.ones((1, D), jnp.float32),
        lln_b=jnp.zeros((1, D), jnp.float32),
    )
    return params


@functools.partial(jax.jit, static_argnames=("batch_tile",))
def sasrec_forward(params, user_interacts, pos_interacts, neg_interacts,
                   batch_tile=8):
    """Equivalent of SASREC.forward -> (pos_logits, neg_logits), each [B, S]."""
    prod_emb = params['product_emb']
    position_emb = params['position_emb']
    D = prod_emb.shape[1]
    B, S = user_interacts.shape
    assert D % NUM_HEADS == 0

    # --- glue: embedding lookups (data-dependent gathers) stay in plain JAX ---
    interacts_emb = jnp.take(prod_emb, user_interacts, axis=0) * jnp.float32(math.sqrt(D))
    positions = jnp.arange(1, S + 1, dtype=jnp.int32)[None, :]
    mask = (user_interacts != 0).astype(jnp.int32)
    filtered_pos = positions * mask
    positions_emb = jnp.take(position_emb, filtered_pos, axis=0)
    x = (interacts_emb + positions_emb).astype(jnp.float32)   # [B, S, D]
    pos_embs = jnp.take(prod_emb, pos_interacts, axis=0).astype(jnp.float32)
    neg_embs = jnp.take(prod_emb, neg_interacts, axis=0).astype(jnp.float32)

    # Batch tile: multiple of 8 so the packed [BT, 2S] output block keeps a
    # sublane-aligned second-minor dim; pad the batch up to a multiple of it.
    bt = max(8, ((batch_tile + 7) // 8) * 8)
    Bp = ((B + bt - 1) // bt) * bt
    pad = Bp - B
    if pad:
        pad_cfg = ((0, pad), (0, 0), (0, 0))
        x = jnp.pad(x, pad_cfg)
        pos_embs = jnp.pad(pos_embs, pad_cfg)
        neg_embs = jnp.pad(neg_embs, pad_cfg)
    grid = (Bp // bt,)

    # --- host-side weight prep: pre-transpose to [in, out], cast to bf16 ---
    def _t(w):
        return jnp.swapaxes(w, -1, -2).astype(jnp.bfloat16)

    wq = _t(params['wqkv'][:, 0:D, :])         # [NB, D, D]
    wkv = _t(params['wqkv'][:, D:3 * D, :])    # [NB, D, 2D]  fused K/V weight
    bq = params['bqkv'][:, 0:D]
    bkv = params['bqkv'][:, D:3 * D]
    wo = _t(params['wo'])
    w1 = _t(params['w1'])
    w2 = _t(params['w2'])

    kernel = functools.partial(sasrec_kernel,
                               num_blocks=NUM_BLOCKS, num_heads=NUM_HEADS)

    tile_spec = pl.BlockSpec((bt, S, D), lambda b: (b, 0, 0))

    def resident(shape):  # weights: always block 0 -> stay VMEM-resident
        return pl.BlockSpec(shape, lambda b: (0,) * len(shape))

    in_specs = [
        tile_spec,                                                      # x
        resident((NUM_BLOCKS, D)), resident((NUM_BLOCKS, D)),           # aln g/b
        resident((NUM_BLOCKS, D, D)), resident((NUM_BLOCKS, D)),        # wq, bq
        resident((NUM_BLOCKS, D, 2 * D)), resident((NUM_BLOCKS, 2 * D)),  # wkv, bkv
        resident((NUM_BLOCKS, D, D)), resident((NUM_BLOCKS, D)),        # wo, bo
        resident((NUM_BLOCKS, D)), resident((NUM_BLOCKS, D)),           # fln g/b
        resident((NUM_BLOCKS, D, D)), resident((NUM_BLOCKS, D)),        # w1, b1
        resident((NUM_BLOCKS, D, D)), resident((NUM_BLOCKS, D)),        # w2, b2
        resident((1, D)), resident((1, D)),                             # lln g/b
        tile_spec, tile_spec,                                           # pos, neg
    ]
    out_spec = pl.BlockSpec((bt, 2 * S), lambda b: (b, 0))

    # Advisory cost estimate so XLA can overlap the embedding gathers.
    n_tok = Bp * S
    flops = NUM_BLOCKS * (2 * n_tok * 6 * D * D + 4 * Bp * S * S * D)
    transcendentals = (NUM_BLOCKS * Bp * NUM_HEADS * S * S
                       + (2 * NUM_BLOCKS + 1) * n_tok)
    bytes_accessed = (3 * Bp * S * D * 4 + Bp * 2 * S * 4
                      + NUM_BLOCKS * 6 * D * D * 2 + NUM_BLOCKS * 8 * D * 4)

    packed = pl.pallas_call(
        kernel,
        grid=grid,
        out_shape=jax.ShapeDtypeStruct((Bp, 2 * S), jnp.float32),
        in_specs=in_specs,
        out_specs=out_spec,
        compiler_params=pltpu.CompilerParams(
            dimension_semantics=("parallel",),
            vmem_limit_bytes=48 * 1024 * 1024),
        cost_estimate=pl.CostEstimate(flops=flops,
                                      transcendentals=transcendentals,
                                      bytes_accessed=bytes_accessed),
    )(x,
      params['aln_g'], params['aln_b'],
      wq, bq, wkv, bkv, wo, params['bo'],
      params['fln_g'], params['fln_b'],
      w1, params['b1'], w2, params['b2'],
      params['lln_g'], params['lln_b'],
      pos_embs, neg_embs)

    pos_logits = packed[:B, :S]
    neg_logits = packed[:B, S:]
    return pos_logits, neg_logits


if __name__ == "__main__":
    # small shapes consistent with the module
    num_users = 10
    num_products = 20
    embedding_dims = 32
    sequence_size = 8
    batch = 12            # not a multiple of the batch tile -> exercises padding

    key = jax.random.PRNGKey(0)
    k_params, k_seq, k_pos, k_neg = jax.random.split(key, 4)

    params = init_params(k_params, num_products, embedding_dims,
                         sequence_size, NUM_BLOCKS)

    user_interacts = jax.random.randint(
        k_seq, (batch, sequence_size), 0, num_products + 1, dtype=jnp.int32)
    # force some padding (id == 0) to exercise the position/padding mask
    user_interacts = user_interacts.at[:, 0].set(0)
    pos_interacts = jax.random.randint(
        k_pos, (batch, sequence_size), 1, num_products + 1, dtype=jnp.int32)
    neg_interacts = jax.random.randint(
        k_neg, (batch, sequence_size), 1, num_products + 1, dtype=jnp.int32)

    pos_logits, neg_logits = sasrec_forward(
        params, user_interacts, pos_interacts, neg_interacts, batch_tile=8)
    jax.block_until_ready((pos_logits, neg_logits))

    assert pos_logits.shape == (batch, sequence_size)
    assert neg_logits.shape == (batch, sequence_size)
    assert bool(jnp.all(jnp.isfinite(pos_logits)))
    assert bool(jnp.all(jnp.isfinite(neg_logits)))
    print("KERNEL_OK")
</pallas_src>

<mosaic_0001>
module attributes {stable_mosaic.version = 11 : i64} {
  func.func @sasrec_kernel(%arg0: i32, %arg1: memref<8x8x32xf32, #tpu.memory_space<vmem>>, %arg2: memref<2x32xf32, #tpu.memory_space<vmem>>, %arg3: memref<2x32xf32, #tpu.memory_space<vmem>>, %arg4: memref<2x32x32xbf16, #tpu.memory_space<vmem>>, %arg5: memref<2x32xf32, #tpu.memory_space<vmem>>, %arg6: memref<2x32x64xbf16, #tpu.memory_space<vmem>>, %arg7: memref<2x64xf32, #tpu.memory_space<vmem>>, %arg8: memref<2x32x32xbf16, #tpu.memory_space<vmem>>, %arg9: memref<2x32xf32, #tpu.memory_space<vmem>>, %arg10: memref<2x32xf32, #tpu.memory_space<vmem>>, %arg11: memref<2x32xf32, #tpu.memory_space<vmem>>, %arg12: memref<2x32x32xbf16, #tpu.memory_space<vmem>>, %arg13: memref<2x32xf32, #tpu.memory_space<vmem>>, %arg14: memref<2x32x32xbf16, #tpu.memory_space<vmem>>, %arg15: memref<2x32xf32, #tpu.memory_space<vmem>>, %arg16: memref<1x32xf32, #tpu.memory_space<vmem>>, %arg17: memref<1x32xf32, #tpu.memory_space<vmem>>, %arg18: memref<8x8x32xf32, #tpu.memory_space<vmem>>, %arg19: memref<8x8x32xf32, #tpu.memory_space<vmem>>, %arg20: memref<8x16xf32, #tpu.memory_space<vmem>>) attributes {dimension_semantics = [#tpu.dimension_semantics<parallel>], iteration_bounds = array<i64: 2>, scalar_prefetch = 0 : i64, scratch_operands = 0 : i64, tpu.core_type = #tpu.core_type<tc>, window_params = [{transform_indices = @transform_0, window_bounds = array<i64: 8, 8, 32>}, {pipeline_mode = #tpu.pipeline_mode<synchronous>, transform_indices = @transform_1, window_bounds = array<i64: 2, 32>}, {pipeline_mode = #tpu.pipeline_mode<synchronous>, transform_indices = @transform_2, window_bounds = array<i64: 2, 32>}, {pipeline_mode = #tpu.pipeline_mode<synchronous>, transform_indices = @transform_3, window_bounds = array<i64: 2, 32, 32>}, {pipeline_mode = #tpu.pipeline_mode<synchronous>, transform_indices = @transform_4, window_bounds = array<i64: 2, 32>}, {pipeline_mode = #tpu.pipeline_mode<synchronous>, transform_indices = @transform_5, window_bounds = array<i64: 2, 32, 64>}, {pipeline_mode = #tpu.pipeline_mode<synchronous>, transform_indices = @transform_6, window_bounds = array<i64: 2, 64>}, {pipeline_mode = #tpu.pipeline_mode<synchronous>, transform_indices = @transform_7, window_bounds = array<i64: 2, 32, 32>}, {pipeline_mode = #tpu.pipeline_mode<synchronous>, transform_indices = @transform_8, window_bounds = array<i64: 2, 32>}, {pipeline_mode = #tpu.pipeline_mode<synchronous>, transform_indices = @transform_9, window_bounds = array<i64: 2, 32>}, {pipeline_mode = #tpu.pipeline_mode<synchronous>, transform_indices = @transform_10, window_bounds = array<i64: 2, 32>}, {pipeline_mode = #tpu.pipeline_mode<synchronous>, transform_indices = @transform_11, window_bounds = array<i64: 2, 32, 32>}, {pipeline_mode = #tpu.pipeline_mode<synchronous>, transform_indices = @transform_12, window_bounds = array<i64: 2, 32>}, {pipeline_mode = #tpu.pipeline_mode<synchronous>, transform_indices = @transform_13, window_bounds = array<i64: 2, 32, 32>}, {pipeline_mode = #tpu.pipeline_mode<synchronous>, transform_indices = @transform_14, window_bounds = array<i64: 2, 32>}, {pipeline_mode = #tpu.pipeline_mode<synchronous>, transform_indices = @transform_15, window_bounds = array<i64: 1, 32>}, {pipeline_mode = #tpu.pipeline_mode<synchronous>, transform_indices = @transform_16, window_bounds = array<i64: 1, 32>}, {transform_indices = @transform_17, window_bounds = array<i64: 8, 8, 32>}, {transform_indices = @transform_18, window_bounds = array<i64: 8, 8, 32>}, {transform_indices = @transform_19, window_bounds = array<i64: 8, 16>}]} {
    %0 = tpu.iota {dimensions = array<i32: 0>} : vector<8x8xi32>
    %1 = tpu.iota {dimensions = array<i32: 1>} : vector<8x8xi32>
    %2 = arith.cmpi sgt, %1, %0 : vector<8x8xi32>
    %cst = arith.constant -1.000000e+30 : f32
    %cst_0 = arith.constant 0.000000e+00 : f32
    %3 = vector.broadcast %cst : f32 to vector<8x8xf32>
    %4 = vector.broadcast %cst_0 : f32 to vector<8x8xf32>
    %5 = arith.select %2, %3, %4 : vector<8x8xi1>, vector<8x8xf32>
    %6 = vector.shape_cast %5 : vector<8x8xf32> to vector<1x8x8xf32>
    %c0 = arith.constant 0 : index
    %c0_1 = arith.constant 0 : index
    %c0_2 = arith.constant 0 : index
    %7 = vector.load %arg1[%c0, %c0_1, %c0_2] : memref<8x8x32xf32, #tpu.memory_space<vmem>>, vector<8x8x32xf32>
    %8 = vector.shape_cast %7 : vector<8x8x32xf32> to vector<64x32xf32>
    %c0_3 = arith.constant 0 : index
    %c0_4 = arith.constant 0 : index
    %9 = vector.load %arg2[%c0_3, %c0_4] : memref<2x32xf32, #tpu.memory_space<vmem>>, vector<1x32xf32>
    %10 = vector.shape_cast %9 : vector<1x32xf32> to vector<32xf32>
    %c0_5 = arith.constant 0 : index
    %c0_6 = arith.constant 0 : index
    %11 = vector.load %arg3[%c0_5, %c0_6] : memref<2x32xf32, #tpu.memory_space<vmem>>, vector<1x32xf32>
    %12 = vector.shape_cast %11 : vector<1x32xf32> to vector<32xf32>
    %cst_7 = arith.constant dense<0.000000e+00> : vector<64xf32>
    %13 = vector.multi_reduction <add>, %8, %cst_7 [1] : vector<64x32xf32> to vector<64xf32>
    %14 = vector.shape_cast %13 : vector<64xf32> to vector<64x1xf32>
    %cst_8 = arith.constant 3.200000e+01 : f32
    %15 = vector.broadcast %cst_8 : f32 to vector<64x1xf32>
    %16 = arith.divf %14, %15 : vector<64x1xf32>
    %17 = vector.broadcast %16 : vector<64x1xf32> to vector<64x32xf32>
    %18 = arith.subf %8, %17 : vector<64x32xf32>
    %19 = arith.mulf %18, %18 : vector<64x32xf32>
    %cst_9 = arith.constant dense<0.000000e+00> : vector<64xf32>
    %20 = vector.multi_reduction <add>, %19, %cst_9 [1] : vector<64x32xf32> to vector<64xf32>
    %21 = vector.shape_cast %20 : vector<64xf32> to vector<64x1xf32>
    %cst_10 = arith.constant 3.200000e+01 : f32
    %22 = vector.broadcast %cst_10 : f32 to vector<64x1xf32>
    %23 = arith.divf %21, %22 : vector<64x1xf32>
    %24 = vector.broadcast %16 : vector<64x1xf32> to vector<64x32xf32>
    %25 = arith.subf %8, %24 : vector<64x32xf32>
    %cst_11 = arith.constant 9.99999993E-9 : f32
    %26 = vector.broadcast %cst_11 : f32 to vector<64x1xf32>
    %27 = arith.addf %23, %26 : vector<64x1xf32>
    %28 = math.rsqrt %27 : vector<64x1xf32>
    %29 = vector.broadcast %28 : vector<64x1xf32> to vector<64x32xf32>
    %30 = arith.mulf %25, %29 : vector<64x32xf32>
    %31 = vector.shape_cast %10 : vector<32xf32> to vector<1x32xf32>
    %32 = vector.broadcast %31 : vector<1x32xf32> to vector<64x32xf32>
    %33 = arith.mulf %30, %32 : vector<64x32xf32>
    %34 = vector.shape_cast %12 : vector<32xf32> to vector<1x32xf32>
    %35 = vector.broadcast %34 : vector<1x32xf32> to vector<64x32xf32>
    %36 = arith.addf %33, %35 : vector<64x32xf32>
    %37 = arith.truncf %36 : vector<64x32xf32> to vector<64x32xbf16>
    %c0_12 = arith.constant 0 : index
    %c0_13 = arith.constant 0 : index
    %c0_14 = arith.constant 0 : index
    %38 = vector.load %arg4[%c0_12, %c0_13, %c0_14] : memref<2x32x32xbf16, #tpu.memory_space<vmem>>, vector<1x32x32xbf16>
    %39 = vector.shape_cast %38 : vector<1x32x32xbf16> to vector<32x32xbf16>
    %cst_15 = arith.constant dense<0.000000e+00> : vector<64x32xf32>
    %40 = tpu.matmul %37, %39, %cst_15 {dimension_numbers = #tpu.dot_dimension_numbers<[1], [0], [0], [1], [0, 0, 1, 1], [], []>} : vector<64x32xbf16>, vector<32x32xbf16>, vector<64x32xf32> -> vector<64x32xf32>
    %c0_16 = arith.constant 0 : index
    %c0_17 = arith.constant 0 : index
    %41 = vector.load %arg5[%c0_16, %c0_17] : memref<2x32xf32, #tpu.memory_space<vmem>>, vector<1x32xf32>
    %42 = vector.shape_cast %41 : vector<1x32xf32> to vector<32xf32>
    %43 = vector.shape_cast %42 : vector<32xf32> to vector<1x32xf32>
    %44 = vector.broadcast %43 : vector<1x32xf32> to vector<64x32xf32>
    %45 = arith.addf %40, %44 : vector<64x32xf32>
    %cst_18 = arith.constant 0.353553385 : f32
    %46 = vector.broadcast %cst_18 : f32 to vector<64x32xf32>
    %47 = arith.mulf %45, %46 : vector<64x32xf32>
    %48 = arith.truncf %8 : vector<64x32xf32> to vector<64x32xbf16>
    %c0_19 = arith.constant 0 : index
    %c0_20 = arith.constant 0 : index
    %c0_21 = arith.constant 0 : index
    %49 = vector.load %arg6[%c0_19, %c0_20, %c0_21] : memref<2x32x64xbf16, #tpu.memory_space<vmem>>, vector<1x32x64xbf16>
    %50 = vector.shape_cast %49 : vector<1x32x64xbf16> to vector<32x64xbf16>
    %cst_22 = arith.constant dense<0.000000e+00> : vector<64x64xf32>
    %51 = tpu.matmul %48, %50, %cst_22 {dimension_numbers = #tpu.dot_dimension_numbers<[1], [0], [0], [1], [0, 0, 1, 1], [], []>} : vector<64x32xbf16>, vector<32x64xbf16>, vector<64x64xf32> -> vector<64x64xf32>
    %c0_23 = arith.constant 0 : index
    %c0_24 = arith.constant 0 : index
    %52 = vector.load %arg7[%c0_23, %c0_24] : memref<2x64xf32, #tpu.memory_space<vmem>>, vector<1x64xf32>
    %53 = vector.shape_cast %52 : vector<1x64xf32> to vector<64xf32>
    %54 = vector.shape_cast %53 : vector<64xf32> to vector<1x64xf32>
    %55 = vector.broadcast %54 : vector<1x64xf32> to vector<64x64xf32>
    %56 = arith.addf %51, %55 : vector<64x64xf32>
    %57 = vector.extract_strided_slice %56 {offsets = [0, 0], sizes = [64, 32], strides = [1, 1]} : vector<64x64xf32> to vector<64x32xf32>
    %58 = vector.extract_strided_slice %56 {offsets = [0, 32], sizes = [64, 32], strides = [1, 1]} : vector<64x64xf32> to vector<64x32xf32>
    %59 = vector.extract_strided_slice %47 {offsets = [0, 0], sizes = [64, 8], strides = [1, 1]} : vector<64x32xf32> to vector<64x8xf32>
    %60 = vector.extract_strided_slice %47 {offsets = [0, 8], sizes = [64, 8], strides = [1, 1]} : vector<64x32xf32> to vector<64x8xf32>
    %61 = vector.extract_strided_slice %47 {offsets = [0, 16], sizes = [64, 8], strides = [1, 1]} : vector<64x32xf32> to vector<64x8xf32>
    %62 = vector.extract_strided_slice %47 {offsets = [0, 24], sizes = [64, 8], strides = [1, 1]} : vector<64x32xf32> to vector<64x8xf32>
    %63 = vector.shape_cast %59 : vector<64x8xf32> to vector<1x64x8xf32>
    %64 = vector.shape_cast %60 : vector<64x8xf32> to vector<1x64x8xf32>
    %65 = vector.shape_cast %61 : vector<64x8xf32> to vector<1x64x8xf32>
    %66 = vector.shape_cast %62 : vector<64x8xf32> to vector<1x64x8xf32>
    %67 = tpu.concatenate %63, %64, %65, %66 in 0 : vector<1x64x8xf32>, vector<1x64x8xf32>, vector<1x64x8xf32>, vector<1x64x8xf32> -> vector<4x64x8xf32>
    %68 = vector.shape_cast %67 : vector<4x64x8xf32> to vector<32x8x8xf32>
    %69 = arith.truncf %68 : vector<32x8x8xf32> to vector<32x8x8xbf16>
    %70 = vector.extract_strided_slice %57 {offsets = [0, 0], sizes = [64, 8], strides = [1, 1]} : vector<64x32xf32> to vector<64x8xf32>
    %71 = vector.extract_strided_slice %57 {offsets = [0, 8], sizes = [64, 8], strides = [1, 1]} : vector<64x32xf32> to vector<64x8xf32>
    %72 = vector.extract_strided_slice %57 {offsets = [0, 16], sizes = [64, 8], strides = [1, 1]} : vector<64x32xf32> to vector<64x8xf32>
    %73 = vector.extract_strided_slice %57 {offsets = [0, 24], sizes = [64, 8], strides = [1, 1]} : vector<64x32xf32> to vector<64x8xf32>
    %74 = vector.shape_cast %70 : vector<64x8xf32> to vector<1x64x8xf32>
    %75 = vector.shape_cast %71 : vector<64x8xf32> to vector<1x64x8xf32>
    %76 = vector.shape_cast %72 : vector<64x8xf32> to vector<1x64x8xf32>
    %77 = vector.shape_cast %73 : vector<64x8xf32> to vector<1x64x8xf32>
    %78 = tpu.concatenate %74, %75, %76, %77 in 0 : vector<1x64x8xf32>, vector<1x64x8xf32>, vector<1x64x8xf32>, vector<1x64x8xf32> -> vector<4x64x8xf32>
    %79 = vector.shape_cast %78 : vector<4x64x8xf32> to vector<32x8x8xf32>
    %80 = arith.truncf %79 : vector<32x8x8xf32> to vector<32x8x8xbf16>
    %81 = vector.extract_strided_slice %58 {offsets = [0, 0], sizes = [64, 8], strides = [1, 1]} : vector<64x32xf32> to vector<64x8xf32>
    %82 = vector.extract_strided_slice %58 {offsets = [0, 8], sizes = [64, 8], strides = [1, 1]} : vector<64x32xf32> to vector<64x8xf32>
    %83 = vector.extract_strided_slice %58 {offsets = [0, 16], sizes = [64, 8], strides = [1, 1]} : vector<64x32xf32> to vector<64x8xf32>
    %84 = vector.extract_strided_slice %58 {offsets = [0, 24], sizes = [64, 8], strides = [1, 1]} : vector<64x32xf32> to vector<64x8xf32>
    %85 = vector.shape_cast %81 : vector<64x8xf32> to vector<1x64x8xf32>
    %86 = vector.shape_cast %82 : vector<64x8xf32> to vector<1x64x8xf32>
    %87 = vector.shape_cast %83 : vector<64x8xf32> to vector<1x64x8xf32>
    %88 = vector.shape_cast %84 : vector<64x8xf32> to vector<1x64x8xf32>
    %89 = tpu.concatenate %85, %86, %87, %88 in 0 : vector<1x64x8xf32>, vector<1x64x8xf32>, vector<1x64x8xf32>, vector<1x64x8xf32> -> vector<4x64x8xf32>
    %90 = vector.shape_cast %89 : vector<4x64x8xf32> to vector<32x8x8xf32>
    %91 = arith.truncf %90 : vector<32x8x8xf32> to vector<32x8x8xbf16>
    "tpu.trace_start"() <{level = 10 : i32, message = "bqd,bkd->bqk"}> : () -> ()
    %cst_25 = arith.constant dense<0.000000e+00> : vector<32x8x8xf32>
    %92 = tpu.matmul %69, %80, %cst_25 {dimension_numbers = #tpu.dot_dimension_numbers<[2], [2], [1], [1], [0, 0, 0, 1, 1, 1], [0], [0]>} : vector<32x8x8xbf16>, vector<32x8x8xbf16>, vector<32x8x8xf32> -> vector<32x8x8xf32>
    "tpu.trace_stop"() : () -> ()
    %93 = vector.broadcast %6 : vector<1x8x8xf32> to vector<32x8x8xf32>
    %94 = arith.addf %92, %93 : vector<32x8x8xf32>
    %cst_26 = arith.constant dense<0xFF800000> : vector<32x8xf32>
    %95 = vector.multi_reduction <maximumf>, %94, %cst_26 [2] : vector<32x8x8xf32> to vector<32x8xf32>
    %96 = vector.shape_cast %95 : vector<32x8xf32> to vector<32x8x1xf32>
    %97 = vector.broadcast %96 : vector<32x8x1xf32> to vector<32x8x8xf32>
    %98 = arith.subf %94, %97 : vector<32x8x8xf32>
    %99 = math.exp %98 : vector<32x8x8xf32>
    %cst_27 = arith.constant dense<0.000000e+00> : vector<32x8xf32>
    %100 = vector.multi_reduction <add>, %99, %cst_27 [2] : vector<32x8x8xf32> to vector<32x8xf32>
    %101 = vector.shape_cast %100 : vector<32x8xf32> to vector<32x8x1xf32>
    %102 = tpu.reciprocal %101 {approx = true} : vector<32x8x1xf32> -> vector<32x8x1xf32>
    %103 = vector.broadcast %102 : vector<32x8x1xf32> to vector<32x8x8xf32>
    %104 = arith.mulf %99, %103 : vector<32x8x8xf32>
    %105 = arith.truncf %104 : vector<32x8x8xf32> to vector<32x8x8xbf16>
    "tpu.trace_start"() <{level = 10 : i32, message = "bqk,bkd->bqd"}> : () -> ()
    %cst_28 = arith.constant dense<0.000000e+00> : vector<32x8x8xf32>
    %106 = tpu.matmul %105, %91, %cst_28 {dimension_numbers = #tpu.dot_dimension_numbers<[2], [1], [1], [2], [0, 0, 0, 1, 1, 2], [0], [0]>} : vector<32x8x8xbf16>, vector<32x8x8xbf16>, vector<32x8x8xf32> -> vector<32x8x8xf32>
    "tpu.trace_stop"() : () -> ()
    %107 = vector.shape_cast %106 : vector<32x8x8xf32> to vector<4x64x8xf32>
    %108 = vector.extract_strided_slice %107 {offsets = [0, 0, 0], sizes = [1, 64, 8], strides = [1, 1, 1]} : vector<4x64x8xf32> to vector<1x64x8xf32>
    %109 = vector.shape_cast %108 : vector<1x64x8xf32> to vector<64x8xf32>
    %110 = vector.extract_strided_slice %107 {offsets = [1, 0, 0], sizes = [1, 64, 8], strides = [1, 1, 1]} : vector<4x64x8xf32> to vector<1x64x8xf32>
    %111 = vector.shape_cast %110 : vector<1x64x8xf32> to vector<64x8xf32>
    %112 = vector.extract_strided_slice %107 {offsets = [2, 0, 0], sizes = [1, 64, 8], strides = [1, 1, 1]} : vector<4x64x8xf32> to vector<1x64x8xf32>
    %113 = vector.shape_cast %112 : vector<1x64x8xf32> to vector<64x8xf32>
    %114 = vector.extract_strided_slice %107 {offsets = [3, 0, 0], sizes = [1, 64, 8], strides = [1, 1, 1]} : vector<4x64x8xf32> to vector<1x64x8xf32>
    %115 = vector.shape_cast %114 : vector<1x64x8xf32> to vector<64x8xf32>
    %116 = tpu.concatenate %109, %111, %113, %115 in 1 : vector<64x8xf32>, vector<64x8xf32>, vector<64x8xf32>, vector<64x8xf32> -> vector<64x32xf32>
    %117 = arith.truncf %116 : vector<64x32xf32> to vector<64x32xbf16>
    %c0_29 = arith.constant 0 : index
    %c0_30 = arith.constant 0 : index
    %c0_31 = arith.constant 0 : index
    %118 = vector.load %arg8[%c0_29, %c0_30, %c0_31] : memref<2x32x32xbf16, #tpu.memory_space<vmem>>, vector<1x32x32xbf16>
    %119 = vector.shape_cast %118 : vector<1x32x32xbf16> to vector<32x32xbf16>
    %cst_32 = arith.constant dense<0.000000e+00> : vector<64x32xf32>
    %120 = tpu.matmul %117, %119, %cst_32 {dimension_numbers = #tpu.dot_dimension_numbers<[1], [0], [0], [1], [0, 0, 1, 1], [], []>} : vector<64x32xbf16>, vector<32x32xbf16>, vector<64x32xf32> -> vector<64x32xf32>
    %c0_33 = arith.constant 0 : index
    %c0_34 = arith.constant 0 : index
    %121 = vector.load %arg9[%c0_33, %c0_34] : memref<2x32xf32, #tpu.memory_space<vmem>>, vector<1x32xf32>
    %122 = vector.shape_cast %121 : vector<1x32xf32> to vector<32xf32>
    %123 = vector.shape_cast %122 : vector<32xf32> to vector<1x32xf32>
    %124 = vector.broadcast %123 : vector<1x32xf32> to vector<64x32xf32>
    %125 = arith.addf %120, %124 : vector<64x32xf32>
    %126 = arith.addf %125, %36 : vector<64x32xf32>
    %c0_35 = arith.constant 0 : index
    %c0_36 = arith.constant 0 : index
    %127 = vector.load %arg10[%c0_35, %c0_36] : memref<2x32xf32, #tpu.memory_space<vmem>>, vector<1x32xf32>
    %128 = vector.shape_cast %127 : vector<1x32xf32> to vector<32xf32>
    %c0_37 = arith.constant 0 : index
    %c0_38 = arith.constant 0 : index
    %129 = vector.load %arg11[%c0_37, %c0_38] : memref<2x32xf32, #tpu.memory_space<vmem>>, vector<1x32xf32>
    %130 = vector.shape_cast %129 : vector<1x32xf32> to vector<32xf32>
    %cst_39 = arith.constant dense<0.000000e+00> : vector<64xf32>
    %131 = vector.multi_reduction <add>, %126, %cst_39 [1] : vector<64x32xf32> to vector<64xf32>
    %132 = vector.shape_cast %131 : vector<64xf32> to vector<64x1xf32>
    %cst_40 = arith.constant 3.200000e+01 : f32
    %133 = vector.broadcast %cst_40 : f32 to vector<64x1xf32>
    %134 = arith.divf %132, %133 : vector<64x1xf32>
    %135 = vector.broadcast %134 : vector<64x1xf32> to vector<64x32xf32>
    %136 = arith.subf %126, %135 : vector<64x32xf32>
    %137 = arith.mulf %136, %136 : vector<64x32xf32>
    %cst_41 = arith.constant dense<0.000000e+00> : vector<64xf32>
    %138 = vector.multi_reduction <add>, %137, %cst_41 [1] : vector<64x32xf32> to vector<64xf32>
    %139 = vector.shape_cast %138 : vector<64xf32> to vector<64x1xf32>
    %cst_42 = arith.constant 3.200000e+01 : f32
    %140 = vector.broadcast %cst_42 : f32 to vector<64x1xf32>
    %141 = arith.divf %139, %140 : vector<64x1xf32>
    %142 = vector.broadcast %134 : vector<64x1xf32> to vector<64x32xf32>
    %143 = arith.subf %126, %142 : vector<64x32xf32>
    %cst_43 = arith.constant 9.99999993E-9 : f32
    %144 = vector.broadcast %cst_43 : f32 to vector<64x1xf32>
    %145 = arith.addf %141, %144 : vector<64x1xf32>
    %146 = math.rsqrt %145 : vector<64x1xf32>
    %147 = vector.broadcast %146 : vector<64x1xf32> to vector<64x32xf32>
    %148 = arith.mulf %143, %147 : vector<64x32xf32>
    %149 = vector.shape_cast %128 : vector<32xf32> to vector<1x32xf32>
    %150 = vector.broadcast %149 : vector<1x32xf32> to vector<64x32xf32>
    %151 = arith.mulf %148, %150 : vector<64x32xf32>
    %152 = vector.shape_cast %130 : vector<32xf32> to vector<1x32xf32>
    %153 = vector.broadcast %152 : vector<1x32xf32> to vector<64x32xf32>
    %154 = arith.addf %151, %153 : vector<64x32xf32>
    %155 = arith.truncf %154 : vector<64x32xf32> to vector<64x32xbf16>
    %c0_44 = arith.constant 0 : index
    %c0_45 = arith.constant 0 : index
    %c0_46 = arith.constant 0 : index
    %156 = vector.load %arg12[%c0_44, %c0_45, %c0_46] : memref<2x32x32xbf16, #tpu.memory_space<vmem>>, vector<1x32x32xbf16>
    %157 = vector.shape_cast %156 : vector<1x32x32xbf16> to vector<32x32xbf16>
    %cst_47 = arith.constant dense<0.000000e+00> : vector<64x32xf32>
    %158 = tpu.matmul %155, %157, %cst_47 {dimension_numbers = #tpu.dot_dimension_numbers<[1], [0], [0], [1], [0, 0, 1, 1], [], []>} : vector<64x32xbf16>, vector<32x32xbf16>, vector<64x32xf32> -> vector<64x32xf32>
    %c0_48 = arith.constant 0 : index
    %c0_49 = arith.constant 0 : index
    %159 = vector.load %arg13[%c0_48, %c0_49] : memref<2x32xf32, #tpu.memory_space<vmem>>, vector<1x32xf32>
    %160 = vector.shape_cast %159 : vector<1x32xf32> to vector<32xf32>
    %161 = vector.shape_cast %160 : vector<32xf32> to vector<1x32xf32>
    %162 = vector.broadcast %161 : vector<1x32xf32> to vector<64x32xf32>
    %163 = arith.addf %158, %162 : vector<64x32xf32>
    %cst_50 = arith.constant 0.000000e+00 : f32
    %164 = vector.broadcast %cst_50 : f32 to vector<64x32xf32>
    %165 = arith.maximumf %163, %164 : vector<64x32xf32>
    %166 = arith.truncf %165 : vector<64x32xf32> to vector<64x32xbf16>
    %c0_51 = arith.constant 0 : index
    %c0_52 = arith.constant 0 : index
    %c0_53 = arith.constant 0 : index
    %167 = vector.load %arg14[%c0_51, %c0_52, %c0_53] : memref<2x32x32xbf16, #tpu.memory_space<vmem>>, vector<1x32x32xbf16>
    %168 = vector.shape_cast %167 : vector<1x32x32xbf16> to vector<32x32xbf16>
    %cst_54 = arith.constant dense<0.000000e+00> : vector<64x32xf32>
    %169 = tpu.matmul %166, %168, %cst_54 {dimension_numbers = #tpu.dot_dimension_numbers<[1], [0], [0], [1], [0, 0, 1, 1], [], []>} : vector<64x32xbf16>, vector<32x32xbf16>, vector<64x32xf32> -> vector<64x32xf32>
    %c0_55 = arith.constant 0 : index
    %c0_56 = arith.constant 0 : index
    %170 = vector.load %arg15[%c0_55, %c0_56] : memref<2x32xf32, #tpu.memory_space<vmem>>, vector<1x32xf32>
    %171 = vector.shape_cast %170 : vector<1x32xf32> to vector<32xf32>
    %172 = vector.shape_cast %171 : vector<32xf32> to vector<1x32xf32>
    %173 = vector.broadcast %172 : vector<1x32xf32> to vector<64x32xf32>
    %174 = arith.addf %169, %173 : vector<64x32xf32>
    %c1 = arith.constant 1 : index
    %c0_57 = arith.constant 0 : index
    %175 = vector.load %arg2[%c1, %c0_57] : memref<2x32xf32, #tpu.memory_space<vmem>>, vector<1x32xf32>
    %176 = vector.shape_cast %175 : vector<1x32xf32> to vector<32xf32>
    %c1_58 = arith.constant 1 : index
    %c0_59 = arith.constant 0 : index
    %177 = vector.load %arg3[%c1_58, %c0_59] : memref<2x32xf32, #tpu.memory_space<vmem>>, vector<1x32xf32>
    %178 = vector.shape_cast %177 : vector<1x32xf32> to vector<32xf32>
    %cst_60 = arith.constant dense<0.000000e+00> : vector<64xf32>
    %179 = vector.multi_reduction <add>, %174, %cst_60 [1] : vector<64x32xf32> to vector<64xf32>
    %180 = vector.shape_cast %179 : vector<64xf32> to vector<64x1xf32>
    %cst_61 = arith.constant 3.200000e+01 : f32
    %181 = vector.broadcast %cst_61 : f32 to vector<64x1xf32>
    %182 = arith.divf %180, %181 : vector<64x1xf32>
    %183 = vector.broadcast %182 : vector<64x1xf32> to vector<64x32xf32>
    %184 = arith.subf %174, %183 : vector<64x32xf32>
    %185 = arith.mulf %184, %184 : vector<64x32xf32>
    %cst_62 = arith.constant dense<0.000000e+00> : vector<64xf32>
    %186 = vector.multi_reduction <add>, %185, %cst_62 [1] : vector<64x32xf32> to vector<64xf32>
    %187 = vector.shape_cast %186 : vector<64xf32> to vector<64x1xf32>
    %cst_63 = arith.constant 3.200000e+01 : f32
    %188 = vector.broadcast %cst_63 : f32 to vector<64x1xf32>
    %189 = arith.divf %187, %188 : vector<64x1xf32>
    %190 = vector.broadcast %182 : vector<64x1xf32> to vector<64x32xf32>
    %191 = arith.subf %174, %190 : vector<64x32xf32>
    %cst_64 = arith.constant 9.99999993E-9 : f32
    %192 = vector.broadcast %cst_64 : f32 to vector<64x1xf32>
    %193 = arith.addf %189, %192 : vector<64x1xf32>
    %194 = math.rsqrt %193 : vector<64x1xf32>
    %195 = vector.broadcast %194 : vector<64x1xf32> to vector<64x32xf32>
    %196 = arith.mulf %191, %195 : vector<64x32xf32>
    %197 = vector.shape_cast %176 : vector<32xf32> to vector<1x32xf32>
    %198 = vector.broadcast %197 : vector<1x32xf32> to vector<64x32xf32>
    %199 = arith.mulf %196, %198 : vector<64x32xf32>
    %200 = vector.shape_cast %178 : vector<32xf32> to vector<1x32xf32>
    %201 = vector.broadcast %200 : vector<1x32xf32> to vector<64x32xf32>
    %202 = arith.addf %199, %201 : vector<64x32xf32>
    %203 = arith.truncf %202 : vector<64x32xf32> to vector<64x32xbf16>
    %c1_65 = arith.constant 1 : index
    %c0_66 = arith.constant 0 : index
    %c0_67 = arith.constant 0 : index
    %204 = vector.load %arg4[%c1_65, %c0_66, %c0_67] : memref<2x32x32xbf16, #tpu.memory_space<vmem>>, vector<1x32x32xbf16>
    %205 = vector.shape_cast %204 : vector<1x32x32xbf16> to vector<32x32xbf16>
    %cst_68 = arith.constant dense<0.000000e+00> : vector<64x32xf32>
    %206 = tpu.matmul %203, %205, %cst_68 {dimension_numbers = #tpu.dot_dimension_numbers<[1], [0], [0], [1], [0, 0, 1, 1], [], []>} : vector<64x32xbf16>, vector<32x32xbf16>, vector<64x32xf32> -> vector<64x32xf32>
    %c1_69 = arith.constant 1 : index
    %c0_70 = arith.constant 0 : index
    %207 = vector.load %arg5[%c1_69, %c0_70] : memref<2x32xf32, #tpu.memory_space<vmem>>, vector<1x32xf32>
    %208 = vector.shape_cast %207 : vector<1x32xf32> to vector<32xf32>
    %209 = vector.shape_cast %208 : vector<32xf32> to vector<1x32xf32>
    %210 = vector.broadcast %209 : vector<1x32xf32> to vector<64x32xf32>
    %211 = arith.addf %206, %210 : vector<64x32xf32>
    %cst_71 = arith.constant 0.353553385 : f32
    %212 = vector.broadcast %cst_71 : f32 to vector<64x32xf32>
    %213 = arith.mulf %211, %212 : vector<64x32xf32>
    %214 = arith.truncf %174 : vector<64x32xf32> to vector<64x32xbf16>
    %c1_72 = arith.constant 1 : index
    %c0_73 = arith.constant 0 : index
    %c0_74 = arith.constant 0 : index
    %215 = vector.load %arg6[%c1_72, %c0_73, %c0_74] : memref<2x32x64xbf16, #tpu.memory_space<vmem>>, vector<1x32x64xbf16>
    %216 = vector.shape_cast %215 : vector<1x32x64xbf16> to vector<32x64xbf16>
    %cst_75 = arith.constant dense<0.000000e+00> : vector<64x64xf32>
    %217 = tpu.matmul %214, %216, %cst_75 {dimension_numbers = #tpu.dot_dimension_numbers<[1], [0], [0], [1], [0, 0, 1, 1], [], []>} : vector<64x32xbf16>, vector<32x64xbf16>, vector<64x64xf32> -> vector<64x64xf32>
    %c1_76 = arith.constant 1 : index
    %c0_77 = arith.constant 0 : index
    %218 = vector.load %arg7[%c1_76, %c0_77] : memref<2x64xf32, #tpu.memory_space<vmem>>, vector<1x64xf32>
    %219 = vector.shape_cast %218 : vector<1x64xf32> to vector<64xf32>
    %220 = vector.shape_cast %219 : vector<64xf32> to vector<1x64xf32>
    %221 = vector.broadcast %220 : vector<1x64xf32> to vector<64x64xf32>
    %222 = arith.addf %217, %221 : vector<64x64xf32>
    %223 = vector.extract_strided_slice %222 {offsets = [0, 0], sizes = [64, 32], strides = [1, 1]} : vector<64x64xf32> to vector<64x32xf32>
    %224 = vector.extract_strided_slice %222 {offsets = [0, 32], sizes = [64, 32], strides = [1, 1]} : vector<64x64xf32> to vector<64x32xf32>
    %225 = vector.extract_strided_slice %213 {offsets = [0, 0], sizes = [64, 8], strides = [1, 1]} : vector<64x32xf32> to vector<64x8xf32>
    %226 = vector.extract_strided_slice %213 {offsets = [0, 8], sizes = [64, 8], strides = [1, 1]} : vector<64x32xf32> to vector<64x8xf32>
    %227 = vector.extract_strided_slice %213 {offsets = [0, 16], sizes = [64, 8], strides = [1, 1]} : vector<64x32xf32> to vector<64x8xf32>
    %228 = vector.extract_strided_slice %213 {offsets = [0, 24], sizes = [64, 8], strides = [1, 1]} : vector<64x32xf32> to vector<64x8xf32>
    %229 = vector.shape_cast %225 : vector<64x8xf32> to vector<1x64x8xf32>
    %230 = vector.shape_cast %226 : vector<64x8xf32> to vector<1x64x8xf32>
    %231 = vector.shape_cast %227 : vector<64x8xf32> to vector<1x64x8xf32>
    %232 = vector.shape_cast %228 : vector<64x8xf32> to vector<1x64x8xf32>
    %233 = tpu.concatenate %229, %230, %231, %232 in 0 : vector<1x64x8xf32>, vector<1x64x8xf32>, vector<1x64x8xf32>, vector<1x64x8xf32> -> vector<4x64x8xf32>
    %234 = vector.shape_cast %233 : vector<4x64x8xf32> to vector<32x8x8xf32>
    %235 = arith.truncf %234 : vector<32x8x8xf32> to vector<32x8x8xbf16>
    %236 = vector.extract_strided_slice %223 {offsets = [0, 0], sizes = [64, 8], strides = [1, 1]} : vector<64x32xf32> to vector<64x8xf32>
    %237 = vector.extract_strided_slice %223 {offsets = [0, 8], sizes = [64, 8], strides = [1, 1]} : vector<64x32xf32> to vector<64x8xf32>
    %238 = vector.extract_strided_slice %223 {offsets = [0, 16], sizes = [64, 8], strides = [1, 1]} : vector<64x32xf32> to vector<64x8xf32>
    %239 = vector.extract_strided_slice %223 {offsets = [0, 24], sizes = [64, 8], strides = [1, 1]} : vector<64x32xf32> to vector<64x8xf32>
    %240 = vector.shape_cast %236 : vector<64x8xf32> to vector<1x64x8xf32>
    %241 = vector.shape_cast %237 : vector<64x8xf32> to vector<1x64x8xf32>
    %242 = vector.shape_cast %238 : vector<64x8xf32> to vector<1x64x8xf32>
    %243 = vector.shape_cast %239 : vector<64x8xf32> to vector<1x64x8xf32>
    %244 = tpu.concatenate %240, %241, %242, %243 in 0 : vector<1x64x8xf32>, vector<1x64x8xf32>, vector<1x64x8xf32>, vector<1x64x8xf32> -> vector<4x64x8xf32>
    %245 = vector.shape_cast %244 : vector<4x64x8xf32> to vector<32x8x8xf32>
    %246 = arith.truncf %245 : vector<32x8x8xf32> to vector<32x8x8xbf16>
    %247 = vector.extract_strided_slice %224 {offsets = [0, 0], sizes = [64, 8], strides = [1, 1]} : vector<64x32xf32> to vector<64x8xf32>
    %248 = vector.extract_strided_slice %224 {offsets = [0, 8], sizes = [64, 8], strides = [1, 1]} : vector<64x32xf32> to vector<64x8xf32>
    %249 = vector.extract_strided_slice %224 {offsets = [0, 16], sizes = [64, 8], strides = [1, 1]} : vector<64x32xf32> to vector<64x8xf32>
    %250 = vector.extract_strided_slice %224 {offsets = [0, 24], sizes = [64, 8], strides = [1, 1]} : vector<64x32xf32> to vector<64x8xf32>
    %251 = vector.shape_cast %247 : vector<64x8xf32> to vector<1x64x8xf32>
    %252 = vector.shape_cast %248 : vector<64x8xf32> to vector<1x64x8xf32>
    %253 = vector.shape_cast %249 : vector<64x8xf32> to vector<1x64x8xf32>
    %254 = vector.shape_cast %250 : vector<64x8xf32> to vector<1x64x8xf32>
    %255 = tpu.concatenate %251, %252, %253, %254 in 0 : vector<1x64x8xf32>, vector<1x64x8xf32>, vector<1x64x8xf32>, vector<1x64x8xf32> -> vector<4x64x8xf32>
    %256 = vector.shape_cast %255 : vector<4x64x8xf32> to vector<32x8x8xf32>
    %257 = arith.truncf %256 : vector<32x8x8xf32> to vector<32x8x8xbf16>
    "tpu.trace_start"() <{level = 10 : i32, message = "bqd,bkd->bqk"}> : () -> ()
    %cst_78 = arith.constant dense<0.000000e+00> : vector<32x8x8xf32>
    %258 = tpu.matmul %235, %246, %cst_78 {dimension_numbers = #tpu.dot_dimension_numbers<[2], [2], [1], [1], [0, 0, 0, 1, 1, 1], [0], [0]>} : vector<32x8x8xbf16>, vector<32x8x8xbf16>, vector<32x8x8xf32> -> vector<32x8x8xf32>
    "tpu.trace_stop"() : () -> ()
    %259 = vector.broadcast %6 : vector<1x8x8xf32> to vector<32x8x8xf32>
    %260 = arith.addf %258, %259 : vector<32x8x8xf32>
    %cst_79 = arith.constant dense<0xFF800000> : vector<32x8xf32>
    %261 = vector.multi_reduction <maximumf>, %260, %cst_79 [2] : vector<32x8x8xf32> to vector<32x8xf32>
    %262 = vector.shape_cast %261 : vector<32x8xf32> to vector<32x8x1xf32>
    %263 = vector.broadcast %262 : vector<32x8x1xf32> to vector<32x8x8xf32>
    %264 = arith.subf %260, %263 : vector<32x8x8xf32>
    %265 = math.exp %264 : vector<32x8x8xf32>
    %cst_80 = arith.constant dense<0.000000e+00> : vector<32x8xf32>
    %266 = vector.multi_reduction <add>, %265, %cst_80 [2] : vector<32x8x8xf32> to vector<32x8xf32>
    %267 = vector.shape_cast %266 : vector<32x8xf32> to vector<32x8x1xf32>
    %268 = tpu.reciprocal %267 {approx = true} : vector<32x8x1xf32> -> vector<32x8x1xf32>
    %269 = vector.broadcast %268 : vector<32x8x1xf32> to vector<32x8x8xf32>
    %270 = arith.mulf %265, %269 : vector<32x8x8xf32>
    %271 = arith.truncf %270 : vector<32x8x8xf32> to vector<32x8x8xbf16>
    "tpu.trace_start"() <{level = 10 : i32, message = "bqk,bkd->bqd"}> : () -> ()
    %cst_81 = arith.constant dense<0.000000e+00> : vector<32x8x8xf32>
    %272 = tpu.matmul %271, %257, %cst_81 {dimension_numbers = #tpu.dot_dimension_numbers<[2], [1], [1], [2], [0, 0, 0, 1, 1, 2], [0], [0]>} : vector<32x8x8xbf16>, vector<32x8x8xbf16>, vector<32x8x8xf32> -> vector<32x8x8xf32>
    "tpu.trace_stop"() : () -> ()
    %273 = vector.shape_cast %272 : vector<32x8x8xf32> to vector<4x64x8xf32>
    %274 = vector.extract_strided_slice %273 {offsets = [0, 0, 0], sizes = [1, 64, 8], strides = [1, 1, 1]} : vector<4x64x8xf32> to vector<1x64x8xf32>
    %275 = vector.shape_cast %274 : vector<1x64x8xf32> to vector<64x8xf32>
    %276 = vector.extract_strided_slice %273 {offsets = [1, 0, 0], sizes = [1, 64, 8], strides = [1, 1, 1]} : vector<4x64x8xf32> to vector<1x64x8xf32>
    %277 = vector.shape_cast %276 : vector<1x64x8xf32> to vector<64x8xf32>
    %278 = vector.extract_strided_slice %273 {offsets = [2, 0, 0], sizes = [1, 64, 8], strides = [1, 1, 1]} : vector<4x64x8xf32> to vector<1x64x8xf32>
    %279 = vector.shape_cast %278 : vector<1x64x8xf32> to vector<64x8xf32>
    %280 = vector.extract_strided_slice %273 {offsets = [3, 0, 0], sizes = [1, 64, 8], strides = [1, 1, 1]} : vector<4x64x8xf32> to vector<1x64x8xf32>
    %281 = vector.shape_cast %280 : vector<1x64x8xf32> to vector<64x8xf32>
    %282 = tpu.concatenate %275, %277, %279, %281 in 1 : vector<64x8xf32>, vector<64x8xf32>, vector<64x8xf32>, vector<64x8xf32> -> vector<64x32xf32>
    %283 = arith.truncf %282 : vector<64x32xf32> to vector<64x32xbf16>
    %c1_82 = arith.constant 1 : index
    %c0_83 = arith.constant 0 : index
    %c0_84 = arith.constant 0 : index
    %284 = vector.load %arg8[%c1_82, %c0_83, %c0_84] : memref<2x32x32xbf16, #tpu.memory_space<vmem>>, vector<1x32x32xbf16>
    %285 = vector.shape_cast %284 : vector<1x32x32xbf16> to vector<32x32xbf16>
    %cst_85 = arith.constant dense<0.000000e+00> : vector<64x32xf32>
    %286 = tpu.matmul %283, %285, %cst_85 {dimension_numbers = #tpu.dot_dimension_numbers<[1], [0], [0], [1], [0, 0, 1, 1], [], []>} : vector<64x32xbf16>, vector<32x32xbf16>, vector<64x32xf32> -> vector<64x32xf32>
    %c1_86 = arith.constant 1 : index
    %c0_87 = arith.constant 0 : index
    %287 = vector.load %arg9[%c1_86, %c0_87] : memref<2x32xf32, #tpu.memory_space<vmem>>, vector<1x32xf32>
    %288 = vector.shape_cast %287 : vector<1x32xf32> to vector<32xf32>
    %289 = vector.shape_cast %288 : vector<32xf32> to vector<1x32xf32>
    %290 = vector.broadcast %289 : vector<1x32xf32> to vector<64x32xf32>
    %291 = arith.addf %286, %290 : vector<64x32xf32>
    %292 = arith.addf %291, %202 : vector<64x32xf32>
    %c1_88 = arith.constant 1 : index
    %c0_89 = arith.constant 0 : index
    %293 = vector.load %arg10[%c1_88, %c0_89] : memref<2x32xf32, #tpu.memory_space<vmem>>, vector<1x32xf32>
    %294 = vector.shape_cast %293 : vector<1x32xf32> to vector<32xf32>
    %c1_90 = arith.constant 1 : index
    %c0_91 = arith.constant 0 : index
    %295 = vector.load %arg11[%c1_90, %c0_91] : memref<2x32xf32, #tpu.memory_space<vmem>>, vector<1x32xf32>
    %296 = vector.shape_cast %295 : vector<1x32xf32> to vector<32xf32>
    %cst_92 = arith.constant dense<0.000000e+00> : vector<64xf32>
    %297 = vector.multi_reduction <add>, %292, %cst_92 [1] : vector<64x32xf32> to vector<64xf32>
    %298 = vector.shape_cast %297 : vector<64xf32> to vector<64x1xf32>
    %cst_93 = arith.constant 3.200000e+01 : f32
    %299 = vector.broadcast %cst_93 : f32 to vector<64x1xf32>
    %300 = arith.divf %298, %299 : vector<64x1xf32>
    %301 = vector.broadcast %300 : vector<64x1xf32> to vector<64x32xf32>
    %302 = arith.subf %292, %301 : vector<64x32xf32>
    %303 = arith.mulf %302, %302 : vector<64x32xf32>
    %cst_94 = arith.constant dense<0.000000e+00> : vector<64xf32>
    %304 = vector.multi_reduction <add>, %303, %cst_94 [1] : vector<64x32xf32> to vector<64xf32>
    %305 = vector.shape_cast %304 : vector<64xf32> to vector<64x1xf32>
    %cst_95 = arith.constant 3.200000e+01 : f32
    %306 = vector.broadcast %cst_95 : f32 to vector<64x1xf32>
    %307 = arith.divf %305, %306 : vector<64x1xf32>
    %308 = vector.broadcast %300 : vector<64x1xf32> to vector<64x32xf32>
    %309 = arith.subf %292, %308 : vector<64x32xf32>
    %cst_96 = arith.constant 9.99999993E-9 : f32
    %310 = vector.broadcast %cst_96 : f32 to vector<64x1xf32>
    %311 = arith.addf %307, %310 : vector<64x1xf32>
    %312 = math.rsqrt %311 : vector<64x1xf32>
    %313 = vector.broadcast %312 : vector<64x1xf32> to vector<64x32xf32>
    %314 = arith.mulf %309, %313 : vector<64x32xf32>
    %315 = vector.shape_cast %294 : vector<32xf32> to vector<1x32xf32>
    %316 = vector.broadcast %315 : vector<1x32xf32> to vector<64x32xf32>
    %317 = arith.mulf %314, %316 : vector<64x32xf32>
    %318 = vector.shape_cast %296 : vector<32xf32> to vector<1x32xf32>
    %319 = vector.broadcast %318 : vector<1x32xf32> to vector<64x32xf32>
    %320 = arith.addf %317, %319 : vector<64x32xf32>
    %321 = arith.truncf %320 : vector<64x32xf32> to vector<64x32xbf16>
    %c1_97 = arith.constant 1 : index
    %c0_98 = arith.constant 0 : index
    %c0_99 = arith.constant 0 : index
    %322 = vector.load %arg12[%c1_97, %c0_98, %c0_99] : memref<2x32x32xbf16, #tpu.memory_space<vmem>>, vector<1x32x32xbf16>
    %323 = vector.shape_cast %322 : vector<1x32x32xbf16> to vector<32x32xbf16>
    %cst_100 = arith.constant dense<0.000000e+00> : vector<64x32xf32>
    %324 = tpu.matmul %321, %323, %cst_100 {dimension_numbers = #tpu.dot_dimension_numbers<[1], [0], [0], [1], [0, 0, 1, 1], [], []>} : vector<64x32xbf16>, vector<32x32xbf16>, vector<64x32xf32> -> vector<64x32xf32>
    %c1_101 = arith.constant 1 : index
    %c0_102 = arith.constant 0 : index
    %325 = vector.load %arg13[%c1_101, %c0_102] : memref<2x32xf32, #tpu.memory_space<vmem>>, vector<1x32xf32>
    %326 = vector.shape_cast %325 : vector<1x32xf32> to vector<32xf32>
    %327 = vector.shape_cast %326 : vector<32xf32> to vector<1x32xf32>
    %328 = vector.broadcast %327 : vector<1x32xf32> to vector<64x32xf32>
    %329 = arith.addf %324, %328 : vector<64x32xf32>
    %cst_103 = arith.constant 0.000000e+00 : f32
    %330 = vector.broadcast %cst_103 : f32 to vector<64x32xf32>
    %331 = arith.maximumf %329, %330 : vector<64x32xf32>
    %332 = arith.truncf %331 : vector<64x32xf32> to vector<64x32xbf16>
    %c1_104 = arith.constant 1 : index
    %c0_105 = arith.constant 0 : index
    %c0_106 = arith.constant 0 : index
    %333 = vector.load %arg14[%c1_104, %c0_105, %c0_106] : memref<2x32x32xbf16, #tpu.memory_space<vmem>>, vector<1x32x32xbf16>
    %334 = vector.shape_cast %333 : vector<1x32x32xbf16> to vector<32x32xbf16>
    %cst_107 = arith.constant dense<0.000000e+00> : vector<64x32xf32>
    %335 = tpu.matmul %332, %334, %cst_107 {dimension_numbers = #tpu.dot_dimension_numbers<[1], [0], [0], [1], [0, 0, 1, 1], [], []>} : vector<64x32xbf16>, vector<32x32xbf16>, vector<64x32xf32> -> vector<64x32xf32>
    %c1_108 = arith.constant 1 : index
    %c0_109 = arith.constant 0 : index
    %336 = vector.load %arg15[%c1_108, %c0_109] : memref<2x32xf32, #tpu.memory_space<vmem>>, vector<1x32xf32>
    %337 = vector.shape_cast %336 : vector<1x32xf32> to vector<32xf32>
    %338 = vector.shape_cast %337 : vector<32xf32> to vector<1x32xf32>
    %339 = vector.broadcast %338 : vector<1x32xf32> to vector<64x32xf32>
    %340 = arith.addf %335, %339 : vector<64x32xf32>
    %c0_110 = arith.constant 0 : index
    %c0_111 = arith.constant 0 : index
    %341 = vector.load %arg16[%c0_110, %c0_111] : memref<1x32xf32, #tpu.memory_space<vmem>>, vector<1x32xf32>
    %342 = vector.shape_cast %341 : vector<1x32xf32> to vector<32xf32>
    %c0_112 = arith.constant 0 : index
    %c0_113 = arith.constant 0 : index
    %343 = vector.load %arg17[%c0_112, %c0_113] : memref<1x32xf32, #tpu.memory_space<vmem>>, vector<1x32xf32>
    %344 = vector.shape_cast %343 : vector<1x32xf32> to vector<32xf32>
    %cst_114 = arith.constant dense<0.000000e+00> : vector<64xf32>
    %345 = vector.multi_reduction <add>, %340, %cst_114 [1] : vector<64x32xf32> to vector<64xf32>
    %346 = vector.shape_cast %345 : vector<64xf32> to vector<64x1xf32>
    %cst_115 = arith.constant 3.200000e+01 : f32
    %347 = vector.broadcast %cst_115 : f32 to vector<64x1xf32>
    %348 = arith.divf %346, %347 : vector<64x1xf32>
    %349 = vector.broadcast %348 : vector<64x1xf32> to vector<64x32xf32>
    %350 = arith.subf %340, %349 : vector<64x32xf32>
    %351 = arith.mulf %350, %350 : vector<64x32xf32>
    %cst_116 = arith.constant dense<0.000000e+00> : vector<64xf32>
    %352 = vector.multi_reduction <add>, %351, %cst_116 [1] : vector<64x32xf32> to vector<64xf32>
    %353 = vector.shape_cast %352 : vector<64xf32> to vector<64x1xf32>
    %cst_117 = arith.constant 3.200000e+01 : f32
    %354 = vector.broadcast %cst_117 : f32 to vector<64x1xf32>
    %355 = arith.divf %353, %354 : vector<64x1xf32>
    %356 = vector.broadcast %348 : vector<64x1xf32> to vector<64x32xf32>
    %357 = arith.subf %340, %356 : vector<64x32xf32>
    %cst_118 = arith.constant 9.99999993E-9 : f32
    %358 = vector.broadcast %cst_118 : f32 to vector<64x1xf32>
    %359 = arith.addf %355, %358 : vector<64x1xf32>
    %360 = math.rsqrt %359 : vector<64x1xf32>
    %361 = vector.broadcast %360 : vector<64x1xf32> to vector<64x32xf32>
    %362 = arith.mulf %357, %361 : vector<64x32xf32>
    %363 = vector.shape_cast %342 : vector<32xf32> to vector<1x32xf32>
    %364 = vector.broadcast %363 : vector<1x32xf32> to vector<64x32xf32>
    %365 = arith.mulf %362, %364 : vector<64x32xf32>
    %366 = vector.shape_cast %344 : vector<32xf32> to vector<1x32xf32>
    %367 = vector.broadcast %366 : vector<1x32xf32> to vector<64x32xf32>
    %368 = arith.addf %365, %367 : vector<64x32xf32>
    %369 = vector.shape_cast %368 : vector<64x32xf32> to vector<8x8x32xf32>
    %c0_119 = arith.constant 0 : index
    %c0_120 = arith.constant 0 : index
    %c0_121 = arith.constant 0 : index
    %370 = vector.load %arg18[%c0_119, %c0_120, %c0_121] : memref<8x8x32xf32, #tpu.memory_space<vmem>>, vector<8x8x32xf32>
    %371 = arith.mulf %369, %370 : vector<8x8x32xf32>
    %cst_122 = arith.constant dense<0.000000e+00> : vector<8x8xf32>
    %372 = vector.multi_reduction <add>, %371, %cst_122 [2] : vector<8x8x32xf32> to vector<8x8xf32>
    %c0_123 = arith.constant 0 : index
    %c0_124 = arith.constant 0 : index
    %c0_125 = arith.constant 0 : index
    %373 = vector.load %arg19[%c0_123, %c0_124, %c0_125] : memref<8x8x32xf32, #tpu.memory_space<vmem>>, vector<8x8x32xf32>
    %374 = arith.mulf %369, %373 : vector<8x8x32xf32>
    %cst_126 = arith.constant dense<0.000000e+00> : vector<8x8xf32>
    %375 = vector.multi_reduction <add>, %374, %cst_126 [2] : vector<8x8x32xf32> to vector<8x8xf32>
    %376 = tpu.concatenate %372, %375 in 1 : vector<8x8xf32>, vector<8x8xf32> -> vector<8x16xf32>
    %c0_127 = arith.constant 0 : index
    %c0_128 = arith.constant 0 : index
    %377 = vector.load %arg20[%c0_127, %c0_128] : memref<8x16xf32, #tpu.memory_space<vmem>>, vector<8x16xf32>
    tpu.vector_store %arg20[%c0_127, %c0_128], %376 {strides = array<i32>} : memref<8x16xf32, #tpu.memory_space<vmem>>, vector<8x16xf32>,
    return
  }
  func.func @transform_0(%arg0: i32) -> (i32, i32, i32) {
    %c0_i32 = arith.constant 0 : i32
    %c0_i32_0 = arith.constant 0 : i32
    %c0_i32_1 = arith.constant 0 : i32
    return %arg0, %c0_i32, %c0_i32_0 : i32, i32, i32
  }
  func.func @transform_1(%arg0: i32) -> (i32, i32) {
    %c0_i32 = arith.constant 0 : i32
    %c0_i32_0 = arith.constant 0 : i32
    %c0_i32_1 = arith.constant 0 : i32
    return %c0_i32, %c0_i32_0 : i32, i32
  }
  func.func @transform_2(%arg0: i32) -> (i32, i32) {
    %c0_i32 = arith.constant 0 : i32
    %c0_i32_0 = arith.constant 0 : i32
    %c0_i32_1 = arith.constant 0 : i32
    return %c0_i32, %c0_i32_0 : i32, i32
  }
  func.func @transform_3(%arg0: i32) -> (i32, i32, i32) {
    %c0_i32 = arith.constant 0 : i32
    %c0_i32_0 = arith.constant 0 : i32
    %c0_i32_1 = arith.constant 0 : i32
    %c0_i32_2 = arith.constant 0 : i32
    return %c0_i32, %c0_i32_0, %c0_i32_1 : i32, i32, i32
  }
  func.func @transform_4(%arg0: i32) -> (i32, i32) {
    %c0_i32 = arith.constant 0 : i32
    %c0_i32_0 = arith.constant 0 : i32
    %c0_i32_1 = arith.constant 0 : i32
    return %c0_i32, %c0_i32_0 : i32, i32
  }
  func.func @transform_5(%arg0: i32) -> (i32, i32, i32) {
    %c0_i32 = arith.constant 0 : i32
    %c0_i32_0 = arith.constant 0 : i32
    %c0_i32_1 = arith.constant 0 : i32
    %c0_i32_2 = arith.constant 0 : i32
    return %c0_i32, %c0_i32_0, %c0_i32_1 : i32, i32, i32
  }
  func.func @transform_6(%arg0: i32) -> (i32, i32) {
    %c0_i32 = arith.constant 0 : i32
    %c0_i32_0 = arith.constant 0 : i32
    %c0_i32_1 = arith.constant 0 : i32
    return %c0_i32, %c0_i32_0 : i32, i32
  }
  func.func @transform_7(%arg0: i32) -> (i32, i32, i32) {
    %c0_i32 = arith.constant 0 : i32
    %c0_i32_0 = arith.constant 0 : i32
    %c0_i32_1 = arith.constant 0 : i32
    %c0_i32_2 = arith.constant 0 : i32
    return %c0_i32, %c0_i32_0, %c0_i32_1 : i32, i32, i32
  }
  func.func @transform_8(%arg0: i32) -> (i32, i32) {
    %c0_i32 = arith.constant 0 : i32
    %c0_i32_0 = arith.constant 0 : i32
    %c0_i32_1 = arith.constant 0 : i32
    return %c0_i32, %c0_i32_0 : i32, i32
  }
  func.func @transform_9(%arg0: i32) -> (i32, i32) {
    %c0_i32 = arith.constant 0 : i32
    %c0_i32_0 = arith.constant 0 : i32
    %c0_i32_1 = arith.constant 0 : i32
    return %c0_i32, %c0_i32_0 : i32, i32
  }
  func.func @transform_10(%arg0: i32) -> (i32, i32) {
    %c0_i32 = arith.constant 0 : i32
    %c0_i32_0 = arith.constant 0 : i32
    %c0_i32_1 = arith.constant 0 : i32
    return %c0_i32, %c0_i32_0 : i32, i32
  }
  func.func @transform_11(%arg0: i32) -> (i32, i32, i32) {
    %c0_i32 = arith.constant 0 : i32
    %c0_i32_0 = arith.constant 0 : i32
    %c0_i32_1 = arith.constant 0 : i32
    %c0_i32_2 = arith.constant 0 : i32
    return %c0_i32, %c0_i32_0, %c0_i32_1 : i32, i32, i32
  }
  func.func @transform_12(%arg0: i32) -> (i32, i32) {
    %c0_i32 = arith.constant 0 : i32
    %c0_i32_0 = arith.constant 0 : i32
    %c0_i32_1 = arith.constant 0 : i32
    return %c0_i32, %c0_i32_0 : i32, i32
  }
  func.func @transform_13(%arg0: i32) -> (i32, i32, i32) {
    %c0_i32 = arith.constant 0 : i32
    %c0_i32_0 = arith.constant 0 : i32
    %c0_i32_1 = arith.constant 0 : i32
    %c0_i32_2 = arith.constant 0 : i32
    return %c0_i32, %c0_i32_0, %c0_i32_1 : i32, i32, i32
  }
  func.func @transform_14(%arg0: i32) -> (i32, i32) {
    %c0_i32 = arith.constant 0 : i32
    %c0_i32_0 = arith.constant 0 : i32
    %c0_i32_1 = arith.constant 0 : i32
    return %c0_i32, %c0_i32_0 : i32, i32
  }
  func.func @transform_15(%arg0: i32) -> (i32, i32) {
    %c0_i32 = arith.constant 0 : i32
    %c0_i32_0 = arith.constant 0 : i32
    %c0_i32_1 = arith.constant 0 : i32
    return %c0_i32, %c0_i32_0 : i32, i32
  }
  func.func @transform_16(%arg0: i32) -> (i32, i32) {
    %c0_i32 = arith.constant 0 : i32
    %c0_i32_0 = arith.constant 0 : i32
    %c0_i32_1 = arith.constant 0 : i32
    return %c0_i32, %c0_i32_0 : i32, i32
  }
  func.func @transform_17(%arg0: i32) -> (i32, i32, i32) {
    %c0_i32 = arith.constant 0 : i32
    %c0_i32_0 = arith.constant 0 : i32
    %c0_i32_1 = arith.constant 0 : i32
    return %arg0, %c0_i32, %c0_i32_0 : i32, i32, i32
  }
  func.func @transform_18(%arg0: i32) -> (i32, i32, i32) {
    %c0_i32 = arith.constant 0 : i32
    %c0_i32_0 = arith.constant 0 : i32
    %c0_i32_1 = arith.constant 0 : i32
    return %arg0, %c0_i32, %c0_i32_0 : i32, i32, i32
  }
  func.func @transform_19(%arg0: i32) -> (i32, i32) {
    %c0_i32 = arith.constant 0 : i32
    %c0_i32_0 = arith.constant 0 : i32
    return %arg0, %c0_i32 : i32, i32
  }
}

</mosaic_0001>

<bundles_post_ra>
// kernel: sasrec_forward.1
= control target key start
LH: loop header
LB: loop body
LE: loop exit
PB: predicated region body
PF: predicated region fallthrough
CT: control target
= control target key end

     0   :  { %s10641_s0 = inlined_call_operand.vmem [shape: f32[16,8,32], index: 0, kind: input, shape index: {}]   ;;  %s10642_s1 = inlined_call_operand.vmem [shape: f32[2,32], index: 1, kind: input, shape index: {}]   ;;  %s10643_s2 = inlined_call_operand.vmem [shape: f32[2,32], index: 2, kind: input, shape index: {}]   ;;  %s10644_s3 = inlined_call_operand.vmem [shape: bf16[2,32,32], index: 3, kind: input, shape index: {}]   ;;  %s10645_s4 = inlined_call_operand.vmem [shape: f32[2,32], index: 4, kind: input, shape index: {}]   ;;  %s10646_s5 = inlined_call_operand.vmem [shape: bf16[2,32,64], index: 5, kind: input, shape index: {}]   ;;  %s10647_s6 = inlined_call_operand.vmem [shape: f32[2,64], index: 6, kind: input, shape index: {}]   ;;  %s10648_s7 = inlined_call_operand.vmem [shape: bf16[2,32,32], index: 7, kind: input, shape index: {}]   ;;  %s10649_s8 = inlined_call_operand.vmem [shape: f32[2,32], index: 8, kind: input, shape index: {}]   ;;  %s10650_s9 = inlined_call_operand.vmem [shape: f32[2,32], index: 9, kind: input, shape index: {}]   ;;  %s10651_s10 = inlined_call_operand.vmem [shape: f32[2,32], index: 10, kind: input, shape index: {}]   ;;  %s10652_s11 = inlined_call_operand.vmem [shape: bf16[2,32,32], index: 11, kind: input, shape index: {}]   ;;  %s10653_s12 = inlined_call_operand.vmem [shape: f32[2,32], index: 12, kind: input, shape index: {}]   ;;  %s10654_s13 = inlined_call_operand.vmem [shape: bf16[2,32,32], index: 13, kind: input, shape index: {}]   ;;  %s10655_s14 = inlined_call_operand.vmem [shape: f32[2,32], index: 14, kind: input, shape index: {}]   ;;  %s10656_s15 = inlined_call_operand.vmem [shape: f32[1,32], index: 15, kind: input, shape index: {}]   ;;  %s10657_s16 = inlined_call_operand.vmem [shape: f32[1,32], index: 16, kind: input, shape index: {}]   ;;  %s10658_s17 = inlined_call_operand.vmem [shape: f32[16,8,32], index: 17, kind: input, shape index: {}]   ;;  %s10659_s18 = inlined_call_operand.vmem [shape: f32[16,8,32], index: 18, kind: input, shape index: {}]   ;;  %s10660_s19 = inlined_call_operand.vmem [shape: f32[16,16], index: 19, kind: output, shape index: {}]  }
   0x1   :  { %10695 = sst [smem:[#allocation16_spill]] %s10641_s0  ;;  %s7922_s0 = smov 0  }
   0x2   :  { %10696 = sst [smem:[#allocation17_spill]] %s10642_s1 }
   0x3   :  { %10697 = sst [smem:[#allocation18_spill]] %s10643_s2 }
   0x4   :  { %10698 = sst [smem:[#allocation19_spill]] %s10644_s3 }
   0x5 LB: > { %s7928_s30 = sadd.s32 4294967295, %s7811_s0   ;;  %p6768_p0 = scmp.ge.s32.totalorder %s7811_s0, 1  ;;  %s7811_s0 = sphi %s7922_s0, %s29_s0  }
   0x6   : > { %p560_p1 = scmp.lt.s32.totalorder %s7811_s0, 3 }
   0x8   : > { %p561_p2 = pnand %p6768_p0, %p560_p1 }
   0xa   : > { %564 = sbr.rel (%p561_p2) target bundleno = 4760 (0x1298), region = 96 }
   0xf   : > { %s6769_s20 = sshll.u32 %s7928_s30, 3  ;;  %vm664_vm0 = vcmask 261120   ;;  %s10699_s2 = sld [smem:[#allocation16_spill]]  ;;  %v7813_v14 = vmov 32.0   ;;  %v7049_v24 = vld [vmem:[%s10646_s5 + $0x8] sm:$0xff]  ;;  %v7979_v26 = vld [vmem:[%s10646_s5] sm:$0xff] }
  0x10   : > { %p626_p3 = scmp.lt.s32.totalorder %s6769_s20, 15  ;;  %7467 = vrcp.f32 %v7813_v14  ;;  %7068 = vmatpush.bf16.msra.mxu1 %v7049_v24  ;;  %s10701_s29 = sld [smem:[#allocation19_spill]] }
  0x11   : > { %s10705_s3 = sld [smem:[#allocation18_spill]]  ;;  %s10678_s28 = smov 96  }
  0x12   : > { %s10761_s20 = smov (!%p626_p3, %s6769_s20), 15  ;;  %s7816_s1 = smov 120  }
  0x13   : > { %s7933_s21 = sshll.u32 %s10761_s20, 3  ;;  %s7815_s20 = smov 104  }
  0x14   : > { %7069 = vmatpush.bf16.msra.mxu1 %v7979_v26  ;;  %s10680_s22 = smov 112   ;;  %s7819_s25 = smov 8  }
  0x15   : > { %s7939_s23 = scalar_lea.vmem %s10699_s2, %s7933_s21  ;;  %s10684_s26 = smov 16  }
  0x16   : > { %v7942_v0 = vld [vmem:[%s7939_s23 + $0x20] sm:$0xff]  ;;  %v656_v1 = vld [vmem:[%s7939_s23 + $0x10] sm:$0xff]  ;;  %v7954_v6 = vld [vmem:[%s7939_s23 + $0x28] sm:$0xff]  ;;  %v7468_v15 = vpop.eup %7467  ;;  %s10682_s27 = smov 24   ;;  %s10732_s2 = smov 112  }
  0x17   : > { %v7946_v2 = vld [vmem:[%s7939_s23] sm:$0xff]  ;;  %v677_v3 = vsel %vm664_vm0, %v7942_v0, 0.0  ;;  %v671_v4 = vsel %vm664_vm0, %v656_v1, 0.0  ;;  %v657_v7 = vld [vmem:[%s7939_s23 + $0x18] sm:$0xff]  ;;  %v7958_v8 = vld [vmem:[%s7939_s23 + $0x8] sm:$0xff]  ;;  %v680_v9 = vsel %vm664_vm0, %v7954_v6, 0.0  ;;  %vm694_vm1 = vweird.f32 %v7468_v15 }
  0x18   : > { %v665_v5 = vsel %vm664_vm0, %v7946_v2, 0.0  ;;  %678 = vadd.xlane.f32.xlu2 %v677_v3  ;;  %672 = vadd.xlane.f32.xlu1 %v671_v4  ;;  %v674_v10 = vsel %vm664_vm0, %v657_v7, 0.0  ;;  %v668_v11 = vsel %vm664_vm0, %v7958_v8, 0.0  ;;  %v7966_v12 = vld [vmem:[%s7939_s23 + $0x30] sm:$0xff]  ;;  %v690_v16 = vmul.f32 32.0, %v7468_v15  ;;  %v661_v39 = vld [vmem:[%s7939_s23 + $0x38] sm:$0xff] }
  0x19   : > { %666 = vadd.xlane.f32.xlu0 %v665_v5  ;;  %v683_v13 = vsel %vm664_vm0, %v7966_v12, 0.0  ;;  %v938_v29 = vpack.c.bf16 %v657_v7, %v656_v1  ;;  %v686_v44 = vsel %vm664_vm0, %v661_v39, 0.0  ;;  %v939_v61 = vpack.c.bf16 %v7954_v6, %v7942_v0  ;;  %v7047_v63 = vld [vmem:[%s10701_s29 + $0x8] sm:$0xff]  ;;  %s10702_s23 = sld [smem:[#allocation17_spill]]  ;;  %s10737_s24 = smov 96  }
  0x1a   : > { %v691_v17 = vsub.f32 1.0, %v690_v16  ;;  %v940_v62 = vpack.c.bf16 %v661_v39, %v7966_v12  ;;  %906 = vmatpush.bf16.msra.mxu0 %v7047_v63  ;;  %7066 = vmatpush.bf16.msra.mxu3 %v7047_v63  ;;  %p643_p4 = scmp.lt.s32.totalorder %s7928_s30, 1 }
  0x1b   : > { %6797 = vmatmul.msk.bf16.vlgmr.msra.gmra.mxu1 %vm664_vm0, %v938_v29 }
  0x1c   : > { %v692_v18 = vmul.f32 %v7468_v15, %v691_v17  ;;  %s10763_s30 = smov (!%p643_p4, %s7928_s30), 1 }
  0x1e   : > { %v693_v19 = vadd.f32 %v7468_v15, %v692_v18 }
  0x20   : > { %681 = vadd.xlane.f32.xlu2 %v680_v9  ;;  %675 = vadd.xlane.f32.xlu1 %v674_v10  ;;  %v7970_v20 = vsel %vm694_vm1, %v7468_v15, %v693_v19 }
  0x21   : > { %669 = vadd.xlane.f32.xlu0 %v668_v11  ;;  %10700 = vst [vmem:[#allocation2_spill] sm:$0xff] %v7970_v20 }
  0x28   : > { %684 = vadd.xlane.f32.xlu2 %v683_v13 }
  0x2b   : > { %6798 = vmatmul.msk.bf16.gmra.mxu1 %vm664_vm0, %v939_v61 }
  0x3b   : > { %6799 = vmatmul.msk.bf16.gmra.mxu1 %vm664_vm0, %v940_v62 }
  0x8b   : > { %v679_v21 = vpop.xlane.xlu2 %678  ;;  %v673_v22 = vpop.xlane.xlu1 %672 }
  0x8c   : > { %v667_v23 = vpop.xlane.xlu0 %666  ;;  %v700_v35 = vmul.f32 %v7970_v20, %v679_v21  ;;  %v698_v36 = vmul.f32 %v7970_v20, %v673_v22 }
  0x8d   : > { %v696_v25 = vmul.f32 %v7970_v20, %v667_v23 }
  0x8e   : > { %v8002_v42 = vsub.f32 %v7942_v0, %v700_v35  ;;  %v8004_v43 = vsub.f32 %v656_v1, %v698_v36  ;;  %v7046_v0 = vld [vmem:[%s10701_s29] sm:$0xff] }
  0x8f   : > { %v7982_v27 = vsub.f32 %v7946_v2, %v696_v25  ;;  %907 = vmatpush.bf16.msra.mxu0 %v7046_v0  ;;  %7067 = vmatpush.bf16.msra.mxu3 %v7046_v0 }
  0x90   : > { %v716_v51 = vmul.f32 %v8002_v42, %v8002_v42  ;;  %v714_v52 = vmul.f32 %v8004_v43, %v8004_v43 }
  0x91   : > { %v712_v28 = vmul.f32 %v7982_v27, %v7982_v27 }
  0x92   : > { %v732_v56 = vsel %vm664_vm0, %v716_v51, 0.0  ;;  %v726_v57 = vsel %vm664_vm0, %v714_v52, 0.0  ;;  %v8062_v51 = vld [vmem:[%s10702_s23] ss:$0 sm:$0xff] }
  0x93   : > { %v682_v30 = vpop.xlane.xlu2 %681  ;;  %v676_v31 = vpop.xlane.xlu1 %675  ;;  %v720_v32 = vsel %vm664_vm0, %v712_v28, 0.0  ;;  %977 = vmatpush.bf16.msrb.mxu0 %v7049_v24 }
  0x94   : > { %v699_v33 = vmul.f32 %v7970_v20, %v676_v31  ;;  %721 = vadd.xlane.f32.xlu0 %v720_v32  ;;  %v670_v34 = vpop.xlane.xlu0 %669  ;;  %v701_v50 = vmul.f32 %v7970_v20, %v682_v30 }
  0x95   : > { %v697_v37 = vmul.f32 %v7970_v20, %v670_v34 }
  0x96   : > { %v7993_v38 = vsub.f32 %v657_v7, %v699_v33  ;;  %v8023_v55 = vsub.f32 %v7954_v6, %v701_v50 }
  0x97   : > { %v7997_v40 = vsub.f32 %v7958_v8, %v697_v37  ;;  %978 = vmatpush.bf16.msrb.mxu0 %v7979_v26 }
  0x98   : > { %v715_v41 = vmul.f32 %v7993_v38, %v7993_v38  ;;  %v717_v59 = vmul.f32 %v8023_v55, %v8023_v55 }
  0x99   : > { %v713_v45 = vmul.f32 %v7997_v40, %v7997_v40 }
  0x9a   : > { %v729_v46 = vsel %vm664_vm0, %v715_v41, 0.0  ;;  %v735_v60 = vsel %vm664_vm0, %v717_v59, 0.0 }
  0x9b   : > { %v685_v47 = vpop.xlane.xlu2 %684  ;;  %730 = vadd.xlane.f32.xlu2 %v729_v46  ;;  %v723_v48 = vsel %vm664_vm0, %v713_v45, 0.0 }
  0x9c   : > { %v702_v49 = vmul.f32 %v7970_v20, %v685_v47  ;;  %687 = vadd.xlane.f32.xlu0 %v686_v44  ;;  %724 = vadd.xlane.f32.xlu1 %v723_v48 }
  0x9e   : > { %v8018_v53 = vsub.f32 %v7966_v12, %v702_v49 }
  0xa0   : > { %v718_v54 = vmul.f32 %v8018_v53, %v8018_v53 }
  0xa2   : > { %v738_v58 = vsel %vm664_vm0, %v718_v54, 0.0 }
  0xa3   : > { %739 = vadd.xlane.f32.xlu2 %v738_v58 }
  0xa4   : > { %733 = vadd.xlane.f32.xlu0 %v732_v56  ;;  %727 = vadd.xlane.f32.xlu1 %v726_v57 }
  0xac   : > { %736 = vadd.xlane.f32.xlu1 %v735_v60 }
 0x107   : > { %v722_v1 = vpop.xlane.xlu0 %721 }
 0x108   : > { %v744_v3 = vmul.f32 %v722_v1, %v7970_v20 }
 0x10a   : > { %v752_v4 = vadd.f32 1e-08, %v744_v3 }
 0x10c   : > { %7469 = vrsqrt.f32 %v752_v4  ;;  %vm766_vm3 = vweird.f32 %v752_v4 }
 0x10e   : > { %v731_v5 = vpop.xlane.xlu2 %730 }
 0x10f   : > { %v747_v6 = vmul.f32 %v731_v5, %v7970_v20  ;;  %v725_v7 = vpop.xlane.xlu1 %724  ;;  %v688_v9 = vpop.xlane.xlu0 %687 }
 0x110   : > { %v745_v10 = vmul.f32 %v725_v7, %v7970_v20  ;;  %v703_v11 = vmul.f32 %v7970_v20, %v688_v9 }
 0x111   : > { %v755_v12 = vadd.f32 1e-08, %v747_v6 }
 0x112   : > { %v7470_v13 = vpop.eup %7469  ;;  %v753_v14 = vadd.f32 1e-08, %v745_v10  ;;  %v8047_v15 = vsub.f32 %v661_v39, %v703_v11 }
 0x113   : > { %v761_v16 = vmul.f32 %v7470_v13, %v752_v4  ;;  %7471 = vrsqrt.f32 %v755_v12  ;;  %vm767_vm2 = vweird.f32 %v7470_v13  ;;  %vm796_vm7 = vweird.f32 %v755_v12  ;;  %v8076_v4 = vld [vmem:[%s10705_s3] ss:$0 sm:$0xff] }
 0x114   : > { %7473 = vrsqrt.f32 %v753_v14  ;;  %v719_v17 = vmul.f32 %v8047_v15, %v8047_v15  ;;  %vm768_vm4 = vmor %vm766_vm3, %vm767_vm2  ;;  %vm776_vm5 = vweird.f32 %v753_v14 }
 0x115   : > { %v762_v18 = vmul.f32 %v7470_v13, %v761_v16 }
 0x116   : > { %v741_v19 = vsel %vm664_vm0, %v719_v17, 0.0 }
 0x117   : > { %v763_v21 = vmul.f32 0.5, %v762_v18  ;;  %v728_v22 = vpop.xlane.xlu1 %727  ;;  %742 = vadd.xlane.f32.xlu0 %v741_v19  ;;  %v734_v23 = vpop.xlane.xlu0 %733 }
 0x118   : > { %v746_v24 = vmul.f32 %v728_v22, %v7970_v20  ;;  %v748_v25 = vmul.f32 %v734_v23, %v7970_v20 }
 0x119   : > { %v7472_v26 = vpop.eup %7471  ;;  %v764_v28 = vsub.f32 1.5, %v763_v21 }
 0x11a   : > { %v7474_v29 = vpop.eup %7473  ;;  %v791_v30 = vmul.f32 %v7472_v26, %v755_v12  ;;  %v754_v31 = vadd.f32 1e-08, %v746_v24  ;;  %v8054_v32 = vadd.f32 1e-08, %v748_v25  ;;  %vm797_vm8 = vweird.f32 %v7472_v26 }
 0x11b   : > { %v765_v33 = vmul.f32 %v7470_v13, %v764_v28  ;;  %v771_v34 = vmul.f32 %v7474_v29, %v753_v14  ;;  %vm777_vm6 = vweird.f32 %v7474_v29  ;;  %vm8064_vm10 = vmor %vm796_vm7, %vm797_vm8  ;;  %vm1224_vm8 = vcmask 64512  }
 0x11c   : > { %v792_v35 = vmul.f32 %v7472_v26, %v791_v30  ;;  %7475 = vrsqrt.f32 %v754_v31  ;;  %vm778_vm9 = vmor %vm776_vm5, %vm777_vm6  ;;  %vm786_vm11 = vweird.f32 %v754_v31  ;;  %vm806_vm1 = vweird.f32 %v8054_v32 }
 0x11d   : > { %v772_v36 = vmul.f32 %v7474_v29, %v771_v34  ;;  %7477 = vrsqrt.f32 %v8054_v32  ;;  %v769_v39 = vsel %vm768_vm4, %v7470_v13, %v765_v33 }
 0x11e   : > { %v793_v37 = vmul.f32 0.5, %v792_v35  ;;  %v840_v50 = vmul.f32 %v769_v39, %v7982_v27 }
 0x11f   : > { %v773_v41 = vmul.f32 0.5, %v772_v36  ;;  %v737_v44 = vpop.xlane.xlu1 %736 }
 0x120   : > { %v794_v45 = vsub.f32 1.5, %v793_v37  ;;  %v749_v46 = vmul.f32 %v737_v44, %v7970_v20  ;;  %v849_v62 = vmul.f32 %v8062_v51, %v840_v50 }
 0x121   : > { %v774_v47 = vsub.f32 1.5, %v773_v41 }
 0x122   : > { %v7476_v48 = vpop.eup %7475  ;;  %v757_v49 = vadd.f32 1e-08, %v749_v46  ;;  %v795_v54 = vmul.f32 %v7472_v26, %v794_v45  ;;  %v8084_v11 = vadd.f32 %v8076_v4, %v849_v62 }
 0x123   : > { %v7478_v52 = vpop.eup %7477  ;;  %v775_v56 = vmul.f32 %v7474_v29, %v774_v47  ;;  %v781_v57 = vmul.f32 %v7476_v48, %v754_v31  ;;  %vm787_vm12 = vweird.f32 %v7476_v48  ;;  %v740_v47 = vpop.xlane.xlu2 %739 }
 0x124   : > { %v801_v59 = vmul.f32 %v7478_v52, %v8054_v32  ;;  %7479 = vrsqrt.f32 %v757_v49  ;;  %v799_v63 = vsel %vm8064_vm10, %v7472_v26, %v795_v54  ;;  %vm788_vm13 = vmor %vm786_vm11, %vm787_vm12  ;;  %10707 = vst [vmem:[#allocation4_spill] sm:$0xff] %v8084_v11  ;;  %vm816_vm14 = vweird.f32 %v757_v49 }
 0x125   : > { %v779_v60 = vsel %vm778_vm9, %v7474_v29, %v775_v56  ;;  %v782_v61 = vmul.f32 %v7476_v48, %v781_v57  ;;  %vm807_vm2 = vweird.f32 %v7478_v52  ;;  %v937_v32 = vpack.c.bf16 %v7958_v8, %v7946_v2  ;;  %v8121_v2 = vld [vmem:[%s10647_s6] ss:$0 sm:$0xff] }
 0x126   : > { %v841_v27 = vmul.f32 %v779_v60, %v7997_v40  ;;  %v802_v3 = vmul.f32 %v7478_v52, %v801_v59  ;;  %v843_v40 = vmul.f32 %v799_v63, %v7993_v38  ;;  %vm808_vm4 = vmor %vm806_vm1, %vm807_vm2 }
 0x127   : > { %v783_v1 = vmul.f32 0.5, %v782_v61 }
 0x128   : > { %v850_v0 = vmul.f32 %v8062_v51, %v841_v27  ;;  %v803_v10 = vmul.f32 0.5, %v802_v3  ;;  %v852_v18 = vmul.f32 %v8062_v51, %v843_v40 }
 0x129   : > { %v784_v5 = vsub.f32 1.5, %v783_v1 }
 0x12a   : > { %v8080_v6 = vadd.f32 %v8076_v4, %v850_v0  ;;  %v7480_v7 = vpop.eup %7479  ;;  %v804_v19 = vsub.f32 1.5, %v803_v10  ;;  %v8097_v24 = vadd.f32 %v8076_v4, %v852_v18 }
 0x12b   : > { %v785_v9 = vmul.f32 %v7476_v48, %v784_v5  ;;  %v811_v12 = vmul.f32 %v7480_v7, %v757_v49  ;;  %vm817_vm15 = vweird.f32 %v7480_v7  ;;  %v750_v49 = vmul.f32 %v740_v47, %v7970_v20 }
 0x12c   : > { %10706 = vst [vmem:[#allocation3_spill] sm:$0xff] %v8080_v6  ;;  %v866_v14 = vpack.c.bf16 %v8080_v6, %v8084_v11  ;;  %vm818_vm3 = vmor %vm816_vm14, %vm817_vm15  ;;  %vm3090_vm14 = vcmask 130048   ;;  %vm3099_vm15 = vcmask 195584  }
 0x12d   : > { %v789_v13 = vsel %vm788_vm13, %v7476_v48, %v785_v9  ;;  %v812_v16 = vmul.f32 %v7480_v7, %v811_v12  ;;  %10709 = vst [vmem:[#allocation6_spill] sm:$0xff] %v8097_v24  ;;  %vm2225_vm13 = vcmask 1043456  }
 0x12e   : > { %v842_v17 = vmul.f32 %v789_v13, %v8004_v43  ;;  %6784 = vmatmul.msk.bf16.vlgmr.msra.gmra.mxu0 %vm664_vm0, %v866_v14  ;;  %v805_v43 = vmul.f32 %v7478_v52, %v804_v19 }
 0x12f   : > { %v813_v38 = vmul.f32 0.5, %v812_v16 }
 0x130   : > { %v851_v21 = vmul.f32 %v8062_v51, %v842_v17  ;;  %v809_v29 = vsel %vm808_vm4, %v7478_v52, %v805_v43  ;;  %v758_v52 = vadd.f32 1e-08, %v750_v49 }
 0x131   : > { %v814_v22 = vsub.f32 1.5, %v813_v38  ;;  %v844_v31 = vmul.f32 %v809_v29, %v8002_v42  ;;  %v985_v42 = vpop.f32.mrf.mxu1 }
 0x132   : > { %v8094_v23 = vadd.f32 %v8076_v4, %v851_v21  ;;  %v986_v8 = vadd.f32 %v8121_v2, %v985_v42  ;;  %7481 = vrsqrt.f32 %v758_v52  ;;  %vm826_vm5 = vweird.f32 %v758_v52 }
 0x133   : > { %v815_v25 = vmul.f32 %v7480_v7, %v814_v22  ;;  %v853_v34 = vmul.f32 %v8062_v51, %v844_v31 }
 0x134   : > { %10708 = vst [vmem:[#allocation5_spill] sm:$0xff] %v8094_v23  ;;  %v867_v26 = vpack.c.bf16 %v8097_v24, %v8094_v23  ;;  %v1194_v39 = vpack.c.bf16 %v986_v8, %v986_v8 }
 0x135   : > { %v819_v28 = vsel %vm818_vm3, %v7480_v7, %v815_v25  ;;  %v8113_v36 = vadd.f32 %v8076_v4, %v853_v34 }
 0x136   : > { %6785 = vmatmul.msk.bf16.vlgmr.msra.gmra.mxu3 %vm664_vm0, %v867_v26  ;;  %v845_v30 = vmul.f32 %v819_v28, %v8023_v55  ;;  %v2267_v41 = vunpack.c.l.b16 %v1194_v39  ;;  %v1267_v18 = vsel %vm1224_vm8, %v1194_v39, 0 }
 0x137   : > { %10711 = vst [vmem:[#allocation8_spill] sm:$0xff] %v8113_v36  ;;  %1276 = vmatpush.bf16.xpose.msra.mxu2 %v1267_v18 }
 0x138   : > { %v854_v33 = vmul.f32 %v8062_v51, %v845_v30  ;;  %v2268_v44 = vpack.c.b16 %v2267_v41, %v2267_v41  ;;  %v7482_v27 = vpop.eup %7481 }
 0x139   : > { %v987_v37 = vpop.f32.mrf.mxu1  ;;  %v821_v62 = vmul.f32 %v7482_v27, %v758_v52  ;;  %vm827_vm6 = vweird.f32 %v7482_v27 }
 0x13a   : > { %v8110_v35 = vadd.f32 %v8076_v4, %v854_v33  ;;  %2269 = vrot.lane.b32.xlu0 %v2268_v44, %s10678_s28  ;;  %v988_v45 = vadd.f32 %v8121_v2, %v987_v37  ;;  %vm828_vm7 = vmor %vm826_vm5, %vm827_vm6 }
 0x13b   : > { %v822_v0 = vmul.f32 %v7482_v27, %v821_v62 }
 0x13c   : > { %10710 = vst [vmem:[#allocation7_spill] sm:$0xff] %v8110_v35  ;;  %v868_v55 = vpack.c.bf16 %v8110_v35, %v8113_v36  ;;  %v7097_v48 = vpack.i.bf16 %v988_v45, %v986_v8  ;;  %v8128_v50 = vpack.c.bf16 %v988_v45, %v988_v45 }
 0x13d   : > { %v823_v10 = vmul.f32 0.5, %v822_v0 }
 0x13e   : > { %6796 = vmatmul.msk.bf16.vlgmr.msrb.gmra.mxu0 %vm664_vm0, %v937_v32  ;;  %v2291_v58 = vunpack.c.l.b16 %v8128_v50  ;;  %7088 = vrot.lane.b32.xlu2 %v7097_v48, %s7816_s1 }
 0x13f   : > { %v824_v12 = vsub.f32 1.5, %v823_v10 }
 0x140   : > { %v2292_v60 = vpack.c.b16 %v2291_v58, %v2291_v58 }
 0x141   : > { %v990_v46 = vpop.f32.mrf.mxu1  ;;  %v825_v14 = vmul.f32 %v7482_v27, %v824_v12 }
 0x142   : > { %7098 = vrot.lane.b32.xlu0 %v7097_v48, %s7815_s20  ;;  %v991_v56 = vadd.f32 %v8121_v2, %v990_v46 }
 0x143   : > { %v829_v19 = vsel %vm828_vm7, %v7482_v27, %v825_v14 }
 0x144   : > { %v846_v22 = vmul.f32 %v829_v19, %v8018_v53  ;;  %v8164_v53 = vpack.c.bf16 %v991_v56, %v991_v56 }
 0x146   : > { %6786 = vmatmul.msk.bf16.gmra.mxu3 %vm664_vm0, %v868_v55  ;;  %7093 = vrot.lane.b32.xlu2 %v7097_v48, %s10680_s22  ;;  %v855_v28 = vmul.f32 %v8062_v51, %v846_v22 }
 0x148   : > { %v8157_v30 = vadd.f32 %v8076_v4, %v855_v28 }
 0x149   : > { %v992_v54 = vpop.f32.mrf.mxu1 }
 0x14a   : > { %v8132_v57 = vadd.f32 %v8121_v2, %v992_v54  ;;  %2293 = vrot.lane.b32.xlu0 %v2292_v60, %s10678_s28  ;;  %10712 = vst [vmem:[#allocation9_spill] sm:$0xff] %v8157_v30 }
 0x14c   : > { %v7102_v59 = vpack.i.bf16 %v8132_v57, %v991_v56  ;;  %v1197_v12 = vpack.c.bf16 %v8132_v57, %v8132_v57 }
 0x14e   : > { %7103 = vrot.lane.b32.xlu1 %v7102_v59, %s7816_s1  ;;  %7108 = vrot.lane.b32.xlu2 %v7102_v59, %s10680_s22 }
 0x151   : > { %v995_v61 = vpop.f32.mrf.mxu1 }
 0x152   : > { %7113 = vrot.lane.b32.xlu0 %v7102_v59, %s7815_s20  ;;  %v996_v63 = vadd.f32 %v8121_v2, %v995_v61 }
 0x154   : > { %v8177_v44 = vpack.c.bf16 %v996_v63, %v996_v63 }
 0x156   : > { %v1343_v49 = vsel %vm1224_vm8, %v8177_v44, 0 }
 0x159   : > { %v997_v1 = vpop.f32.mrf.mxu1 }
 0x15a   : > { %v8143_v3 = vadd.f32 %v8121_v2, %v997_v1 }
 0x15c   : > { %v7117_v7 = vpack.i.bf16 %v8143_v3, %v996_v63  ;;  %v1199_v22 = vpack.c.bf16 %v8143_v3, %v8143_v3 }
 0x15e   : > { %7118 = vrot.lane.b32.xlu0 %v7117_v7, %s7816_s1  ;;  %7128 = vrot.lane.b32.xlu2 %v7117_v7, %s7815_s20  ;;  %v1362_v28 = vsel %vm1224_vm8, %v1199_v22, 0 }
 0x15f   : > { %7123 = vrot.lane.b32.xlu1 %v7117_v7, %s10680_s22 }
 0x18a   : > { %v743_v5 = vpop.xlane.xlu0 %742 }
 0x18b   : > { %v751_v40 = vmul.f32 %v743_v5, %v7970_v20 }
 0x18d   : > { %v759_v9 = vadd.f32 1e-08, %v751_v40 }
 0x18f   : > { %7483 = vrsqrt.f32 %v759_v9  ;;  %vm836_vm10 = vweird.f32 %v759_v9 }
 0x195   : > { %v7484_v13 = vpop.eup %7483 }
 0x196   : > { %v831_v16 = vmul.f32 %v7484_v13, %v759_v9  ;;  %vm837_vm9 = vweird.f32 %v7484_v13 }
 0x197   : > { %vm838_vm11 = vmor %vm836_vm10, %vm837_vm9 }
 0x198   : > { %v832_v17 = vmul.f32 %v7484_v13, %v831_v16 }
 0x19a   : > { %v833_v38 = vmul.f32 0.5, %v832_v17 }
 0x19c   : > { %v834_v21 = vsub.f32 1.5, %v833_v38  ;;  %v2339_v38 = vunpack.c.l.b16 %v1197_v12 }
 0x19e   : > { %v835_v43 = vmul.f32 %v7484_v13, %v834_v21 }
 0x1a0   : > { %v839_v25 = vsel %vm838_vm11, %v7484_v13, %v835_v43  ;;  %v2340_v43 = vpack.c.b16 %v2339_v38, %v2339_v38 }
 0x1a1   : > { %v847_v26 = vmul.f32 %v839_v25, %v8047_v15  ;;  %v1305_v15 = vsel %vm1224_vm8, %v8164_v53, 0 }
 0x1a2   : > { %1314 = vmatpush.bf16.xpose.msrb.mxu2 %v1305_v15  ;;  %v7089_v15 = vpop.permute.xlu2 %7088 }
 0x1a3   : > { %v856_v29 = vmul.f32 %v8062_v51, %v847_v26  ;;  %v8172_v51 = vld [vmem:[%s10645_s4] ss:$0 sm:$0xff]  ;;  %v7090_v3 = vunpack.i.l.bf16 %v7089_v15 }
 0x1a5   : > { %v8160_v31 = vadd.f32 %v8076_v4, %v856_v29  ;;  %v2387_v29 = vunpack.c.l.b16 %v1199_v22 }
 0x1a7   : > { %10713 = vst [vmem:[#allocation10_spill] sm:$0xff] %v8160_v31  ;;  %v869_v32 = vpack.c.bf16 %v8160_v31, %v8157_v30 }
 0x1a9   : > { %6787 = vmatmul.msk.bf16.gmra.mxu3 %vm664_vm0, %v869_v32  ;;  %v2388_v32 = vpack.c.b16 %v2387_v29, %v2387_v29 }
 0x1ab   : > { %v909_v33 = vpop.f32.mrf.mxu0 }
 0x1ac   : > { %v910_v4 = vadd.f32 %v8172_v51, %v909_v33  ;;  %v8211_v26 = vpop.permute.xlu0 %2269 }
 0x1ae   : > { %v929_v42 = vmul.f32 0.35355338, %v910_v4 }
 0x1b0   : > { %v1080_v62 = vpack.c.bf16 %v929_v42, %v929_v42 }
 0x1b3   : > { %v911_v34 = vpop.f32.mrf.mxu0 }
 0x1b4   : > { %v912_v55 = vadd.f32 %v8172_v51, %v911_v34  ;;  %v8217_v33 = vpop.permute.xlu0 %7098 }
 0x1b6   : > { %v930_v8 = vmul.f32 0.35355338, %v912_v55 }
 0x1b8   : > { %v7142_v39 = vpack.i.bf16 %v930_v8, %v929_v42  ;;  %v1081_v14 = vpack.c.bf16 %v930_v8, %v930_v8  ;;  %v7091_v42 = vunpack.i.h.bf16 %v7089_v15  ;;  %v8223_v8 = vpop.permute.xlu2 %7093 }
 0x1b9   : > { %v914_v37 = vpop.f32.mrf.mxu3 }
 0x1ba   : > { %v915_v41 = vadd.f32 %v8172_v51, %v914_v37  ;;  %7143 = vrot.lane.b32.xlu2 %v7142_v39, %s7815_s20  ;;  %7138 = vrot.lane.b32.xlu1 %v7142_v39, %s10680_s22 }
 0x1bb   : > { %7133 = vrot.lane.b32.xlu0 %v7142_v39, %s7816_s1  ;;  %v980_v46 = vpop.f32.mrf.mxu0  ;;  %v1202_v39 = vpack.c.bf16 %v7090_v3, %v7090_v3 }
 0x1bc   : > { %v931_v45 = vmul.f32 0.35355338, %v915_v41  ;;  %v981_v47 = vadd.f32 %v8121_v2, %v980_v46  ;;  %v8221_v55 = vpop.permute.xlu0 %2293  ;;  %v7095_v41 = vunpack.i.l.bf16 %v8223_v8 }
 0x1be   : > { %v1082_v48 = vpack.c.bf16 %v931_v45, %v931_v45  ;;  %v1192_v52 = vpack.c.bf16 %v981_v47, %v981_v47 }
 0x1c0   : > { %6802 = vmatmul.msk.bf16.vlgmr.msra.gmra.mxu2 %vm1224_vm8, %v1082_v48  ;;  %v1229_v56 = vsel %vm1224_vm8, %v1192_v52, 0  ;;  %v2218_v1 = vunpack.c.l.b16 %v1192_v52  ;;  %v7104_v34 = vpop.permute.xlu1 %7103  ;;  %v8231_v48 = vpack.c.bf16 %v7095_v41, %v7095_v41  ;;  %v2459_v52 = vunpack.c.l.b16 %v1202_v39 }
 0x1c1   : > { %v916_v54 = vpop.f32.mrf.mxu3  ;;  %1352 = vmatpush.bf16.xpose.msra.mxu2 %v1343_v49  ;;  %1238 = vmatpush.bf16.xpose.msra.mxu0 %v1229_v56  ;;  %v7105_v37 = vunpack.i.l.bf16 %v7104_v34 }
 0x1c2   : > { %v917_v58 = vadd.f32 %v8172_v51, %v916_v54  ;;  %v2219_v9 = vpack.c.b16 %v2218_v1, %v2218_v1  ;;  %v2460_v56 = vpack.c.b16 %v2459_v52, %v2459_v52 }
 0x1c3   : > { %v982_v60 = vpop.f32.mrf.mxu0  ;;  %v8227_v46 = vpack.c.bf16 %v7105_v37, %v7105_v37 }
 0x1c4   : > { %v932_v59 = vmul.f32 0.35355338, %v917_v58  ;;  %v983_v61 = vadd.f32 %v8121_v2, %v982_v60  ;;  %v1286_v2 = vsel %vm1224_vm8, %v8128_v50, 0  ;;  %v1324_v50 = vsel %vm1224_vm8, %v1197_v12, 0 }
 0x1c5   : > { %v2507_v54 = vunpack.c.l.b16 %v8227_v46  ;;  %v1419_v60 = vsel %vm1224_vm8, %v1202_v39, 0 }
 0x1c6   : > { %v7147_v27 = vpack.i.bf16 %v932_v59, %v931_v45  ;;  %v1193_v63 = vpack.c.bf16 %v983_v61, %v983_v61  ;;  %v7162_v10 = vpack.i.bf16 %v983_v61, %v981_v47  ;;  %v1083_v25 = vpack.c.bf16 %v932_v59, %v932_v59  ;;  %v8236_v59 = vpop.permute.xlu0 %7113 }
 0x1c7   : > { %v7106_v45 = vunpack.i.h.bf16 %v7104_v34  ;;  %v8229_v47 = vpack.c.bf16 %v7091_v42, %v7091_v42  ;;  %v2508_v58 = vpack.c.b16 %v2507_v54, %v2507_v54 }
 0x1c8   : > { %7148 = vrot.lane.b32.xlu2 %v7147_v27, %s7816_s1  ;;  %7158 = vrot.lane.b32.xlu1 %v7147_v27, %s7815_s20  ;;  %v1248_v5 = vsel %vm1224_vm8, %v1193_v63, 0  ;;  %v2243_v19 = vunpack.c.l.b16 %v1193_v63 }
 0x1c9   : > { %6800 = vmatmul.msk.bf16.vlgmr.msra.gmra.mxu0 %vm1224_vm8, %v1080_v62  ;;  %7153 = vrot.lane.b32.xlu0 %v7147_v27, %s10680_s22  ;;  %v919_v0 = vpop.f32.mrf.mxu3  ;;  %v8233_v49 = vpack.c.bf16 %v7106_v45, %v7106_v45  ;;  %v1438_v61 = vsel %vm1224_vm8, %v8229_v47, 0  ;;  %v2651_v62 = vunpack.c.l.b16 %v8231_v48 }
 0x1ca   : > { %v920_v40 = vadd.f32 %v8172_v51, %v919_v0  ;;  %1257 = vmatpush.bf16.xpose.msrb.mxu3 %v1248_v5  ;;  %v2244_v21 = vpack.c.b16 %v2243_v19, %v2243_v19  ;;  %v7109_v0 = vpop.permute.xlu2 %7108 }
 0x1cb   : > { %v2531_v27 = vunpack.c.l.b16 %v8233_v49  ;;  %v2652_v1 = vpack.c.b16 %v2651_v62, %v2651_v62 }
 0x1cc   : > { %v933_v7 = vmul.f32 0.35355338, %v920_v40  ;;  %v7111_v40 = vunpack.i.h.bf16 %v7109_v0 }
 0x1cd   : > { %v2532_v63 = vpack.c.b16 %v2531_v27, %v2531_v27  ;;  %v2315_v27 = vunpack.c.l.b16 %v8164_v53 }
 0x1ce   : > { %v1084_v13 = vpack.c.bf16 %v933_v7, %v933_v7 }
 0x1d0   : > { %2220 = vrot.lane.b32.xlu2 %v2219_v9, %s10678_s28  ;;  %7163 = vrot.lane.b32.xlu1 %v7162_v10, %s7816_s1  ;;  %v7119_v5 = vpop.permute.xlu0 %7118  ;;  %v8247_v9 = vpack.c.bf16 %v7111_v40, %v7111_v40 }
 0x1d1   : > { %7168 = vrot.lane.b32.xlu0 %v7162_v10, %s10680_s22  ;;  %6801 = vmatmul.msk.bf16.vlgmr.msrb.gmra.mxu3 %vm1224_vm8, %v1081_v14  ;;  %v921_v16 = vpop.f32.mrf.mxu3  ;;  %v8249_v14 = vpop.permute.xlu1 %7123 }
 0x1d2   : > { %1295 = vmatpush.bf16.xpose.msra.mxu3 %v1286_v2  ;;  %6804 = vmatmul.msk.bf16.vlgmr.msrb.gmra.mxu2 %vm1224_vm8, %v1084_v13  ;;  %v922_v17 = vadd.f32 %v8172_v51, %v921_v16  ;;  %v7120_v2 = vunpack.i.l.bf16 %v7119_v5 }
 0x1d3   : > { %1428 = vmatpush.bf16.xpose.msrb.mxu2 %v1419_v60 }
 0x1d4   : > { %v934_v18 = vmul.f32 0.35355338, %v922_v17  ;;  %v2723_v17 = vunpack.c.l.b16 %v8247_v9 }
 0x1d6   : > { %v7182_v57 = vpack.i.bf16 %v934_v18, %v933_v7  ;;  %v1085_v4 = vpack.c.bf16 %v934_v18, %v934_v18  ;;  %v1206_v7 = vpack.c.bf16 %v7120_v2, %v7120_v2  ;;  %v2724_v18 = vpack.c.b16 %v2723_v17, %v2723_v17 }
 0x1d8   : > { %7173 = vrot.lane.b32.xlu1 %v7162_v10, %s7815_s20  ;;  %7178 = vrot.lane.b32.xlu2 %v7182_v57, %s7816_s1  ;;  %v7110_v10 = vunpack.i.l.bf16 %v7109_v0  ;;  %v2555_v12 = vunpack.c.l.b16 %v1206_v7  ;;  %v1495_v15 = vsel %vm1224_vm8, %v1206_v7, 0  ;;  %v7096_v0 = vunpack.i.h.bf16 %v8223_v8 }
 0x1d9   : > { %7183 = vrot.lane.b32.xlu0 %v7182_v57, %s10680_s22  ;;  %v1571_v7 = vsel %vm1224_vm8, %v8231_v48, 0 }
 0x1da   : > { %1333 = vmatpush.bf16.xpose.msrb.mxu3 %v1324_v50  ;;  %v2556_v13 = vpack.c.b16 %v2555_v12, %v2555_v12  ;;  %v8251_v16 = vpack.c.bf16 %v7110_v10, %v7110_v10  ;;  %v7125_v50 = vunpack.i.l.bf16 %v8249_v14 }
 0x1dc   : > { %v2699_v19 = vunpack.c.l.b16 %v8251_v16 }
 0x1de   : > { %v2700_v38 = vpack.c.b16 %v2699_v19, %v2699_v19  ;;  %v2363_v19 = vunpack.c.l.b16 %v8177_v44 }
 0x1e0   : > { %2245 = vrot.lane.b32.xlu1 %v2244_v21, %s10678_s28  ;;  %2341 = vrot.lane.b32.xlu2 %v2340_v43, %s10678_s28  ;;  %v8263_v43 = vpop.permute.xlu2 %7128 }
 0x1e1   : > { %6803 = vmatmul.msk.bf16.vlgmr.msra.gmra.mxu3 %vm1224_vm8, %v1083_v25  ;;  %2461 = vrot.lane.b32.xlu0 %v2460_v56, %s10678_s28 }
 0x1e2   : > { %1371 = vmatpush.bf16.xpose.msra.mxu3 %v1362_v28 }
 0x1e8   : > { %7188 = vrot.lane.b32.xlu1 %v7182_v57, %s7815_s20  ;;  %2389 = vrot.lane.b32.xlu2 %v2388_v32, %s10678_s28  ;;  %v8256_v57 = vpack.c.bf16 %v7125_v50, %v7125_v50 }
 0x1e9   : > { %2533 = vrot.lane.b32.xlu0 %v2532_v63, %s10678_s28 }
 0x1ea   : > { %v2747_v21 = vunpack.c.l.b16 %v8256_v57 }
 0x1ec   : > { %v2748_v22 = vpack.c.b16 %v2747_v21, %v2747_v21 }
 0x1f0   : > { %2509 = vrot.lane.b32.xlu2 %v2508_v58, %s10678_s28 }
 0x1f1   : > { %6805 = vmatmul.msk.bf16.vlgmr.msrb.gmra.mxu3 %vm1224_vm8, %v1085_v4  ;;  %2557 = vrot.lane.b32.xlu0 %v2556_v13, %s10678_s28  ;;  %v7121_v4 = vunpack.i.h.bf16 %v7119_v5 }
 0x1f2   : > { %1447 = vmatpush.bf16.xpose.msrb.mxu3 %v1438_v61 }
 0x1f3   : > { %v8275_v41 = vpack.c.bf16 %v7121_v4, %v7121_v4 }
 0x1f5   : > { %v1514_v60 = vsel %vm1224_vm8, %v8275_v41, 0 }
 0x1f8   : > { %2653 = vrot.lane.b32.xlu2 %v2652_v1, %s10678_s28  ;;  %v2316_v1 = vpack.c.b16 %v2315_v27, %v2315_v27 }
 0x1f9   : > { %2701 = vrot.lane.b32.xlu0 %v2700_v38, %s10678_s28  ;;  %v8300_v38 = vpack.c.bf16 %v7096_v0, %v7096_v0 }
 0x200   : > { %2725 = vrot.lane.b32.xlu2 %v2724_v18, %s10678_s28 }
 0x208   : > { %2749 = vrot.lane.b32.xlu2 %v2748_v22, %s10678_s28 }
 0x214   : > { %v8267_v3 = vpop.permute.xlu2 %7143 }
 0x222   : > { %v7149_v56 = vpop.permute.xlu2 %7148 }
 0x223   : > { %v7151_v53 = vunpack.i.h.bf16 %v7149_v56 }
 0x225   : > { %v1091_v44 = vpack.c.bf16 %v7151_v53, %v7151_v53 }
 0x22c   : > { %v924_v25 = vpop.f32.mrf.mxu3  ;;  %v8269_v34 = vpop.permute.xlu1 %7138 }
 0x22d   : > { %v925_v28 = vadd.f32 %v8172_v51, %v924_v25  ;;  %v8271_v42 = vpop.permute.xlu0 %7133 }
 0x22e   : > { %v7136_v25 = vunpack.i.h.bf16 %v8271_v42 }
 0x22f   : > { %v935_v29 = vmul.f32 0.35355338, %v925_v28  ;;  %v1457_v28 = vsel %vm1224_vm8, %v8227_v46, 0  ;;  %v8315_v46 = vpop.permute.xlu2 %2220 }
 0x231   : > { %v1086_v32 = vpack.c.bf16 %v935_v29, %v935_v29 }
 0x233   : > { %6806 = vmatmul.msk.bf16.vlgmr.msra.gmra.mxu2 %vm1224_vm8, %v1086_v32 }
 0x234   : > { %v926_v37 = vpop.f32.mrf.mxu3  ;;  %1504 = vmatpush.bf16.xpose.msra.mxu2 %v1495_v15  ;;  %v7135_v15 = vunpack.i.l.bf16 %v8271_v42  ;;  %v1590_v42 = vsel %vm1224_vm8, %v8300_v38, 0 }
 0x235   : > { %v927_v39 = vadd.f32 %v8172_v51, %v926_v37  ;;  %v7150_v51 = vunpack.i.l.bf16 %v7149_v56 }
 0x237   : > { %v936_v45 = vmul.f32 0.35355338, %v927_v39  ;;  %v1090_v62 = vpack.c.bf16 %v7150_v51, %v7150_v51 }
 0x239   : > { %v1087_v52 = vpack.c.bf16 %v936_v45, %v936_v45  ;;  %v7197_v54 = vpack.i.bf16 %v936_v45, %v935_v29  ;;  %v1476_v29 = vsel %vm1224_vm8, %v8233_v49, 0  ;;  %v2364_v45 = vpack.c.b16 %v2363_v19, %v2363_v19 }
 0x23a   : > { %v8277_v58 = vpop.permute.xlu1 %7158  ;;  %v1089_v49 = vpack.c.bf16 %v7136_v25, %v7136_v25  ;;  %v2675_v25 = vunpack.c.l.b16 %v8300_v38 }
 0x23b   : > { %v8281_v61 = vpop.permute.xlu0 %7153  ;;  %6807 = vmatmul.msk.bf16.vlgmr.msra.gmra.mxu3 %vm1224_vm8, %v1087_v52  ;;  %7198 = vrot.lane.b32.xlu2 %v7197_v54, %s10680_s22 }
 0x23c   : > { %7193 = vrot.lane.b32.xlu1 %v7197_v54, %s7816_s1  ;;  %7203 = vrot.lane.b32.xlu0 %v7197_v54, %s7815_s20 }
 0x23d   : > { %1523 = vmatpush.bf16.xpose.msra.mxu3 %v1514_v60  ;;  %v1088_v60 = vpack.c.bf16 %v7135_v15, %v7135_v15 }
 0x242   : > { %v7164_v63 = vpop.permute.xlu1 %7163 }
 0x243   : > { %v7165_v5 = vunpack.i.l.bf16 %v7164_v63  ;;  %v7169_v40 = vpop.permute.xlu0 %7168  ;;  %v8289_v2 = vpop.f32.mrf.mxu2  ;;  %6810 = vmatmul.msk.bf16.vlgmr.msrb.gmra.mxu2 %vm1224_vm8, %v1090_v62  ;;  %v7166_v10 = vunpack.i.h.bf16 %v7164_v63 }
 0x244   : > { %v7170_v12 = vunpack.i.l.bf16 %v7169_v40  ;;  %2317 = vrot.lane.b32.xlu1 %v2316_v1, %s10678_s28  ;;  %1580 = vmatpush.bf16.xpose.msrb.mxu2 %v1571_v7  ;;  %v7171_v50 = vunpack.i.h.bf16 %v7169_v40  ;;  %v2483_v1 = vunpack.c.l.b16 %v8229_v47  ;;  %v2579_v47 = vunpack.c.l.b16 %v8275_v41 }
 0x245   : > { %v1200_v13 = vpack.c.bf16 %v7165_v5, %v7165_v5  ;;  %v8295_v17 = vpack.c.bf16 %v7166_v10, %v7166_v10  ;;  %v1609_v41 = vsel %vm1224_vm8, %v8251_v16, 0  ;;  %v7141_v16 = vunpack.i.h.bf16 %v8269_v34 }
 0x246   : > { %v1208_v8 = vpack.c.bf16 %v7170_v12, %v7170_v12  ;;  %v8297_v18 = vpop.f32.mrf.mxu0  ;;  %v8311_v4 = vpack.c.bf16 %v7171_v50, %v7171_v50  ;;  %v2484_v40 = vpack.c.b16 %v2483_v1, %v2483_v1  ;;  %v7179_v12 = vpop.permute.xlu2 %7178  ;;  %v2580_v50 = vpack.c.b16 %v2579_v47, %v2579_v47 }
 0x247   : > { %v1381_v21 = vsel %vm1224_vm8, %v1200_v13, 0  ;;  %v1400_v48 = vsel %vm1224_vm8, %v8295_v17, 0  ;;  %v2411_v22 = vunpack.c.l.b16 %v1200_v13  ;;  %v7181_v53 = vunpack.i.h.bf16 %v7179_v12 }
 0x248   : > { %1390 = vmatpush.bf16.xpose.msrb.mxu0 %v1381_v21  ;;  %1409 = vmatpush.bf16.xpose.msrb.mxu1 %v1400_v48  ;;  %v2603_v32 = vunpack.c.l.b16 %v1208_v8  ;;  %v1533_v27 = vsel %vm1224_vm8, %v1208_v8, 0  ;;  %v1552_v62 = vsel %vm1224_vm8, %v8311_v4, 0  ;;  %v7180_v13 = vunpack.i.l.bf16 %v7179_v12 }
 0x249   : > { %v2412_v37 = vpack.c.b16 %v2411_v22, %v2411_v22  ;;  %v1093_v19 = vpack.c.bf16 %v7181_v53, %v7181_v53  ;;  %v7126_v22 = vunpack.i.h.bf16 %v8249_v14 }
 0x24a   : > { %v7174_v39 = vpop.permute.xlu1 %7173  ;;  %v2604_v52 = vpack.c.b16 %v2603_v32, %v2603_v32  ;;  %v1092_v21 = vpack.c.bf16 %v7180_v13, %v7180_v13  ;;  %v2676_v32 = vpack.c.b16 %v2675_v25, %v2675_v25  ;;  %v2627_v25 = vunpack.c.l.b16 %v8311_v4 }
 0x24b   : > { %v7175_v54 = vunpack.i.l.bf16 %v7174_v39  ;;  %v1280_v56 = vpop.f32.mrf.mxu2  ;;  %6811 = vmatmul.msk.bf16.vlgmr.msrb.gmra.mxu3 %vm1224_vm8, %v1091_v44  ;;  %2413 = vrot.lane.b32.xlu0 %v2412_v37, %s10678_s28  ;;  %v648_v44 = vlaneseq  ;;  %v7176_v38 = vunpack.i.h.bf16 %v7174_v39  ;;  %v7818_v39 = vmov 0.0  }
 0x24c   : > { %2365 = vrot.lane.b32.xlu1 %v2364_v45, %s10678_s28  ;;  %2605 = vrot.lane.b32.xlu2 %v2604_v52, %s10678_s28 }
 0x24d   : > { %v1216_v51 = vpack.c.bf16 %v7175_v54, %v7175_v54  ;;  %1599 = vmatpush.bf16.xpose.msrb.mxu3 %v1590_v42  ;;  %v649_v37 = vshrl.u32 %v648_v44, 7  ;;  %v8349_v45 = vand.u32 127, %v648_v44  ;;  %v8353_v54 = vpack.c.bf16 %v7176_v38, %v7176_v38 }
 0x24e   : > { %v1242_v63 = vpop.f32.mrf.mxu0  ;;  %v2227_v44 = vsel %vm2225_vm13, %v8315_v46, 0  ;;  %v2628_v38 = vpack.c.b16 %v2627_v25, %v2627_v25 }
 0x24f   : > { %6808 = vmatmul.msk.bf16.vlgmr.msrb.gmra.mxu0 %vm1224_vm8, %v1088_v60  ;;  %6809 = vmatmul.msk.bf16.vlgmr.msrb.gmra.mxu1 %vm1224_vm8, %v1089_v49  ;;  %v2795_v0 = vunpack.c.l.b16 %v1216_v51  ;;  %10714 = vst [vmem:[#allocation11_spill] sm:$0xff] %v8349_v45  ;;  %vm652_vm12 = vcmp.gt.s32.totalorder %v8349_v45, %v649_v37  ;;  %v1097_v49 = vpack.c.bf16 %v7141_v16, %v7141_v16  ;;  %v2435_v60 = vunpack.c.l.b16 %v8295_v17  ;;  %v2342_v37 = vpop.permute.xlu2 %2341 }
 0x250   : > { %1466 = vmatpush.bf16.xpose.msra.mxu0 %v1457_v28  ;;  %1485 = vmatpush.bf16.xpose.msra.mxu1 %v1476_v29  ;;  %v1628_v28 = vsel %vm1224_vm8, %v8247_v9, 0  ;;  %v8343_v29 = vpack.c.bf16 %v7126_v22, %v7126_v22  ;;  %v7140_v9 = vunpack.i.l.bf16 %v8269_v34  ;;  %v1685_v34 = vsel %vm1224_vm8, %v1216_v51, 0 }
 0x251   : > { %v2796_v5 = vpack.c.b16 %v2795_v0, %v2795_v0  ;;  %v2436_v1 = vpack.c.b16 %v2435_v60, %v2435_v60  ;;  %v7116_v51 = vunpack.i.h.bf16 %v8236_v59  ;;  %v7145_v22 = vunpack.i.l.bf16 %v8267_v3 }
 0x252   : > { %v2771_v14 = vunpack.c.l.b16 %v8343_v29  ;;  %v1096_v42 = vpack.c.bf16 %v7140_v9, %v7140_v9 }
 0x253   : > { %2797 = vrot.lane.b32.xlu0 %v2796_v5, %s10678_s28  ;;  %v7184_v5 = vpop.permute.xlu0 %7183  ;;  %v8380_v53 = vpack.c.bf16 %v7116_v51, %v7116_v51 }
 0x254   : > { %v8328_v7 = vpop.f32.mrf.mxu3  ;;  %2485 = vrot.lane.b32.xlu1 %v2484_v40, %s10678_s28  ;;  %v2772_v52 = vpack.c.b16 %v2771_v14, %v2771_v14  ;;  %v7115_v40 = vunpack.i.l.bf16 %v8236_v59  ;;  %v7186_v12 = vunpack.i.h.bf16 %v7184_v5  ;;  %v7185_v47 = vunpack.i.l.bf16 %v7184_v5 }
 0x255   : > { %v8331_v10 = vpop.f32.mrf.mxu2 }
 0x256   : > { %v8382_v13 = vpack.c.bf16 %v7115_v40, %v7115_v40 }
 0x257   : > { %v8405_v46 = vpop.permute.xlu2 %2389 }
 0x258   : > { %1542 = vmatpush.bf16.xpose.msrb.mxu0 %v1533_v27  ;;  %1561 = vmatpush.bf16.xpose.msrb.mxu1 %v1552_v62  ;;  %v8358_v27 = vsel %vm652_vm12, -1e+30, %v7818_v39  ;;  %v1704_v62 = vsel %vm1224_vm8, %v8353_v54, 0  ;;  %v1761_v59 = vsel %vm1224_vm8, %v8382_v13, 0 }
 0x259   : > { %v8367_v63 = vadd.f32 %v8297_v18, %v8358_v27  ;;  %v8378_v18 = vadd.f32 %v8289_v2, %v8358_v27  ;;  %v1780_v2 = vsel %vm1224_vm8, %v8380_v53, 0  ;;  %v8403_v4 = vadd.f32 %v8331_v10, %v8358_v27 }
 0x25a   : > { %v8414_v10 = vadd.f32 %v8328_v7, %v8358_v27  ;;  %v1647_v7 = vsel %vm1224_vm8, %v8256_v57, 0 }
 0x25b   : > { %v1833_v0 = vsel %vm1224_vm8, %v8367_v63, -inf  ;;  %v8422_v5 = vpop.permute.xlu0 %2461 }
 0x25c   : > { %v1261_v8 = vpop.f32.mrf.mxu3  ;;  %2581 = vrot.lane.b32.xlu1 %v2580_v50, %s10678_s28  ;;  %v1836_v39 = vsel %vm1224_vm8, %v8414_v10, -inf }
 0x25d   : > { %v1318_v48 = vpop.f32.mrf.mxu2  ;;  %v1839_v8 = vsel %vm1224_vm8, %v8378_v18, -inf }
 0x25e   : > { %v7146_v48 = vunpack.i.h.bf16 %v8267_v3 }
 0x25f   : > { %6812 = vmatmul.msk.bf16.vlgmr.msra.gmra.mxu0 %vm1224_vm8, %v1092_v21  ;;  %6813 = vmatmul.msk.bf16.vlgmr.msra.gmra.mxu1 %vm1224_vm8, %v1093_v19  ;;  %v1101_v19 = vpack.c.bf16 %v7186_v12, %v7186_v12  ;;  %v1100_v21 = vpack.c.bf16 %v7185_v47, %v7185_v47  ;;  %v8416_v60 = vpop.permute.xlu2 %2509  ;;  %v1666_v12 = vsel %vm1224_vm8, %v8343_v29, 0 }
 0x260   : > { %1618 = vmatpush.bf16.xpose.msra.mxu0 %v1609_v41  ;;  %1637 = vmatpush.bf16.xpose.msra.mxu1 %v1628_v28  ;;  %v2246_v41 = vpop.permute.xlu1 %2245  ;;  %v1105_v28 = vpack.c.bf16 %v7146_v48, %v7146_v48  ;;  %v7101_v48 = vunpack.i.h.bf16 %v8217_v33 }
 0x261   : > { %v2251_v14 = vsel %vm2225_vm13, %v2246_v41, 0  ;;  %v7156_v41 = vunpack.i.h.bf16 %v8281_v61 }
 0x263   : > { %v8442_v29 = vpop.permute.xlu0 %2533 }
 0x264   : > { %v8345_v15 = vpop.f32.mrf.mxu3  ;;  %2677 = vrot.lane.b32.xlu1 %v2676_v32, %s10678_s28  ;;  %v1104_v32 = vpack.c.bf16 %v7145_v22, %v7145_v22  ;;  %v7155_v22 = vunpack.i.l.bf16 %v8281_v61 }
 0x265   : > { %v8451_v25 = vadd.f32 %v8345_v15, %v8358_v27 }
 0x268   : > { %v7189_v3 = vpop.permute.xlu1 %7188 }
 0x269   : > { %v7191_v16 = vunpack.i.h.bf16 %v7189_v3  ;;  %v7190_v9 = vunpack.i.l.bf16 %v7189_v3  ;;  %v1842_v3 = vsel %vm1224_vm8, %v8451_v25, -inf }
 0x26c   : > { %v1299_v56 = vpop.f32.mrf.mxu3  ;;  %2773 = vrot.lane.b32.xlu1 %v2772_v52, %s10678_s28  ;;  %v1109_v52 = vpack.c.bf16 %v7191_v16, %v7191_v16  ;;  %v1099_v16 = vpack.c.bf16 %v7156_v41, %v7156_v41 }
 0x26d   : > { %v1108_v56 = vpack.c.bf16 %v7190_v9, %v7190_v9  ;;  %v8470_v9 = vpop.permute.xlu0 %2557 }
 0x26f   : > { %6816 = vmatmul.msk.bf16.vlgmr.msrb.gmra.mxu0 %vm1224_vm8, %v1096_v42  ;;  %6817 = vmatmul.msk.bf16.vlgmr.msrb.gmra.mxu1 %vm1224_vm8, %v1097_v49  ;;  %v1845_v49 = vsel %vm1224_vm8, %v8403_v4, -inf  ;;  %v2347_v42 = vsel %vm2225_vm13, %v2342_v37, 0 }
 0x270   : > { %1694 = vmatpush.bf16.xpose.msrb.mxu0 %v1685_v34  ;;  %1713 = vmatpush.bf16.xpose.msrb.mxu1 %v1704_v62  ;;  %v8420_v34 = vpop.permute.xlu2 %2653 }
 0x274   : > { %v8369_v17 = vpop.f32.mrf.mxu3  ;;  %2437 = vrot.lane.b32.xlu1 %v2436_v1, %s10678_s28 }
 0x275   : > { %1834 = vmax.xlane.f32.xlu2 %v1833_v0 }
 0x278   : > { %v8430_v47 = vpop.permute.xlu2 %2725 }
 0x27c   : > { %v1337_v50 = vpop.f32.mrf.mxu3 }
 0x27d   : > { %1840 = vmax.xlane.f32.xlu0 %v1839_v8  ;;  %v8434_v50 = vadd.f32 %v8369_v17, %v8358_v27  ;;  %v7100_v17 = vunpack.i.l.bf16 %v8217_v33  ;;  %v1098_v33 = vpack.c.bf16 %v7155_v22, %v7155_v22 }
 0x27f   : > { %6820 = vmatmul.msk.bf16.vlgmr.msra.gmra.mxu0 %vm1224_vm8, %v1100_v21  ;;  %6821 = vmatmul.msk.bf16.vlgmr.msra.gmra.mxu1 %vm1224_vm8, %v1101_v19 }
 0x280   : > { %1770 = vmatpush.bf16.xpose.msra.mxu0 %v1761_v59  ;;  %1789 = vmatpush.bf16.xpose.msra.mxu1 %v1780_v2  ;;  %v1848_v2 = vsel %vm1224_vm8, %v8434_v50, -inf }
 0x28f   : > { %6824 = vmatmul.msk.bf16.vlgmr.msrb.gmra.mxu0 %vm1224_vm8, %v1104_v32  ;;  %6825 = vmatmul.msk.bf16.vlgmr.msrb.gmra.mxu1 %vm1224_vm8, %v1105_v28  ;;  %v8454_v32 = vpack.c.bf16 %v7100_v17, %v7100_v17 }
 0x290   : > { %2236 = vmatpush.bf16.msrb.mxu0 %v2227_v44  ;;  %2260 = vmatpush.bf16.msrb.mxu1 %v2251_v14  ;;  %v8456_v14 = vpack.c.bf16 %v7101_v48, %v7101_v48 }
 0x291   : > { %2629 = vrot.lane.b32.xlu0 %v2628_v38, %s10678_s28  ;;  %v8458_v38 = vpop.permute.xlu2 %2749  ;;  %v1723_v15 = vsel %vm1224_vm8, %v8454_v32, 0 }
 0x29e   : > { %1846 = vmax.xlane.f32.xlu1 %v1845_v49 }
 0x29f   : > { %6828 = vmatmul.msk.bf16.vlgmr.msra.gmra.mxu0 %vm1224_vm8, %v1108_v56  ;;  %6829 = vmatmul.msk.bf16.vlgmr.msra.gmra.mxu1 %vm1224_vm8, %v1109_v52  ;;  %v1742_v52 = vsel %vm1224_vm8, %v8456_v14, 0 }
 0x2a0   : > { %2356 = vmatpush.bf16.msra.mxu1 %v2347_v42 }
 0x2a6   : > { %1837 = vmax.xlane.f32.xlu1 %v1836_v39 }
 0x2ae   : > { %v7194_v62 = vpop.permute.xlu1 %7193 }
 0x2af   : > { %v7196_v1 = vunpack.i.h.bf16 %v7194_v62  ;;  %v7195_v0 = vunpack.i.l.bf16 %v7194_v62  ;;  %v7199_v62 = vpop.permute.xlu2 %7198 }
 0x2b1   : > { %v1095_v51 = vpack.c.bf16 %v7196_v1, %v7196_v1  ;;  %v1094_v40 = vpack.c.bf16 %v7195_v0, %v7195_v0  ;;  %v7130_v1 = vunpack.i.l.bf16 %v8263_v43  ;;  %v7131_v0 = vunpack.i.h.bf16 %v8263_v43 }
 0x2b3   : > { %6814 = vmatmul.msk.bf16.vlgmr.msra.gmra.mxu2 %vm1224_vm8, %v1094_v40  ;;  %6815 = vmatmul.msk.bf16.vlgmr.msra.gmra.mxu3 %vm1224_vm8, %v1095_v51  ;;  %v8491_v48 = vpack.c.bf16 %v7131_v0, %v7131_v0 }
 0x2b4   : > { %1656 = vmatpush.bf16.xpose.msra.mxu2 %v1647_v7  ;;  %1675 = vmatpush.bf16.xpose.msra.mxu3 %v1666_v12  ;;  %v7200_v7 = vunpack.i.l.bf16 %v7199_v62 }
 0x2b5   : > { %10716 = vst [vmem:[#allocation13_spill] sm:$0xff] %v8491_v48 }
 0x2b6   : > { %v2318_v8 = vpop.permute.xlu1 %2317  ;;  %v1354_v19 = vpop.f32.mrf.mxu2  ;;  %v1102_v22 = vpack.c.bf16 %v7200_v7, %v7200_v7 }
 0x2b7   : > { %v2323_v21 = vsel %vm2225_vm13, %v2318_v8, 0  ;;  %v8438_v59 = vadd.f32 %v1354_v19, %v8358_v27  ;;  %v7201_v8 = vunpack.i.h.bf16 %v7199_v62  ;;  %v8485_v19 = vpop.permute.xlu0 %2701 }
 0x2b8   : > { %2332 = vmatpush.bf16.msra.mxu0 %v2323_v21 }
 0x2b9   : > { %v1851_v57 = vsel %vm1224_vm8, %v8438_v59, -inf  ;;  %v1103_v41 = vpack.c.bf16 %v7201_v8, %v7201_v8 }
 0x2ba   : > { %1852 = vmax.xlane.f32.xlu2 %v1851_v57  ;;  %v8487_v57 = vpack.c.bf16 %v7130_v1, %v7130_v1  ;;  %v7160_v1 = vunpack.i.l.bf16 %v8277_v58 }
 0x2bb   : > { %1849 = vmax.xlane.f32.xlu0 %v1848_v2 }
 0x2bc   : > { %10715 = vst [vmem:[#allocation12_spill] sm:$0xff] %v8487_v57  ;;  %v1106_v8 = vpack.c.bf16 %v7160_v1, %v7160_v1 }
 0x2be   : > { %v1356_v28 = vpop.f32.mrf.mxu2  ;;  %v1373_v44 = vpop.f32.mrf.mxu3 }
 0x2bf   : > { %v8461_v37 = vadd.f32 %v1373_v44, %v8358_v27  ;;  %v1799_v44 = vsel %vm1224_vm8, %v8487_v57, 0 }
 0x2c1   : > { %v1854_v61 = vsel %vm1224_vm8, %v8461_v37, -inf }
 0x2c2   : > { %1843 = vmax.xlane.f32.xlu2 %v1842_v3  ;;  %1855 = vmax.xlane.f32.xlu1 %v1854_v61  ;;  %v7204_v61 = vpop.permute.xlu0 %7203 }
 0x2c3   : > { %6818 = vmatmul.msk.bf16.vlgmr.msrb.gmra.mxu2 %vm1224_vm8, %v1098_v33  ;;  %6819 = vmatmul.msk.bf16.vlgmr.msrb.gmra.mxu3 %vm1224_vm8, %v1099_v16  ;;  %v1818_v33 = vsel %vm1224_vm8, %v8491_v48, 0 }
 0x2c4   : > { %1732 = vmatpush.bf16.xpose.msrb.mxu2 %v1723_v15  ;;  %1751 = vmatpush.bf16.xpose.msrb.mxu3 %v1742_v52  ;;  %v2366_v52 = vpop.permute.xlu1 %2365 }
 0x2c6   : > { %v1430_v56 = vpop.f32.mrf.mxu2  ;;  %v1375_v49 = vpop.f32.mrf.mxu3 }
 0x2c7   : > { %v8476_v42 = vadd.f32 %v1430_v56, %v8358_v27 }
 0x2c9   : > { %v1863_v39 = vsel %vm1224_vm8, %v8476_v42, -inf }
 0x2ca   : > { %1864 = vmax.xlane.f32.xlu1 %v1863_v39  ;;  %v8516_v7 = vpop.permute.xlu0 %2413 }
 0x2cc   : > { %v1392_v51 = vpop.f32.mrf.mxu0  ;;  %v1411_v40 = vpop.f32.mrf.mxu1 }
 0x2cd   : > { %v8483_v12 = vadd.f32 %v1411_v40, %v8358_v27  ;;  %v8505_v15 = vadd.f32 %v1392_v51, %v8358_v27  ;;  %v7161_v40 = vunpack.i.h.bf16 %v8277_v58 }
 0x2ce   : > { %v1432_v21 = vpop.f32.mrf.mxu2  ;;  %v1449_v2 = vpop.f32.mrf.mxu3 }
 0x2cf   : > { %v1860_v17 = vsel %vm1224_vm8, %v8483_v12, -inf  ;;  %v8494_v43 = vadd.f32 %v1449_v2, %v8358_v27  ;;  %v1857_v49 = vsel %vm1224_vm8, %v8505_v15, -inf  ;;  %v8520_v21 = vpop.permute.xlu1 %2485  ;;  %v1107_v2 = vpack.c.bf16 %v7161_v40, %v7161_v40 }
 0x2d0   : > { %1861 = vmax.xlane.f32.xlu2 %v1860_v17  ;;  %v2275_v17 = vsel %vm2225_vm13, %v8211_v26, 0 }
 0x2d1   : > { %v1866_v28 = vsel %vm1224_vm8, %v8494_v43, -inf }
 0x2d2   : > { %1867 = vmax.xlane.f32.xlu0 %v1866_v28  ;;  %v8528_v28 = vpop.permute.xlu2 %2605 }
 0x2d3   : > { %6822 = vmatmul.msk.bf16.vlgmr.msra.gmra.mxu2 %vm1224_vm8, %v1102_v22  ;;  %6823 = vmatmul.msk.bf16.vlgmr.msra.gmra.mxu3 %vm1224_vm8, %v1103_v41  ;;  %v2299_v22 = vsel %vm2225_vm13, %v8221_v55, 0 }
 0x2d4   : > { %1808 = vmatpush.bf16.xpose.msra.mxu2 %v1799_v44  ;;  %v1394_v3 = vpop.f32.mrf.mxu0  ;;  %v1413_v16 = vpop.f32.mrf.mxu1  ;;  %1827 = vmatpush.bf16.xpose.msra.mxu3 %v1818_v33 }
 0x2d5   : > { %v8530_v44 = vpop.permute.xlu0 %2797  ;;  %v7205_v16 = vunpack.i.l.bf16 %v7204_v61 }
 0x2d6   : > { %v1451_v56 = vpop.f32.mrf.mxu3  ;;  %10717 = vst [vmem:[#allocation14_spill] sm:$0xff] %v8530_v44 }
 0x2d7   : > { %v8532_v33 = vpop.permute.xlu1 %2581  ;;  %v7206_v56 = vunpack.i.h.bf16 %v7204_v61  ;;  %v1110_v55 = vpack.c.bf16 %v7205_v16, %v7205_v16 }
 0x2d9   : > { %v1111_v40 = vpack.c.bf16 %v7206_v56, %v7206_v56 }
 0x2da   : > { %1858 = vmax.xlane.f32.xlu0 %v1857_v49 }
 0x2dc   : > { %v1468_v39 = vpop.f32.mrf.mxu0  ;;  %v8509_v62 = vpop.f32.mrf.mxu1 }
 0x2dd   : > { %v8513_v0 = vadd.f32 %v1468_v39, %v8358_v27  ;;  %v8599_v20 = vadd.f32 %v8509_v62, %v8358_v27 }
 0x2df   : > { %v1869_v51 = vsel %vm1224_vm8, %v8513_v0, -inf }
 0x2e0   : > { %1870 = vmax.xlane.f32.xlu2 %v1869_v51  ;;  %v2371_v51 = vsel %vm2225_vm13, %v2366_v52, 0 }
 0x2e3   : > { %6826 = vmatmul.msk.bf16.vlgmr.msrb.gmra.mxu2 %vm1224_vm8, %v1106_v8  ;;  %6827 = vmatmul.msk.bf16.vlgmr.msrb.gmra.mxu3 %vm1224_vm8, %v1107_v2 }
 0x2e4   : > { %2284 = vmatpush.bf16.msrb.mxu2 %v2275_v17  ;;  %v1470_v58 = vpop.f32.mrf.mxu0  ;;  %v1489_v41 = vpop.f32.mrf.mxu1  ;;  %2308 = vmatpush.bf16.msrb.mxu3 %v2299_v22  ;;  %v2395_v17 = vsel %vm2225_vm13, %v8405_v46, 0 }
 0x2e5   : > { %v8543_v58 = vpop.permute.xlu1 %2677 }
 0x2e8   : > { %v1835_v49 = vpop.xlane.xlu2 %1834 }
 0x2e9   : > { %v1929_v8 = vsub.f32 %v8367_v63, %v1835_v49 }
 0x2ec   : > { %v8534_v3 = vpop.f32.mrf.mxu0  ;;  %v1563_v26 = vpop.f32.mrf.mxu1 }
 0x2ed   : > { %v8553_v16 = vpop.permute.xlu1 %2773 }
 0x2ee   : > { %10718 = vst [vmem:[#allocation15_spill] sm:$0xff] %v8553_v16 }
 0x2f0   : > { %v1841_v39 = vpop.xlane.xlu0 %1840 }
 0x2f1   : > { %v1931_v1 = vsub.f32 %v8378_v18, %v1841_v39  ;;  %v1961_v18 = vmul.f32 1.442695, %v1929_v8 }
 0x2f3   : > { %v1965_v2 = vmul.f32 1.442695, %v1931_v1  ;;  %6830 = vmatmul.msk.bf16.vlgmr.msra.gmra.mxu2 %vm1224_vm8, %v1110_v55  ;;  %6831 = vmatmul.msk.bf16.vlgmr.msra.gmra.mxu3 %vm1224_vm8, %v1111_v40 }
 0x2f4   : > { %2380 = vmatpush.bf16.msra.mxu2 %v2371_v51  ;;  %v1546_v61 = vpop.f32.mrf.mxu0  ;;  %v1565_v22 = vpop.f32.mrf.mxu1  ;;  %2404 = vmatpush.bf16.msra.mxu3 %v2395_v17 }
 0x2f5   : > { %7485 = vpow2.f32 %v1965_v2  ;;  %v8559_v1 = vpop.permute.xlu1 %2437 }
 0x2f6   : > { %7487 = vpow2.f32 %v1961_v18 }
 0x2fb   : > { %v8545_v41 = vpop.eup %7485 }
 0x2fc   : > { %v8547_v63 = vpop.f32.mrf.mxu0  ;;  %v8549_v52 = vpop.f32.mrf.mxu1  ;;  %v2031_v46 = vsel %vm1224_vm8, %v8545_v41, 0.0 }
 0x2fd   : > { %2032 = vadd.xlane.f32.xlu0 %v2031_v46  ;;  %v8555_v56 = vpop.eup %7487 }
 0x2fe   : > { %v2025_v55 = vsel %vm1224_vm8, %v8555_v56, 0.0 }
 0x304   : > { %v1622_v49 = vpop.f32.mrf.mxu0  ;;  %v1641_v39 = vpop.f32.mrf.mxu1 }
 0x305   : > { %2026 = vadd.xlane.f32.xlu0 %v2025_v55 }
 0x30c   : > { %v8561_v40 = vpop.f32.mrf.mxu0  ;;  %v8563_v51 = vpop.f32.mrf.mxu1 }
 0x311   : > { %v1847_v8 = vpop.xlane.xlu1 %1846 }
 0x312   : > { %v1933_v2 = vsub.f32 %v8403_v4, %v1847_v8 }
 0x314   : > { %v1969_v17 = vmul.f32 1.442695, %v1933_v2  ;;  %v1698_v61 = vpop.f32.mrf.mxu0  ;;  %v1717_v22 = vpop.f32.mrf.mxu1 }
 0x316   : > { %7489 = vpow2.f32 %v1969_v17 }
 0x319   : > { %v1838_v18 = vpop.xlane.xlu1 %1837 }
 0x31a   : > { %v1930_v46 = vsub.f32 %v8414_v10, %v1838_v18  ;;  %v8580_v10 = vadd.f32 %v1563_v26, %v8358_v27  ;;  %v8584_v18 = vpop.permute.xlu0 %2629 }
 0x31c   : > { %v8567_v49 = vpop.eup %7489  ;;  %v1963_v39 = vmul.f32 1.442695, %v1930_v46  ;;  %v8569_v55 = vpop.f32.mrf.mxu0  ;;  %v1884_v61 = vsel %vm1224_vm8, %v8580_v10, -inf }
 0x31d   : > { %v8571_v45 = vpop.f32.mrf.mxu1  ;;  %v2037_v31 = vsel %vm1224_vm8, %v8567_v49, 0.0 }
 0x31e   : > { %7491 = vpow2.f32 %v1963_v39  ;;  %2038 = vadd.xlane.f32.xlu1 %v2037_v31 }
 0x324   : > { %v8575_v4 = vpop.eup %7491  ;;  %v1774_v8 = vpop.f32.mrf.mxu0 }
 0x325   : > { %v1793_v2 = vpop.f32.mrf.mxu1  ;;  %v2028_v17 = vsel %vm1224_vm8, %v8575_v4, 0.0 }
 0x326   : > { %2029 = vadd.xlane.f32.xlu2 %v2028_v17 }
 0x32d   : > { %v1853_v22 = vpop.xlane.xlu2 %1852 }
 0x32e   : > { %1885 = vmax.xlane.f32.xlu2 %v1884_v61  ;;  %v1935_v8 = vsub.f32 %v8438_v59, %v1853_v22  ;;  %v8603_v59 = vadd.f32 %v8534_v3, %v8358_v27 }
 0x330   : > { %v1973_v61 = vmul.f32 1.442695, %v1935_v8  ;;  %v1881_v8 = vsel %vm1224_vm8, %v8603_v59, -inf }
 0x332   : > { %7493 = vpow2.f32 %v1973_v61 }
 0x335   : > { %v1844_v22 = vpop.xlane.xlu2 %1843 }
 0x336   : > { %v1506_v46 = vpop.f32.mrf.mxu2  ;;  %v1525_v39 = vpop.f32.mrf.mxu3  ;;  %v1932_v35 = vsub.f32 %v8451_v25, %v1844_v22 }
 0x337   : > { %v8587_v31 = vadd.f32 %v1506_v46, %v8358_v27  ;;  %v8591_v2 = vadd.f32 %v1525_v39, %v8358_v27  ;;  %v1850_v46 = vpop.xlane.xlu0 %1849 }
 0x338   : > { %v1967_v62 = vmul.f32 1.442695, %v1932_v35 }
 0x339   : > { %v1875_v26 = vsel %vm1224_vm8, %v8587_v31, -inf  ;;  %v1878_v17 = vsel %vm1224_vm8, %v8591_v2, -inf }
 0x33a   : > { %1876 = vmax.xlane.f32.xlu1 %v1875_v26  ;;  %1879 = vmax.xlane.f32.xlu0 %v1878_v17  ;;  %v1872_v26 = vsel %vm1224_vm8, %v8599_v20, -inf  ;;  %v8610_v17 = vpop.eup %7493  ;;  %7495 = vpow2.f32 %v1967_v62 }
 0x33b   : > { %v2043_v35 = vsel %vm1224_vm8, %v8610_v17, 0.0 }
 0x33e   : > { %v1508_v39 = vpop.f32.mrf.mxu2  ;;  %v1527_v30 = vpop.f32.mrf.mxu3 }
 0x342   : > { %1873 = vmax.xlane.f32.xlu1 %v1872_v26  ;;  %1882 = vmax.xlane.f32.xlu0 %v1881_v8 }
 0x343   : > { %v8625_v8 = vpop.xlane.xlu2 %1861 }
 0x345   : > { %v1868_v36 = vpop.xlane.xlu0 %1867 }
 0x346   : > { %v1582_v3 = vpop.f32.mrf.mxu2  ;;  %v1601_v24 = vpop.f32.mrf.mxu3  ;;  %v1940_v39 = vsub.f32 %v8494_v43, %v1868_v36 }
 0x347   : > { %v8614_v30 = vadd.f32 %v1582_v3, %v8358_v27  ;;  %v8617_v25 = vadd.f32 %v1601_v24, %v8358_v27  ;;  %v8627_v24 = vpop.eup %7495 }
 0x348   : > { %v1983_v61 = vmul.f32 1.442695, %v1940_v39  ;;  %v2034_v3 = vsel %vm1224_vm8, %v8627_v24, 0.0 }
 0x349   : > { %v1887_v22 = vsel %vm1224_vm8, %v8614_v30, -inf  ;;  %v1890_v26 = vsel %vm1224_vm8, %v8617_v25, -inf }
 0x34a   : > { %2044 = vadd.xlane.f32.xlu1 %v2043_v35  ;;  %7497 = vpow2.f32 %v1983_v61  ;;  %1891 = vmax.xlane.f32.xlu2 %v1890_v26  ;;  %v8638_v61 = vadd.f32 %v8547_v63, %v8358_v27 }
 0x34b   : > { %1888 = vmax.xlane.f32.xlu0 %v1887_v22 }
 0x34e   : > { %v1584_v36 = vpop.f32.mrf.mxu2  ;;  %v1603_v43 = vpop.f32.mrf.mxu3 }
 0x34f   : > { %v1893_v43 = vsel %vm1224_vm8, %v8638_v61, -inf }
 0x350   : > { %v8629_v62 = vpop.eup %7497 }
 0x351   : > { %v2058_v39 = vsel %vm1224_vm8, %v8629_v62, 0.0 }
 0x352   : > { %2059 = vadd.xlane.f32.xlu1 %v2058_v39 }
 0x353   : > { %2035 = vadd.xlane.f32.xlu0 %v2034_v3  ;;  %v1871_v35 = vpop.xlane.xlu2 %1870 }
 0x354   : > { %v1941_v23 = vsub.f32 %v8513_v0, %v1871_v35 }
 0x356   : > { %v1985_v22 = vmul.f32 1.442695, %v1941_v23  ;;  %v1658_v26 = vpop.f32.mrf.mxu2  ;;  %v1677_v36 = vpop.f32.mrf.mxu3  ;;  %v1934_v23 = vsub.f32 %v8434_v50, %v1850_v46 }
 0x357   : > { %v8645_v3 = vadd.f32 %v1658_v26, %v8358_v27 }
 0x358   : > { %7499 = vpow2.f32 %v1985_v22  ;;  %v1971_v35 = vmul.f32 1.442695, %v1934_v23  ;;  %v1856_v22 = vpop.xlane.xlu1 %1855  ;;  %v8668_v23 = vadd.f32 %v8563_v51, %v8358_v27  ;;  %v8679_v51 = vadd.f32 %v1677_v36, %v8358_v27 }
 0x359   : > { %v1899_v63 = vsel %vm1224_vm8, %v8645_v3, -inf  ;;  %v1936_v44 = vsub.f32 %v8461_v37, %v1856_v22 }
 0x35a   : > { %7501 = vpow2.f32 %v1971_v35  ;;  %v1908_v35 = vsel %vm1224_vm8, %v8668_v23, -inf }
 0x35b   : > { %1894 = vmax.xlane.f32.xlu0 %v1893_v43  ;;  %v8654_v43 = vadd.f32 %v8549_v52, %v8358_v27  ;;  %v1975_v52 = vmul.f32 1.442695, %v1936_v44 }
 0x35d   : > { %v1896_v46 = vsel %vm1224_vm8, %v8654_v43, -inf  ;;  %7503 = vpow2.f32 %v1975_v52 }
 0x35e   : > { %v8642_v6 = vpop.eup %7499  ;;  %v1660_v39 = vpop.f32.mrf.mxu2 }
 0x35f   : > { %v1679_v11 = vpop.f32.mrf.mxu3  ;;  %v2061_v0 = vsel %vm1224_vm8, %v8642_v6, 0.0 }
 0x360   : > { %2062 = vadd.xlane.f32.xlu1 %v2061_v0  ;;  %v8660_v0 = vpop.xlane.xlu0 %1858  ;;  %v1865_v36 = vpop.xlane.xlu1 %1864 }
 0x363   : > { %1900 = vmax.xlane.f32.xlu0 %v1899_v63 }
 0x366   : > { %v1734_v26 = vpop.f32.mrf.mxu2 }
 0x367   : > { %v8657_v39 = vadd.f32 %v1734_v26, %v8358_v27  ;;  %v1753_v11 = vpop.f32.mrf.mxu3  ;;  %v8670_v26 = vpop.eup %7501 }
 0x368   : > { %v2040_v16 = vsel %vm1224_vm8, %v8670_v26, 0.0  ;;  %v8676_v44 = vpop.eup %7503  ;;  %v8690_v48 = vadd.f32 %v1753_v11, %v8358_v27 }
 0x369   : > { %v1911_v50 = vsel %vm1224_vm8, %v8657_v39, -inf }
 0x36a   : > { %1912 = vmax.xlane.f32.xlu2 %v1911_v50 }
 0x36b   : > { %1897 = vmax.xlane.f32.xlu0 %v1896_v46 }
 0x36e   : > { %v1736_v63 = vpop.f32.mrf.mxu2 }
 0x36f   : > { %v1755_v37 = vpop.f32.mrf.mxu3 }
 0x370   : > { %v2033_v22 = vpop.xlane.xlu0 %2032 }
 0x371   : > { %7505 = vrcp.f32 %v2033_v22  ;;  %v2046_v22 = vsel %vm1224_vm8, %v8676_v44, 0.0 }
 0x372   : > { %1909 = vmax.xlane.f32.xlu2 %v1908_v35  ;;  %v1902_v35 = vsel %vm1224_vm8, %v8679_v51, -inf }
 0x373   : > { %2041 = vadd.xlane.f32.xlu0 %v2040_v16  ;;  %v2467_v16 = vsel %vm2225_vm13, %v8422_v5, 0  ;;  %v1914_v5 = vsel %vm1224_vm8, %v8690_v48, -inf }
 0x376   : > { %v1810_v50 = vpop.f32.mrf.mxu2 }
 0x377   : > { %v7506_v46 = vpop.eup %7505  ;;  %v1829_v63 = vpop.f32.mrf.mxu3 }
 0x378   : > { %v2155_v52 = vmul.f32 %v7506_v46, %v8545_v41  ;;  %v2027_v37 = vpop.xlane.xlu0 %2026  ;;  %v8694_v41 = vadd.f32 %v8561_v40, %v8358_v27  ;;  %v2419_v40 = vsel %vm2225_vm13, %v8516_v7, 0 }
 0x379   : > { %7507 = vrcp.f32 %v2027_v37 }
 0x37a   : > { %v2187_v57 = vpack.c.bf16 %v2155_v52, %v2155_v52  ;;  %2047 = vadd.xlane.f32.xlu2 %v2046_v22  ;;  %v1939_v22 = vsub.f32 %v8476_v42, %v1865_v36  ;;  %v1905_v11 = vsel %vm1224_vm8, %v8694_v41, -inf  ;;  %v8707_v42 = vadd.f32 %v8569_v55, %v8358_v27 }
 0x37b   : > { %1903 = vmax.xlane.f32.xlu0 %v1902_v35  ;;  %v1937_v55 = vsub.f32 %v8505_v15, %v8660_v0 }
 0x37c   : > { %6834 = vmatmul.msk.bf16.vlgmr.msrb.gmra.mxu2 %vm1224_vm8, %v2187_v57  ;;  %v1917_v36 = vsel %vm1224_vm8, %v8707_v42, -inf }
 0x37d   : > { %2476 = vmatpush.bf16.msrb.mxu2 %v2467_v16  ;;  %v1981_v16 = vmul.f32 1.442695, %v1939_v22 }
 0x37e   : > { %v1812_v46 = vpop.f32.mrf.mxu2 }
 0x37f   : > { %v7508_v52 = vpop.eup %7507  ;;  %v1831_v37 = vpop.f32.mrf.mxu3  ;;  %7509 = vpow2.f32 %v1981_v16  ;;  %v2515_v16 = vsel %vm2225_vm13, %v8416_v60, 0 }
 0x380   : > { %v2153_v35 = vmul.f32 %v7508_v52, %v8555_v56  ;;  %v8710_v56 = vadd.f32 %v1810_v50, %v8358_v27  ;;  %v8720_v52 = vadd.f32 %v8571_v45, %v8358_v27  ;;  %v1938_v45 = vsub.f32 %v8483_v12, %v8625_v8 }
 0x382   : > { %v2185_v57 = vpack.c.bf16 %v2153_v35, %v2153_v35  ;;  %1915 = vmax.xlane.f32.xlu2 %v1914_v5  ;;  %v1923_v46 = vsel %vm1224_vm8, %v8710_v56, -inf  ;;  %v1920_v22 = vsel %vm1224_vm8, %v8720_v52, -inf  ;;  %v1977_v35 = vmul.f32 1.442695, %v1937_v55 }
 0x383   : > { %1906 = vmax.xlane.f32.xlu0 %v1905_v11  ;;  %v8729_v5 = vadd.f32 %v1829_v63, %v8358_v27  ;;  %v2443_v55 = vsel %vm2225_vm13, %v8559_v1, 0 }
 0x384   : > { %6832 = vmatmul.msk.bf16.vlgmr.msrb.gmra.mxu0 %vm1224_vm8, %v2185_v57 }
 0x385   : > { %2428 = vmatpush.bf16.msrb.mxu0 %v2419_v40  ;;  %v8716_v7 = vpop.eup %7509  ;;  %v1926_v11 = vsel %vm1224_vm8, %v8729_v5, -inf }
 0x386   : > { %v2055_v37 = vsel %vm1224_vm8, %v8716_v7, 0.0 }
 0x38a   : > { %1918 = vmax.xlane.f32.xlu2 %v1917_v36  ;;  %v1979_v36 = vmul.f32 1.442695, %v1938_v45 }
 0x38b   : > { %1924 = vmax.xlane.f32.xlu0 %v1923_v46 }
 0x391   : > { %v2039_v50 = vpop.xlane.xlu1 %2038 }
 0x392   : > { %7511 = vrcp.f32 %v2039_v50  ;;  %2056 = vadd.xlane.f32.xlu2 %v2055_v37 }
 0x393   : > { %1921 = vmax.xlane.f32.xlu0 %v1920_v22  ;;  %7513 = vpow2.f32 %v1977_v35 }
 0x398   : > { %v7512_v57 = vpop.eup %7511 }
 0x399   : > { %v2157_v15 = vmul.f32 %v7512_v57, %v8567_v49  ;;  %v2030_v0 = vpop.xlane.xlu2 %2029  ;;  %v8739_v63 = vpop.eup %7513 }
 0x39a   : > { %7515 = vrcp.f32 %v2030_v0  ;;  %v2049_v8 = vsel %vm1224_vm8, %v8739_v63, 0.0 }
 0x39b   : > { %v2189_v40 = vpack.c.bf16 %v2157_v15, %v2157_v15  ;;  %1927 = vmax.xlane.f32.xlu0 %v1926_v11  ;;  %7517 = vpow2.f32 %v1979_v36 }
 0x39d   : > { %6836 = vmatmul.msk.bf16.vlgmr.msra.gmra.mxu0 %vm1224_vm8, %v2189_v40 }
 0x39e   : > { %2524 = vmatpush.bf16.msra.mxu0 %v2515_v16 }
 0x3a0   : > { %v7516_v12 = vpop.eup %7515 }
 0x3a1   : > { %v2154_v49 = vmul.f32 %v7516_v12, %v8575_v4  ;;  %v8747_v60 = vpop.eup %7517  ;;  %v1886_v37 = vpop.xlane.xlu2 %1885  ;;  %v2843_v12 = vunpack.c.l.b16 %v8454_v32 }
 0x3a2   : > { %v2052_v50 = vsel %vm1224_vm8, %v8747_v60, 0.0  ;;  %v1946_v57 = vsub.f32 %v8580_v10, %v1886_v37 }
 0x3a3   : > { %v2186_v46 = vpack.c.bf16 %v2154_v49, %v2154_v49  ;;  %2050 = vadd.xlane.f32.xlu0 %v2049_v8 }
 0x3a4   : > { %v1995_v15 = vmul.f32 1.442695, %v1946_v57 }
 0x3a5   : > { %6833 = vmatmul.msk.bf16.vlgmr.msrb.gmra.mxu1 %vm1224_vm8, %v2186_v46 }
 0x3a6   : > { %2452 = vmatpush.bf16.msrb.mxu1 %v2443_v55 }
 0x3ab   : > { %2053 = vadd.xlane.f32.xlu0 %v2052_v50 }
 0x3ad   : > { %v1877_v22 = vpop.xlane.xlu1 %1876  ;;  %v1880_v4 = vpop.xlane.xlu0 %1879 }
 0x3ae   : > { %v1943_v35 = vsub.f32 %v8587_v31, %v1877_v22  ;;  %v2844_v31 = vpack.c.b16 %v2843_v12, %v2843_v12 }
 0x3b0   : > { %v1989_v45 = vmul.f32 1.442695, %v1943_v35 }
 0x3b2   : > { %7519 = vpow2.f32 %v1989_v45 }
 0x3b3   : > { %7521 = vpow2.f32 %v1995_v15  ;;  %v2563_v15 = vsel %vm2225_vm13, %v8470_v9, 0  ;;  %v2819_v9 = vunpack.c.l.b16 %v8353_v54 }
 0x3b5   : > { %v1874_v1 = vpop.xlane.xlu1 %1873  ;;  %v8753_v0 = vpop.xlane.xlu0 %1882 }
 0x3b6   : > { %v1942_v11 = vsub.f32 %v8599_v20, %v1874_v1 }
 0x3b8   : > { %v8756_v40 = vpop.eup %7519  ;;  %v1987_v16 = vmul.f32 1.442695, %v1942_v11 }
 0x3b9   : > { %v2067_v36 = vsel %vm1224_vm8, %v8756_v40, 0.0  ;;  %v8761_v49 = vpop.eup %7521 }
 0x3ba   : > { %7523 = vpow2.f32 %v1987_v16  ;;  %2068 = vadd.xlane.f32.xlu1 %v2067_v36  ;;  %v2076_v32 = vsel %vm1224_vm8, %v8761_v49, 0.0 }
 0x3bd   : > { %v2045_v10 = vpop.xlane.xlu1 %2044  ;;  %v1892_v8 = vpop.xlane.xlu2 %1891 }
 0x3be   : > { %v8763_v46 = vpop.xlane.xlu0 %1888  ;;  %7525 = vrcp.f32 %v2045_v10  ;;  %v1948_v20 = vsub.f32 %v8617_v25, %v1892_v8 }
 0x3bf   : > { %2845 = vrot.lane.b32.xlu0 %v2844_v31, %s10678_s28  ;;  %v2491_v31 = vsel %vm2225_vm13, %v8520_v21, 0 }
 0x3c0   : > { %v8767_v55 = vpop.eup %7523  ;;  %v1999_v50 = vmul.f32 1.442695, %v1948_v20  ;;  %v1944_v20 = vsub.f32 %v8591_v2, %v1880_v4 }
 0x3c1   : > { %v2064_v37 = vsel %vm1224_vm8, %v8767_v55, 0.0 }
 0x3c2   : > { %2077 = vadd.xlane.f32.xlu1 %v2076_v32  ;;  %2065 = vadd.xlane.f32.xlu2 %v2064_v37  ;;  %7527 = vpow2.f32 %v1999_v50  ;;  %v1991_v21 = vmul.f32 1.442695, %v1944_v20 }
 0x3c4   : > { %v7526_v22 = vpop.eup %7525 }
 0x3c5   : > { %v2159_v35 = vmul.f32 %v7526_v22, %v8610_v17 }
 0x3c6   : > { %v2036_v57 = vpop.xlane.xlu0 %2035 }
 0x3c7   : > { %v2191_v45 = vpack.c.bf16 %v2159_v35, %v2159_v35  ;;  %7529 = vrcp.f32 %v2036_v57 }
 0x3c8   : > { %v8774_v25 = vpop.eup %7527 }
 0x3c9   : > { %6838 = vmatmul.msk.bf16.vlgmr.msra.gmra.mxu2 %vm1224_vm8, %v2191_v45  ;;  %v2082_v1 = vsel %vm1224_vm8, %v8774_v25, 0.0 }
 0x3ca   : > { %2572 = vmatpush.bf16.msra.mxu2 %v2563_v15  ;;  %2083 = vadd.xlane.f32.xlu1 %v2082_v1 }
 0x3cd   : > { %v7530_v11 = vpop.eup %7529 }
 0x3ce   : > { %v2156_v16 = vmul.f32 %v7530_v11, %v8627_v24  ;;  %v1895_v36 = vpop.xlane.xlu0 %1894  ;;  %v2820_v24 = vpack.c.b16 %v2819_v9, %v2819_v9 }
 0x3cf   : > { %v1949_v17 = vsub.f32 %v8638_v61, %v1895_v36 }
 0x3d0   : > { %v2188_v12 = vpack.c.bf16 %v2156_v16, %v2156_v16 }
 0x3d1   : > { %v2001_v10 = vmul.f32 1.442695, %v1949_v17 }
 0x3d2   : > { %6835 = vmatmul.msk.bf16.vlgmr.msrb.gmra.mxu3 %vm1224_vm8, %v2188_v12 }
 0x3d3   : > { %7531 = vpow2.f32 %v2001_v10  ;;  %2500 = vmatpush.bf16.msrb.mxu3 %v2491_v31 }
 0x3d6   : > { %v1901_v8 = vpop.xlane.xlu0 %1900 }
 0x3d7   : > { %v1951_v50 = vsub.f32 %v8645_v3, %v1901_v8  ;;  %v1945_v8 = vsub.f32 %v8603_v59, %v8753_v0  ;;  %v2867_v59 = vunpack.c.l.b16 %v8456_v14  ;;  %v2587_v0 = vsel %vm2225_vm13, %v8532_v33, 0 }
 0x3d9   : > { %v8789_v32 = vpop.eup %7531  ;;  %v2005_v61 = vmul.f32 1.442695, %v1951_v50  ;;  %v2539_v50 = vsel %vm2225_vm13, %v8442_v29, 0 }
 0x3da   : > { %v2085_v37 = vsel %vm1224_vm8, %v8789_v32, 0.0  ;;  %2821 = vrot.lane.b32.xlu2 %v2820_v24, %s10678_s28 }
 0x3db   : > { %7533 = vpow2.f32 %v2005_v61  ;;  %2086 = vadd.xlane.f32.xlu1 %v2085_v37 }
 0x3dc   : > { %7535 = vpow2.f32 %v1991_v21 }
 0x3dd   : > { %v1913_v22 = vpop.xlane.xlu2 %1912 }
 0x3de   : > { %v8794_v35 = vpop.xlane.xlu0 %1897  ;;  %v1955_v54 = vsub.f32 %v8657_v39, %v1913_v22  ;;  %v2060_v22 = vpop.xlane.xlu1 %2059 }
 0x3e0   : > { %v2013_v2 = vmul.f32 1.442695, %v1955_v54 }
 0x3e1   : > { %v8797_v3 = vpop.eup %7533 }
 0x3e2   : > { %7537 = vpow2.f32 %v2013_v2  ;;  %v2091_v4 = vsel %vm1224_vm8, %v8797_v3, 0.0  ;;  %v8801_v57 = vpop.eup %7535  ;;  %v2868_v2 = vpack.c.b16 %v2867_v59, %v2867_v59 }
 0x3e3   : > { %2092 = vadd.xlane.f32.xlu1 %v2091_v4  ;;  %v2070_v39 = vsel %vm1224_vm8, %v8801_v57, 0.0 }
 0x3e5   : > { %v1910_v45 = vpop.xlane.xlu2 %1909 }
 0x3e6   : > { %v2042_v15 = vpop.xlane.xlu0 %2041  ;;  %v1954_v1 = vsub.f32 %v8668_v23, %v1910_v45 }
 0x3e7   : > { %7539 = vrcp.f32 %v2042_v15 }
 0x3e8   : > { %v8804_v11 = vpop.eup %7537  ;;  %v2011_v16 = vmul.f32 1.442695, %v1954_v1 }
 0x3e9   : > { %2071 = vadd.xlane.f32.xlu0 %v2070_v39  ;;  %v2103_v36 = vsel %vm1224_vm8, %v8804_v11, 0.0 }
 0x3ea   : > { %7541 = vpow2.f32 %v2011_v16 }
 0x3eb   : > { %2104 = vadd.xlane.f32.xlu1 %v2103_v36 }
 0x3ed   : > { %v7540_v17 = vpop.eup %7539  ;;  %v2048_v12 = vpop.xlane.xlu2 %2047 }
 0x3ee   : > { %v2158_v10 = vmul.f32 %v7540_v17, %v8670_v26  ;;  %v1904_v31 = vpop.xlane.xlu0 %1903  ;;  %7543 = vrcp.f32 %v2048_v12  ;;  %v1993_v26 = vmul.f32 1.442695, %v1945_v8 }
 0x3ef   : > { %v1952_v29 = vsub.f32 %v8679_v51, %v1904_v31 }
 0x3f0   : > { %v8811_v23 = vpop.eup %7541  ;;  %v2190_v9 = vpack.c.bf16 %v2158_v10, %v2158_v10  ;;  %7545 = vpow2.f32 %v1993_v26  ;;  %v2915_v10 = vunpack.c.l.b16 %v8380_v53 }
 0x3f1   : > { %v2100_v20 = vsel %vm1224_vm8, %v8811_v23, 0.0  ;;  %7547 = vrcp.f32 %v2060_v22  ;;  %v2007_v4 = vmul.f32 1.442695, %v1952_v29 }
 0x3f2   : > { %6837 = vmatmul.msk.bf16.vlgmr.msra.gmra.mxu1 %vm1224_vm8, %v2190_v9 }
 0x3f3   : > { %2548 = vmatpush.bf16.msra.mxu1 %v2539_v50  ;;  %2101 = vadd.xlane.f32.xlu1 %v2100_v20  ;;  %7549 = vpow2.f32 %v2007_v4  ;;  %v2916_v50 = vpack.c.b16 %v2915_v10, %v2915_v10 }
 0x3f4   : > { %v7544_v24 = vpop.eup %7543 }
 0x3f5   : > { %v2160_v61 = vmul.f32 %v7544_v24, %v8676_v44  ;;  %v1916_v37 = vpop.xlane.xlu2 %1915 }
 0x3f6   : > { %v8821_v21 = vpop.xlane.xlu0 %1906  ;;  %v8833_v15 = vpop.eup %7545  ;;  %v1956_v51 = vsub.f32 %v8690_v48, %v1916_v37  ;;  %v2683_v48 = vsel %vm2225_vm13, %v8543_v58, 0  ;;  %v2659_v37 = vsel %vm2225_vm13, %v8420_v34, 0  ;;  %v1950_v34 = vsub.f32 %v8654_v43, %v8794_v35 }
 0x3f7   : > { %v2192_v54 = vpack.c.bf16 %v2160_v61, %v2160_v61  ;;  %v7548_v33 = vpop.eup %7547  ;;  %v2073_v16 = vsel %vm1224_vm8, %v8833_v15, 0.0  ;;  %v1953_v35 = vsub.f32 %v8694_v41, %v8821_v21 }
 0x3f8   : > { %v2164_v39 = vmul.f32 %v7548_v33, %v8629_v62  ;;  %v2015_v36 = vmul.f32 1.442695, %v1956_v51  ;;  %v2063_v33 = vpop.xlane.xlu1 %2062 }
 0x3f9   : > { %6839 = vmatmul.msk.bf16.vlgmr.msra.gmra.mxu3 %vm1224_vm8, %v2192_v54  ;;  %v8844_v31 = vpop.eup %7549  ;;  %v1947_v54 = vsub.f32 %v8614_v30, %v8763_v46  ;;  %v2611_v30 = vsel %vm2225_vm13, %v8528_v28, 0 }
 0x3fa   : > { %2596 = vmatpush.bf16.msra.mxu3 %v2587_v0  ;;  %v2196_v9 = vpack.c.bf16 %v2164_v39, %v2164_v39  ;;  %v2094_v62 = vsel %vm1224_vm8, %v8844_v31, 0.0 }
 0x3fd   : > { %2869 = vrot.lane.b32.xlu0 %v2868_v2, %s10678_s28  ;;  %v8829_v44 = vpop.xlane.xlu2 %1918 }
 0x3fe   : > { %v8831_v45 = vpop.xlane.xlu0 %1924 }
 0x3ff   : > { %v8835_v14 = vpop.f32.mrf.mxu2 }
 0x401   : > { %v8838_v1 = vpop.f32.mrf.mxu0 }
 0x403   : > { %2074 = vadd.xlane.f32.xlu2 %v2073_v16  ;;  %v2003_v16 = vmul.f32 1.442695, %v1950_v34 }
 0x405   : > { %v2057_v17 = vpop.xlane.xlu2 %2056 }
 0x406   : > { %v1922_v12 = vpop.xlane.xlu0 %1921  ;;  %7551 = vrcp.f32 %v2057_v17  ;;  %v2891_v17 = vunpack.c.l.b16 %v8382_v13 }
 0x407   : > { %v2288_v8 = vpop.f32.mrf.mxu2  ;;  %7553 = vpow2.f32 %v2015_v36  ;;  %v1958_v43 = vsub.f32 %v8720_v52, %v1922_v12  ;;  %v2635_v52 = vsel %vm2225_vm13, %v8584_v18, 0 }
 0x409   : > { %6843 = vmatmul.msk.bf16.vlgmr.msrb.gmra.mxu3 %vm1224_vm8, %v2196_v9  ;;  %v2240_v20 = vpop.f32.mrf.mxu0  ;;  %v2019_v9 = vmul.f32 1.442695, %v1958_v43 }
 0x40a   : > { %2692 = vmatpush.bf16.msrb.mxu3 %v2683_v48  ;;  %v2009_v20 = vmul.f32 1.442695, %v1953_v35 }
 0x40b   : > { %2095 = vadd.xlane.f32.xlu2 %v2094_v62  ;;  %v2892_v62 = vpack.c.b16 %v2891_v17, %v2891_v17 }
 0x40c   : > { %v7552_v24 = vpop.eup %7551  ;;  %2917 = vrot.lane.b32.xlu1 %v2916_v50, %s10678_s28 }
 0x40d   : > { %v2163_v53 = vmul.f32 %v7552_v24, %v8716_v7  ;;  %v8855_v61 = vpop.eup %7553  ;;  %v1997_v7 = vmul.f32 1.442695, %v1947_v54 }
 0x40e   : > { %v8853_v26 = vpop.xlane.xlu0 %1927  ;;  %v2106_v22 = vsel %vm1224_vm8, %v8855_v61, 0.0 }
 0x40f   : > { %v2195_v58 = vpack.c.bf16 %v2163_v53, %v2163_v53 }
 0x411   : > { %6842 = vmatmul.msk.bf16.vlgmr.msrb.gmra.mxu2 %vm1224_vm8, %v2195_v58  ;;  %v2707_v58 = vsel %vm2225_vm13, %v8485_v19, 0 }
 0x412   : > { %2668 = vmatpush.bf16.msrb.mxu2 %v2659_v37 }
 0x413   : > { %2107 = vadd.xlane.f32.xlu2 %v2106_v22 }
 0x416   : > { %v2051_v59 = vpop.xlane.xlu0 %2050 }
 0x417   : > { %7555 = vrcp.f32 %v2051_v59 }
 0x418   : > { %7557 = vpow2.f32 %v1997_v7  ;;  %v2755_v7 = vsel %vm2225_vm13, %v8458_v38, 0  ;;  %v1960_v38 = vsub.f32 %v8729_v5, %v8853_v26 }
 0x41a   : > { %v8864_v0 = vpop.f32.mrf.mxu0 }
 0x41d   : > { %v7556_v29 = vpop.eup %7555 }
 0x41e   : > { %v2161_v2 = vmul.f32 %v7556_v29, %v8739_v63  ;;  %v2054_v4 = vpop.xlane.xlu0 %2053  ;;  %v8874_v36 = vpop.eup %7557 }
 0x41f   : > { %7559 = vrcp.f32 %v2054_v4  ;;  %v2079_v10 = vsel %vm1224_vm8, %v8874_v36, 0.0 }
 0x420   : > { %v2193_v51 = vpack.c.bf16 %v2161_v2, %v2161_v2  ;;  %7561 = vrcp.f32 %v2063_v33  ;;  %v2731_v33 = vsel %vm2225_vm13, %v8430_v47, 0 }
 0x421   : > { %7563 = vpow2.f32 %v2003_v16  ;;  %v2023_v16 = vmul.f32 1.442695, %v1960_v38 }
 0x422   : > { %6840 = vmatmul.msk.bf16.vlgmr.msrb.gmra.mxu0 %vm1224_vm8, %v2193_v51  ;;  %v8872_v46 = vpop.f32.mrf.mxu1  ;;  %v2336_v39 = vpop.f32.mrf.mxu0  ;;  %7565 = vpow2.f32 %v2019_v9 }
 0x423   : > { %2620 = vmatpush.bf16.msrb.mxu0 %v2611_v30  ;;  %7567 = vpow2.f32 %v2009_v20  ;;  %v10719_v39 = vld [vmem:[#allocation13_spill] sm:$0xff] }
 0x424   : > { %v2963_v43 = vunpack.c.l.b16 %v10719_v39 }
 0x425   : > { %v7560_v63 = vpop.eup %7559 }
 0x426   : > { %v2162_v28 = vmul.f32 %v7560_v63, %v8747_v60  ;;  %v7562_v48 = vpop.eup %7561  ;;  %v1957_v60 = vsub.f32 %v8707_v42, %v8829_v44  ;;  %v1959_v42 = vsub.f32 %v8710_v56, %v8831_v45  ;;  %v2964_v5 = vpack.c.b16 %v2963_v43, %v2963_v43 }
 0x427   : > { %2080 = vadd.xlane.f32.xlu0 %v2079_v10  ;;  %v8886_v41 = vpop.eup %7563  ;;  %v2165_v13 = vmul.f32 %v7562_v48, %v8642_v6 }
 0x428   : > { %v2194_v8 = vpack.c.bf16 %v2162_v28, %v2162_v28  ;;  %v2088_v18 = vsel %vm1224_vm8, %v8886_v41, 0.0  ;;  %v2017_v24 = vmul.f32 1.442695, %v1957_v60  ;;  %v8894_v53 = vpop.eup %7565  ;;  %v2021_v29 = vmul.f32 1.442695, %v1959_v42 }
 0x429   : > { %v2197_v50 = vpack.c.bf16 %v2165_v13, %v2165_v13  ;;  %v8899_v6 = vpop.eup %7567  ;;  %v2112_v22 = vsel %vm1224_vm8, %v8894_v53, 0.0 }
 0x42a   : > { %6841 = vmatmul.msk.bf16.vlgmr.msrb.gmra.mxu1 %vm1224_vm8, %v2194_v8  ;;  %v2264_v12 = vpop.f32.mrf.mxu1  ;;  %v2097_v19 = vsel %vm1224_vm8, %v8899_v6, 0.0  ;;  %v10720_v8 = vld [vmem:[#allocation12_spill] sm:$0xff] }
 0x42b   : > { %2644 = vmatpush.bf16.msrb.mxu1 %v2635_v52  ;;  %2893 = vrot.lane.b32.xlu2 %v2892_v62, %s10678_s28  ;;  %v2939_v48 = vunpack.c.l.b16 %v10720_v8 }
 0x42d   : > { %v2069_v21 = vpop.xlane.xlu1 %2068  ;;  %v2940_v62 = vpack.c.b16 %v2939_v48, %v2939_v48 }
 0x42e   : > { %7569 = vrcp.f32 %v2069_v21 }
 0x42f   : > { %2089 = vadd.xlane.f32.xlu0 %v2088_v18  ;;  %7571 = vpow2.f32 %v2017_v24 }
 0x431   : > { %v8936_v9 = vpop.permute.xlu0 %2845 }
 0x432   : > { %6844 = vmatmul.msk.bf16.vlgmr.msra.gmra.mxu0 %vm1224_vm8, %v2197_v50  ;;  %v10721_v50 = vld [vmem:[#allocation15_spill] sm:$0xff] }
 0x433   : > { %2716 = vmatpush.bf16.msra.mxu0 %v2707_v58  ;;  %v2779_v24 = vsel %vm2225_vm13, %v10721_v50, 0 }
 0x434   : > { %v7570_v37 = vpop.eup %7569 }
 0x435   : > { %v2167_v44 = vmul.f32 %v7570_v37, %v8756_v40  ;;  %v2066_v54 = vpop.xlane.xlu2 %2065  ;;  %v8911_v56 = vpop.eup %7571 }
 0x436   : > { %2113 = vadd.xlane.f32.xlu1 %v2112_v22  ;;  %7573 = vrcp.f32 %v2066_v54  ;;  %v2109_v34 = vsel %vm1224_vm8, %v8911_v56, 0.0  ;;  %v2078_v2 = vpop.xlane.xlu1 %2077 }
 0x437   : > { %v2199_v59 = vpack.c.bf16 %v2167_v44, %v2167_v44  ;;  %2098 = vadd.xlane.f32.xlu0 %v2097_v19  ;;  %7575 = vpow2.f32 %v2021_v29 }
 0x438   : > { %7577 = vrcp.f32 %v2078_v2 }
 0x439   : > { %6846 = vmatmul.msk.bf16.vlgmr.msra.gmra.mxu2 %vm1224_vm8, %v2199_v59  ;;  %7579 = vpow2.f32 %v2023_v16 }
 0x43a   : > { %2764 = vmatpush.bf16.msra.mxu2 %v2755_v7 }
 0x43c   : > { %v7574_v40 = vpop.eup %7573 }
 0x43d   : > { %v2166_v45 = vmul.f32 %v7574_v40, %v8767_v55  ;;  %v8921_v51 = vpop.eup %7575  ;;  %v2822_v26 = vpop.permute.xlu2 %2821 }
 0x43e   : > { %v2115_v55 = vsel %vm1224_vm8, %v8921_v51, 0.0  ;;  %v7578_v30 = vpop.eup %7577  ;;  %v2827_v28 = vsel %vm2225_vm13, %v2822_v26, 0  ;;  %v2084_v21 = vpop.xlane.xlu1 %2083 }
 0x43f   : > { %2110 = vadd.xlane.f32.xlu0 %v2109_v34  ;;  %v2198_v4 = vpack.c.bf16 %v2166_v45, %v2166_v45  ;;  %v2170_v47 = vmul.f32 %v7578_v30, %v8761_v49  ;;  %v8930_v35 = vpop.eup %7579 }
 0x440   : > { %v2118_v10 = vsel %vm1224_vm8, %v8930_v35, 0.0 }
 0x441   : > { %6845 = vmatmul.msk.bf16.vlgmr.msra.gmra.mxu1 %vm1224_vm8, %v2198_v4  ;;  %v2202_v17 = vpack.c.bf16 %v2170_v47, %v2170_v47 }
 0x442   : > { %2740 = vmatpush.bf16.msra.mxu1 %v2731_v33 }
 0x447   : > { %2116 = vadd.xlane.f32.xlu0 %v2115_v55 }
 0x44c   : > { %v8927_v63 = vpop.f32.mrf.mxu2 }
 0x44e   : > { %v2087_v45 = vpop.xlane.xlu1 %2086 }
 0x44f   : > { %2965 = vrot.lane.b32.xlu1 %v2964_v5, %s10678_s28 }
 0x451   : > { %6849 = vmatmul.msk.bf16.vlgmr.msrb.gmra.mxu1 %vm1224_vm8, %v2202_v17 }
 0x452   : > { %2836 = vmatpush.bf16.msrb.mxu1 %v2827_v28 }
 0x454   : > { %v2384_v49 = vpop.f32.mrf.mxu2  ;;  %2119 = vadd.xlane.f32.xlu2 %v2118_v10 }
 0x455   : > { %v8939_v20 = vpop.f32.mrf.mxu3 }
 0x456   : > { %v2093_v43 = vpop.xlane.xlu1 %2092 }
 0x45b   : > { %2941 = vrot.lane.b32.xlu0 %v2940_v62, %s10678_s28 }
 0x45c   : > { %v2072_v52 = vpop.xlane.xlu0 %2071 }
 0x45d   : > { %7581 = vrcp.f32 %v2072_v52  ;;  %v2312_v12 = vpop.f32.mrf.mxu3 }
 0x45e   : > { %7583 = vrcp.f32 %v2084_v21  ;;  %v2105_v8 = vpop.xlane.xlu1 %2104 }
 0x463   : > { %v7582_v13 = vpop.eup %7581 }
 0x464   : > { %v2168_v60 = vmul.f32 %v7582_v13, %v8801_v57  ;;  %v7584_v58 = vpop.eup %7583 }
 0x465   : > { %v2172_v42 = vmul.f32 %v7584_v58, %v8774_v25  ;;  %v10722_v25 = vld [vmem:[#allocation14_spill] sm:$0xff] }
 0x466   : > { %v2200_v18 = vpack.c.bf16 %v2168_v60, %v2168_v60  ;;  %v2803_v2 = vsel %vm2225_vm13, %v10722_v25, 0  ;;  %v2102_v21 = vpop.xlane.xlu1 %2101 }
 0x467   : > { %v2204_v22 = vpack.c.bf16 %v2172_v42, %v2172_v42 }
 0x468   : > { %6847 = vmatmul.msk.bf16.vlgmr.msra.gmra.mxu3 %vm1224_vm8, %v2200_v18  ;;  %v2851_v18 = vsel %vm2225_vm13, %v8936_v9, 0 }
 0x469   : > { %2788 = vmatpush.bf16.msra.mxu3 %v2779_v24 }
 0x46f   : > { %v8946_v37 = vpop.f32.mrf.mxu1  ;;  %v2870_v44 = vpop.permute.xlu0 %2869 }
 0x470   : > { %v2875_v57 = vsel %vm2225_vm13, %v2870_v44, 0 }
 0x476   : > { %v2075_v54 = vpop.xlane.xlu2 %2074 }
 0x477   : > { %v2360_v19 = vpop.f32.mrf.mxu1  ;;  %7585 = vrcp.f32 %v2075_v54 }
 0x478   : > { %6851 = vmatmul.msk.bf16.vlgmr.msrb.gmra.mxu3 %vm1224_vm8, %v2204_v22 }
 0x479   : > { %2884 = vmatpush.bf16.msrb.mxu3 %v2875_v57 }
 0x47c   : > { %v8951_v59 = vpop.f32.mrf.mxu3 }
 0x47d   : > { %v7586_v7 = vpop.eup %7585 }
 0x47e   : > { %v2169_v29 = vmul.f32 %v7586_v7, %v8833_v15  ;;  %v2096_v40 = vpop.xlane.xlu2 %2095 }
 0x47f   : > { %7587 = vrcp.f32 %v2096_v40 }
 0x480   : > { %v2201_v34 = vpack.c.bf16 %v2169_v29, %v2169_v29  ;;  %7589 = vrcp.f32 %v2087_v45 }
 0x482   : > { %6848 = vmatmul.msk.bf16.vlgmr.msrb.gmra.mxu0 %vm1224_vm8, %v2201_v34 }
 0x483   : > { %2812 = vmatpush.bf16.msrb.mxu0 %v2803_v2 }
 0x484   : > { %v2408_v4 = vpop.f32.mrf.mxu3 }
 0x485   : > { %v7588_v33 = vpop.eup %7587 }
 0x486   : > { %v2176_v38 = vmul.f32 %v7588_v33, %v8844_v31  ;;  %v2108_v16 = vpop.xlane.xlu2 %2107  ;;  %v7590_v30 = vpop.eup %7589 }
 0x487   : > { %7591 = vrcp.f32 %v2108_v16  ;;  %v2173_v15 = vmul.f32 %v7590_v30, %v8789_v32 }
 0x488   : > { %v2208_v55 = vpack.c.bf16 %v2176_v38, %v2176_v38 }
 0x489   : > { %v2205_v5 = vpack.c.bf16 %v2173_v15, %v2173_v15 }
 0x48a   : > { %6855 = vmatmul.msk.bf16.vlgmr.msra.gmra.mxu3 %vm1224_vm8, %v2208_v55 }
 0x48c   : > { %v8960_v39 = vpop.f32.mrf.mxu3 }
 0x48d   : > { %v7592_v26 = vpop.eup %7591 }
 0x48e   : > { %v2894_v47 = vpop.permute.xlu2 %2893  ;;  %v2180_v31 = vmul.f32 %v7592_v26, %v8855_v61 }
 0x48f   : > { %v2899_v17 = vsel %vm2225_vm13, %v2894_v47, 0 }
 0x490   : > { %v2212_v32 = vpack.c.bf16 %v2180_v31, %v2180_v31 }
 0x492   : > { %6852 = vmatmul.msk.bf16.vlgmr.msra.gmra.mxu0 %vm1224_vm8, %v2205_v5 }
 0x493   : > { %2908 = vmatpush.bf16.msra.mxu0 %v2899_v17 }
 0x494   : > { %v8965_v28 = vpop.f32.mrf.mxu2  ;;  %v2504_v10 = vpop.f32.mrf.mxu3 }
 0x495   : > { %v7222_v49 = vpack.i.bf16 %v8960_v39, %v8965_v28 }
 0x49a   : > { %v2081_v48 = vpop.xlane.xlu0 %2080  ;;  %6859 = vmatmul.msk.bf16.vlgmr.msrb.gmra.mxu3 %vm1224_vm8, %v2212_v32 }
 0x49b   : > { %7593 = vrcp.f32 %v2081_v48 }
 0x49c   : > { %v2480_v62 = vpop.f32.mrf.mxu2 }
 0x49f   : > { %v2430_v52 = vpop.f32.mrf.mxu0 }
 0x4a1   : > { %v7594_v12 = vpop.eup %7593 }
 0x4a2   : > { %v2171_v13 = vmul.f32 %v7594_v12, %v8874_v36  ;;  %v2090_v60 = vpop.xlane.xlu0 %2089  ;;  %v2918_v36 = vpop.permute.xlu1 %2917 }
 0x4a3   : > { %7595 = vrcp.f32 %v2090_v60  ;;  %v2923_v9 = vsel %vm2225_vm13, %v2918_v36, 0 }
 0x4a4   : > { %v2203_v61 = vpack.c.bf16 %v2171_v13, %v2171_v13  ;;  %7597 = vrcp.f32 %v2093_v43 }
 0x4a6   : > { %6850 = vmatmul.msk.bf16.vlgmr.msrb.gmra.mxu2 %vm1224_vm8, %v2203_v61 }
 0x4a7   : > { %2860 = vmatpush.bf16.msrb.mxu2 %v2851_v18  ;;  %v2432_v50 = vpop.f32.mrf.mxu0  ;;  %v2454_v24 = vpop.f32.mrf.mxu1 }
 0x4a8   : > { %v7207_v58 = vpack.i.bf16 %v2454_v24, %v2430_v52 }
 0x4a9   : > { %v7596_v42 = vpop.eup %7595 }
 0x4aa   : > { %v2174_v44 = vmul.f32 %v7596_v42, %v8886_v41  ;;  %v2099_v22 = vpop.xlane.xlu0 %2098  ;;  %7208 = vrot.lane.b32.xlu1 %v7207_v58, %s7819_s25  ;;  %v7598_v19 = vpop.eup %7597 }
 0x4ab   : > { %7599 = vrcp.f32 %v2099_v22  ;;  %v2175_v29 = vmul.f32 %v7598_v19, %v8797_v3  ;;  %v2114_v38 = vpop.xlane.xlu1 %2113 }
 0x4ac   : > { %v2206_v54 = vpack.c.bf16 %v2174_v44, %v2174_v44  ;;  %7601 = vrcp.f32 %v2102_v21 }
 0x4ad   : > { %v2207_v45 = vpack.c.bf16 %v2175_v29, %v2175_v29  ;;  %7603 = vrcp.f32 %v2105_v8 }
 0x4ae   : > { %6853 = vmatmul.msk.bf16.vlgmr.msra.gmra.mxu1 %vm1224_vm8, %v2206_v54 }
 0x4af   : > { %2932 = vmatpush.bf16.msra.mxu1 %v2923_v9  ;;  %v2456_v57 = vpop.f32.mrf.mxu1  ;;  %v8978_v7 = vpop.f32.mrf.mxu0 }
 0x4b1   : > { %v7600_v41 = vpop.eup %7599 }
 0x4b2   : > { %v2177_v40 = vmul.f32 %v7600_v41, %v8899_v6  ;;  %v2111_v25 = vpop.xlane.xlu0 %2110  ;;  %v7602_v2 = vpop.eup %7601 }
 0x4b3   : > { %7605 = vrcp.f32 %v2111_v25  ;;  %v2178_v33 = vmul.f32 %v7602_v2, %v8811_v23  ;;  %v7604_v16 = vpop.eup %7603 }
 0x4b4   : > { %v2209_v34 = vpack.c.bf16 %v2177_v40, %v2177_v40  ;;  %7607 = vrcp.f32 %v2114_v38  ;;  %v2179_v15 = vmul.f32 %v7604_v16, %v8804_v11 }
 0x4b5   : > { %v2210_v55 = vpack.c.bf16 %v2178_v33, %v2178_v33 }
 0x4b6   : > { %6854 = vmatmul.msk.bf16.vlgmr.msra.gmra.mxu2 %vm1224_vm8, %v2207_v45  ;;  %6856 = vmatmul.msk.bf16.vlgmr.msrb.gmra.mxu0 %vm1224_vm8, %v2209_v34  ;;  %v2211_v26 = vpack.c.bf16 %v2179_v15, %v2179_v15 }
 0x4b7   : > { %v2528_v4 = vpop.f32.mrf.mxu0 }
 0x4b9   : > { %v7606_v30 = vpop.eup %7605 }
 0x4ba   : > { %v2181_v43 = vmul.f32 %v7606_v30, %v8911_v56  ;;  %v2117_v31 = vpop.xlane.xlu0 %2116  ;;  %v7608_v32 = vpop.eup %7607 }
 0x4bb   : > { %7609 = vrcp.f32 %v2117_v31  ;;  %v2182_v56 = vmul.f32 %v7608_v32, %v8894_v53 }
 0x4bc   : > { %v8985_v3 = vpop.f32.mrf.mxu2  ;;  %v2213_v17 = vpack.c.bf16 %v2181_v43, %v2181_v43 }
 0x4bd   : > { %v2214_v48 = vpack.c.bf16 %v2182_v56, %v2182_v56 }
 0x4be   : > { %6857 = vmatmul.msk.bf16.vlgmr.msrb.gmra.mxu1 %vm1224_vm8, %v2210_v55  ;;  %v8988_v6 = vpop.f32.mrf.mxu1 }
 0x4bf   : > { %v7237_v47 = vpack.i.bf16 %v8988_v6, %v8978_v7  ;;  %v7051_v7 = vld [vmem:[%s10648_s7 + $0x8] sm:$0xff]  ;;  %v7050_v6 = vld [vmem:[%s10648_s7] sm:$0xff] }
 0x4c0   : > { %3148 = vmatpush.bf16.msrb.mxu0 %v7051_v7 }
 0x4c1   : > { %v2966_v5 = vpop.permute.xlu1 %2965  ;;  %v7610_v62 = vpop.eup %7609 }
 0x4c2   : > { %v2971_v23 = vsel %vm2225_vm13, %v2966_v5, 0  ;;  %v2183_v61 = vmul.f32 %v7610_v62, %v8921_v51 }
 0x4c3   : > { %2980 = vmatpush.bf16.msra.mxu3 %v2971_v23 }
 0x4c4   : > { %v2576_v10 = vpop.f32.mrf.mxu2  ;;  %v2215_v50 = vpack.c.bf16 %v2183_v61, %v2183_v61  ;;  %3149 = vmatpush.bf16.msrb.mxu0 %v7050_v6 }
 0x4c6   : > { %6858 = vmatmul.msk.bf16.vlgmr.msrb.gmra.mxu2 %vm1224_vm8, %v2211_v26  ;;  %6860 = vmatmul.msk.bf16.vlgmr.msra.gmra.mxu0 %vm1224_vm8, %v2213_v17  ;;  %v2552_v11 = vpop.f32.mrf.mxu1 }
 0x4c7   : > { %v2120_v8 = vpop.xlane.xlu2 %2119 }
 0x4c8   : > { %7611 = vrcp.f32 %v2120_v8 }
 0x4cd   : > { %v2942_v52 = vpop.permute.xlu0 %2941 }
 0x4ce   : > { %v7612_v12 = vpop.eup %7611  ;;  %v2947_v13 = vsel %vm2225_vm13, %v2942_v52, 0  ;;  %6861 = vmatmul.msk.bf16.vlgmr.msra.gmra.mxu1 %vm1224_vm8, %v2214_v48  ;;  %v2646_v21 = vpop.f32.mrf.mxu1 }
 0x4cf   : > { %v2184_v60 = vmul.f32 %v7612_v12, %v8930_v35  ;;  %2956 = vmatpush.bf16.msra.mxu2 %v2947_v13 }
 0x4d1   : > { %v2216_v18 = vpack.c.bf16 %v2184_v60, %v2184_v60 }
 0x4d3   : > { %6863 = vmatmul.msk.bf16.vlgmr.msra.gmra.mxu3 %vm1224_vm8, %v2216_v18 }
 0x4d6   : > { %6862 = vmatmul.msk.bf16.vlgmr.msra.gmra.mxu2 %vm1224_vm8, %v2215_v50  ;;  %v2648_v53 = vpop.f32.mrf.mxu1 }
 0x4eb   : > { %v2598_v24 = vpop.f32.mrf.mxu3 }
 0x4ec   : > { %v7252_v58 = vpack.i.bf16 %v2598_v24, %v8985_v3 }
 0x4f3   : > { %v2600_v42 = vpop.f32.mrf.mxu3 }
 0x4fb   : > { %v2694_v44 = vpop.f32.mrf.mxu3 }
 0x4ff   : > { %v2622_v22 = vpop.f32.mrf.mxu0 }
 0x500   : > { %v7212_v36 = vpack.i.bf16 %v2646_v21, %v2622_v22 }
 0x502   : > { %7213 = vrot.lane.b32.xlu0 %v7212_v36, %s10684_s26 }
 0x503   : > { %v2696_v35 = vpop.f32.mrf.mxu3 }
 0x507   : > { %v2624_v54 = vpop.f32.mrf.mxu0 }
 0x50a   : > { %7223 = vrot.lane.b32.xlu0 %v7222_v49, %s7819_s25 }
 0x50d   : > { %v2790_v51 = vpop.f32.mrf.mxu3 }
 0x50f   : > { %v2718_v19 = vpop.f32.mrf.mxu0 }
 0x515   : > { %v2792_v9 = vpop.f32.mrf.mxu3 }
 0x517   : > { %v2720_v57 = vpop.f32.mrf.mxu0 }
 0x51d   : > { %v2886_v29 = vpop.f32.mrf.mxu3 }
 0x525   : > { %v2888_v41 = vpop.f32.mrf.mxu3 }
 0x529   : > { %v2670_v40 = vpop.f32.mrf.mxu2 }
 0x52a   : > { %v7227_v3 = vpack.i.bf16 %v2694_v44, %v2670_v40 }
 0x52b   : > { %v2742_v45 = vpop.f32.mrf.mxu1 }
 0x52c   : > { %v7242_v34 = vpack.i.bf16 %v2742_v45, %v2718_v19 }
 0x52e   : > { %7243 = vrot.lane.b32.xlu2 %v7242_v34, %s10684_s26 }
 0x531   : > { %v2672_v25 = vpop.f32.mrf.mxu2 }
 0x533   : > { %v2744_v2 = vpop.f32.mrf.mxu1  ;;  %v2814_v4 = vpop.f32.mrf.mxu0 }
 0x539   : > { %v2766_v33 = vpop.f32.mrf.mxu2 }
 0x53a   : > { %v7257_v32 = vpack.i.bf16 %v2790_v51, %v2766_v33 }
 0x53b   : > { %v2816_v38 = vpop.f32.mrf.mxu0  ;;  %v2838_v16 = vpop.f32.mrf.mxu1 }
 0x53c   : > { %v7217_v55 = vpack.i.bf16 %v2838_v16, %v2814_v4 }
 0x53e   : > { %7218 = vrot.lane.b32.xlu1 %v7217_v55, %s10682_s27 }
 0x541   : > { %v2768_v39 = vpop.f32.mrf.mxu2 }
 0x543   : > { %v2840_v28 = vpop.f32.mrf.mxu1  ;;  %v2910_v49 = vpop.f32.mrf.mxu0 }
 0x546   : > { %7228 = vrot.lane.b32.xlu1 %v7227_v3, %s10684_s26 }
 0x549   : > { %v2862_v30 = vpop.f32.mrf.mxu2 }
 0x54a   : > { %v7232_v15 = vpack.i.bf16 %v2886_v29, %v2862_v30 }
 0x54b   : > { %v2912_v43 = vpop.f32.mrf.mxu0  ;;  %v2934_v5 = vpop.f32.mrf.mxu1 }
 0x54c   : > { %7233 = vrot.lane.b32.xlu0 %v7232_v15, %s10682_s27  ;;  %v7247_v26 = vpack.i.bf16 %v2934_v5, %v2910_v49 }
 0x54e   : > { %7238 = vrot.lane.b32.xlu1 %v7237_v47, %s7819_s25  ;;  %v7209_v47 = vpop.permute.xlu1 %7208 }
 0x54f   : > { %v7211_v62 = vunpack.i.h.bf16 %v7209_v47  ;;  %v7210_v52 = vunpack.i.l.bf16 %v7209_v47 }
 0x551   : > { %v2864_v23 = vpop.f32.mrf.mxu2  ;;  %v3083_v21 = vsel %vm1224_vm8, %v8872_v46, %v7211_v62  ;;  %v3082_v61 = vsel %vm1224_vm8, %v8838_v1, %v7210_v52 }
 0x553   : > { %v2936_v17 = vpop.f32.mrf.mxu1 }
 0x554   : > { %7248 = vrot.lane.b32.xlu0 %v7247_v26, %s10682_s27 }
 0x556   : > { %7253 = vrot.lane.b32.xlu1 %v7252_v58, %s7819_s25  ;;  %v2982_v31 = vpop.f32.mrf.mxu3 }
 0x559   : > { %v2958_v10 = vpop.f32.mrf.mxu2 }
 0x55a   : > { %v7262_v11 = vpack.i.bf16 %v2982_v31, %v2958_v10 }
 0x55c   : > { %7258 = vrot.lane.b32.xlu0 %v7257_v32, %s10684_s26 }
 0x55e   : > { %7263 = vrot.lane.b32.xlu1 %v7262_v11, %s10682_s27  ;;  %v2984_v8 = vpop.f32.mrf.mxu3 }
 0x561   : > { %v2960_v56 = vpop.f32.mrf.mxu2 }
 0x574   : > { %v7214_v48 = vpop.permute.xlu0 %7213 }
 0x575   : > { %v7216_v12 = vunpack.i.h.bf16 %v7214_v48  ;;  %v7215_v13 = vunpack.i.l.bf16 %v7214_v48 }
 0x577   : > { %v3092_v53 = vsel %vm3090_vm14, %v3083_v21, %v7216_v12  ;;  %v3091_v24 = vsel %vm3090_vm14, %v3082_v61, %v7215_v13 }
 0x57c   : > { %v7224_v22 = vpop.permute.xlu0 %7223 }
 0x57d   : > { %v7226_v35 = vunpack.i.h.bf16 %v7224_v22  ;;  %v7225_v46 = vunpack.i.l.bf16 %v7224_v22 }
 0x57f   : > { %v3085_v19 = vsel %vm1224_vm8, %v8939_v20, %v7226_v35  ;;  %v3084_v9 = vsel %vm1224_vm8, %v8835_v14, %v7225_v46  ;;  %v10726_v46 = vld [vmem:[#allocation6_spill] sm:$0xff] }
 0x588   : > { %v7244_v38 = vpop.permute.xlu2 %7243 }
 0x589   : > { %v7246_v28 = vunpack.i.h.bf16 %v7244_v38  ;;  %v7245_v49 = vunpack.i.l.bf16 %v7244_v38 }
 0x5b0   : > { %v7219_v60 = vpop.permute.xlu1 %7218 }
 0x5b1   : > { %v7221_v18 = vunpack.i.h.bf16 %v7219_v60  ;;  %v7220_v50 = vunpack.i.l.bf16 %v7219_v60 }
 0x5b3   : > { %v3101_v58 = vsel %vm3099_vm15, %v3092_v53, %v7221_v18  ;;  %v3100_v42 = vsel %vm3099_vm15, %v3091_v24, %v7220_v50  ;;  %v10724_v18 = vld [vmem:[#allocation3_spill] sm:$0xff] }
 0x5b4   : > { %v3108_v44 = vpack.c.bf16 %v3101_v58, %v3100_v42  ;;  %v10725_v42 = vld [vmem:[#allocation5_spill] sm:$0xff] }
 0x5b6   : > { %6872 = vmatmul.msk.bf16.vlgmr.msrb.gmra.mxu0 %vm664_vm0, %v3108_v44 }
 0x5b8   : > { %v7229_v36 = vpop.permute.xlu1 %7228 }
 0x5b9   : > { %v7231_v54 = vunpack.i.h.bf16 %v7229_v36  ;;  %v7230_v51 = vunpack.i.l.bf16 %v7229_v36 }
 0x5bb   : > { %v3094_v41 = vsel %vm3090_vm14, %v3085_v19, %v7231_v54  ;;  %v3093_v40 = vsel %vm3090_vm14, %v3084_v9, %v7230_v51  ;;  %v10727_v9 = vld [vmem:[#allocation8_spill] sm:$0xff] }
 0x5be   : > { %v7234_v1 = vpop.permute.xlu0 %7233 }
 0x5bf   : > { %v7236_v57 = vunpack.i.h.bf16 %v7234_v1  ;;  %v7235_v29 = vunpack.i.l.bf16 %v7234_v1 }
 0x5c0   : > { %v7239_v2 = vpop.permute.xlu1 %7238 }
 0x5c1   : > { %v3103_v45 = vsel %vm3099_vm15, %v3094_v41, %v7236_v57  ;;  %v3102_v34 = vsel %vm3099_vm15, %v3093_v40, %v7235_v29  ;;  %v7241_v4 = vunpack.i.h.bf16 %v7239_v2  ;;  %v7240_v33 = vunpack.i.l.bf16 %v7239_v2 }
 0x5c2   : > { %v3109_v25 = vpack.c.bf16 %v3103_v45, %v3102_v34  ;;  %v10728_v45 = vld [vmem:[#allocation7_spill] sm:$0xff] }
 0x5c3   : > { %v3087_v14 = vsel %vm1224_vm8, %v8946_v37, %v7241_v4  ;;  %v3086_v16 = vsel %vm1224_vm8, %v8864_v0, %v7240_v33  ;;  %v10729_v33 = vld [vmem:[#allocation9_spill] sm:$0xff] }
 0x5c4   : > { %v3095_v3 = vsel %vm3090_vm14, %v3086_v16, %v7245_v49  ;;  %v3096_v30 = vsel %vm3090_vm14, %v3087_v14, %v7246_v28  ;;  %v10730_v16 = vld [vmem:[#allocation2_spill] sm:$0xff] }
 0x5c6   : > { %6873 = vmatmul.msk.bf16.gmra.mxu0 %vm664_vm0, %v3109_v25  ;;  %v7249_v20 = vpop.permute.xlu0 %7248 }
 0x5c7   : > { %v7251_v55 = vunpack.i.h.bf16 %v7249_v20  ;;  %v7250_v39 = vunpack.i.l.bf16 %v7249_v20 }
 0x5c8   : > { %v7254_v15 = vpop.permute.xlu1 %7253 }
 0x5c9   : > { %v3104_v43 = vsel %vm3099_vm15, %v3095_v3, %v7250_v39  ;;  %v3105_v5 = vsel %vm3099_vm15, %v3096_v30, %v7251_v55  ;;  %v7256_v26 = vunpack.i.h.bf16 %v7254_v15  ;;  %v7255_v17 = vunpack.i.l.bf16 %v7254_v15 }
 0x5ca   : > { %v3110_v23 = vpack.c.bf16 %v3105_v5, %v3104_v43 }
 0x5cb   : > { %v3089_v32 = vsel %vm1224_vm8, %v8951_v59, %v7256_v26  ;;  %v3088_v11 = vsel %vm1224_vm8, %v8927_v63, %v7255_v17  ;;  %v7451_v59 = vld [vmem:[%s10649_s8] ss:$0 sm:$0xff]  ;;  %v10723_v63 = vld [vmem:[#allocation4_spill] sm:$0xff] }
 0x5ce   : > { %v7259_v37 = vpop.permute.xlu0 %7258 }
 0x5cf   : > { %v7261_v0 = vunpack.i.h.bf16 %v7259_v37  ;;  %v7260_v31 = vunpack.i.l.bf16 %v7259_v37 }
 0x5d0   : > { %v7264_v10 = vpop.permute.xlu1 %7263 }
 0x5d1   : > { %v7266_v8 = vunpack.i.h.bf16 %v7264_v10  ;;  %v7265_v56 = vunpack.i.l.bf16 %v7264_v10  ;;  %v3098_v7 = vsel %vm3090_vm14, %v3089_v32, %v7261_v0  ;;  %v3097_v6 = vsel %vm3090_vm14, %v3088_v11, %v7260_v31 }
 0x5d3   : > { %v3107_v47 = vsel %vm3099_vm15, %v3098_v7, %v7266_v8  ;;  %v3106_v48 = vsel %vm3099_vm15, %v3097_v6, %v7265_v56 }
 0x5d4   : > { %v3111_v62 = vpack.c.bf16 %v3107_v47, %v3106_v48 }
 0x5d6   : > { %6874 = vmatmul.msk.bf16.gmra.mxu0 %vm664_vm0, %v3110_v23  ;;  %v10731_v23 = vld [vmem:[#allocation10_spill] sm:$0xff] }
 0x5e6   : > { %6875 = vmatmul.msk.bf16.gmra.mxu0 %vm664_vm0, %v3111_v62 }
 0x633   : > { %v3151_v52 = vpop.f32.mrf.mxu0 }
 0x634   : > { %v3152_v12 = vadd.f32 %v7451_v59, %v3151_v52 }
 0x636   : > { %v3171_v13 = vadd.f32 %v3152_v12, %v10723_v63 }
 0x638   : > { %v3181_v60 = vsel %vm664_vm0, %v3171_v13, 0.0 }
 0x639   : > { %3182 = vadd.xlane.f32.xlu0 %v3181_v60 }
 0x63b   : > { %v3153_v21 = vpop.f32.mrf.mxu0 }
 0x63c   : > { %v3154_v61 = vadd.f32 %v7451_v59, %v3153_v21 }
 0x63e   : > { %v3172_v50 = vadd.f32 %v3154_v61, %v10724_v18 }
 0x640   : > { %v3184_v53 = vsel %vm664_vm0, %v3172_v50, 0.0 }
 0x641   : > { %3185 = vadd.xlane.f32.xlu1 %v3184_v53 }
 0x643   : > { %v3156_v24 = vpop.f32.mrf.mxu0 }
 0x644   : > { %v3157_v58 = vadd.f32 %v7451_v59, %v3156_v24 }
 0x646   : > { %v3173_v44 = vadd.f32 %v3157_v58, %v10725_v42 }
 0x648   : > { %v3187_v22 = vsel %vm664_vm0, %v3173_v44, 0.0 }
 0x649   : > { %3188 = vadd.xlane.f32.xlu2 %v3187_v22 }
 0x64b   : > { %v3158_v36 = vpop.f32.mrf.mxu0 }
 0x64c   : > { %v3159_v35 = vadd.f32 %v7451_v59, %v3158_v36 }
 0x64e   : > { %v3174_v54 = vadd.f32 %v3159_v35, %v10726_v46  ;;  %v7052_v46 = vld [vmem:[%s10652_s11] sm:$0xff] }
 0x650   : > { %v3190_v51 = vsel %vm664_vm0, %v3174_v54, 0.0 }
 0x651   : > { %3191 = vadd.xlane.f32.xlu0 %v3190_v51 }
 0x653   : > { %v3161_v1 = vpop.f32.mrf.mxu0 }
 0x654   : > { %v3162_v19 = vadd.f32 %v7451_v59, %v3161_v1 }
 0x656   : > { %v3175_v57 = vadd.f32 %v3162_v19, %v10727_v9 }
 0x658   : > { %v3193_v29 = vsel %vm664_vm0, %v3175_v57, 0.0 }
 0x659   : > { %3194 = vadd.xlane.f32.xlu2 %v3193_v29 }
 0x65b   : > { %v3163_v41 = vpop.f32.mrf.mxu0 }
 0x65c   : > { %v3164_v40 = vadd.f32 %v7451_v59, %v3163_v41 }
 0x65e   : > { %v3176_v34 = vadd.f32 %v3164_v40, %v10728_v45 }
 0x660   : > { %v3196_v25 = vsel %vm664_vm0, %v3176_v34, 0.0 }
 0x661   : > { %3197 = vadd.xlane.f32.xlu1 %v3196_v25 }
 0x663   : > { %v3166_v2 = vpop.f32.mrf.mxu0 }
 0x664   : > { %v3167_v4 = vadd.f32 %v7451_v59, %v3166_v2 }
 0x666   : > { %v3177_v20 = vadd.f32 %v3167_v4, %v10729_v33 }
 0x668   : > { %v3199_v38 = vsel %vm664_vm0, %v3177_v20, 0.0 }
 0x669   : > { %3200 = vadd.xlane.f32.xlu1 %v3199_v38 }
 0x66b   : > { %v3168_v28 = vpop.f32.mrf.mxu0 }
 0x66c   : > { %v3169_v3 = vadd.f32 %v7451_v59, %v3168_v28 }
 0x66e   : > { %v3178_v37 = vadd.f32 %v3169_v3, %v10731_v23 }
 0x670   : > { %v3202_v17 = vsel %vm664_vm0, %v3178_v37, 0.0 }
 0x6ac   : > { %v3183_v14 = vpop.xlane.xlu0 %3182 }
 0x6ad   : > { %v3205_v55 = vmul.f32 %v3183_v14, %v10730_v16 }
 0x6af   : > { %v9082_v39 = vsub.f32 %v3171_v13, %v3205_v55 }
 0x6b1   : > { %v3221_v49 = vmul.f32 %v9082_v39, %v9082_v39 }
 0x6b3   : > { %v3229_v30 = vsel %vm664_vm0, %v3221_v49, 0.0 }
 0x6b4   : > { %3230 = vadd.xlane.f32.xlu0 %v3229_v30  ;;  %v3186_v15 = vpop.xlane.xlu1 %3185 }
 0x6b5   : > { %v3206_v43 = vmul.f32 %v3186_v15, %v10730_v16 }
 0x6b7   : > { %v9088_v5 = vsub.f32 %v3172_v50, %v3206_v43 }
 0x6b9   : > { %v3222_v26 = vmul.f32 %v9088_v5, %v9088_v5 }
 0x6bb   : > { %v3232_v0 = vsel %vm664_vm0, %v3222_v26, 0.0 }
 0x6bc   : > { %v3189_v31 = vpop.xlane.xlu2 %3188  ;;  %3203 = vadd.xlane.f32.xlu0 %v3202_v17  ;;  %3233 = vadd.xlane.f32.xlu2 %v3232_v0 }
 0x6bd   : > { %v3207_v10 = vmul.f32 %v3189_v31, %v10730_v16 }
 0x6bf   : > { %v9096_v32 = vsub.f32 %v3173_v44, %v3207_v10  ;;  %v7053_v44 = vld [vmem:[%s10652_s11 + $0x8] sm:$0xff] }
 0x6c0   : > { %3415 = vmatpush.bf16.msrb.mxu1 %v7053_v44 }
 0x6c1   : > { %v3223_v11 = vmul.f32 %v9096_v32, %v9096_v32 }
 0x6c3   : > { %v3235_v8 = vsel %vm664_vm0, %v3223_v11, 0.0 }
 0x6c4   : > { %v3192_v56 = vpop.xlane.xlu0 %3191  ;;  %3236 = vadd.xlane.f32.xlu2 %v3235_v8  ;;  %3416 = vmatpush.bf16.msrb.mxu1 %v7052_v46  ;;  %v9150_v8 = vld [vmem:[%s10651_s10] ss:$0 sm:$0xff] }
 0x6c5   : > { %v3208_v7 = vmul.f32 %v3192_v56, %v10730_v16 }
 0x6c7   : > { %v9102_v6 = vsub.f32 %v3174_v54, %v3208_v7 }
 0x6c9   : > { %v3224_v47 = vmul.f32 %v9102_v6, %v9102_v6 }
 0x6cb   : > { %v3238_v48 = vsel %vm664_vm0, %v3224_v47, 0.0 }
 0x6cc   : > { %3239 = vadd.xlane.f32.xlu1 %v3238_v48  ;;  %v3195_v62 = vpop.xlane.xlu2 %3194 }
 0x6cd   : > { %v3209_v59 = vmul.f32 %v3195_v62, %v10730_v16 }
 0x6cf   : > { %v9108_v52 = vsub.f32 %v3175_v57, %v3209_v59 }
 0x6d1   : > { %v3225_v12 = vmul.f32 %v9108_v52, %v9108_v52 }
 0x6d3   : > { %v3241_v63 = vsel %vm664_vm0, %v3225_v12, 0.0 }
 0x6d4   : > { %v3198_v13 = vpop.xlane.xlu1 %3197  ;;  %3242 = vadd.xlane.f32.xlu0 %v3241_v63 }
 0x6d5   : > { %v3210_v60 = vmul.f32 %v3198_v13, %v10730_v16 }
 0x6d7   : > { %v9114_v21 = vsub.f32 %v3176_v34, %v3210_v60 }
 0x6d9   : > { %v3226_v61 = vmul.f32 %v9114_v21, %v9114_v21 }
 0x6db   : > { %v3244_v18 = vsel %vm664_vm0, %v3226_v61, 0.0 }
 0x6dc   : > { %v3201_v50 = vpop.xlane.xlu1 %3200  ;;  %3245 = vadd.xlane.f32.xlu2 %v3244_v18 }
 0x6dd   : > { %v3211_v53 = vmul.f32 %v3201_v50, %v10730_v16 }
 0x6df   : > { %v9120_v24 = vsub.f32 %v3177_v20, %v3211_v53 }
 0x6e1   : > { %v3227_v58 = vmul.f32 %v9120_v24, %v9120_v24 }
 0x6e3   : > { %v3247_v42 = vsel %vm664_vm0, %v3227_v58, 0.0 }
 0x6e4   : > { %3248 = vadd.xlane.f32.xlu1 %v3247_v42 }
 0x727   : > { %v3231_v22 = vpop.xlane.xlu0 %3230 }
 0x728   : > { %v3253_v36 = vmul.f32 %v3231_v22, %v10730_v16 }
 0x72a   : > { %v3261_v35 = vadd.f32 1e-08, %v3253_v36 }
 0x72c   : > { %7613 = vrsqrt.f32 %v3261_v35  ;;  %vm3275_vm2 = vweird.f32 %v3261_v35 }
 0x72f   : > { %v3204_v54 = vpop.xlane.xlu0 %3203  ;;  %v3234_v51 = vpop.xlane.xlu2 %3233 }
 0x730   : > { %v3212_v1 = vmul.f32 %v3204_v54, %v10730_v16  ;;  %v3254_v19 = vmul.f32 %v3234_v51, %v10730_v16 }
 0x732   : > { %v7614_v9 = vpop.eup %7613  ;;  %v9134_v57 = vsub.f32 %v3178_v37, %v3212_v1  ;;  %v3262_v29 = vadd.f32 1e-08, %v3254_v19  ;;  %v9144_v37 = vld [vmem:[%s10650_s9] ss:$0 sm:$0xff] }
 0x733   : > { %v3270_v41 = vmul.f32 %v7614_v9, %v3261_v35  ;;  %vm3276_vm1 = vweird.f32 %v7614_v9 }
 0x734   : > { %7615 = vrsqrt.f32 %v3262_v29  ;;  %v3228_v40 = vmul.f32 %v9134_v57, %v9134_v57  ;;  %vm3277_vm3 = vmor %vm3275_vm2, %vm3276_vm1  ;;  %vm3285_vm5 = vweird.f32 %v3262_v29 }
 0x735   : > { %v3271_v45 = vmul.f32 %v7614_v9, %v3270_v41 }
 0x736   : > { %v3250_v34 = vsel %vm664_vm0, %v3228_v40, 0.0 }
 0x737   : > { %v3272_v25 = vmul.f32 0.5, %v3271_v45  ;;  %3251 = vadd.xlane.f32.xlu0 %v3250_v34  ;;  %v3237_v2 = vpop.xlane.xlu2 %3236 }
 0x738   : > { %v3255_v4 = vmul.f32 %v3237_v2, %v10730_v16 }
 0x739   : > { %v3273_v33 = vsub.f32 1.5, %v3272_v25 }
 0x73a   : > { %v7616_v20 = vpop.eup %7615  ;;  %v3263_v38 = vadd.f32 1e-08, %v3255_v4 }
 0x73b   : > { %v3274_v14 = vmul.f32 %v7614_v9, %v3273_v33  ;;  %v3280_v55 = vmul.f32 %v7616_v20, %v3262_v29  ;;  %vm3286_vm4 = vweird.f32 %v7616_v20 }
 0x73c   : > { %7617 = vrsqrt.f32 %v3263_v38  ;;  %vm3287_vm6 = vmor %vm3285_vm5, %vm3286_vm4  ;;  %vm3295_vm9 = vweird.f32 %v3263_v38 }
 0x73d   : > { %v3281_v28 = vmul.f32 %v7616_v20, %v3280_v55  ;;  %v3278_v49 = vsel %vm3277_vm3, %v7614_v9, %v3274_v14 }
 0x73e   : > { %v3349_v26 = vmul.f32 %v3278_v49, %v9082_v39 }
 0x73f   : > { %v3282_v3 = vmul.f32 0.5, %v3281_v28  ;;  %v3240_v30 = vpop.xlane.xlu1 %3239 }
 0x740   : > { %v3256_v15 = vmul.f32 %v3240_v30, %v10730_v16  ;;  %v3358_v56 = vmul.f32 %v9144_v37, %v3349_v26 }
 0x741   : > { %v3283_v43 = vsub.f32 1.5, %v3282_v3 }
 0x742   : > { %v7618_v23 = vpop.eup %7617  ;;  %v3264_v17 = vadd.f32 1e-08, %v3256_v15  ;;  %v3367_v63 = vadd.f32 %v9150_v8, %v3358_v56 }
 0x743   : > { %v3284_v0 = vmul.f32 %v7616_v20, %v3283_v43  ;;  %v3290_v31 = vmul.f32 %v7618_v23, %v3263_v38  ;;  %vm3296_vm7 = vweird.f32 %v7618_v23 }
 0x744   : > { %7619 = vrsqrt.f32 %v3264_v17  ;;  %vm3297_vm10 = vmor %vm3295_vm9, %vm3296_vm7  ;;  %vm3305_vm12 = vweird.f32 %v3264_v17 }
 0x745   : > { %v3288_v10 = vsel %vm3287_vm6, %v7616_v20, %v3284_v0  ;;  %v3291_v11 = vmul.f32 %v7618_v23, %v3290_v31 }
 0x746   : > { %v3350_v7 = vmul.f32 %v3288_v10, %v9088_v5 }
 0x747   : > { %v3292_v47 = vmul.f32 0.5, %v3291_v11  ;;  %v3243_v48 = vpop.xlane.xlu0 %3242 }
 0x748   : > { %v3359_v39 = vmul.f32 %v9144_v37, %v3350_v7  ;;  %v3257_v62 = vmul.f32 %v3243_v48, %v10730_v16 }
 0x749   : > { %v3293_v59 = vsub.f32 1.5, %v3292_v47 }
 0x74a   : > { %v7620_v12 = vpop.eup %7619  ;;  %v3368_v13 = vadd.f32 %v9150_v8, %v3359_v39  ;;  %v3265_v60 = vadd.f32 1e-08, %v3257_v62  ;;  %v7054_v39 = vld [vmem:[%s10654_s13] sm:$0xff] }
 0x74b   : > { %v3294_v61 = vmul.f32 %v7618_v23, %v3293_v59  ;;  %v3300_v18 = vmul.f32 %v7620_v12, %v3264_v17  ;;  %vm3306_vm11 = vweird.f32 %v7620_v12 }
 0x74c   : > { %v3375_v50 = vpack.c.bf16 %v3368_v13, %v3367_v63  ;;  %7621 = vrsqrt.f32 %v3265_v60  ;;  %vm3307_vm1 = vmor %vm3305_vm12, %vm3306_vm11  ;;  %vm3315_vm3 = vweird.f32 %v3265_v60 }
 0x74d   : > { %v3301_v5 = vmul.f32 %v7620_v12, %v3300_v18  ;;  %v3298_v53 = vsel %vm3297_vm10, %v7618_v23, %v3294_v61 }
 0x74e   : > { %6884 = vmatmul.msk.bf16.vlgmr.msrb.gmra.mxu1 %vm664_vm0, %v3375_v50  ;;  %v3351_v35 = vmul.f32 %v3298_v53, %v9096_v32 }
 0x74f   : > { %v3302_v58 = vmul.f32 0.5, %v3301_v5  ;;  %v3246_v42 = vpop.xlane.xlu2 %3245 }
 0x750   : > { %v3258_v44 = vmul.f32 %v3246_v42, %v10730_v16  ;;  %v3360_v29 = vmul.f32 %v9144_v37, %v3351_v35 }
 0x751   : > { %v3303_v22 = vsub.f32 1.5, %v3302_v58 }
 0x752   : > { %v7622_v36 = vpop.eup %7621  ;;  %v3266_v46 = vadd.f32 1e-08, %v3258_v44  ;;  %v3369_v25 = vadd.f32 %v9150_v8, %v3360_v29 }
 0x753   : > { %v3304_v54 = vmul.f32 %v7620_v12, %v3303_v22  ;;  %v3310_v51 = vmul.f32 %v7622_v36, %v3265_v60  ;;  %vm3316_vm2 = vweird.f32 %v7622_v36 }
 0x754   : > { %7623 = vrsqrt.f32 %v3266_v46  ;;  %vm3317_vm4 = vmor %vm3315_vm3, %vm3316_vm2  ;;  %vm3325_vm6 = vweird.f32 %v3266_v46 }
 0x755   : > { %v3308_v1 = vsel %vm3307_vm1, %v7620_v12, %v3304_v54  ;;  %v3311_v19 = vmul.f32 %v7622_v36, %v3310_v51 }
 0x756   : > { %v3352_v9 = vmul.f32 %v3308_v1, %v9102_v6 }
 0x757   : > { %v3312_v41 = vmul.f32 0.5, %v3311_v19  ;;  %v3249_v17 = vpop.xlane.xlu1 %3248 }
 0x758   : > { %v3361_v40 = vmul.f32 %v9144_v37, %v3352_v9 }
 0x759   : > { %v3313_v45 = vsub.f32 1.5, %v3312_v41 }
 0x75a   : > { %v7624_v34 = vpop.eup %7623  ;;  %v3370_v32 = vadd.f32 %v9150_v8, %v3361_v40 }
 0x75b   : > { %v3314_v2 = vmul.f32 %v7622_v36, %v3313_v45  ;;  %v3320_v4 = vmul.f32 %v7624_v34, %v3266_v46  ;;  %vm3326_vm5 = vweird.f32 %v7624_v34 }
 0x75c   : > { %v3376_v33 = vpack.c.bf16 %v3370_v32, %v3369_v25  ;;  %vm3327_vm7 = vmor %vm3325_vm6, %vm3326_vm5 }
 0x75d   : > { %v3321_v20 = vmul.f32 %v7624_v34, %v3320_v4  ;;  %v3318_v6 = vsel %vm3317_vm4, %v7622_v36, %v3314_v2 }
 0x75e   : > { %6885 = vmatmul.msk.bf16.gmra.mxu1 %vm664_vm0, %v3376_v33  ;;  %v3353_v55 = vmul.f32 %v3318_v6, %v9108_v52  ;;  %v3259_v52 = vmul.f32 %v3249_v17, %v10730_v16 }
 0x75f   : > { %v3322_v38 = vmul.f32 0.5, %v3321_v20 }
 0x760   : > { %v3362_v30 = vmul.f32 %v9144_v37, %v3353_v55  ;;  %v3267_v0 = vadd.f32 1e-08, %v3259_v52  ;;  %v7058_v55 = vld [vmem:[%s10646_s5 + $0x10] sm:$0xff] }
 0x761   : > { %v3323_v14 = vsub.f32 1.5, %v3322_v38  ;;  %v7059_v38 = vld [vmem:[%s10646_s5 + $0x18] sm:$0xff] }
 0x762   : > { %v3371_v43 = vadd.f32 %v9150_v8, %v3362_v30  ;;  %7625 = vrsqrt.f32 %v3267_v0  ;;  %vm3335_vm10 = vweird.f32 %v3267_v0  ;;  %3818 = vmatpush.bf16.msra.mxu0 %v7059_v38 }
 0x763   : > { %v3324_v28 = vmul.f32 %v7624_v34, %v3323_v14 }
 0x765   : > { %v3328_v49 = vsel %vm3327_vm7, %v7624_v34, %v3324_v28 }
 0x766   : > { %v3354_v3 = vmul.f32 %v3328_v49, %v9114_v21  ;;  %v7055_v21 = vld [vmem:[%s10654_s13 + $0x8] sm:$0xff]  ;;  %3819 = vmatpush.bf16.msra.mxu0 %v7058_v55 }
 0x767   : > { %3486 = vmatpush.bf16.msrb.mxu2 %v7055_v21 }
 0x768   : > { %v3363_v15 = vmul.f32 %v9144_v37, %v3354_v3  ;;  %v7626_v31 = vpop.eup %7625 }
 0x769   : > { %v3330_v10 = vmul.f32 %v7626_v31, %v3267_v0  ;;  %vm3336_vm9 = vweird.f32 %v7626_v31 }
 0x76a   : > { %v3372_v23 = vadd.f32 %v9150_v8, %v3363_v15  ;;  %vm3337_vm11 = vmor %vm3335_vm10, %vm3336_vm9 }
 0x76b   : > { %v3331_v11 = vmul.f32 %v7626_v31, %v3330_v10  ;;  %3487 = vmatpush.bf16.msrb.mxu2 %v7054_v39 }
 0x76c   : > { %v3377_v26 = vpack.c.bf16 %v3372_v23, %v3371_v43  ;;  %v7455_v23 = vld [vmem:[%s10655_s14] ss:$0 sm:$0xff] }
 0x76d   : > { %v3332_v48 = vmul.f32 0.5, %v3331_v11 }
 0x76e   : > { %6886 = vmatmul.msk.bf16.gmra.mxu1 %vm664_vm0, %v3377_v26 }
 0x76f   : > { %v3333_v62 = vsub.f32 1.5, %v3332_v48 }
 0x771   : > { %v3334_v12 = vmul.f32 %v7626_v31, %v3333_v62 }
 0x773   : > { %v3338_v60 = vsel %vm3337_vm11, %v7626_v31, %v3334_v12 }
 0x774   : > { %v3355_v50 = vmul.f32 %v3338_v60, %v9120_v24  ;;  %v7454_v24 = vld [vmem:[%s10653_s12] ss:$0 sm:$0xff] }
 0x776   : > { %v3364_v42 = vmul.f32 %v9144_v37, %v3355_v50 }
 0x778   : > { %v3373_v22 = vadd.f32 %v9150_v8, %v3364_v42 }
 0x7aa   : > { %v3252_v56 = vpop.xlane.xlu0 %3251 }
 0x7ab   : > { %v3260_v7 = vmul.f32 %v3252_v56, %v10730_v16 }
 0x7ad   : > { %v3268_v47 = vadd.f32 1e-08, %v3260_v7 }
 0x7af   : > { %7627 = vrsqrt.f32 %v3268_v47  ;;  %vm3345_vm1 = vweird.f32 %v3268_v47 }
 0x7b5   : > { %v7628_v59 = vpop.eup %7627 }
 0x7b6   : > { %v3340_v63 = vmul.f32 %v7628_v59, %v3268_v47  ;;  %vm3346_vm12 = vweird.f32 %v7628_v59 }
 0x7b7   : > { %vm3347_vm2 = vmor %vm3345_vm1, %vm3346_vm12 }
 0x7b8   : > { %v3341_v13 = vmul.f32 %v7628_v59, %v3340_v63 }
 0x7ba   : > { %v3342_v61 = vmul.f32 0.5, %v3341_v13 }
 0x7bc   : > { %v3343_v18 = vsub.f32 1.5, %v3342_v61 }
 0x7be   : > { %v3344_v5 = vmul.f32 %v7628_v59, %v3343_v18 }
 0x7c0   : > { %v3348_v53 = vsel %vm3347_vm2, %v7628_v59, %v3344_v5 }
 0x7c1   : > { %v3356_v58 = vmul.f32 %v3348_v53, %v9134_v57 }
 0x7c3   : > { %v3365_v44 = vmul.f32 %v9144_v37, %v3356_v58  ;;  %v7057_v58 = vld [vmem:[%s10701_s29 + $0x18] sm:$0xff] }
 0x7c4   : > { %3746 = vmatpush.bf16.msrb.mxu3 %v7057_v58 }
 0x7c5   : > { %v3374_v36 = vadd.f32 %v9150_v8, %v3365_v44 }
 0x7c7   : > { %v3378_v35 = vpack.c.bf16 %v3374_v36, %v3373_v22  ;;  %v7056_v36 = vld [vmem:[%s10701_s29 + $0x10] sm:$0xff] }
 0x7c8   : > { %3747 = vmatpush.bf16.msrb.mxu3 %v7056_v36 }
 0x7c9   : > { %6887 = vmatmul.msk.bf16.gmra.mxu1 %vm664_vm0, %v3378_v35 }
 0x7cb   : > { %v3418_v46 = vpop.f32.mrf.mxu1 }
 0x7cc   : > { %v3419_v54 = vadd.f32 %v7454_v24, %v3418_v46 }
 0x7ce   : > { %v3438_v57 = vmax.f32 %v3419_v54, 0.0 }
 0x7d3   : > { %v3420_v51 = vpop.f32.mrf.mxu1 }
 0x7d4   : > { %v3421_v1 = vadd.f32 %v7454_v24, %v3420_v51 }
 0x7d6   : > { %v3439_v19 = vmax.f32 %v3421_v1, 0.0 }
 0x7d8   : > { %v3446_v9 = vpack.c.bf16 %v3439_v19, %v3438_v57 }
 0x7da   : > { %6896 = vmatmul.msk.bf16.vlgmr.msrb.gmra.mxu2 %vm664_vm0, %v3446_v9 }
 0x7db   : > { %v3423_v37 = vpop.f32.mrf.mxu1 }
 0x7dc   : > { %v3424_v29 = vadd.f32 %v7454_v24, %v3423_v37 }
 0x7de   : > { %v3440_v40 = vmax.f32 %v3424_v29, 0.0 }
 0x7e3   : > { %v3425_v41 = vpop.f32.mrf.mxu1 }
 0x7e4   : > { %v3426_v8 = vadd.f32 %v7454_v24, %v3425_v41 }
 0x7e6   : > { %v3441_v45 = vmax.f32 %v3426_v8, 0.0  ;;  %v9249_v8 = vld [vmem:[%s10647_s6 + $0x1] ss:$0 sm:$0xff] }
 0x7e8   : > { %v3447_v34 = vpack.c.bf16 %v3441_v45, %v3440_v40 }
 0x7ea   : > { %6897 = vmatmul.msk.bf16.gmra.mxu2 %vm664_vm0, %v3447_v34 }
 0x7eb   : > { %v3428_v25 = vpop.f32.mrf.mxu1 }
 0x7ec   : > { %v3429_v32 = vadd.f32 %v7454_v24, %v3428_v25 }
 0x7ee   : > { %v3442_v33 = vmax.f32 %v3429_v32, 0.0 }
 0x7f3   : > { %v3430_v2 = vpop.f32.mrf.mxu1 }
 0x7f4   : > { %v3431_v4 = vadd.f32 %v7454_v24, %v3430_v2 }
 0x7f6   : > { %v3443_v20 = vmax.f32 %v3431_v4, 0.0 }
 0x7f8   : > { %v3448_v6 = vpack.c.bf16 %v3443_v20, %v3442_v33 }
 0x7fa   : > { %6898 = vmatmul.msk.bf16.gmra.mxu2 %vm664_vm0, %v3448_v6 }
 0x846   : > { %v3433_v14 = vpop.f32.mrf.mxu1 }
 0x847   : > { %v3434_v28 = vadd.f32 %v7454_v24, %v3433_v14 }
 0x849   : > { %v3444_v30 = vmax.f32 %v3434_v28, 0.0 }
 0x84e   : > { %v3435_v49 = vpop.f32.mrf.mxu1 }
 0x84f   : > { %v3436_v3 = vadd.f32 %v7454_v24, %v3435_v49 }
 0x851   : > { %v3445_v15 = vmax.f32 %v3436_v3, 0.0 }
 0x853   : > { %v3449_v43 = vpack.c.bf16 %v3445_v15, %v3444_v30 }
 0x855   : > { %6899 = vmatmul.msk.bf16.gmra.mxu2 %vm664_vm0, %v3449_v43 }
 0x85d   : > { %v3489_v26 = vpop.f32.mrf.mxu2 }
 0x85e   : > { %v3490_v17 = vadd.f32 %v7455_v23, %v3489_v26 }
 0x860   : > { %v3511_v52 = vsel %vm664_vm0, %v3490_v17, 0.0 }
 0x861   : > { %3512 = vadd.xlane.f32.xlu2 %v3511_v52 }
 0x865   : > { %v3491_v0 = vpop.f32.mrf.mxu2 }
 0x866   : > { %v3492_v31 = vadd.f32 %v7455_v23, %v3491_v0 }
 0x868   : > { %v3777_v10 = vpack.c.bf16 %v3492_v31, %v3490_v17  ;;  %v3514_v21 = vsel %vm664_vm0, %v3492_v31, 0.0 }
 0x869   : > { %3515 = vadd.xlane.f32.xlu1 %v3514_v21 }
 0x86a   : > { %6928 = vmatmul.msk.bf16.vlgmr.msra.gmra.mxu0 %vm664_vm0, %v3777_v10 }
 0x86d   : > { %v3494_v11 = vpop.f32.mrf.mxu2 }
 0x86e   : > { %v3495_v56 = vadd.f32 %v7455_v23, %v3494_v11 }
 0x870   : > { %v3517_v7 = vsel %vm664_vm0, %v3495_v56, 0.0 }
 0x871   : > { %3518 = vadd.xlane.f32.xlu0 %v3517_v7 }
 0x875   : > { %v3496_v47 = vpop.f32.mrf.mxu2 }
 0x876   : > { %v3497_v48 = vadd.f32 %v7455_v23, %v3496_v47 }
 0x878   : > { %v3778_v39 = vpack.c.bf16 %v3497_v48, %v3495_v56  ;;  %v3520_v62 = vsel %vm664_vm0, %v3497_v48, 0.0 }
 0x879   : > { %3521 = vadd.xlane.f32.xlu2 %v3520_v62 }
 0x87a   : > { %6929 = vmatmul.msk.bf16.gmra.mxu0 %vm664_vm0, %v3778_v39 }
 0x87d   : > { %v3499_v59 = vpop.f32.mrf.mxu2 }
 0x87e   : > { %v3500_v12 = vadd.f32 %v7455_v23, %v3499_v59 }
 0x880   : > { %v3523_v63 = vsel %vm664_vm0, %v3500_v12, 0.0 }
 0x881   : > { %3524 = vadd.xlane.f32.xlu1 %v3523_v63 }
 0x885   : > { %v3501_v13 = vpop.f32.mrf.mxu2 }
 0x886   : > { %v9212_v60 = vadd.f32 %v7455_v23, %v3501_v13 }
 0x888   : > { %v3779_v61 = vpack.c.bf16 %v9212_v60, %v3500_v12  ;;  %v3526_v18 = vsel %vm664_vm0, %v9212_v60, 0.0 }
 0x889   : > { %3527 = vadd.xlane.f32.xlu0 %v3526_v18 }
 0x88a   : > { %6930 = vmatmul.msk.bf16.gmra.mxu0 %vm664_vm0, %v3779_v61 }
 0x8d4   : > { %v3513_v50 = vpop.xlane.xlu2 %3512 }
 0x8d5   : > { %v3535_v5 = vmul.f32 %v3513_v50, %v10730_v16 }
 0x8d7   : > { %v9219_v53 = vsub.f32 %v3490_v17, %v3535_v5 }
 0x8d8   : > { %v3504_v42 = vpop.f32.mrf.mxu2 }
 0x8d9   : > { %v9224_v44 = vadd.f32 %v7455_v23, %v3504_v42  ;;  %v3551_v22 = vmul.f32 %v9219_v53, %v9219_v53 }
 0x8db   : > { %v3529_v35 = vsel %vm664_vm0, %v9224_v44, 0.0  ;;  %v3559_v46 = vsel %vm664_vm0, %v3551_v22, 0.0 }
 0x8dc   : > { %v3516_v24 = vpop.xlane.xlu1 %3515  ;;  %3530 = vadd.xlane.f32.xlu0 %v3529_v35  ;;  %3560 = vadd.xlane.f32.xlu2 %v3559_v46 }
 0x8dd   : > { %v3536_v54 = vmul.f32 %v3516_v24, %v10730_v16 }
 0x8df   : > { %v9235_v51 = vsub.f32 %v3492_v31, %v3536_v54 }
 0x8e0   : > { %v3506_v1 = vpop.f32.mrf.mxu2 }
 0x8e1   : > { %v9237_v57 = vadd.f32 %v7455_v23, %v3506_v1  ;;  %v3552_v19 = vmul.f32 %v9235_v51, %v9235_v51 }
 0x8e3   : > { %v3780_v9 = vpack.c.bf16 %v9237_v57, %v9224_v44  ;;  %v3562_v37 = vsel %vm664_vm0, %v3552_v19, 0.0  ;;  %v3532_v29 = vsel %vm664_vm0, %v9237_v57, 0.0 }
 0x8e4   : > { %v3519_v41 = vpop.xlane.xlu0 %3518  ;;  %3563 = vadd.xlane.f32.xlu1 %v3562_v37  ;;  %3533 = vadd.xlane.f32.xlu2 %v3532_v29 }
 0x8e5   : > { %v3537_v40 = vmul.f32 %v3519_v41, %v10730_v16  ;;  %6931 = vmatmul.msk.bf16.gmra.mxu0 %vm664_vm0, %v3780_v9 }
 0x8e7   : > { %v9253_v45 = vsub.f32 %v3495_v56, %v3537_v40  ;;  %v3821_v34 = vpop.f32.mrf.mxu0 }
 0x8e8   : > { %v9256_v25 = vadd.f32 %v9249_v8, %v3821_v34 }
 0x8e9   : > { %v3553_v32 = vmul.f32 %v9253_v45, %v9253_v45 }
 0x8ea   : > { %v9262_v2 = vpack.c.bf16 %v9256_v25, %v9256_v25 }
 0x8eb   : > { %v3565_v4 = vsel %vm664_vm0, %v3553_v32, 0.0 }
 0x8ec   : > { %3566 = vadd.xlane.f32.xlu1 %v3565_v4  ;;  %v3522_v33 = vpop.xlane.xlu2 %3521  ;;  %v4069_v20 = vsel %vm1224_vm8, %v9262_v2, 0 }
 0x8ed   : > { %v3538_v6 = vmul.f32 %v3522_v33, %v10730_v16  ;;  %4078 = vmatpush.bf16.xpose.msra.mxu1 %v4069_v20 }
 0x8ef   : > { %v9268_v38 = vsub.f32 %v3497_v48, %v3538_v6  ;;  %v3823_v14 = vpop.f32.mrf.mxu0 }
 0x8f0   : > { %v9271_v55 = vadd.f32 %v9249_v8, %v3823_v14 }
 0x8f1   : > { %v3554_v28 = vmul.f32 %v9268_v38, %v9268_v38 }
 0x8f2   : > { %v9277_v49 = vpack.c.bf16 %v9271_v55, %v9271_v55  ;;  %v9330_v58 = vpack.i.bf16 %v9271_v55, %v9256_v25 }
 0x8f3   : > { %v3568_v3 = vsel %vm664_vm0, %v3554_v28, 0.0 }
 0x8f4   : > { %v3525_v30 = vpop.xlane.xlu1 %3524  ;;  %3569 = vadd.xlane.f32.xlu0 %v3568_v3  ;;  %v4088_v15 = vsel %vm1224_vm8, %v9277_v49, 0 }
 0x8f5   : > { %v3539_v43 = vmul.f32 %v3525_v30, %v10730_v16  ;;  %4097 = vmatpush.bf16.xpose.msra.mxu2 %v4088_v15 }
 0x8f7   : > { %v9283_v23 = vsub.f32 %v3500_v12, %v3539_v43  ;;  %v3826_v26 = vpop.f32.mrf.mxu0 }
 0x8f8   : > { %v9286_v17 = vadd.f32 %v9249_v8, %v3826_v26 }
 0x8f9   : > { %v3555_v52 = vmul.f32 %v9283_v23, %v9283_v23 }
 0x8fa   : > { %v9292_v0 = vpack.c.bf16 %v9286_v17, %v9286_v17  ;;  %v7267_v31 = vpack.i.bf16 %v9286_v17, %v9271_v55 }
 0x8fb   : > { %v3571_v10 = vsel %vm664_vm0, %v3555_v52, 0.0 }
 0x8fc   : > { %v3528_v21 = vpop.xlane.xlu0 %3527  ;;  %3572 = vadd.xlane.f32.xlu2 %v3571_v10  ;;  %v4107_v11 = vsel %vm1224_vm8, %v9292_v0, 0 }
 0x8fd   : > { %v3540_v56 = vmul.f32 %v3528_v21, %v10730_v16  ;;  %4116 = vmatpush.bf16.xpose.msra.mxu3 %v4107_v11 }
 0x8ff   : > { %v9301_v7 = vsub.f32 %v9212_v60, %v3540_v56  ;;  %v3828_v47 = vpop.f32.mrf.mxu0 }
 0x900   : > { %v9304_v48 = vadd.f32 %v9249_v8, %v3828_v47 }
 0x901   : > { %v3556_v39 = vmul.f32 %v9301_v7, %v9301_v7 }
 0x902   : > { %v9310_v62 = vpack.c.bf16 %v9304_v48, %v9304_v48 }
 0x903   : > { %v3574_v59 = vsel %vm664_vm0, %v3556_v39, 0.0  ;;  %v9355_v39 = vld [vmem:[%s10702_s23 + $0x1] ss:$0 sm:$0xff] }
 0x904   : > { %3575 = vadd.xlane.f32.xlu1 %v3574_v59  ;;  %v4126_v12 = vsel %vm1224_vm8, %v9310_v62, 0 }
 0x905   : > { %4135 = vmatpush.bf16.xpose.msrb.mxu1 %v4126_v12 }
 0x907   : > { %v3831_v63 = vpop.f32.mrf.mxu0 }
 0x908   : > { %v3832_v13 = vadd.f32 %v9249_v8, %v3831_v63 }
 0x90a   : > { %v9316_v60 = vpack.c.bf16 %v3832_v13, %v3832_v13 }
 0x90c   : > { %v4145_v61 = vsel %vm1224_vm8, %v9316_v60, 0 }
 0x90d   : > { %4154 = vmatpush.bf16.xpose.msrb.mxu2 %v4145_v61 }
 0x90f   : > { %v3833_v18 = vpop.f32.mrf.mxu0 }
 0x910   : > { %v9321_v50 = vadd.f32 %v9249_v8, %v3833_v18 }
 0x912   : > { %v9324_v5 = vpack.i.bf16 %v9321_v50, %v3832_v13 }
 0x91d   : > { %7273 = vrot.lane.b32.xlu1 %v9324_v5, %s7816_s1 }
 0x925   : > { %7293 = vrot.lane.b32.xlu1 %v9330_v58, %s7815_s20 }
 0x94f   : > { %v3531_v42 = vpop.xlane.xlu0 %3530  ;;  %v3561_v22 = vpop.xlane.xlu2 %3560 }
 0x950   : > { %v3541_v36 = vmul.f32 %v3531_v42, %v10730_v16  ;;  %v3583_v35 = vmul.f32 %v3561_v22, %v10730_v16 }
 0x952   : > { %v9337_v46 = vsub.f32 %v9224_v44, %v3541_v36  ;;  %v3591_v24 = vadd.f32 1e-08, %v3583_v35  ;;  %v9375_v35 = vld [vmem:[%s10705_s3 + $0x1] ss:$0 sm:$0xff] }
 0x954   : > { %7629 = vrsqrt.f32 %v3591_v24  ;;  %v3557_v54 = vmul.f32 %v9337_v46, %v9337_v46  ;;  %vm3605_vm4 = vweird.f32 %v3591_v24 }
 0x956   : > { %v3577_v1 = vsel %vm664_vm0, %v3557_v54, 0.0 }
 0x957   : > { %v3564_v19 = vpop.xlane.xlu1 %3563  ;;  %3578 = vadd.xlane.f32.xlu0 %v3577_v1  ;;  %v3534_v9 = vpop.xlane.xlu2 %3533 }
 0x958   : > { %v3584_v37 = vmul.f32 %v3564_v19, %v10730_v16  ;;  %v3542_v29 = vmul.f32 %v3534_v9, %v10730_v16  ;;  %v7282_v9 = vpack.i.bf16 %v9304_v48, %v9286_v17 }
 0x95a   : > { %v7630_v41 = vpop.eup %7629  ;;  %v3592_v40 = vadd.f32 1e-08, %v3584_v37  ;;  %v9345_v34 = vsub.f32 %v9237_v57, %v3542_v29 }
 0x95b   : > { %v3600_v44 = vmul.f32 %v7630_v41, %v3591_v24  ;;  %vm3606_vm3 = vweird.f32 %v7630_v41 }
 0x95c   : > { %7631 = vrsqrt.f32 %v3592_v40  ;;  %v3558_v32 = vmul.f32 %v9345_v34, %v9345_v34  ;;  %vm3607_vm5 = vmor %vm3605_vm4, %vm3606_vm3  ;;  %vm3615_vm7 = vweird.f32 %v3592_v40 }
 0x95d   : > { %v3601_v4 = vmul.f32 %v7630_v41, %v3600_v44 }
 0x95e   : > { %v3580_v33 = vsel %vm664_vm0, %v3558_v32, 0.0 }
 0x95f   : > { %v3602_v20 = vmul.f32 0.5, %v3601_v4  ;;  %v3567_v6 = vpop.xlane.xlu1 %3566  ;;  %3581 = vadd.xlane.f32.xlu2 %v3580_v33 }
 0x960   : > { %v3585_v14 = vmul.f32 %v3567_v6, %v10730_v16 }
 0x961   : > { %v3603_v28 = vsub.f32 1.5, %v3602_v20 }
 0x962   : > { %v7632_v3 = vpop.eup %7631  ;;  %v3593_v30 = vadd.f32 1e-08, %v3585_v14  ;;  %v3836_v15 = vpop.f32.mrf.mxu0 }
 0x963   : > { %v3604_v43 = vmul.f32 %v7630_v41, %v3603_v28  ;;  %v3610_v57 = vmul.f32 %v7632_v3, %v3592_v40  ;;  %vm3616_vm6 = vweird.f32 %v7632_v3  ;;  %v9359_v18 = vadd.f32 %v9249_v8, %v3836_v15 }
 0x964   : > { %7633 = vrsqrt.f32 %v3593_v30  ;;  %vm3617_vm9 = vmor %vm3615_vm7, %vm3616_vm6  ;;  %v9393_v40 = vpack.c.bf16 %v9321_v50, %v9321_v50  ;;  %vm3625_vm11 = vweird.f32 %v3593_v30 }
 0x965   : > { %v3611_v26 = vmul.f32 %v7632_v3, %v3610_v57  ;;  %v3608_v52 = vsel %vm3607_vm5, %v7630_v41, %v3604_v43 }
 0x966   : > { %v3679_v59 = vmul.f32 %v3608_v52, %v9219_v53  ;;  %v4164_v33 = vsel %vm1224_vm8, %v9393_v40, 0 }
 0x967   : > { %v3612_v10 = vmul.f32 0.5, %v3611_v26  ;;  %v3570_v21 = vpop.xlane.xlu0 %3569  ;;  %v5058_v26 = vunpack.c.l.b16 %v9262_v2 }
 0x968   : > { %v3586_v11 = vmul.f32 %v3570_v21, %v10730_v16 }
 0x969   : > { %v3613_v56 = vsub.f32 1.5, %v3612_v10 }
 0x96a   : > { %v7634_v47 = vpop.eup %7633  ;;  %v3594_v12 = vadd.f32 1e-08, %v3586_v11  ;;  %v3838_v63 = vpop.f32.mrf.mxu0 }
 0x96b   : > { %v3614_v13 = vmul.f32 %v7632_v3, %v3613_v56  ;;  %v3620_v61 = vmul.f32 %v7634_v47, %v3593_v30  ;;  %v9362_v42 = vadd.f32 %v9249_v8, %v3838_v63  ;;  %7268 = vrot.lane.b32.xlu0 %v7267_v31, %s7816_s1  ;;  %v3688_v8 = vmul.f32 %v9355_v39, %v3679_v59 }
 0x96c   : > { %7635 = vrsqrt.f32 %v3594_v12  ;;  %vm3626_vm10 = vweird.f32 %v7634_v47  ;;  %vm3635_vm2 = vweird.f32 %v3594_v12 }
 0x96d   : > { %v3618_v22 = vsel %vm3617_vm9, %v7632_v3, %v3614_v13  ;;  %v3621_v53 = vmul.f32 %v7634_v47, %v3620_v61  ;;  %v9370_v36 = vpack.i.bf16 %v9362_v42, %v9359_v18  ;;  %v9386_v29 = vadd.f32 %v9375_v35, %v3688_v8  ;;  %vm3627_vm12 = vmor %vm3625_vm11, %vm3626_vm10 }
 0x96e   : > { %v3680_v24 = vmul.f32 %v3618_v22, %v9235_v51 }
 0x96f   : > { %v3622_v54 = vmul.f32 0.5, %v3621_v53  ;;  %7313 = vrot.lane.b32.xlu1 %v9370_v36, %s10732_s2  ;;  %v3573_v55 = vpop.xlane.xlu2 %3572  ;;  %10733 = vst [vmem:[#allocation13_spill] sm:$0xff] %v9386_v29 }
 0x970   : > { %v3689_v31 = vmul.f32 %v9355_v39, %v3680_v24  ;;  %v3587_v1 = vmul.f32 %v3573_v55, %v10730_v16  ;;  %v5178_v55 = vunpack.c.l.b16 %v9393_v40 }
 0x971   : > { %v3623_v19 = vsub.f32 1.5, %v3622_v54 }
 0x972   : > { %v7636_v37 = vpop.eup %7635  ;;  %v9389_v41 = vadd.f32 %v9375_v35, %v3689_v31  ;;  %v3595_v51 = vadd.f32 1e-08, %v3587_v1 }
 0x973   : > { %v3624_v44 = vmul.f32 %v7634_v47, %v3623_v19  ;;  %v3630_v32 = vmul.f32 %v7636_v37, %v3594_v12  ;;  %7283 = vrot.lane.b32.xlu0 %v7282_v9, %s10732_s2  ;;  %vm3636_vm1 = vweird.f32 %v7636_v37 }
 0x974   : > { %10734 = vst [vmem:[#allocation12_spill] sm:$0xff] %v9389_v41  ;;  %v3705_v17 = vpack.c.bf16 %v9389_v41, %v9386_v29  ;;  %7637 = vrsqrt.f32 %v3595_v51  ;;  %vm3637_vm3 = vmor %vm3635_vm2, %vm3636_vm1  ;;  %vm3645_vm5 = vweird.f32 %v3595_v51 }
 0x975   : > { %v3631_v4 = vmul.f32 %v7636_v37, %v3630_v32  ;;  %v3628_v20 = vsel %vm3627_vm12, %v7634_v47, %v3624_v44  ;;  %v5059_v47 = vpack.c.b16 %v5058_v26, %v5058_v26 }
 0x976   : > { %6912 = vmatmul.msk.bf16.vlgmr.msrb.gmra.mxu3 %vm664_vm0, %v3705_v17  ;;  %v3681_v30 = vmul.f32 %v3628_v20, %v9253_v45 }
 0x977   : > { %v3632_v50 = vmul.f32 0.5, %v3631_v4  ;;  %4173 = vmatpush.bf16.xpose.msrb.mxu3 %v4164_v33  ;;  %v3576_v6 = vpop.xlane.xlu1 %3575  ;;  %7278 = vrot.lane.b32.xlu2 %v9330_v58, %s10732_s2  ;;  %v5154_v33 = vunpack.c.l.b16 %v9316_v60 }
 0x978   : > { %v3588_v14 = vmul.f32 %v3576_v6, %v10730_v16  ;;  %v3690_v21 = vmul.f32 %v9355_v39, %v3681_v30 }
 0x979   : > { %v3633_v28 = vsub.f32 1.5, %v3632_v50  ;;  %v5155_v20 = vpack.c.b16 %v5154_v33, %v5154_v33 }
 0x97a   : > { %v7638_v3 = vpop.eup %7637  ;;  %v3596_v15 = vadd.f32 1e-08, %v3588_v14  ;;  %v9413_v12 = vadd.f32 %v9375_v35, %v3690_v21 }
 0x97b   : > { %v3634_v43 = vmul.f32 %v7636_v37, %v3633_v28  ;;  %v3640_v57 = vmul.f32 %v7638_v3, %v3595_v51  ;;  %7288 = vrot.lane.b32.xlu0 %v9324_v5, %s10732_s2  ;;  %vm3646_vm4 = vweird.f32 %v7638_v3  ;;  %v5179_v51 = vpack.c.b16 %v5178_v55, %v5178_v55 }
 0x97c   : > { %7639 = vrsqrt.f32 %v3596_v15  ;;  %10735 = vst [vmem:[#allocation15_spill] sm:$0xff] %v9413_v12  ;;  %vm3647_vm6 = vmor %vm3645_vm5, %vm3646_vm4  ;;  %vm3655_vm9 = vweird.f32 %v3596_v15 }
 0x97d   : > { %v3638_v52 = vsel %vm3637_vm3, %v7636_v37, %v3634_v43  ;;  %v3641_v58 = vmul.f32 %v7638_v3, %v3640_v57  ;;  %v5106_v37 = vunpack.c.l.b16 %v9292_v0  ;;  %v5130_v0 = vunpack.c.l.b16 %v9310_v62 }
 0x97e   : > { %v3682_v10 = vmul.f32 %v3638_v52, %v9268_v38 }
 0x97f   : > { %v3642_v11 = vmul.f32 0.5, %v3641_v58  ;;  %7298 = vrot.lane.b32.xlu2 %v7282_v9, %s7815_s20  ;;  %v5107_v17 = vpack.c.b16 %v5106_v37, %v5106_v37  ;;  %v5131_v4 = vpack.c.b16 %v5130_v0, %v5130_v0 }
 0x980   : > { %v3691_v45 = vmul.f32 %v9355_v39, %v3682_v10 }
 0x981   : > { %v3643_v56 = vsub.f32 1.5, %v3642_v11 }
 0x982   : > { %v7640_v59 = vpop.eup %7639  ;;  %v9416_v63 = vadd.f32 %v9375_v35, %v3691_v45 }
 0x983   : > { %v3644_v2 = vmul.f32 %v7638_v3, %v3643_v56  ;;  %v3650_v13 = vmul.f32 %v7640_v59, %v3596_v15  ;;  %5060 = vrot.lane.b32.xlu0 %v5059_v47, %s10737_s24  ;;  %vm3656_vm7 = vweird.f32 %v7640_v59 }
 0x984   : > { %10736 = vst [vmem:[#allocation14_spill] sm:$0xff] %v9416_v63  ;;  %v3706_v38 = vpack.c.bf16 %v9416_v63, %v9413_v12  ;;  %vm3657_vm10 = vmor %vm3655_vm9, %vm3656_vm7 }
 0x985   : > { %v3651_v61 = vmul.f32 %v7640_v59, %v3650_v13  ;;  %v3648_v22 = vsel %vm3647_vm6, %v7638_v3, %v3644_v2 }
 0x986   : > { %6913 = vmatmul.msk.bf16.gmra.mxu3 %vm664_vm0, %v3706_v38  ;;  %v3683_v24 = vmul.f32 %v3648_v22, %v9283_v23 }
 0x987   : > { %v3652_v53 = vmul.f32 0.5, %v3651_v61  ;;  %7303 = vrot.lane.b32.xlu2 %v9324_v5, %s7815_s20 }
 0x988   : > { %v3692_v19 = vmul.f32 %v9355_v39, %v3683_v24 }
 0x989   : > { %v3653_v8 = vsub.f32 1.5, %v3652_v53 }
 0x98a   : > { %v9440_v40 = vadd.f32 %v9375_v35, %v3692_v19 }
 0x98b   : > { %v3654_v54 = vmul.f32 %v7640_v59, %v3653_v8  ;;  %7318 = vrot.lane.b32.xlu0 %v9370_v36, %s7815_s20 }
 0x98c   : > { %10738 = vst [vmem:[#allocation4_spill] sm:$0xff] %v9440_v40 }
 0x98d   : > { %v3658_v31 = vsel %vm3657_vm10, %v7640_v59, %v3654_v54 }
 0x98e   : > { %v3684_v1 = vmul.f32 %v3658_v31, %v9301_v7 }
 0x98f   : > { %v9430_v9 = vpop.permute.xlu1 %7273  ;;  %7308 = vrot.lane.b32.xlu2 %v9370_v36, %s7816_s1 }
 0x990   : > { %v7275_v23 = vunpack.i.l.bf16 %v9430_v9  ;;  %v3693_v5 = vmul.f32 %v9355_v39, %v3684_v1  ;;  %v9486_v1 = vpack.c.bf16 %v9359_v18, %v9359_v18  ;;  %v4040_v18 = vpack.c.bf16 %v9362_v42, %v9362_v42 }
 0x992   : > { %v9437_v44 = vpack.c.bf16 %v7275_v23, %v7275_v23  ;;  %v9443_v7 = vadd.f32 %v9375_v35, %v3693_v5  ;;  %v4183_v23 = vsel %vm1224_vm8, %v9486_v1, 0 }
 0x993   : > { %5180 = vrot.lane.b32.xlu0 %v5179_v51, %s10737_s24  ;;  %v5082_v51 = vunpack.c.l.b16 %v9277_v49 }
 0x994   : > { %10739 = vst [vmem:[#allocation3_spill] sm:$0xff] %v9443_v7  ;;  %v4297_v36 = vsel %vm1224_vm8, %v9437_v44, 0  ;;  %v3707_v32 = vpack.c.bf16 %v9443_v7, %v9440_v40 }
 0x995   : > { %4306 = vmatpush.bf16.xpose.msrb.mxu0 %v4297_v36  ;;  %v5083_v0 = vpack.c.b16 %v5082_v51, %v5082_v51 }
 0x996   : > { %6914 = vmatmul.msk.bf16.gmra.mxu3 %vm664_vm0, %v3707_v32 }
 0x997   : > { %5108 = vrot.lane.b32.xlu2 %v5107_v17, %s10737_s24 }
 0x99f   : > { %5132 = vrot.lane.b32.xlu2 %v5131_v4, %s10737_s24  ;;  %v4202_v4 = vsel %vm1224_vm8, %v4040_v18, 0 }
 0x9a7   : > { %5156 = vrot.lane.b32.xlu2 %v5155_v20, %s10737_s24 }
 0x9ca   : > { %v3579_v50 = vpop.xlane.xlu0 %3578 }
 0x9cb   : > { %v3589_v6 = vmul.f32 %v3579_v50, %v10730_v16 }
 0x9cd   : > { %v3597_v14 = vadd.f32 1e-08, %v3589_v6 }
 0x9cf   : > { %7641 = vrsqrt.f32 %v3597_v14  ;;  %vm3665_vm12 = vweird.f32 %v3597_v14 }
 0x9d2   : > { %v3582_v28 = vpop.xlane.xlu2 %3581 }
 0x9d3   : > { %v3590_v3 = vmul.f32 %v3582_v28, %v10730_v16 }
 0x9d5   : > { %v7642_v30 = vpop.eup %7641  ;;  %v3598_v15 = vadd.f32 1e-08, %v3590_v3 }
 0x9d6   : > { %v3660_v43 = vmul.f32 %v7642_v30, %v3597_v14  ;;  %vm3666_vm11 = vweird.f32 %v7642_v30 }
 0x9d7   : > { %7643 = vrsqrt.f32 %v3598_v15  ;;  %vm3667_vm1 = vmor %vm3665_vm12, %vm3666_vm11  ;;  %vm3675_vm3 = vweird.f32 %v3598_v15 }
 0x9d8   : > { %v3661_v62 = vmul.f32 %v7642_v30, %v3660_v43 }
 0x9da   : > { %v3662_v57 = vmul.f32 0.5, %v3661_v62  ;;  %v9458_v26 = vpop.permute.xlu2 %7278 }
 0x9db   : > { %v7280_v60 = vunpack.i.l.bf16 %v9458_v26 }
 0x9dc   : > { %v3663_v52 = vsub.f32 1.5, %v3662_v57 }
 0x9dd   : > { %v7644_v58 = vpop.eup %7643  ;;  %v9461_v10 = vpack.c.bf16 %v7280_v60, %v7280_v60  ;;  %v7269_v20 = vpop.permute.xlu0 %7268 }
 0x9de   : > { %v3664_v21 = vmul.f32 %v7642_v30, %v3663_v52  ;;  %v3670_v11 = vmul.f32 %v7644_v58, %v3598_v15  ;;  %vm3676_vm2 = vweird.f32 %v7644_v58  ;;  %v7270_v6 = vunpack.i.l.bf16 %v7269_v20 }
 0x9df   : > { %v4373_v45 = vsel %vm1224_vm8, %v9461_v10, 0  ;;  %vm3677_vm4 = vmor %vm3675_vm3, %vm3676_vm2  ;;  %v7271_v43 = vunpack.i.h.bf16 %v7269_v20 }
 0x9e0   : > { %v3671_v56 = vmul.f32 %v7644_v58, %v3670_v11  ;;  %4382 = vmatpush.bf16.xpose.msra.mxu0 %v4373_v45  ;;  %v3668_v47 = vsel %vm3667_vm1, %v7642_v30, %v3664_v21  ;;  %v4042_v28 = vpack.c.bf16 %v7270_v6, %v7270_v6 }
 0x9e1   : > { %v3685_v13 = vmul.f32 %v3668_v47, %v9337_v46  ;;  %v9481_v46 = vld [vmem:[%s10645_s4 + $0x1] ss:$0 sm:$0xff]  ;;  %v9513_v52 = vpack.c.bf16 %v7271_v43, %v7271_v43 }
 0x9e2   : > { %v3672_v59 = vmul.f32 0.5, %v3671_v56  ;;  %v4240_v62 = vsel %vm1224_vm8, %v4042_v28, 0 }
 0x9e3   : > { %v3694_v53 = vmul.f32 %v9355_v39, %v3685_v13  ;;  %v4259_v11 = vsel %vm1224_vm8, %v9513_v52, 0  ;;  %v9523_v13 = vpop.permute.xlu2 %7298 }
 0x9e4   : > { %v3673_v2 = vsub.f32 1.5, %v3672_v59 }
 0x9e5   : > { %v9470_v24 = vadd.f32 %v9375_v35, %v3694_v53 }
 0x9e6   : > { %v3674_v38 = vmul.f32 %v7644_v58, %v3673_v2 }
 0x9e7   : > { %10740 = vst [vmem:[#allocation5_spill] sm:$0xff] %v9470_v24 }
 0x9e8   : > { %v3678_v61 = vsel %vm3677_vm4, %v7644_v58, %v3674_v38  ;;  %v5226_v38 = vunpack.c.l.b16 %v4040_v18 }
 0x9e9   : > { %v3686_v22 = vmul.f32 %v3678_v61, %v9345_v34 }
 0x9ea   : > { %v5227_v61 = vpack.c.b16 %v5226_v38, %v5226_v38 }
 0x9eb   : > { %v3695_v8 = vmul.f32 %v9355_v39, %v3686_v22  ;;  %v5274_v22 = vunpack.c.l.b16 %v4042_v28  ;;  %v9526_v53 = vpop.permute.xlu2 %7303 }
 0x9ed   : > { %v9473_v54 = vadd.f32 %v9375_v35, %v3695_v8  ;;  %v5275_v8 = vpack.c.b16 %v5274_v22, %v5274_v22 }
 0x9ef   : > { %10741 = vst [vmem:[#allocation6_spill] sm:$0xff] %v9473_v54  ;;  %v3708_v55 = vpack.c.bf16 %v9473_v54, %v9470_v24 }
 0x9f1   : > { %6915 = vmatmul.msk.bf16.gmra.mxu3 %vm664_vm0, %v3708_v55 }
 0x9f3   : > { %v7309_v55 = vpop.permute.xlu2 %7308 }
 0x9f9   : > { %v3749_v34 = vpop.f32.mrf.mxu3 }
 0x9fa   : > { %v3750_v31 = vadd.f32 %v9481_v46, %v3749_v34 }
 0x9fb   : > { %v9529_v34 = vpop.permute.xlu2 %5108 }
 0x9fc   : > { %v3769_v39 = vmul.f32 0.35355338, %v3750_v31  ;;  %v9531_v31 = vpop.permute.xlu0 %7283 }
 0x9fe   : > { %v3921_v35 = vpack.c.bf16 %v3769_v39, %v3769_v39  ;;  %v7322_v19 = vpack.i.bf16 %v3769_v39, %v9256_v25 }
 0xa00   : > { %7323 = vrot.lane.b32.xlu1 %v7322_v19, %s7816_s1  ;;  %6932 = vmatmul.msk.bf16.vlgmr.msra.gmra.mxu1 %vm1224_vm8, %v3921_v35 }
 0xa01   : > { %4192 = vmatpush.bf16.xpose.msra.mxu1 %v4183_v23  ;;  %v3751_v5 = vpop.f32.mrf.mxu3  ;;  %v9539_v23 = vpop.permute.xlu1 %7293 }
 0xa02   : > { %v3752_v37 = vadd.f32 %v9481_v46, %v3751_v5 }
 0xa04   : > { %v3770_v36 = vmul.f32 0.35355338, %v3752_v37  ;;  %v9535_v35 = vpop.permute.xlu0 %7288 }
 0xa06   : > { %v3922_v32 = vpack.c.bf16 %v3770_v36, %v3770_v36  ;;  %v7337_v17 = vpack.i.bf16 %v3770_v36, %v3769_v39  ;;  %v7327_v25 = vpack.i.bf16 %v3770_v36, %v9304_v48  ;;  %v9533_v39 = vpop.permute.xlu2 %5132  ;;  %v7310_v36 = vunpack.i.l.bf16 %v7309_v55 }
 0xa08   : > { %6933 = vmatmul.msk.bf16.vlgmr.msra.gmra.mxu2 %vm1224_vm8, %v3922_v32  ;;  %7338 = vrot.lane.b32.xlu0 %v7337_v17, %s7815_s20 }
 0xa09   : > { %4211 = vmatpush.bf16.xpose.msra.mxu2 %v4202_v4  ;;  %5084 = vrot.lane.b32.xlu1 %v5083_v0, %s10737_s24  ;;  %v3754_v33 = vpop.f32.mrf.mxu3  ;;  %v7281_v4 = vunpack.i.h.bf16 %v9458_v26  ;;  %v7290_v26 = vunpack.i.l.bf16 %v9535_v35 }
 0xa0a   : > { %7328 = vrot.lane.b32.xlu2 %v7327_v25, %s7816_s1  ;;  %v3755_v49 = vadd.f32 %v9481_v46, %v3754_v33  ;;  %v4047_v25 = vpack.c.bf16 %v7310_v36, %v7310_v36 }
 0xa0c   : > { %v3771_v42 = vmul.f32 0.35355338, %v3755_v49  ;;  %v9544_v51 = vpop.permute.xlu0 %5060  ;;  %v5394_v33 = vunpack.c.l.b16 %v4047_v25 }
 0xa0e   : > { %v3923_v50 = vpack.c.bf16 %v3771_v42, %v3771_v42  ;;  %v9537_v19 = vpop.permute.xlu2 %5156 }
 0xa10   : > { %6934 = vmatmul.msk.bf16.vlgmr.msra.gmra.mxu3 %vm1224_vm8, %v3923_v50  ;;  %v5395_v50 = vpack.c.b16 %v5394_v33, %v5394_v33 }
 0xa11   : > { %7333 = vrot.lane.b32.xlu1 %v7337_v17, %s10732_s2  ;;  %v3756_v48 = vpop.f32.mrf.mxu3  ;;  %v9546_v17 = vpop.permute.xlu1 %7313 }
 0xa12   : > { %v3757_v14 = vadd.f32 %v9481_v46, %v3756_v48  ;;  %v7276_v48 = vunpack.i.h.bf16 %v9430_v9 }
 0xa14   : > { %v3772_v3 = vmul.f32 0.35355338, %v3757_v14  ;;  %v9550_v49 = vpop.permute.xlu0 %7318 }
 0xa16   : > { %v3924_v30 = vpack.c.bf16 %v3772_v3, %v3772_v3  ;;  %v7342_v15 = vpack.i.bf16 %v3772_v3, %v3771_v42  ;;  %v9552_v42 = vpack.c.bf16 %v7281_v4, %v7281_v4 }
 0xa18   : > { %7343 = vrot.lane.b32.xlu0 %v7342_v15, %s7816_s1  ;;  %6935 = vmatmul.msk.bf16.vlgmr.msrb.gmra.mxu1 %vm1224_vm8, %v3924_v30  ;;  %v5466_v3 = vunpack.c.l.b16 %v9552_v42 }
 0xa19   : > { %7353 = vrot.lane.b32.xlu1 %v7342_v15, %s7815_s20  ;;  %4249 = vmatpush.bf16.xpose.msrb.mxu1 %v4240_v62  ;;  %v3759_v57 = vpop.f32.mrf.mxu3 }
 0xa1a   : > { %7348 = vrot.lane.b32.xlu2 %v7342_v15, %s10732_s2  ;;  %v3760_v60 = vadd.f32 %v9481_v46, %v3759_v57  ;;  %v7311_v15 = vunpack.i.h.bf16 %v7309_v55  ;;  %v9560_v57 = vpack.c.bf16 %v7276_v48, %v7276_v48  ;;  %v7286_v48 = vunpack.i.h.bf16 %v9531_v31 }
 0xa1c   : > { %v3773_v58 = vmul.f32 0.35355338, %v3760_v60 }
 0xa1e   : > { %v3925_v21 = vpack.c.bf16 %v3773_v58, %v3773_v58 }
 0xa20   : > { %6936 = vmatmul.msk.bf16.vlgmr.msrb.gmra.mxu2 %vm1224_vm8, %v3925_v21 }
 0xa21   : > { %4268 = vmatpush.bf16.xpose.msrb.mxu2 %v4259_v11  ;;  %v3761_v45 = vpop.f32.mrf.mxu3  ;;  %v9563_v11 = vpop.permute.xlu0 %5180 }
 0xa22   : > { %v3762_v56 = vadd.f32 %v9481_v46, %v3761_v45 }
 0xa24   : > { %v3774_v47 = vmul.f32 0.35355338, %v3762_v56  ;;  %v5467_v56 = vpack.c.b16 %v5466_v3, %v5466_v3 }
 0xa26   : > { %v3926_v59 = vpack.c.bf16 %v3774_v47, %v3774_v47  ;;  %v7367_v2 = vpack.i.bf16 %v3774_v47, %v3773_v58  ;;  %v9565_v47 = vpack.c.bf16 %v7290_v26, %v7290_v26 }
 0xa28   : > { %7368 = vrot.lane.b32.xlu1 %v7367_v2, %s7815_s20  ;;  %7363 = vrot.lane.b32.xlu2 %v7367_v2, %s10732_s2  ;;  %v5538_v36 = vunpack.c.l.b16 %v9565_v47 }
 0xa29   : > { %7358 = vrot.lane.b32.xlu0 %v7367_v2, %s7816_s1  ;;  %6937 = vmatmul.msk.bf16.vlgmr.msrb.gmra.mxu3 %vm1224_vm8, %v3926_v59  ;;  %v9567_v59 = vpack.c.bf16 %v7311_v15, %v7311_v15  ;;  %v4316_v2 = vsel %vm1224_vm8, %v9560_v57, 0  ;;  %v4052_v15 = vpack.c.bf16 %v7286_v48, %v7286_v48  ;;  %v7315_v48 = vunpack.i.l.bf16 %v9546_v17 }
 0xa30   : > { %5228 = vrot.lane.b32.xlu2 %v5227_v61, %s10737_s24  ;;  %v5346_v61 = vunpack.c.l.b16 %v9437_v44 }
 0xa32   : > { %v5347_v44 = vpack.c.b16 %v5346_v61, %v5346_v61 }
 0xa38   : > { %5276 = vrot.lane.b32.xlu2 %v5275_v8, %s10737_s24 }
 0xa64   : > { %v9541_v5 = vpop.permute.xlu2 %7328 }
 0xa65   : > { %v7330_v37 = vunpack.i.l.bf16 %v9541_v5  ;;  %v7331_v3 = vunpack.i.h.bf16 %v9541_v5  ;;  %v5514_v5 = vunpack.c.l.b16 %v4052_v15 }
 0xa67   : > { %v4044_v18 = vpack.c.bf16 %v7330_v37, %v7330_v37  ;;  %v7295_v37 = vunpack.i.l.bf16 %v9539_v23 }
 0xa69   : > { %v5322_v32 = vunpack.c.l.b16 %v4044_v18  ;;  %v4278_v9 = vsel %vm1224_vm8, %v4044_v18, 0 }
 0xa6b   : > { %v5323_v0 = vpack.c.b16 %v5322_v32, %v5322_v32  ;;  %v4354_v32 = vsel %vm1224_vm8, %v9567_v59, 0 }
 0xa6d   : > { %5324 = vrot.lane.b32.xlu2 %v5323_v0, %s10737_s24 }
 0xa72   : > { %v7324_v20 = vpop.permute.xlu1 %7323 }
 0xa73   : > { %v7325_v6 = vunpack.i.l.bf16 %v7324_v20  ;;  %v7326_v58 = vunpack.i.h.bf16 %v7324_v20  ;;  %v9585_v20 = vpack.c.bf16 %v7295_v37, %v7295_v37 }
 0xa74   : > { %v3764_v14 = vpop.f32.mrf.mxu3 }
 0xa75   : > { %v4041_v28 = vpack.c.bf16 %v7325_v6, %v7325_v6  ;;  %5396 = vrot.lane.b32.xlu2 %v5395_v50, %s10737_s24  ;;  %v3765_v30 = vadd.f32 %v9481_v46, %v3764_v14  ;;  %v3929_v22 = vpack.c.bf16 %v7326_v58, %v7326_v58  ;;  %v4335_v50 = vsel %vm1224_vm8, %v4047_v25, 0 }
 0xa76   : > { %v5442_v6 = vunpack.c.l.b16 %v9461_v10 }
 0xa77   : > { %v5250_v43 = vunpack.c.l.b16 %v4041_v28  ;;  %v4221_v62 = vsel %vm1224_vm8, %v4041_v28, 0  ;;  %v3775_v60 = vmul.f32 0.35355338, %v3765_v30  ;;  %v5202_v28 = vunpack.c.l.b16 %v9486_v1 }
 0xa78   : > { %4230 = vmatpush.bf16.xpose.msra.mxu3 %v4221_v62  ;;  %v5634_v30 = vunpack.c.l.b16 %v9585_v20  ;;  %v5443_v26 = vpack.c.b16 %v5442_v6, %v5442_v6  ;;  %v4392_v1 = vsel %vm1224_vm8, %v9552_v42, 0 }
 0xa79   : > { %v5251_v21 = vpack.c.b16 %v5250_v43, %v5250_v43  ;;  %v3927_v45 = vpack.c.bf16 %v3775_v60, %v3775_v60  ;;  %v3930_v43 = vpack.c.bf16 %v7331_v3, %v7331_v3  ;;  %v5203_v62 = vpack.c.b16 %v5202_v28, %v5202_v28 }
 0xa7a   : > { %v9583_v33 = vpop.permute.xlu0 %7338  ;;  %v5418_v3 = vunpack.c.l.b16 %v9567_v59 }
 0xa7b   : > { %5252 = vrot.lane.b32.xlu0 %v5251_v21, %s10737_s24  ;;  %6938 = vmatmul.msk.bf16.vlgmr.msra.gmra.mxu1 %vm1224_vm8, %v3927_v45 }
 0xa7c   : > { %v3766_v38 = vpop.f32.mrf.mxu3  ;;  %4325 = vmatpush.bf16.xpose.msra.mxu1 %v4316_v2  ;;  %v4430_v2 = vsel %vm1224_vm8, %v4052_v15, 0  ;;  %v9631_v15 = vpack.c.bf16 %v7315_v48, %v7315_v48 }
 0xa7d   : > { %5468 = vrot.lane.b32.xlu2 %v5467_v56, %s10737_s24  ;;  %v3767_v8 = vadd.f32 %v9481_v46, %v3766_v38  ;;  %v9576_v55 = vpop.f32.mrf.mxu1  ;;  %v5539_v46 = vpack.c.b16 %v5538_v36, %v5538_v36  ;;  %v5515_v38 = vpack.c.b16 %v5514_v5, %v5514_v5 }
 0xa7e   : > { %v5586_v59 = vunpack.c.l.b16 %v9631_v15 }
 0xa7f   : > { %v3776_v18 = vmul.f32 0.35355338, %v3767_v8  ;;  %6940 = vmatmul.msk.bf16.vlgmr.msra.gmra.mxu3 %vm1224_vm8, %v3929_v22 }
 0xa80   : > { %4287 = vmatpush.bf16.xpose.msrb.mxu3 %v4278_v9  ;;  %v7285_v9 = vunpack.i.l.bf16 %v9531_v31  ;;  %v5298_v31 = vunpack.c.l.b16 %v9513_v52  ;;  %v7291_v52 = vunpack.i.h.bf16 %v9535_v35  ;;  %v9623_v35 = vpop.permute.xlu1 %5084 }
 0xa81   : > { %v3928_v0 = vpack.c.bf16 %v3776_v18, %v3776_v18  ;;  %v7372_v4 = vpack.i.bf16 %v3776_v18, %v3775_v60  ;;  %v5635_v60 = vpack.c.b16 %v5634_v30, %v5634_v30  ;;  %v5370_v18 = vunpack.c.l.b16 %v9560_v57 }
 0xa82   : > { %v4051_v56 = vpack.c.bf16 %v7285_v9, %v7285_v9  ;;  %v5299_v22 = vpack.c.b16 %v5298_v31, %v5298_v31 }
 0xa83   : > { %5348 = vrot.lane.b32.xlu0 %v5347_v44, %s10737_s24  ;;  %6939 = vmatmul.msk.bf16.vlgmr.msra.gmra.mxu2 %vm1224_vm8, %v3928_v0  ;;  %v5371_v44 = vpack.c.b16 %v5370_v18, %v5370_v18 }
 0xa84   : > { %7373 = vrot.lane.b32.xlu1 %v7372_v4, %s7816_s1  ;;  %4344 = vmatpush.bf16.xpose.msra.mxu2 %v4335_v50  ;;  %v4411_v42 = vsel %vm1224_vm8, %v4051_v56, 0  ;;  %v5490_v9 = vunpack.c.l.b16 %v4051_v56  ;;  %s10749_s1 = smov 24  }
 0xa85   : > { %5540 = vrot.lane.b32.xlu2 %v5539_v46, %s10737_s24  ;;  %v4082_v14 = vpop.f32.mrf.mxu1 }
 0xa88   : > { %4363 = vmatpush.bf16.xpose.msra.mxu3 %v4354_v32  ;;  %v4054_v32 = vpack.c.bf16 %v7291_v52, %v7291_v52 }
 0xa8a   : > { %v7344_v25 = vpop.permute.xlu0 %7343  ;;  %v5562_v14 = vunpack.c.l.b16 %v4054_v32 }
 0xa8b   : > { %v7346_v10 = vunpack.i.h.bf16 %v7344_v25  ;;  %v9598_v58 = vpop.f32.mrf.mxu2  ;;  %5444 = vrot.lane.b32.xlu0 %v5443_v26, %s10737_s24  ;;  %6941 = vmatmul.msk.bf16.vlgmr.msrb.gmra.mxu1 %vm1224_vm8, %v3930_v43  ;;  %v7345_v45 = vunpack.i.l.bf16 %v7344_v25  ;;  %v4468_v26 = vsel %vm1224_vm8, %v4054_v32, 0  ;;  %v5419_v25 = vpack.c.b16 %v5418_v3, %v5418_v3 }
 0xa8c   : > { %5204 = vrot.lane.b32.xlu1 %v5203_v62, %s10737_s24  ;;  %4401 = vmatpush.bf16.xpose.msrb.mxu1 %v4392_v1  ;;  %v5563_v43 = vpack.c.b16 %v5562_v14, %v5562_v14  ;;  %v5587_v1 = vpack.c.b16 %v5586_v59, %v5586_v59 }
 0xa8d   : > { %v3932_v21 = vpack.c.bf16 %v7346_v10, %v7346_v10  ;;  %5636 = vrot.lane.b32.xlu2 %v5635_v60, %s10737_s24  ;;  %v3931_v61 = vpack.c.bf16 %v7345_v45, %v7345_v45  ;;  %v7316_v60 = vunpack.i.h.bf16 %v9546_v17  ;;  %v7296_v10 = vunpack.i.h.bf16 %v9539_v23 }
 0xa8e   : > { %v4525_v23 = vsel %vm1224_vm8, %v9585_v20, 0 }
 0xa8f   : > { %6943 = vmatmul.msk.bf16.vlgmr.msrb.gmra.mxu3 %vm1224_vm8, %v3932_v21  ;;  %v9640_v5 = vpack.c.bf16 %v7316_v60, %v7316_v60  ;;  %v5491_v21 = vpack.c.b16 %v5490_v9, %v5490_v9  ;;  %v5066_v60 = vsel %vm2225_vm13, %v9544_v51, 0  ;;  %v5090_v9 = vsel %vm2225_vm13, %v9623_v35, 0 }
 0xa90   : > { %4439 = vmatpush.bf16.xpose.msrb.mxu3 %v4430_v2  ;;  %v9701_v35 = vadd.f32 %v9598_v58, %v8358_v27 }
 0xa91   : > { %v5610_v17 = vunpack.c.l.b16 %v9640_v5 }
 0xa93   : > { %v4101_v8 = vpop.f32.mrf.mxu2  ;;  %v9609_v37 = vpop.f32.mrf.mxu3  ;;  %6942 = vmatmul.msk.bf16.vlgmr.msrb.gmra.mxu2 %vm1224_vm8, %v3931_v61  ;;  %5516 = vrot.lane.b32.xlu0 %v5515_v38, %s10737_s24  ;;  %v9643_v38 = vpack.c.bf16 %v7296_v10, %v7296_v10  ;;  %v5611_v52 = vpack.c.b16 %v5610_v17, %v5610_v17 }
 0xa94   : > { %5300 = vrot.lane.b32.xlu1 %v5299_v22, %s10737_s24  ;;  %4420 = vmatpush.bf16.xpose.msrb.mxu2 %v4411_v42  ;;  %v9647_v8 = vpop.permute.xlu2 %7348 }
 0xa95   : > { %7383 = vrot.lane.b32.xlu2 %v7372_v4, %s7815_s20  ;;  %v9617_v36 = vpop.f32.mrf.mxu1  ;;  %v4544_v42 = vsel %vm1224_vm8, %v9643_v38, 0  ;;  %s10748_s20 = smov 16  }
 0xa96   : > { %v9697_v51 = vadd.f32 %v9617_v36, %v8358_v27  ;;  %v5186_v36 = vsel %vm2225_vm13, %v9563_v11, 0 }
 0xa9b   : > { %v7359_v0 = vpop.permute.xlu0 %7358  ;;  %v4120_v46 = vpop.f32.mrf.mxu3  ;;  %7378 = vrot.lane.b32.xlu0 %v7372_v4, %s10732_s2  ;;  %v4449_v4 = vsel %vm1224_vm8, %v9565_v47, 0 }
 0xa9c   : > { %v7361_v50 = vunpack.i.h.bf16 %v7359_v0  ;;  %v7360_v6 = vunpack.i.l.bf16 %v7359_v0  ;;  %5372 = vrot.lane.b32.xlu1 %v5371_v44, %s10737_s24  ;;  %v7334_v47 = vpop.permute.xlu1 %7333  ;;  %v7364_v32 = vpop.permute.xlu2 %7363  ;;  %v7306_v44 = vunpack.i.h.bf16 %v9526_v53  ;;  %v7305_v0 = vunpack.i.l.bf16 %v9526_v53 }
 0xa9d   : > { %v4139_v28 = vpop.f32.mrf.mxu1  ;;  %v7336_v45 = vunpack.i.h.bf16 %v7334_v47  ;;  %v7335_v31 = vunpack.i.l.bf16 %v7334_v47  ;;  %v9660_v46 = vadd.f32 %v9609_v37, %v8358_v27  ;;  %v7365_v20 = vunpack.i.l.bf16 %v7364_v32 }
 0xa9e   : > { %v3934_v30 = vpack.c.bf16 %v7361_v50, %v7361_v50  ;;  %v3933_v57 = vpack.c.bf16 %v7360_v6, %v7360_v6  ;;  %v7366_v50 = vunpack.i.h.bf16 %v7364_v32  ;;  %v9662_v6 = vpack.c.bf16 %v7306_v44, %v7306_v44 }
 0xa9f   : > { %v3938_v56 = vpack.c.bf16 %v7336_v45, %v7336_v45  ;;  %v3937_v22 = vpack.c.bf16 %v7335_v31, %v7335_v31  ;;  %v9664_v48 = vpack.c.bf16 %v7305_v0, %v7305_v0  ;;  %v4679_v14 = vsel %vm1224_vm8, %v9660_v46, -inf }
 0xaa0   : > { %6944 = vmatmul.msk.bf16.vlgmr.msrb.gmra.mxu0 %vm1224_vm8, %v3933_v57  ;;  %6945 = vmatmul.msk.bf16.vlgmr.msra.gmra.mxu1 %vm1224_vm8, %v3934_v30  ;;  %v3942_v28 = vpack.c.bf16 %v7366_v50, %v7366_v50  ;;  %v3941_v3 = vpack.c.bf16 %v7365_v20, %v7365_v20  ;;  %v4620_v37 = vsel %vm1224_vm8, %v9662_v6, 0  ;;  %v9689_v47 = vadd.f32 %v9576_v55, %v8358_v27 }
 0xaa1   : > { %4458 = vmatpush.bf16.xpose.msrb.mxu0 %v4449_v4  ;;  %4477 = vmatpush.bf16.xpose.msra.mxu1 %v4468_v26  ;;  %v4601_v53 = vsel %vm1224_vm8, %v9664_v48, 0  ;;  %v7341_v4 = vunpack.i.h.bf16 %v9583_v33  ;;  %v7340_v26 = vunpack.i.l.bf16 %v9583_v33  ;;  %v4676_v45 = vsel %vm1224_vm8, %v9701_v35, -inf }
 0xaa2   : > { %v4673_v33 = vsel %vm1224_vm8, %v9689_v47, -inf  ;;  %v4487_v0 = vsel %vm1224_vm8, %v9631_v15, 0  ;;  %v4506_v50 = vsel %vm1224_vm8, %v9640_v5, 0  ;;  %v7351_v5 = vunpack.i.h.bf16 %v9647_v8 }
 0xaa3   : > { %v9633_v62 = vpop.f32.mrf.mxu2  ;;  %5564 = vrot.lane.b32.xlu0 %v5563_v43, %s10737_s24  ;;  %v3946_v43 = vpack.c.bf16 %v7341_v4, %v7341_v4  ;;  %v7350_v4 = vunpack.i.l.bf16 %v9647_v8 }
 0xaa4   : > { %5420 = vrot.lane.b32.xlu1 %v5419_v25, %s10737_s24  ;;  %v3945_v25 = vpack.c.bf16 %v7340_v26, %v7340_v26  ;;  %v9681_v59 = vpop.permute.xlu1 %7353  ;;  %v9715_v58 = vadd.f32 %v9633_v62, %v8358_v27  ;;  %v9721_v11 = vpop.permute.xlu2 %5228 }
 0xaa6   : > { %v4685_v17 = vsel %vm1224_vm8, %v9715_v58, -inf }
 0xaab   : > { %v4158_v2 = vpop.f32.mrf.mxu2  ;;  %5588 = vrot.lane.b32.xlu0 %v5587_v1, %s10737_s24 }
 0xaac   : > { %v4175_v61 = vpop.f32.mrf.mxu3  ;;  %5492 = vrot.lane.b32.xlu1 %v5491_v21, %s10737_s24  ;;  %v7369_v10 = vpop.permute.xlu1 %7368  ;;  %v4682_v21 = vsel %vm1224_vm8, %v9697_v51, -inf }
 0xaad   : > { %v9675_v30 = vadd.f32 %v4175_v61, %v8358_v27  ;;  %v7371_v55 = vunpack.i.h.bf16 %v7369_v10  ;;  %v7370_v1 = vunpack.i.l.bf16 %v7369_v10  ;;  %v5162_v61 = vsel %vm2225_vm13, %v9537_v19, 0 }
 0xaae   : > { %v3939_v10 = vpack.c.bf16 %v7350_v4, %v7350_v4 }
 0xaaf   : > { %v4688_v57 = vsel %vm1224_vm8, %v9675_v30, -inf  ;;  %v3950_v31 = vpack.c.bf16 %v7371_v55, %v7371_v55  ;;  %v3949_v2 = vpack.c.bf16 %v7370_v1, %v7370_v1 }
 0xab0   : > { %6948 = vmatmul.msk.bf16.vlgmr.msra.gmra.mxu0 %vm1224_vm8, %v3937_v22  ;;  %6949 = vmatmul.msk.bf16.vlgmr.msrb.gmra.mxu1 %vm1224_vm8, %v3938_v56 }
 0xab1   : > { %4534 = vmatpush.bf16.xpose.msra.mxu0 %v4525_v23  ;;  %4553 = vmatpush.bf16.xpose.msrb.mxu1 %v4544_v42 }
 0xab4   : > { %v4177_v18 = vpop.f32.mrf.mxu3  ;;  %5612 = vrot.lane.b32.xlu1 %v5611_v52, %s10737_s24  ;;  %v9725_v52 = vpop.permute.xlu2 %5276 }
 0xabe   : > { %4680 = vmax.xlane.f32.xlu2 %v4679_v14 }
 0xac0   : > { %6952 = vmatmul.msk.bf16.vlgmr.msrb.gmra.mxu0 %vm1224_vm8, %v3941_v3  ;;  %6953 = vmatmul.msk.bf16.vlgmr.msra.gmra.mxu1 %vm1224_vm8, %v3942_v28 }
 0xac1   : > { %4610 = vmatpush.bf16.xpose.msrb.mxu0 %v4601_v53  ;;  %4629 = vmatpush.bf16.xpose.msra.mxu1 %v4620_v37  ;;  %v7301_v37 = vunpack.i.h.bf16 %v9523_v13 }
 0xac6   : > { %4689 = vmax.xlane.f32.xlu2 %v4688_v57  ;;  %v7300_v57 = vunpack.i.l.bf16 %v9523_v13 }
 0xac7   : > { %v9740_v28 = vpop.permute.xlu2 %5324 }
 0xacf   : > { %v9762_v1 = vpop.permute.xlu2 %5396 }
 0xad0   : > { %6956 = vmatmul.msk.bf16.vlgmr.msra.gmra.mxu0 %vm1224_vm8, %v3945_v25  ;;  %6957 = vmatmul.msk.bf16.vlgmr.msrb.gmra.mxu1 %vm1224_vm8, %v3946_v43  ;;  %v9751_v25 = vpack.c.bf16 %v7301_v37, %v7301_v37 }
 0xad1   : > { %5075 = vmatpush.bf16.msra.mxu0 %v5066_v60  ;;  %5099 = vmatpush.bf16.msrb.mxu1 %v5090_v9  ;;  %v9753_v60 = vpack.c.bf16 %v7300_v57, %v7300_v57 }
 0xad5   : > { %4674 = vmax.xlane.f32.xlu0 %v4673_v33  ;;  %v3940_v33 = vpack.c.bf16 %v7351_v5, %v7351_v5 }
 0xadd   : > { %4683 = vmax.xlane.f32.xlu0 %v4682_v21 }
 0xade   : > { %4677 = vmax.xlane.f32.xlu1 %v4676_v45 }
 0xae0   : > { %6960 = vmatmul.msk.bf16.vlgmr.msrb.gmra.mxu0 %vm1224_vm8, %v3949_v2  ;;  %6961 = vmatmul.msk.bf16.vlgmr.msra.gmra.mxu1 %vm1224_vm8, %v3950_v31  ;;  %v4563_v31 = vsel %vm1224_vm8, %v9753_v60, 0  ;;  %v4582_v2 = vsel %vm1224_vm8, %v9751_v25, 0 }
 0xae1   : > { %5171 = vmatpush.bf16.msrb.mxu0 %v5162_v61  ;;  %5195 = vmatpush.bf16.msra.mxu1 %v5186_v36 }
 0xae6   : > { %4686 = vmax.xlane.f32.xlu1 %v4685_v17 }
 0xaed   : > { %v9719_v56 = vpop.permute.xlu0 %5252 }
 0xaf5   : > { %v9723_v22 = vpop.permute.xlu0 %5348 }
 0xaf6   : > { %v7374_v19 = vpop.permute.xlu1 %7373 }
 0xaf7   : > { %v7376_v23 = vunpack.i.h.bf16 %v7374_v19  ;;  %v7375_v42 = vunpack.i.l.bf16 %v7374_v19 }
 0xaf8   : > { %v4194_v32 = vpop.f32.mrf.mxu1 }
 0xaf9   : > { %v3936_v18 = vpack.c.bf16 %v7376_v23, %v7376_v23  ;;  %v3935_v62 = vpack.c.bf16 %v7375_v42, %v7375_v42  ;;  %v9728_v44 = vadd.f32 %v4194_v32, %v8358_v27  ;;  %v7321_v42 = vunpack.i.h.bf16 %v9550_v49 }
 0xafb   : > { %6946 = vmatmul.msk.bf16.vlgmr.msra.gmra.mxu2 %vm1224_vm8, %v3935_v62  ;;  %6947 = vmatmul.msk.bf16.vlgmr.msra.gmra.mxu3 %vm1224_vm8, %v3936_v18  ;;  %v4691_v20 = vsel %vm1224_vm8, %v9728_v44, -inf  ;;  %v7320_v18 = vunpack.i.l.bf16 %v9550_v49  ;;  %v9779_v62 = vpop.permute.xlu2 %5468 }
 0xafc   : > { %4496 = vmatpush.bf16.xpose.msra.mxu2 %v4487_v0  ;;  %4515 = vmatpush.bf16.xpose.msra.mxu3 %v4506_v50 }
 0xafd   : > { %4692 = vmax.xlane.f32.xlu0 %v4691_v20  ;;  %v9738_v14 = vpop.permute.xlu0 %5444 }
 0xafe   : > { %v5205_v50 = vpop.permute.xlu1 %5204 }
 0xb00   : > { %v4196_v3 = vpop.f32.mrf.mxu1 }
 0xb01   : > { %v9781_v3 = vpack.c.bf16 %v7321_v42, %v7321_v42 }
 0xb02   : > { %v4232_v53 = vpop.f32.mrf.mxu3 }
 0xb03   : > { %v9745_v15 = vadd.f32 %v4232_v53, %v8358_v27  ;;  %v9783_v53 = vpack.c.bf16 %v7320_v18, %v7320_v18 }
 0xb05   : > { %v4697_v26 = vsel %vm1224_vm8, %v9745_v15, -inf  ;;  %v9758_v13 = vpop.permute.xlu0 %5516  ;;  %v4639_v49 = vsel %vm1224_vm8, %v9783_v53, 0 }
 0xb06   : > { %v4213_v43 = vpop.f32.mrf.mxu2  ;;  %4698 = vmax.xlane.f32.xlu2 %v4697_v26 }
 0xb07   : > { %v9756_v9 = vadd.f32 %v4213_v43, %v8358_v27  ;;  %v4658_v43 = vsel %vm1224_vm8, %v9781_v3, 0 }
 0xb08   : > { %v4251_v55 = vpop.f32.mrf.mxu1 }
 0xb09   : > { %v4694_v8 = vsel %vm1224_vm8, %v9756_v9, -inf  ;;  %v9765_v21 = vadd.f32 %v4251_v55, %v8358_v27  ;;  %v9798_v55 = vpop.permute.xlu2 %5540 }
 0xb0a   : > { %v4234_v45 = vpop.f32.mrf.mxu3  ;;  %4695 = vmax.xlane.f32.xlu1 %v4694_v8 }
 0xb0b   : > { %6950 = vmatmul.msk.bf16.vlgmr.msrb.gmra.mxu2 %vm1224_vm8, %v3939_v10  ;;  %6951 = vmatmul.msk.bf16.vlgmr.msrb.gmra.mxu3 %vm1224_vm8, %v3940_v33  ;;  %v4700_v36 = vsel %vm1224_vm8, %v9765_v21, -inf }
 0xb0c   : > { %4572 = vmatpush.bf16.xpose.msrb.mxu2 %v4563_v31  ;;  %4591 = vmatpush.bf16.xpose.msrb.mxu3 %v4582_v2  ;;  %v9803_v31 = vpop.permute.xlu1 %5300 }
 0xb0d   : > { %4701 = vmax.xlane.f32.xlu0 %v4700_v36  ;;  %v7379_v19 = vpop.permute.xlu0 %7378  ;;  %v7356_v36 = vunpack.i.h.bf16 %v9681_v59 }
 0xb0e   : > { %v4215_v61 = vpop.f32.mrf.mxu2  ;;  %v7381_v32 = vunpack.i.h.bf16 %v7379_v19  ;;  %v7380_v0 = vunpack.i.l.bf16 %v7379_v19 }
 0xb0f   : > { %v7355_v61 = vunpack.i.l.bf16 %v9681_v59  ;;  %v3948_v18 = vpack.c.bf16 %v7356_v36, %v7356_v36  ;;  %v5234_v36 = vsel %vm2225_vm13, %v9721_v11, 0 }
 0xb10   : > { %v4253_v17 = vpop.f32.mrf.mxu1  ;;  %v3944_v57 = vpack.c.bf16 %v7381_v32, %v7381_v32  ;;  %v3943_v5 = vpack.c.bf16 %v7380_v0, %v7380_v0 }
 0xb11   : > { %v9809_v42 = vpop.permute.xlu2 %5636  ;;  %v3947_v32 = vpack.c.bf16 %v7355_v61, %v7355_v61  ;;  %v5210_v61 = vsel %vm2225_vm13, %v5205_v50, 0 }
 0xb12   : > { %v9775_v23 = vpop.f32.mrf.mxu3  ;;  %10742 = vst [vmem:[#allocation8_spill] sm:$0xff] %v9809_v42 }
 0xb14   : > { %v9811_v0 = vpop.permute.xlu1 %5372 }
 0xb16   : > { %v4270_v20 = vpop.f32.mrf.mxu2 }
 0xb17   : > { %v9786_v37 = vadd.f32 %v4270_v20, %v8358_v27  ;;  %v5114_v20 = vsel %vm2225_vm13, %v9529_v34, 0 }
 0xb19   : > { %v4703_v4 = vsel %vm1224_vm8, %v9786_v37, -inf }
 0xb1a   : > { %v4291_v26 = vpop.f32.mrf.mxu3  ;;  %4704 = vmax.xlane.f32.xlu1 %v4703_v4  ;;  %v7384_v4 = vpop.permute.xlu2 %7383 }
 0xb1b   : > { %6954 = vmatmul.msk.bf16.vlgmr.msra.gmra.mxu2 %vm1224_vm8, %v3943_v5  ;;  %6955 = vmatmul.msk.bf16.vlgmr.msra.gmra.mxu3 %vm1224_vm8, %v3944_v57  ;;  %v5138_v57 = vsel %vm2225_vm13, %v9533_v39, 0 }
 0xb1c   : > { %4648 = vmatpush.bf16.xpose.msra.mxu2 %v4639_v49  ;;  %4667 = vmatpush.bf16.xpose.msra.mxu3 %v4658_v43  ;;  %v9823_v26 = vpop.permute.xlu1 %5420  ;;  %v7386_v49 = vunpack.i.h.bf16 %v7384_v4  ;;  %v7385_v43 = vunpack.i.l.bf16 %v7384_v4 }
 0xb1d   : > { %v9796_v33 = vpop.f32.mrf.mxu0  ;;  %v4327_v10 = vpop.f32.mrf.mxu1 }
 0xb1e   : > { %v9801_v8 = vadd.f32 %v4327_v10, %v8358_v27  ;;  %v4272_v45 = vpop.f32.mrf.mxu2  ;;  %v3952_v39 = vpack.c.bf16 %v7386_v49, %v7386_v49 }
 0xb1f   : > { %v9825_v45 = vpop.permute.xlu0 %5564 }
 0xb20   : > { %v4712_v2 = vsel %vm1224_vm8, %v9801_v8, -inf  ;;  %10743 = vst [vmem:[#allocation7_spill] sm:$0xff] %v9825_v45 }
 0xb22   : > { %4713 = vmax.xlane.f32.xlu1 %v4712_v2  ;;  %v3951_v2 = vpack.c.bf16 %v7385_v43, %v7385_v43 }
 0xb25   : > { %v4310_v17 = vpop.f32.mrf.mxu0  ;;  %v4329_v19 = vpop.f32.mrf.mxu1 }
 0xb2b   : > { %6958 = vmatmul.msk.bf16.vlgmr.msrb.gmra.mxu2 %vm1224_vm8, %v3947_v32  ;;  %6959 = vmatmul.msk.bf16.vlgmr.msrb.gmra.mxu3 %vm1224_vm8, %v3948_v18  ;;  %v9836_v18 = vpop.permute.xlu1 %5492  ;;  %v9838_v32 = vpop.permute.xlu0 %5588 }
 0xb2c   : > { %5123 = vmatpush.bf16.msrb.mxu2 %v5114_v20  ;;  %5147 = vmatpush.bf16.msrb.mxu3 %v5138_v57  ;;  %10744 = vst [vmem:[#allocation9_spill] sm:$0xff] %v9838_v32 }
 0xb2d   : > { %v9819_v59 = vpop.f32.mrf.mxu0  ;;  %v9821_v5 = vpop.f32.mrf.mxu1 }
 0xb33   : > { %v9840_v11 = vpop.permute.xlu1 %5612 }
 0xb35   : > { %v4386_v10 = vpop.f32.mrf.mxu0  ;;  %v4405_v34 = vpop.f32.mrf.mxu1 }
 0xb36   : > { %v4681_v34 = vpop.xlane.xlu2 %4680 }
 0xb3b   : > { %6962 = vmatmul.msk.bf16.vlgmr.msra.gmra.mxu2 %vm1224_vm8, %v3951_v2  ;;  %6963 = vmatmul.msk.bf16.vlgmr.msra.gmra.mxu3 %vm1224_vm8, %v3952_v39 }
 0xb3c   : > { %5219 = vmatpush.bf16.msra.mxu2 %v5210_v61  ;;  %5243 = vmatpush.bf16.msra.mxu3 %v5234_v36  ;;  %v4771_v61 = vsub.f32 %v9660_v46, %v4681_v34 }
 0xb3d   : > { %v9832_v17 = vpop.f32.mrf.mxu0  ;;  %v9834_v19 = vpop.f32.mrf.mxu1 }
 0xb45   : > { %v4462_v20 = vpop.f32.mrf.mxu0  ;;  %v4481_v57 = vpop.f32.mrf.mxu1 }
 0xb48   : > { %v4675_v4 = vpop.xlane.xlu0 %4674 }
 0xb49   : > { %v4769_v50 = vsub.f32 %v9689_v47, %v4675_v4  ;;  %v4805_v4 = vmul.f32 1.442695, %v4771_v61 }
 0xb4b   : > { %v4801_v49 = vmul.f32 1.442695, %v4769_v50  ;;  %v9855_v50 = vadd.f32 %v9775_v23, %v8358_v27 }
 0xb4d   : > { %7645 = vpow2.f32 %v4801_v49  ;;  %v9843_v43 = vpop.f32.mrf.mxu0  ;;  %v9845_v10 = vpop.f32.mrf.mxu1 }
 0xb50   : > { %v4684_v49 = vpop.xlane.xlu0 %4683 }
 0xb51   : > { %v4678_v39 = vpop.xlane.xlu1 %4677  ;;  %v4772_v46 = vsub.f32 %v9697_v51, %v4684_v49  ;;  %v9873_v51 = vadd.f32 %v9796_v33, %v8358_v27 }
 0xb52   : > { %v4770_v2 = vsub.f32 %v9701_v35, %v4678_v39 }
 0xb53   : > { %v9848_v36 = vpop.eup %7645 }
 0xb54   : > { %v4803_v20 = vmul.f32 1.442695, %v4770_v2  ;;  %v4865_v57 = vsel %vm1224_vm8, %v9848_v36, 0.0 }
 0xb55   : > { %v4538_v54 = vpop.f32.mrf.mxu0  ;;  %v4557_v47 = vpop.f32.mrf.mxu1  ;;  %4866 = vadd.xlane.f32.xlu2 %v4865_v57 }
 0xb56   : > { %7647 = vpow2.f32 %v4803_v20  ;;  %v4706_v54 = vsel %vm1224_vm8, %v9855_v50, -inf }
 0xb57   : > { %7649 = vpow2.f32 %v4805_v4 }
 0xb59   : > { %v4687_v16 = vpop.xlane.xlu1 %4686 }
 0xb5a   : > { %v4773_v35 = vsub.f32 %v9715_v58, %v4687_v16  ;;  %v4807_v16 = vmul.f32 1.442695, %v4772_v46  ;;  %v4690_v46 = vpop.xlane.xlu2 %4689 }
 0xb5c   : > { %v9859_v34 = vpop.eup %7647  ;;  %v4809_v39 = vmul.f32 1.442695, %v4773_v35  ;;  %v4709_v35 = vsel %vm1224_vm8, %v9873_v51, -inf }
 0xb5d   : > { %v9863_v2 = vpop.f32.mrf.mxu0  ;;  %v9865_v61 = vpop.f32.mrf.mxu1  ;;  %v4868_v23 = vsel %vm1224_vm8, %v9859_v34, 0.0  ;;  %4707 = vmax.xlane.f32.xlu2 %v4706_v54  ;;  %v4774_v54 = vsub.f32 %v9675_v30, %v4690_v46 }
 0xb5e   : > { %7651 = vpow2.f32 %v4809_v39  ;;  %4869 = vadd.xlane.f32.xlu0 %v4868_v23  ;;  %v9869_v58 = vpop.eup %7649  ;;  %v9887_v39 = vadd.f32 %v9819_v59, %v8358_v27 }
 0xb5f   : > { %7653 = vpow2.f32 %v4807_v16  ;;  %v4871_v57 = vsel %vm1224_vm8, %v9869_v58, 0.0 }
 0xb60   : > { %v4721_v16 = vsel %vm1224_vm8, %v9887_v39, -inf }
 0xb64   : > { %v9875_v20 = vpop.eup %7651 }
 0xb65   : > { %v4614_v47 = vpop.f32.mrf.mxu0  ;;  %v4633_v4 = vpop.f32.mrf.mxu1  ;;  %v4877_v49 = vsel %vm1224_vm8, %v9875_v20, 0.0  ;;  %4872 = vadd.xlane.f32.xlu2 %v4871_v57  ;;  %v4811_v57 = vmul.f32 1.442695, %v4774_v54 }
 0xb66   : > { %4878 = vadd.xlane.f32.xlu1 %v4877_v49  ;;  %4710 = vmax.xlane.f32.xlu0 %v4709_v35  ;;  %v9883_v33 = vpop.eup %7653  ;;  %v9896_v47 = vadd.f32 %v9821_v5, %v8358_v27 }
 0xb67   : > { %v4874_v23 = vsel %vm1224_vm8, %v9883_v33, 0.0  ;;  %7655 = vpow2.f32 %v4811_v57 }
 0xb68   : > { %v4724_v59 = vsel %vm1224_vm8, %v9896_v47, -inf }
 0xb6d   : > { %4875 = vadd.xlane.f32.xlu2 %v4874_v23  ;;  %v9901_v49 = vpop.eup %7655 }
 0xb6e   : > { %4722 = vmax.xlane.f32.xlu0 %v4721_v16  ;;  %v4880_v46 = vsel %vm1224_vm8, %v9901_v49, 0.0 }
 0xb70   : > { %v4693_v4 = vpop.xlane.xlu0 %4692 }
 0xb71   : > { %v4775_v30 = vsub.f32 %v9728_v44, %v4693_v4 }
 0xb73   : > { %v4813_v35 = vmul.f32 1.442695, %v4775_v30 }
 0xb75   : > { %4725 = vmax.xlane.f32.xlu2 %v4724_v59  ;;  %7657 = vpow2.f32 %v4813_v35 }
 0xb7d   : > { %v4696_v23 = vpop.xlane.xlu1 %4695  ;;  %4881 = vadd.xlane.f32.xlu2 %v4880_v46 }
 0xb7e   : > { %v4776_v54 = vsub.f32 %v9756_v9, %v4696_v23  ;;  %v4346_v5 = vpop.f32.mrf.mxu2  ;;  %v4365_v16 = vpop.f32.mrf.mxu3 }
 0xb7f   : > { %v9907_v57 = vadd.f32 %v4346_v5, %v8358_v27  ;;  %v9910_v59 = vadd.f32 %v4365_v16, %v8358_v27  ;;  %v9916_v9 = vpop.eup %7657 }
 0xb80   : > { %v4815_v24 = vmul.f32 1.442695, %v4776_v54  ;;  %v4883_v35 = vsel %vm1224_vm8, %v9916_v9, 0.0 }
 0xb81   : > { %v4715_v44 = vsel %vm1224_vm8, %v9907_v57, -inf  ;;  %v4718_v4 = vsel %vm1224_vm8, %v9910_v59, -inf }
 0xb82   : > { %4716 = vmax.xlane.f32.xlu1 %v4715_v44  ;;  %7659 = vpow2.f32 %v4815_v24  ;;  %v9926_v24 = vadd.f32 %v9832_v17, %v8358_v27 }
 0xb85   : > { %4719 = vmax.xlane.f32.xlu2 %v4718_v4  ;;  %v9933_v4 = vadd.f32 %v9863_v2, %v8358_v27 }
 0xb86   : > { %v4348_v30 = vpop.f32.mrf.mxu2  ;;  %v4367_v46 = vpop.f32.mrf.mxu3 }
 0xb87   : > { %v4733_v30 = vsel %vm1224_vm8, %v9926_v24, -inf  ;;  %v4757_v17 = vsel %vm1224_vm8, %v9933_v4, -inf }
 0xb88   : > { %v9918_v23 = vpop.eup %7659 }
 0xb89   : > { %v4886_v54 = vsel %vm1224_vm8, %v9918_v23, 0.0 }
 0xb8a   : > { %4884 = vadd.xlane.f32.xlu1 %v4883_v35  ;;  %v9943_v35 = vadd.f32 %v9834_v19, %v8358_v27 }
 0xb8d   : > { %4887 = vadd.xlane.f32.xlu2 %v4886_v54 }
 0xb8e   : > { %v4422_v5 = vpop.f32.mrf.mxu2  ;;  %v4441_v16 = vpop.f32.mrf.mxu3 }
 0xb8f   : > { %v9929_v44 = vadd.f32 %v4422_v5, %v8358_v27  ;;  %v9946_v54 = vadd.f32 %v4441_v16, %v8358_v27 }
 0xb91   : > { %v4727_v46 = vsel %vm1224_vm8, %v9929_v44, -inf  ;;  %v4730_v7 = vsel %vm1224_vm8, %v9946_v54, -inf }
 0xb92   : > { %4734 = vmax.xlane.f32.xlu1 %v4733_v30  ;;  %4728 = vmax.xlane.f32.xlu0 %v4727_v46  ;;  %v4736_v30 = vsel %vm1224_vm8, %v9943_v35, -inf  ;;  %v9954_v46 = vadd.f32 %v9843_v43, %v8358_v27 }
 0xb95   : > { %4758 = vmax.xlane.f32.xlu2 %v4757_v17  ;;  %v4745_v17 = vsel %vm1224_vm8, %v9954_v46, -inf }
 0xb96   : > { %v4424_v2 = vpop.f32.mrf.mxu2  ;;  %v4443_v5 = vpop.f32.mrf.mxu3 }
 0xb9a   : > { %4731 = vmax.xlane.f32.xlu1 %v4730_v7  ;;  %4737 = vmax.xlane.f32.xlu0 %v4736_v30  ;;  %v9965_v7 = vadd.f32 %v9845_v10, %v8358_v27 }
 0xb9c   : > { %v4748_v30 = vsel %vm1224_vm8, %v9965_v7, -inf }
 0xb9e   : > { %v4498_v19 = vpop.f32.mrf.mxu2  ;;  %v4517_v40 = vpop.f32.mrf.mxu3 }
 0xb9f   : > { %v9957_v16 = vadd.f32 %v4498_v19, %v8358_v27  ;;  %v4699_v19 = vpop.xlane.xlu2 %4698  ;;  %v9970_v63 = vadd.f32 %v4517_v40, %v8358_v27  ;;  %v9982_v40 = vadd.f32 %v9865_v61, %v8358_v27  ;;  %v4705_v61 = vpop.xlane.xlu1 %4704 }
 0xba1   : > { %v4739_v2 = vsel %vm1224_vm8, %v9957_v16, -inf  ;;  %v4742_v10 = vsel %vm1224_vm8, %v9970_v63, -inf }
 0xba2   : > { %4746 = vmax.xlane.f32.xlu1 %v4745_v17  ;;  %4740 = vmax.xlane.f32.xlu0 %v4739_v2  ;;  %v4777_v17 = vsub.f32 %v9745_v15, %v4699_v19  ;;  %v4760_v19 = vsel %vm1224_vm8, %v9982_v40, -inf }
 0xba6   : > { %v4500_v5 = vpop.f32.mrf.mxu2  ;;  %v4519_v43 = vpop.f32.mrf.mxu3 }
 0xba7   : > { %v4817_v5 = vmul.f32 1.442695, %v4777_v17  ;;  %v4702_v43 = vpop.xlane.xlu0 %4701 }
 0xba8   : > { %v4778_v15 = vsub.f32 %v9765_v21, %v4702_v43  ;;  %v4779_v21 = vsub.f32 %v9786_v37, %v4705_v61 }
 0xba9   : > { %7661 = vpow2.f32 %v4817_v5 }
 0xbaa   : > { %4749 = vmax.xlane.f32.xlu1 %v4748_v30  ;;  %v4819_v17 = vmul.f32 1.442695, %v4778_v15  ;;  %v4821_v43 = vmul.f32 1.442695, %v4779_v21 }
 0xbac   : > { %7663 = vpow2.f32 %v4819_v17 }
 0xbad   : > { %7665 = vpow2.f32 %v4821_v43 }
 0xbae   : > { %v4574_v12 = vpop.f32.mrf.mxu2  ;;  %v4593_v41 = vpop.f32.mrf.mxu3 }
 0xbaf   : > { %v9973_v29 = vadd.f32 %v4574_v12, %v8358_v27  ;;  %v9985_v30 = vadd.f32 %v4593_v41, %v8358_v27 }
 0xbb1   : > { %v4751_v2 = vsel %vm1224_vm8, %v9973_v29, -inf }
 0xbb2   : > { %4743 = vmax.xlane.f32.xlu1 %v4742_v10  ;;  %4752 = vmax.xlane.f32.xlu0 %v4751_v2  ;;  %v4754_v10 = vsel %vm1224_vm8, %v9985_v30, -inf  ;;  %v9992_v2 = vpop.eup %7661 }
 0xbb3   : > { %v4889_v5 = vsel %vm1224_vm8, %v9992_v2, 0.0 }
 0xbb6   : > { %v4576_v12 = vpop.f32.mrf.mxu2  ;;  %v4595_v42 = vpop.f32.mrf.mxu3 }
 0xbba   : > { %4761 = vmax.xlane.f32.xlu1 %v4760_v19  ;;  %4755 = vmax.xlane.f32.xlu0 %v4754_v10  ;;  %v10005_v19 = vpop.eup %7663 }
 0xbbb   : > { %v4892_v61 = vsel %vm1224_vm8, %v10005_v19, 0.0 }
 0xbbe   : > { %v4650_v32 = vpop.f32.mrf.mxu2  ;;  %v4669_v41 = vpop.f32.mrf.mxu3 }
 0xbbf   : > { %v9995_v12 = vadd.f32 %v4650_v32, %v8358_v27  ;;  %v10003_v15 = vadd.f32 %v4669_v41, %v8358_v27 }
 0xbc1   : > { %v4763_v42 = vsel %vm1224_vm8, %v9995_v12, -inf  ;;  %v4766_v37 = vsel %vm1224_vm8, %v10003_v15, -inf }
 0xbc2   : > { %4764 = vmax.xlane.f32.xlu2 %v4763_v42  ;;  %4890 = vadd.xlane.f32.xlu1 %v4889_v5  ;;  %v10011_v42 = vpop.eup %7665  ;;  %v10014_v5 = vpop.xlane.xlu1 %4713 }
 0xbc6   : > { %v4652_v10 = vpop.f32.mrf.mxu2  ;;  %v4671_v32 = vpop.f32.mrf.mxu3 }
 0xbc7   : > { %v4895_v32 = vsel %vm1224_vm8, %v10011_v42, 0.0 }
 0xbc8   : > { %v4867_v17 = vpop.xlane.xlu2 %4866 }
 0xbc9   : > { %7667 = vrcp.f32 %v4867_v17 }
 0xbca   : > { %4767 = vmax.xlane.f32.xlu2 %v4766_v37  ;;  %4893 = vadd.xlane.f32.xlu1 %v4892_v61  ;;  %v5258_v37 = vsel %vm2225_vm13, %v9719_v56, 0 }
 0xbcf   : > { %v7668_v21 = vpop.eup %7667 }
 0xbd0   : > { %v4993_v27 = vmul.f32 %v7668_v21, %v9848_v36  ;;  %v4708_v41 = vpop.xlane.xlu2 %4707 }
 0xbd1   : > { %v4780_v43 = vsub.f32 %v9855_v50, %v4708_v41  ;;  %v4870_v10 = vpop.xlane.xlu0 %4869 }
 0xbd2   : > { %v5025_v17 = vpack.c.bf16 %v4993_v27, %v4993_v27  ;;  %7669 = vrcp.f32 %v4870_v10  ;;  %4896 = vadd.xlane.f32.xlu2 %v4895_v32 }
 0xbd3   : > { %v4823_v45 = vmul.f32 1.442695, %v4780_v43 }
 0xbd4   : > { %6964 = vmatmul.msk.bf16.vlgmr.msra.gmra.mxu0 %vm1224_vm8, %v5025_v17 }
 0xbd5   : > { %7671 = vpow2.f32 %v4823_v45  ;;  %5267 = vmatpush.bf16.msra.mxu0 %v5258_v37  ;;  %v5282_v45 = vsel %vm2225_vm13, %v9725_v52, 0  ;;  %v5306_v52 = vsel %vm2225_vm13, %v9803_v31, 0 }
 0xbd8   : > { %v7670_v36 = vpop.eup %7669  ;;  %v4873_v61 = vpop.xlane.xlu2 %4872 }
 0xbd9   : > { %v4994_v21 = vmul.f32 %v7670_v36, %v9859_v34  ;;  %v4879_v50 = vpop.xlane.xlu1 %4878  ;;  %7673 = vrcp.f32 %v4873_v61  ;;  %v4711_v41 = vpop.xlane.xlu0 %4710 }
 0xbda   : > { %7675 = vrcp.f32 %v4879_v50  ;;  %v4781_v27 = vsub.f32 %v9873_v51, %v4711_v41  ;;  %v5682_v41 = vunpack.c.l.b16 %v9753_v60 }
 0xbdb   : > { %v10024_v10 = vpop.eup %7671  ;;  %v5026_v43 = vpack.c.bf16 %v4994_v21, %v4994_v21 }
 0xbdc   : > { %v4825_v32 = vmul.f32 1.442695, %v4781_v27  ;;  %v4898_v56 = vsel %vm1224_vm8, %v10024_v10, 0.0  ;;  %v5354_v27 = vsel %vm2225_vm13, %v9723_v22, 0  ;;  %v5330_v22 = vsel %vm2225_vm13, %v9740_v28, 0 }
 0xbdd   : > { %6965 = vmatmul.msk.bf16.vlgmr.msrb.gmra.mxu1 %vm1224_vm8, %v5026_v43  ;;  %4899 = vadd.xlane.f32.xlu0 %v4898_v56  ;;  %v5683_v43 = vpack.c.b16 %v5682_v41, %v5682_v41  ;;  %v5658_v56 = vunpack.c.l.b16 %v9643_v38  ;;  %v5378_v28 = vsel %vm2225_vm13, %v9811_v0, 0 }
 0xbde   : > { %7677 = vpow2.f32 %v4825_v32  ;;  %5291 = vmatpush.bf16.msrb.mxu1 %v5282_v45 }
 0xbdf   : > { %v7674_v34 = vpop.eup %7673  ;;  %v5659_v45 = vpack.c.b16 %v5658_v56, %v5658_v56 }
 0xbe0   : > { %v7676_v17 = vpop.eup %7675  ;;  %v4995_v37 = vmul.f32 %v7674_v34, %v9869_v58  ;;  %v4876_v51 = vpop.xlane.xlu2 %4875 }
 0xbe1   : > { %v4997_v36 = vmul.f32 %v7676_v17, %v9875_v20  ;;  %7679 = vrcp.f32 %v4876_v51 }
 0xbe2   : > { %v5027_v61 = vpack.c.bf16 %v4995_v37, %v4995_v37 }
 0xbe3   : > { %v5029_v21 = vpack.c.bf16 %v4997_v36, %v4997_v36 }
 0xbe4   : > { %v10033_v50 = vpop.eup %7677  ;;  %6966 = vmatmul.msk.bf16.vlgmr.msrb.gmra.mxu2 %vm1224_vm8, %v5027_v61 }
 0xbe5   : > { %6968 = vmatmul.msk.bf16.vlgmr.msrb.gmra.mxu0 %vm1224_vm8, %v5029_v21  ;;  %5315 = vmatpush.bf16.msrb.mxu2 %v5306_v52  ;;  %v4901_v58 = vsel %vm1224_vm8, %v10033_v50, 0.0  ;;  %v4723_v21 = vpop.xlane.xlu0 %4722 }
 0xbe6   : > { %5363 = vmatpush.bf16.msrb.mxu0 %v5354_v27  ;;  %4902 = vadd.xlane.f32.xlu1 %v4901_v58  ;;  %v4782_v27 = vsub.f32 %v9801_v8, %v10014_v5 }
 0xbe7   : > { %v7680_v20 = vpop.eup %7679 }
 0xbe8   : > { %v4996_v60 = vmul.f32 %v7680_v20, %v9883_v33  ;;  %v10045_v32 = vpop.xlane.xlu2 %4725  ;;  %v4827_v20 = vmul.f32 1.442695, %v4782_v27 }
 0xbea   : > { %v5028_v31 = vpack.c.bf16 %v4996_v60, %v4996_v60  ;;  %5684 = vrot.lane.b32.xlu2 %v5683_v43, %s10737_s24 }
 0xbec   : > { %6967 = vmatmul.msk.bf16.vlgmr.msrb.gmra.mxu3 %vm1224_vm8, %v5028_v31 }
 0xbed   : > { %5339 = vmatpush.bf16.msrb.mxu3 %v5330_v22 }
 0xbf0   : > { %v4882_v34 = vpop.xlane.xlu2 %4881 }
 0xbf1   : > { %7681 = vrcp.f32 %v4882_v34  ;;  %5660 = vrot.lane.b32.xlu0 %v5659_v45, %s10737_s24  ;;  %v4785_v45 = vsub.f32 %v9887_v39, %v4723_v21  ;;  %v5402_v34 = vsel %vm2225_vm13, %v9762_v1, 0 }
 0xbf5   : > { %v4717_v17 = vpop.xlane.xlu1 %4716 }
 0xbf7   : > { %v7682_v33 = vpop.eup %7681 }
 0xbf8   : > { %v4998_v37 = vmul.f32 %v7682_v33, %v9901_v49  ;;  %v4720_v51 = vpop.xlane.xlu2 %4719  ;;  %v4783_v33 = vsub.f32 %v9907_v57, %v4717_v17  ;;  %v4786_v57 = vsub.f32 %v9896_v47, %v10045_v32 }
 0xbf9   : > { %v4784_v36 = vsub.f32 %v9910_v59, %v4720_v51 }
 0xbfa   : > { %v5030_v61 = vpack.c.bf16 %v4998_v37, %v4998_v37  ;;  %v4833_v37 = vmul.f32 1.442695, %v4785_v45  ;;  %v4829_v39 = vmul.f32 1.442695, %v4783_v33 }
 0xbfb   : > { %v4831_v38 = vmul.f32 1.442695, %v4784_v36 }
 0xbfc   : > { %6969 = vmatmul.msk.bf16.vlgmr.msra.gmra.mxu1 %vm1224_vm8, %v5030_v61 }
 0xbfd   : > { %7683 = vpow2.f32 %v4831_v38  ;;  %v4885_v41 = vpop.xlane.xlu1 %4884  ;;  %5387 = vmatpush.bf16.msra.mxu1 %v5378_v28  ;;  %v4835_v38 = vmul.f32 1.442695, %v4786_v57 }
 0xbfe   : > { %7685 = vrcp.f32 %v4885_v41 }
 0xc00   : > { %v4888_v52 = vpop.xlane.xlu2 %4887 }
 0xc01   : > { %7687 = vrcp.f32 %v4888_v52 }
 0xc02   : > { %7689 = vpow2.f32 %v4827_v20 }
 0xc03   : > { %v10060_v49 = vpop.eup %7683 }
 0xc04   : > { %v7686_v59 = vpop.eup %7685  ;;  %v4910_v58 = vsel %vm1224_vm8, %v10060_v49, 0.0 }
 0xc05   : > { %v4999_v0 = vmul.f32 %v7686_v59, %v9916_v9  ;;  %v4735_v43 = vpop.xlane.xlu1 %4734  ;;  %v4729_v60 = vpop.xlane.xlu0 %4728  ;;  %4911 = vadd.xlane.f32.xlu1 %v4910_v58 }
 0xc06   : > { %v4787_v31 = vsub.f32 %v9929_v44, %v4729_v60  ;;  %v5426_v44 = vsel %vm2225_vm13, %v9823_v26, 0  ;;  %v4789_v17 = vsub.f32 %v9926_v24, %v4735_v43 }
 0xc07   : > { %v7688_v56 = vpop.eup %7687  ;;  %v5031_v22 = vpack.c.bf16 %v4999_v0, %v4999_v0 }
 0xc08   : > { %v5000_v8 = vmul.f32 %v7688_v56, %v9918_v23  ;;  %v4837_v5 = vmul.f32 1.442695, %v4787_v31  ;;  %v10075_v36 = vpop.eup %7689  ;;  %v4841_v52 = vmul.f32 1.442695, %v4789_v17 }
 0xc09   : > { %6970 = vmatmul.msk.bf16.vlgmr.msra.gmra.mxu2 %vm1224_vm8, %v5031_v22  ;;  %v4904_v61 = vsel %vm1224_vm8, %v10075_v36, 0.0 }
 0xc0a   : > { %v5032_v9 = vpack.c.bf16 %v5000_v8, %v5000_v8  ;;  %5411 = vmatpush.bf16.msra.mxu2 %v5402_v34  ;;  %7691 = vpow2.f32 %v4837_v5 }
 0xc0b   : > { %7693 = vpow2.f32 %v4833_v37 }
 0xc0c   : > { %6971 = vmatmul.msk.bf16.vlgmr.msra.gmra.mxu3 %vm1224_vm8, %v5032_v9  ;;  %7695 = vpow2.f32 %v4829_v39 }
 0xc0d   : > { %5435 = vmatpush.bf16.msra.mxu3 %v5426_v44  ;;  %v4732_v23 = vpop.xlane.xlu1 %4731  ;;  %v4738_v51 = vpop.xlane.xlu0 %4737  ;;  %7697 = vpow2.f32 %v4835_v38 }
 0xc0e   : > { %v4788_v24 = vsub.f32 %v9946_v54, %v4732_v23  ;;  %v4790_v59 = vsub.f32 %v9943_v35, %v4738_v51  ;;  %7699 = vpow2.f32 %v4841_v52 }
 0xc10   : > { %v10077_v1 = vpop.eup %7691  ;;  %v4839_v0 = vmul.f32 1.442695, %v4788_v24 }
 0xc11   : > { %v4919_v26 = vsel %vm1224_vm8, %v10077_v1, 0.0  ;;  %v10088_v41 = vpop.eup %7693 }
 0xc12   : > { %4920 = vadd.xlane.f32.xlu1 %v4919_v26  ;;  %v10091_v32 = vpop.eup %7695  ;;  %v4913_v20 = vsel %vm1224_vm8, %v10088_v41, 0.0 }
 0xc13   : > { %4905 = vadd.xlane.f32.xlu2 %v4904_v61  ;;  %v4907_v58 = vsel %vm1224_vm8, %v10091_v32, 0.0  ;;  %v10100_v54 = vpop.eup %7697 }
 0xc14   : > { %v10102_v31 = vpop.eup %7699  ;;  %v4916_v45 = vsel %vm1224_vm8, %v10100_v54, 0.0 }
 0xc15   : > { %v10086_v28 = vpop.xlane.xlu1 %4746  ;;  %v4741_v21 = vpop.xlane.xlu0 %4740 }
 0xc16   : > { %v4791_v47 = vsub.f32 %v9957_v16, %v4741_v21  ;;  %v4843_v16 = vmul.f32 1.442695, %v4790_v59 }
 0xc18   : > { %v4845_v27 = vmul.f32 1.442695, %v4791_v47 }
 0xc1a   : > { %7701 = vpow2.f32 %v4845_v27 }
 0xc1b   : > { %4908 = vadd.xlane.f32.xlu2 %v4907_v58  ;;  %4914 = vadd.xlane.f32.xlu0 %v4913_v20  ;;  %7703 = vpow2.f32 %v4839_v0 }
 0xc1c   : > { %7705 = vpow2.f32 %v4843_v16  ;;  %v5706_v16 = vunpack.c.l.b16 %v9751_v25 }
 0xc1d   : > { %v4750_v43 = vpop.xlane.xlu1 %4749 }
 0xc1e   : > { %v4794_v60 = vsub.f32 %v9965_v7, %v4750_v43  ;;  %v4925_v7 = vsel %vm1224_vm8, %v10102_v31, 0.0 }
 0xc20   : > { %v4851_v35 = vmul.f32 1.442695, %v4794_v60  ;;  %v10104_v56 = vpop.eup %7701 }
 0xc21   : > { %v4931_v22 = vsel %vm1224_vm8, %v10104_v56, 0.0  ;;  %v10112_v34 = vpop.eup %7703 }
 0xc22   : > { %7707 = vpow2.f32 %v4851_v35  ;;  %4932 = vadd.xlane.f32.xlu1 %v4931_v22  ;;  %v10115_v9 = vpop.eup %7705  ;;  %v4922_v57 = vsel %vm1224_vm8, %v10112_v34, 0.0 }
 0xc23   : > { %4917 = vadd.xlane.f32.xlu2 %v4916_v45  ;;  %4926 = vadd.xlane.f32.xlu0 %v4925_v7  ;;  %v4928_v51 = vsel %vm1224_vm8, %v10115_v9, 0.0  ;;  %v5707_v7 = vpack.c.b16 %v5706_v16, %v5706_v16 }
 0xc25   : > { %v4744_v8 = vpop.xlane.xlu1 %4743  ;;  %v4753_v5 = vpop.xlane.xlu0 %4752 }
 0xc26   : > { %v4792_v33 = vsub.f32 %v9970_v63, %v4744_v8  ;;  %v4795_v23 = vsub.f32 %v9973_v29, %v4753_v5  ;;  %v10126_v63 = vpop.xlane.xlu2 %4758  ;;  %v5450_v8 = vsel %vm2225_vm13, %v9738_v14, 0 }
 0xc28   : > { %v10117_v44 = vpop.eup %7707  ;;  %v4847_v37 = vmul.f32 1.442695, %v4792_v33  ;;  %v4853_v61 = vmul.f32 1.442695, %v4795_v23 }
 0xc29   : > { %v4940_v39 = vsel %vm1224_vm8, %v10117_v44, 0.0 }
 0xc2a   : > { %7709 = vpow2.f32 %v4847_v37  ;;  %4941 = vadd.xlane.f32.xlu1 %v4940_v39  ;;  %v5474_v39 = vsel %vm2225_vm13, %v9779_v62, 0  ;;  %v5754_v62 = vunpack.c.l.b16 %v9662_v6 }
 0xc2b   : > { %4929 = vadd.xlane.f32.xlu2 %v4928_v51  ;;  %4923 = vadd.xlane.f32.xlu0 %v4922_v57  ;;  %7711 = vpow2.f32 %v4853_v61  ;;  %v5730_v51 = vunpack.c.l.b16 %v9664_v48 }
 0xc2d   : > { %v4762_v17 = vpop.xlane.xlu1 %4761  ;;  %v4756_v26 = vpop.xlane.xlu0 %4755  ;;  %v5731_v61 = vpack.c.b16 %v5730_v51, %v5730_v51 }
 0xc2e   : > { %v4796_v38 = vsub.f32 %v9985_v30, %v4756_v26  ;;  %v4798_v29 = vsub.f32 %v9982_v40, %v4762_v17  ;;  %v5498_v26 = vsel %vm2225_vm13, %v9836_v18, 0  ;;  %v5778_v18 = vunpack.c.l.b16 %v9783_v53 }
 0xc30   : > { %v10129_v21 = vpop.eup %7709  ;;  %v4855_v52 = vmul.f32 1.442695, %v4796_v38  ;;  %v4859_v59 = vmul.f32 1.442695, %v4798_v29  ;;  %v5755_v38 = vpack.c.b16 %v5754_v62, %v5754_v62  ;;  %v5618_v62 = vsel %vm2225_vm13, %v9840_v11, 0 }
 0xc31   : > { %v4934_v47 = vsel %vm1224_vm8, %v10129_v21, 0.0  ;;  %v10136_v58 = vpop.eup %7711 }
 0xc32   : > { %7713 = vpow2.f32 %v4855_v52  ;;  %v4943_v40 = vsel %vm1224_vm8, %v10136_v58, 0.0 }
 0xc33   : > { %4935 = vadd.xlane.f32.xlu0 %v4934_v47  ;;  %v4793_v47 = vsub.f32 %v9954_v46, %v10086_v28  ;;  %v4797_v46 = vsub.f32 %v9933_v4, %v10126_v63 }
 0xc35   : > { %v10134_v24 = vpop.xlane.xlu2 %4764  ;;  %v4891_v27 = vpop.xlane.xlu1 %4890 }
 0xc36   : > { %7715 = vrcp.f32 %v4891_v27 }
 0xc37   : > { %7717 = vpow2.f32 %v4859_v59  ;;  %v5522_v59 = vsel %vm2225_vm13, %v9758_v13, 0  ;;  %v5546_v13 = vsel %vm2225_vm13, %v9798_v55, 0 }
 0xc38   : > { %v10138_v20 = vpop.eup %7713 }
 0xc39   : > { %v4946_v30 = vsel %vm1224_vm8, %v10138_v20, 0.0 }
 0xc3a   : > { %4947 = vadd.xlane.f32.xlu1 %v4946_v30  ;;  %v4849_v30 = vmul.f32 1.442695, %v4793_v47 }
 0xc3b   : > { %4944 = vadd.xlane.f32.xlu0 %v4943_v40 }
 0xc3c   : > { %v7716_v0 = vpop.eup %7715 }
 0xc3d   : > { %v5001_v43 = vmul.f32 %v7716_v0, %v9992_v2  ;;  %v10146_v60 = vpop.xlane.xlu2 %4767  ;;  %v4894_v35 = vpop.xlane.xlu1 %4893 }
 0xc3e   : > { %7719 = vrcp.f32 %v4894_v35  ;;  %v10148_v45 = vpop.eup %7717  ;;  %v4800_v4 = vsub.f32 %v10003_v15, %v10146_v60 }
 0xc3f   : > { %v5033_v22 = vpack.c.bf16 %v5001_v43, %v5001_v43  ;;  %v4952_v25 = vsel %vm1224_vm8, %v10148_v45, 0.0  ;;  %v4857_v43 = vmul.f32 1.442695, %v4797_v46 }
 0xc40   : > { %v4863_v55 = vmul.f32 1.442695, %v4800_v4 }
 0xc41   : > { %6972 = vmatmul.msk.bf16.vlgmr.msra.gmra.mxu0 %vm1224_vm8, %v5033_v22 }
 0xc42   : > { %5459 = vmatpush.bf16.msra.mxu0 %v5450_v8 }
 0xc43   : > { %5708 = vrot.lane.b32.xlu2 %v5707_v7, %s10737_s24  ;;  %4953 = vadd.xlane.f32.xlu0 %v4952_v25  ;;  %v4799_v7 = vsub.f32 %v9995_v12, %v10134_v24 }
 0xc44   : > { %v7720_v2 = vpop.eup %7719 }
 0xc45   : > { %v5002_v5 = vmul.f32 %v7720_v2, %v10005_v19  ;;  %v4897_v33 = vpop.xlane.xlu2 %4896 }
 0xc46   : > { %7721 = vrcp.f32 %v4897_v33 }
 0xc47   : > { %v5034_v37 = vpack.c.bf16 %v5002_v5, %v5002_v5  ;;  %v4861_v5 = vmul.f32 1.442695, %v4799_v7  ;;  %v10747_v7 = vld [vmem:[#allocation8_spill] sm:$0xff] }
 0xc49   : > { %6973 = vmatmul.msk.bf16.vlgmr.msrb.gmra.mxu1 %vm1224_vm8, %v5034_v37 }
 0xc4a   : > { %5483 = vmatpush.bf16.msrb.mxu1 %v5474_v39 }
 0xc4c   : > { %v7722_v14 = vpop.eup %7721 }
 0xc4d   : > { %v5003_v23 = vmul.f32 %v7722_v14, %v10011_v42 }
 0xc4f   : > { %v5035_v57 = vpack.c.bf16 %v5003_v23, %v5003_v23  ;;  %v10214_v23 = vpop.permute.xlu2 %5684 }
 0xc50   : > { %v4900_v17 = vpop.xlane.xlu0 %4899 }
 0xc51   : > { %6974 = vmatmul.msk.bf16.vlgmr.msrb.gmra.mxu2 %vm1224_vm8, %v5035_v57  ;;  %7723 = vrcp.f32 %v4900_v17  ;;  %v10165_v19 = vpop.f32.mrf.mxu0 }
 0xc52   : > { %5507 = vmatpush.bf16.msrb.mxu2 %v5498_v26 }
 0xc53   : > { %5732 = vrot.lane.b32.xlu1 %v5731_v61, %s10737_s24 }
 0xc57   : > { %v7724_v42 = vpop.eup %7723  ;;  %5756 = vrot.lane.b32.xlu0 %v5755_v38, %s10737_s24 }
 0xc58   : > { %v5004_v48 = vmul.f32 %v7724_v42, %v10024_v10  ;;  %v5779_v10 = vpack.c.b16 %v5778_v18, %v5778_v18 }
 0xc59   : > { %v4903_v52 = vpop.xlane.xlu1 %4902  ;;  %v5079_v29 = vpop.f32.mrf.mxu0 }
 0xc5a   : > { %v5036_v27 = vpack.c.bf16 %v5004_v48, %v5004_v48  ;;  %7725 = vrcp.f32 %v4903_v52  ;;  %v10174_v6 = vpop.f32.mrf.mxu1  ;;  %v5802_v52 = vunpack.c.l.b16 %v9781_v3 }
 0xc5b   : > { %7727 = vpow2.f32 %v4849_v30 }
 0xc5c   : > { %6975 = vmatmul.msk.bf16.vlgmr.msrb.gmra.mxu3 %vm1224_vm8, %v5036_v27  ;;  %7729 = vpow2.f32 %v4857_v43  ;;  %v5803_v27 = vpack.c.b16 %v5802_v52, %v5802_v52  ;;  %v5690_v52 = vsel %vm2225_vm13, %v10214_v23, 0 }
 0xc5d   : > { %5531 = vmatpush.bf16.msrb.mxu3 %v5522_v59  ;;  %7731 = vpow2.f32 %v4863_v55  ;;  %v10745_v59 = vld [vmem:[#allocation7_spill] sm:$0xff]  ;;  %v5642_v55 = vsel %vm2225_vm13, %v10747_v7, 0 }
 0xc5e   : > { %7733 = vpow2.f32 %v4861_v5 }
 0xc5f   : > { %5780 = vrot.lane.b32.xlu0 %v5779_v10, %s10737_s24  ;;  %v5570_v10 = vsel %vm2225_vm13, %v10745_v59, 0 }
 0xc60   : > { %v7726_v40 = vpop.eup %7725 }
 0xc61   : > { %v5005_v53 = vmul.f32 %v7726_v40, %v10033_v50  ;;  %v10190_v22 = vpop.eup %7727 }
 0xc62   : > { %v5103_v28 = vpop.f32.mrf.mxu1  ;;  %v10183_v0 = vpop.f32.mrf.mxu0  ;;  %v4937_v63 = vsel %vm1224_vm8, %v10190_v22, 0.0 }
 0xc63   : > { %v5037_v16 = vpack.c.bf16 %v5005_v53, %v5005_v53  ;;  %v10200_v2 = vpop.eup %7729  ;;  %v5661_v61 = vpop.permute.xlu0 %5660 }
 0xc64   : > { %v4949_v33 = vsel %vm1224_vm8, %v10200_v2, 0.0  ;;  %v10204_v60 = vpop.eup %7731 }
 0xc65   : > { %6976 = vmatmul.msk.bf16.vlgmr.msrb.gmra.mxu0 %vm1224_vm8, %v5037_v16  ;;  %v10208_v24 = vpop.eup %7733  ;;  %v4958_v39 = vsel %vm1224_vm8, %v10204_v60, 0.0 }
 0xc66   : > { %5555 = vmatpush.bf16.msrb.mxu0 %v5546_v13  ;;  %v4955_v14 = vsel %vm1224_vm8, %v10208_v24, 0.0 }
 0xc67   : > { %v10188_v35 = vpop.f32.mrf.mxu2 }
 0xc6a   : > { %v5175_v50 = vpop.f32.mrf.mxu0 }
 0xc6b   : > { %v10746_v50 = vld [vmem:[#allocation9_spill] sm:$0xff] }
 0xc6c   : > { %4938 = vadd.xlane.f32.xlu2 %v4937_v63  ;;  %v5594_v63 = vsel %vm2225_vm13, %v10746_v50, 0 }
 0xc6f   : > { %v5127_v8 = vpop.f32.mrf.mxu2  ;;  %v10198_v25 = vpop.f32.mrf.mxu3 }
 0xc74   : > { %4950 = vadd.xlane.f32.xlu2 %v4949_v33 }
 0xc77   : > { %v5151_v15 = vpop.f32.mrf.mxu3 }
 0xc78   : > { %v4912_v37 = vpop.xlane.xlu1 %4911 }
 0xc79   : > { %7735 = vrcp.f32 %v4912_v37  ;;  %v10206_v12 = vpop.f32.mrf.mxu1 }
 0xc7c   : > { %4959 = vadd.xlane.f32.xlu2 %v4958_v39  ;;  %v5666_v39 = vsel %vm2225_vm13, %v5661_v61, 0 }
 0xc7d   : > { %4956 = vadd.xlane.f32.xlu1 %v4955_v14 }
 0xc7f   : > { %v7736_v51 = vpop.eup %7735 }
 0xc80   : > { %v5008_v57 = vmul.f32 %v7736_v51, %v10060_v49 }
 0xc81   : > { %v5199_v17 = vpop.f32.mrf.mxu1 }
 0xc82   : > { %v5040_v26 = vpack.c.bf16 %v5008_v57, %v5008_v57 }
 0xc84   : > { %6979 = vmatmul.msk.bf16.vlgmr.msra.gmra.mxu3 %vm1224_vm8, %v5040_v26 }
 0xc85   : > { %5627 = vmatpush.bf16.msra.mxu3 %v5618_v62  ;;  %v4921_v13 = vpop.xlane.xlu1 %4920 }
 0xc86   : > { %v4906_v38 = vpop.xlane.xlu2 %4905 }
 0xc87   : > { %7737 = vrcp.f32 %v4906_v38 }
 0xc8c   : > { %v10220_v42 = vpop.f32.mrf.mxu2 }
 0xc8d   : > { %v7738_v48 = vpop.eup %7737 }
 0xc8e   : > { %v4909_v29 = vpop.xlane.xlu2 %4908  ;;  %v4915_v18 = vpop.xlane.xlu0 %4914  ;;  %v5006_v49 = vmul.f32 %v7738_v48, %v10075_v36 }
 0xc8f   : > { %7739 = vrcp.f32 %v4909_v29  ;;  %v10224_v47 = vpop.f32.mrf.mxu3 }
 0xc90   : > { %7741 = vrcp.f32 %v4915_v18  ;;  %v5038_v11 = vpack.c.bf16 %v5006_v49, %v5006_v49 }
 0xc92   : > { %6977 = vmatmul.msk.bf16.vlgmr.msra.gmra.mxu1 %vm1224_vm8, %v5038_v11 }
 0xc93   : > { %5579 = vmatpush.bf16.msra.mxu1 %v5570_v10 }
 0xc94   : > { %v5223_v30 = vpop.f32.mrf.mxu2  ;;  %5804 = vrot.lane.b32.xlu2 %v5803_v27, %s10737_s24 }
 0xc95   : > { %v7740_v3 = vpop.eup %7739  ;;  %v4933_v17 = vpop.xlane.xlu1 %4932 }
 0xc96   : > { %v7742_v40 = vpop.eup %7741  ;;  %v5007_v53 = vmul.f32 %v7740_v3, %v10091_v32  ;;  %v4918_v36 = vpop.xlane.xlu2 %4917 }
 0xc97   : > { %v5009_v46 = vmul.f32 %v7742_v40, %v10088_v41  ;;  %v4927_v28 = vpop.xlane.xlu0 %4926  ;;  %v5247_v16 = vpop.f32.mrf.mxu3  ;;  %7743 = vrcp.f32 %v4918_v36 }
 0xc98   : > { %v5039_v43 = vpack.c.bf16 %v5007_v53, %v5007_v53  ;;  %7745 = vrcp.f32 %v4921_v13 }
 0xc99   : > { %v5041_v4 = vpack.c.bf16 %v5009_v46, %v5009_v46  ;;  %7747 = vrcp.f32 %v4927_v28 }
 0xc9a   : > { %6978 = vmatmul.msk.bf16.vlgmr.msra.gmra.mxu2 %vm1224_vm8, %v5039_v43 }
 0xc9b   : > { %5603 = vmatpush.bf16.msra.mxu2 %v5594_v63  ;;  %6980 = vmatmul.msk.bf16.vlgmr.msra.gmra.mxu0 %vm1224_vm8, %v5041_v4 }
 0xc9c   : > { %5651 = vmatpush.bf16.msra.mxu0 %v5642_v55 }
 0xc9d   : > { %v7744_v41 = vpop.eup %7743  ;;  %v4942_v18 = vpop.xlane.xlu1 %4941 }
 0xc9e   : > { %v5010_v32 = vmul.f32 %v7744_v41, %v10100_v54  ;;  %v4930_v8 = vpop.xlane.xlu2 %4929  ;;  %v7746_v33 = vpop.eup %7745 }
 0xc9f   : > { %v4924_v5 = vpop.xlane.xlu0 %4923  ;;  %v7748_v37 = vpop.eup %7747  ;;  %v5011_v14 = vmul.f32 %v7746_v33, %v10077_v1 }
 0xca0   : > { %v5042_v15 = vpack.c.bf16 %v5010_v32, %v5010_v32  ;;  %7749 = vrcp.f32 %v4924_v5  ;;  %v5013_v51 = vmul.f32 %v7748_v37, %v10102_v31 }
 0xca1   : > { %7751 = vrcp.f32 %v4930_v8  ;;  %v5043_v26 = vpack.c.bf16 %v5011_v14, %v5011_v14 }
 0xca2   : > { %6981 = vmatmul.msk.bf16.vlgmr.msrb.gmra.mxu1 %vm1224_vm8, %v5042_v15  ;;  %v5045_v62 = vpack.c.bf16 %v5013_v51, %v5013_v51  ;;  %7753 = vrcp.f32 %v4933_v17 }
 0xca3   : > { %5675 = vmatpush.bf16.msrb.mxu1 %v5666_v39 }
 0xca6   : > { %v7750_v57 = vpop.eup %7749  ;;  %v5709_v38 = vpop.permute.xlu2 %5708 }
 0xca7   : > { %v5012_v54 = vmul.f32 %v7750_v57, %v10112_v34  ;;  %v7752_v48 = vpop.eup %7751  ;;  %v4936_v29 = vpop.xlane.xlu0 %4935  ;;  %v5714_v1 = vsel %vm2225_vm13, %v5709_v38, 0 }
 0xca8   : > { %v5014_v31 = vmul.f32 %v7752_v48, %v10115_v9  ;;  %7755 = vrcp.f32 %v4936_v29  ;;  %v7754_v34 = vpop.eup %7753 }
 0xca9   : > { %v5044_v61 = vpack.c.bf16 %v5012_v54, %v5012_v54  ;;  %v5015_v11 = vmul.f32 %v7754_v34, %v10104_v56  ;;  %7757 = vrcp.f32 %v4942_v18 }
 0xcaa   : > { %6982 = vmatmul.msk.bf16.vlgmr.msrb.gmra.mxu2 %vm1224_vm8, %v5043_v26  ;;  %v5046_v49 = vpack.c.bf16 %v5014_v31, %v5014_v31 }
 0xcab   : > { %5699 = vmatpush.bf16.msrb.mxu2 %v5690_v52  ;;  %6984 = vmatmul.msk.bf16.vlgmr.msrb.gmra.mxu0 %vm1224_vm8, %v5045_v62  ;;  %v5047_v10 = vpack.c.bf16 %v5015_v11, %v5015_v11 }
 0xcac   : > { %6983 = vmatmul.msk.bf16.vlgmr.msrb.gmra.mxu3 %vm1224_vm8, %v5044_v61 }
 0xcad   : > { %5723 = vmatpush.bf16.msrb.mxu3 %v5714_v1  ;;  %v4948_v40 = vpop.xlane.xlu1 %4947 }
 0xcae   : > { %v7756_v23 = vpop.eup %7755 }
 0xcaf   : > { %v5016_v27 = vmul.f32 %v7756_v23, %v10129_v21  ;;  %v4945_v59 = vpop.xlane.xlu0 %4944  ;;  %v7758_v30 = vpop.eup %7757 }
 0xcb0   : > { %7759 = vrcp.f32 %v4945_v59  ;;  %v5018_v9 = vmul.f32 %v7758_v30, %v10117_v44 }
 0xcb1   : > { %v5048_v3 = vpack.c.bf16 %v5016_v27, %v5016_v27  ;;  %7761 = vrcp.f32 %v4948_v40 }
 0xcb2   : > { %6985 = vmatmul.msk.bf16.vlgmr.msra.gmra.mxu1 %vm1224_vm8, %v5046_v49  ;;  %v5050_v46 = vpack.c.bf16 %v5018_v9, %v5018_v9 }
 0xcb6   : > { %v7760_v36 = vpop.eup %7759 }
 0xcb7   : > { %v4954_v56 = vpop.xlane.xlu0 %4953  ;;  %v7762_v28 = vpop.eup %7761  ;;  %v5019_v21 = vmul.f32 %v7760_v36, %v10136_v58 }
 0xcb8   : > { %7763 = vrcp.f32 %v4954_v56  ;;  %v5020_v16 = vmul.f32 %v7762_v28, %v10138_v20 }
 0xcb9   : > { %v5051_v63 = vpack.c.bf16 %v5019_v21, %v5019_v21 }
 0xcba   : > { %6986 = vmatmul.msk.bf16.vlgmr.msra.gmra.mxu2 %vm1224_vm8, %v5047_v10  ;;  %v5052_v55 = vpack.c.bf16 %v5020_v16, %v5020_v16 }
 0xcbc   : > { %6987 = vmatmul.msk.bf16.vlgmr.msra.gmra.mxu3 %vm1224_vm8, %v5048_v3 }
 0xcbe   : > { %v5269_v53 = vpop.f32.mrf.mxu0  ;;  %v7764_v7 = vpop.eup %7763 }
 0xcbf   : > { %v5022_v20 = vmul.f32 %v7764_v7, %v10148_v45 }
 0xcc1   : > { %v5054_v8 = vpack.c.bf16 %v5022_v20, %v5022_v20 }
 0xcc2   : > { %6989 = vmatmul.msk.bf16.vlgmr.msrb.gmra.mxu1 %vm1224_vm8, %v5050_v46 }
 0xcc5   : > { %v5733_v13 = vpop.permute.xlu1 %5732 }
 0xcc6   : > { %v5271_v43 = vpop.f32.mrf.mxu0  ;;  %v5738_v4 = vsel %vm2225_vm13, %v5733_v13, 0  ;;  %v5293_v50 = vpop.f32.mrf.mxu1 }
 0xcc7   : > { %v7387_v44 = vpack.i.bf16 %v5293_v50, %v5269_v53  ;;  %5747 = vmatpush.bf16.msrb.mxu0 %v5738_v4 }
 0xcc9   : > { %7388 = vrot.lane.b32.xlu0 %v7387_v44, %s7819_s25  ;;  %v5757_v41 = vpop.permute.xlu0 %5756 }
 0xcca   : > { %6990 = vmatmul.msk.bf16.vlgmr.msrb.gmra.mxu2 %vm1224_vm8, %v5051_v63  ;;  %v5762_v58 = vsel %vm2225_vm13, %v5757_v41, 0 }
 0xccb   : > { %5771 = vmatpush.bf16.msra.mxu1 %v5762_v58 }
 0xccc   : > { %6991 = vmatmul.msk.bf16.vlgmr.msrb.gmra.mxu3 %vm1224_vm8, %v5052_v55 }
 0xcce   : > { %v5295_v32 = vpop.f32.mrf.mxu1 }
 0xcd1   : > { %v5781_v5 = vpop.permute.xlu0 %5780 }
 0xcd2   : > { %6993 = vmatmul.msk.bf16.vlgmr.msra.gmra.mxu1 %vm1224_vm8, %v5054_v8  ;;  %v5786_v33 = vsel %vm2225_vm13, %v5781_v5, 0 }
 0xcd3   : > { %5795 = vmatpush.bf16.msra.mxu2 %v5786_v33 }
 0xcd4   : > { %v5317_v15 = vpop.f32.mrf.mxu2 }
 0xcdc   : > { %v5319_v37 = vpop.f32.mrf.mxu2 }
 0xcdf   : > { %v4939_v39 = vpop.xlane.xlu2 %4938  ;;  %v5341_v14 = vpop.f32.mrf.mxu3 }
 0xce0   : > { %7765 = vrcp.f32 %v4939_v39  ;;  %v7402_v51 = vpack.i.bf16 %v5341_v14, %v5317_v15 }
 0xce2   : > { %v5365_v57 = vpop.f32.mrf.mxu0  ;;  %7403 = vrot.lane.b32.xlu2 %v7402_v51, %s7819_s25 }
 0xce6   : > { %v7766_v17 = vpop.eup %7765 }
 0xce7   : > { %v5017_v45 = vmul.f32 %v7766_v17, %v10190_v22  ;;  %v4951_v26 = vpop.xlane.xlu2 %4950  ;;  %v5343_v54 = vpop.f32.mrf.mxu3 }
 0xce8   : > { %7767 = vrcp.f32 %v4951_v26 }
 0xce9   : > { %v5049_v62 = vpack.c.bf16 %v5017_v45, %v5017_v45 }
 0xcea   : > { %v5367_v38 = vpop.f32.mrf.mxu0 }
 0xceb   : > { %6988 = vmatmul.msk.bf16.vlgmr.msra.gmra.mxu0 %vm1224_vm8, %v5049_v62 }
 0xcee   : > { %v7768_v61 = vpop.eup %7767 }
 0xcef   : > { %v4960_v48 = vpop.xlane.xlu2 %4959  ;;  %v5021_v29 = vmul.f32 %v7768_v61, %v10200_v2 }
 0xcf0   : > { %7769 = vrcp.f32 %v4960_v48  ;;  %v4957_v52 = vpop.xlane.xlu1 %4956 }
 0xcf1   : > { %7771 = vrcp.f32 %v4957_v52  ;;  %v5053_v49 = vpack.c.bf16 %v5021_v29, %v5021_v29 }
 0xcf6   : > { %v7770_v1 = vpop.eup %7769 }
 0xcf7   : > { %v5024_v31 = vmul.f32 %v7770_v1, %v10204_v60  ;;  %v5805_v34 = vpop.permute.xlu2 %5804  ;;  %v7772_v18 = vpop.eup %7771 }
 0xcf8   : > { %v5810_v22 = vsel %vm2225_vm13, %v5805_v34, 0  ;;  %v5023_v11 = vmul.f32 %v7772_v18, %v10208_v24  ;;  %v7060_v34 = vld [vmem:[%s10648_s7 + $0x10] sm:$0xff] }
 0xcf9   : > { %v5056_v23 = vpack.c.bf16 %v5024_v31, %v5024_v31  ;;  %5819 = vmatpush.bf16.msra.mxu3 %v5810_v22  ;;  %v7061_v31 = vld [vmem:[%s10648_s7 + $0x18] sm:$0xff] }
 0xcfa   : > { %v5055_v27 = vpack.c.bf16 %v5023_v11, %v5023_v11  ;;  %5986 = vmatpush.bf16.msra.mxu0 %v7061_v31 }
 0xcfb   : > { %6992 = vmatmul.msk.bf16.vlgmr.msrb.gmra.mxu0 %vm1224_vm8, %v5053_v49 }
 0xcfc   : > { %6995 = vmatmul.msk.bf16.vlgmr.msra.gmra.mxu3 %vm1224_vm8, %v5056_v23  ;;  %6994 = vmatmul.msk.bf16.vlgmr.msra.gmra.mxu2 %vm1224_vm8, %v5055_v27 }
 0xcfe   : > { %5987 = vmatpush.bf16.msra.mxu0 %v7060_v34 }
 0xd07   : > { %v5437_v2 = vpop.f32.mrf.mxu3 }
 0xd0f   : > { %v5439_v59 = vpop.f32.mrf.mxu3  ;;  %v5389_v10 = vpop.f32.mrf.mxu1 }
 0xd10   : > { %v7417_v60 = vpack.i.bf16 %v5389_v10, %v5365_v57 }
 0xd12   : > { %7418 = vrot.lane.b32.xlu1 %v7417_v60, %s7819_s25 }
 0xd17   : > { %v5391_v30 = vpop.f32.mrf.mxu1 }
 0xd18   : > { %v5461_v3 = vpop.f32.mrf.mxu0 }
 0xd1d   : > { %v5413_v40 = vpop.f32.mrf.mxu2 }
 0xd1e   : > { %v7432_v9 = vpack.i.bf16 %v5437_v2, %v5413_v40 }
 0xd1f   : > { %v5485_v53 = vpop.f32.mrf.mxu1 }
 0xd20   : > { %v5463_v24 = vpop.f32.mrf.mxu0  ;;  %v7392_v36 = vpack.i.bf16 %v5485_v53, %v5461_v3 }
 0xd22   : > { %7393 = vrot.lane.b32.xlu0 %v7392_v36, %s10748_s20 }
 0xd25   : > { %v5415_v46 = vpop.f32.mrf.mxu2 }
 0xd27   : > { %v5487_v56 = vpop.f32.mrf.mxu1 }
 0xd28   : > { %v5557_v28 = vpop.f32.mrf.mxu0 }
 0xd2d   : > { %v5509_v21 = vpop.f32.mrf.mxu2 }
 0xd2f   : > { %v5533_v16 = vpop.f32.mrf.mxu3  ;;  %v5581_v43 = vpop.f32.mrf.mxu1 }
 0xd30   : > { %v7407_v13 = vpack.i.bf16 %v5533_v16, %v5509_v21  ;;  %v5559_v4 = vpop.f32.mrf.mxu0  ;;  %v7422_v50 = vpack.i.bf16 %v5581_v43, %v5557_v28 }
 0xd35   : > { %v5511_v63 = vpop.f32.mrf.mxu2 }
 0xd37   : > { %v5535_v44 = vpop.f32.mrf.mxu3  ;;  %v5583_v7 = vpop.f32.mrf.mxu1 }
 0xd3b   : > { %v7389_v18 = vpop.permute.xlu0 %7388 }
 0xd3c   : > { %v7391_v49 = vunpack.i.h.bf16 %v7389_v18  ;;  %v7390_v23 = vunpack.i.l.bf16 %v7389_v18  ;;  %v7404_v24 = vpop.permute.xlu2 %7403 }
 0xd3d   : > { %v5605_v55 = vpop.f32.mrf.mxu2  ;;  %v7406_v56 = vunpack.i.h.bf16 %v7404_v24 }
 0xd3e   : > { %v5922_v59 = vsel %vm1224_vm8, %v10174_v6, %v7391_v49  ;;  %v5921_v10 = vsel %vm1224_vm8, %v10165_v19, %v7390_v23  ;;  %v7405_v6 = vunpack.i.l.bf16 %v7404_v24  ;;  %v10750_v23 = vld [vmem:[#allocation13_spill] sm:$0xff] }
 0xd3f   : > { %v5629_v41 = vpop.f32.mrf.mxu3  ;;  %v5677_v20 = vpop.f32.mrf.mxu1  ;;  %v5924_v16 = vsel %vm1224_vm8, %v10198_v25, %v7406_v56  ;;  %v10753_v56 = vld [vmem:[#allocation14_spill] sm:$0xff] }
 0xd40   : > { %v7437_v58 = vpack.i.bf16 %v5629_v41, %v5605_v55 }
 0xd45   : > { %v5607_v32 = vpop.f32.mrf.mxu2 }
 0xd47   : > { %v5631_v8 = vpop.f32.mrf.mxu3  ;;  %v5679_v5 = vpop.f32.mrf.mxu1 }
 0xd4d   : > { %v5701_v33 = vpop.f32.mrf.mxu2 }
 0xd4f   : > { %v5725_v15 = vpop.f32.mrf.mxu3  ;;  %v5773_v39 = vpop.f32.mrf.mxu1 }
 0xd50   : > { %v7412_v37 = vpack.i.bf16 %v5725_v15, %v5701_v33 }
 0xd52   : > { %7413 = vrot.lane.b32.xlu2 %v7412_v37, %s10749_s1 }
 0xd55   : > { %v5703_v14 = vpop.f32.mrf.mxu2 }
 0xd57   : > { %v5727_v51 = vpop.f32.mrf.mxu3  ;;  %v5775_v57 = vpop.f32.mrf.mxu1 }
 0xd68   : > { %v5653_v17 = vpop.f32.mrf.mxu0 }
 0xd69   : > { %v7397_v45 = vpack.i.bf16 %v5677_v20, %v5653_v17 }
 0xd6b   : > { %7398 = vrot.lane.b32.xlu0 %v7397_v45, %s10749_s1 }
 0xd70   : > { %v5655_v26 = vpop.f32.mrf.mxu0 }
 0xd73   : > { %7408 = vrot.lane.b32.xlu0 %v7407_v13, %s10748_s20  ;;  %v5923_v13 = vsel %vm1224_vm8, %v10188_v35, %v7405_v6 }
 0xd78   : > { %v5749_v54 = vpop.f32.mrf.mxu0 }
 0xd79   : > { %v7427_v62 = vpack.i.bf16 %v5773_v39, %v5749_v54 }
 0xd7b   : > { %7423 = vrot.lane.b32.xlu0 %v7422_v50, %s10748_s20  ;;  %7428 = vrot.lane.b32.xlu2 %v7427_v62, %s10749_s1 }
 0xd7f   : > { %v5821_v38 = vpop.f32.mrf.mxu3  ;;  %v5797_v48 = vpop.f32.mrf.mxu2 }
 0xd80   : > { %v5751_v52 = vpop.f32.mrf.mxu0  ;;  %v7442_v1 = vpack.i.bf16 %v5821_v38, %v5797_v48 }
 0xd83   : > { %7433 = vrot.lane.b32.xlu0 %v7432_v9, %s7819_s25  ;;  %7438 = vrot.lane.b32.xlu2 %v7437_v58, %s10748_s20  ;;  %s10545_s25 = scalar_lea.vmem %s10658_s17, %s7933_s21 }
 0xd84   : > { %v7419_v41 = vpop.permute.xlu1 %7418 }
 0xd85   : > { %v7421_v20 = vunpack.i.h.bf16 %v7419_v41  ;;  %v7420_v25 = vunpack.i.l.bf16 %v7419_v41 }
 0xd87   : > { %v5823_v61 = vpop.f32.mrf.mxu3  ;;  %v5799_v29 = vpop.f32.mrf.mxu2  ;;  %v5926_v5 = vsel %vm1224_vm8, %v10206_v12, %v7421_v20  ;;  %v5925_v33 = vsel %vm1224_vm8, %v10183_v0, %v7420_v25 }
 0xd8b   : > { %7443 = vrot.lane.b32.xlu0 %v7442_v1, %s10749_s1  ;;  %s10533_s1 = scalar_lea.vmem %s10659_s18, %s7933_s21  ;;  %s6775_s21 = sshll.u32 %s10763_s30, 3 }
 0xd8c   : > { %s646_s30 = scalar_lea.vmem %s10660_s19, %s6775_s21 }
 0xd94   : > { %v7394_v22 = vpop.permute.xlu0 %7393 }
 0xd95   : > { %v7396_v11 = vunpack.i.h.bf16 %v7394_v22  ;;  %v7395_v27 = vunpack.i.l.bf16 %v7394_v22 }
 0xd97   : > { %v5929_v3 = vsel %vm3090_vm14, %v5921_v10, %v7395_v27  ;;  %v5930_v40 = vsel %vm3090_vm14, %v5922_v59, %v7396_v11  ;;  %v10751_v10 = vld [vmem:[#allocation12_spill] sm:$0xff] }
 0xdac   : > { %v7414_v19 = vpop.permute.xlu2 %7413 }
 0xdad   : > { %v7416_v50 = vunpack.i.h.bf16 %v7414_v19  ;;  %v7415_v63 = vunpack.i.l.bf16 %v7414_v19 }
 0xdd5   : > { %v7429_v35 = vpop.permute.xlu2 %7428 }
 0xdd6   : > { %v7431_v39 = vunpack.i.h.bf16 %v7429_v35  ;;  %v7430_v14 = vunpack.i.l.bf16 %v7429_v35 }
 0xddd   : > { %v7399_v2 = vpop.permute.xlu0 %7398  ;;  %v7439_v62 = vpop.permute.xlu2 %7438 }
 0xdde   : > { %v7401_v60 = vunpack.i.h.bf16 %v7399_v2  ;;  %v7400_v30 = vunpack.i.l.bf16 %v7399_v2  ;;  %v7441_v61 = vunpack.i.h.bf16 %v7439_v62  ;;  %v7440_v29 = vunpack.i.l.bf16 %v7439_v62 }
 0xde0   : > { %v5937_v9 = vsel %vm3099_vm15, %v5929_v3, %v7400_v30  ;;  %v5938_v53 = vsel %vm3099_vm15, %v5930_v40, %v7401_v60 }
 0xde1   : > { %v5945_v36 = vpack.c.bf16 %v5938_v53, %v5937_v9  ;;  %v10752_v9 = vld [vmem:[#allocation15_spill] sm:$0xff] }
 0xde3   : > { %7008 = vmatmul.msk.bf16.vlgmr.msra.gmra.mxu0 %vm664_vm0, %v5945_v36 }
 0xde5   : > { %v7409_v46 = vpop.permute.xlu0 %7408 }
 0xde6   : > { %v7411_v28 = vunpack.i.h.bf16 %v7409_v46  ;;  %v7410_v21 = vunpack.i.l.bf16 %v7409_v46 }
 0xde8   : > { %v5932_v43 = vsel %vm3090_vm14, %v5924_v16, %v7411_v28  ;;  %v5931_v4 = vsel %vm3090_vm14, %v5923_v13, %v7410_v21  ;;  %v10754_v16 = vld [vmem:[#allocation4_spill] sm:$0xff] }
 0xde9   : > { %v5939_v44 = vsel %vm3099_vm15, %v5931_v4, %v7415_v63  ;;  %v5940_v7 = vsel %vm3099_vm15, %v5932_v43, %v7416_v50  ;;  %v10755_v63 = vld [vmem:[#allocation3_spill] sm:$0xff] }
 0xdea   : > { %v5946_v55 = vpack.c.bf16 %v5940_v7, %v5939_v44 }
 0xded   : > { %v7424_v58 = vpop.permute.xlu0 %7423 }
 0xdee   : > { %v7426_v32 = vunpack.i.h.bf16 %v7424_v58  ;;  %v7425_v8 = vunpack.i.l.bf16 %v7424_v58  ;;  %v10756_v58 = vld [vmem:[#allocation5_spill] sm:$0xff] }
 0xdf0   : > { %v5934_v15 = vsel %vm3090_vm14, %v5926_v5, %v7426_v32  ;;  %v5933_v37 = vsel %vm3090_vm14, %v5925_v33, %v7425_v8  ;;  %v10757_v8 = vld [vmem:[#allocation2_spill] sm:$0xff] }
 0xdf1   : > { %v5941_v57 = vsel %vm3099_vm15, %v5933_v37, %v7430_v14  ;;  %v5942_v17 = vsel %vm3099_vm15, %v5934_v15, %v7431_v39 }
 0xdf2   : > { %v5947_v45 = vpack.c.bf16 %v5942_v17, %v5941_v57  ;;  %v10758_v57 = vld [vmem:[#allocation6_spill] sm:$0xff] }
 0xdf3   : > { %7009 = vmatmul.msk.bf16.gmra.mxu0 %vm664_vm0, %v5946_v55 }
 0xdf5   : > { %v7434_v51 = vpop.permute.xlu0 %7433 }
 0xdf6   : > { %v7436_v26 = vunpack.i.h.bf16 %v7434_v51  ;;  %v7435_v54 = vunpack.i.l.bf16 %v7434_v51 }
 0xdf8   : > { %v5928_v0 = vsel %vm1224_vm8, %v10224_v47, %v7436_v26  ;;  %v5927_v38 = vsel %vm1224_vm8, %v10220_v42, %v7435_v54  ;;  %v7460_v47 = vld [vmem:[%s10649_s8 + $0x1] ss:$0 sm:$0xff] }
 0xdf9   : > { %v5935_v1 = vsel %vm3090_vm14, %v5927_v38, %v7440_v29  ;;  %v5936_v31 = vsel %vm3090_vm14, %v5928_v0, %v7441_v61 }
 0xdfd   : > { %v7444_v12 = vpop.permute.xlu0 %7443 }
 0xdfe   : > { %v7446_v48 = vunpack.i.h.bf16 %v7444_v12  ;;  %v7445_v52 = vunpack.i.l.bf16 %v7444_v12 }
 0xe00   : > { %v5943_v34 = vsel %vm3099_vm15, %v5935_v1, %v7445_v52  ;;  %v5944_v18 = vsel %vm3099_vm15, %v5936_v31, %v7446_v48 }
 0xe01   : > { %v5948_v22 = vpack.c.bf16 %v5944_v18, %v5943_v34 }
 0xe03   : > { %7010 = vmatmul.msk.bf16.gmra.mxu0 %vm664_vm0, %v5947_v45 }
 0xe13   : > { %7011 = vmatmul.msk.bf16.gmra.mxu0 %vm664_vm0, %v5948_v22 }
 0xe60   : > { %v5989_v42 = vpop.f32.mrf.mxu0 }
 0xe61   : > { %v5990_v49 = vadd.f32 %v7460_v47, %v5989_v42 }
 0xe63   : > { %v6009_v11 = vadd.f32 %v5990_v49, %v10750_v23 }
 0xe65   : > { %v6019_v27 = vsel %vm664_vm0, %v6009_v11, 0.0 }
 0xe66   : > { %6020 = vadd.xlane.f32.xlu2 %v6019_v27 }
 0xe68   : > { %v5991_v2 = vpop.f32.mrf.mxu0 }
 0xe69   : > { %v5992_v59 = vadd.f32 %v7460_v47, %v5991_v2 }
 0xe6b   : > { %v6010_v60 = vadd.f32 %v5992_v59, %v10751_v10 }
 0xe6d   : > { %v6022_v30 = vsel %vm664_vm0, %v6010_v60, 0.0 }
 0xe6e   : > { %6023 = vadd.xlane.f32.xlu0 %v6022_v30 }
 0xe70   : > { %v5994_v3 = vpop.f32.mrf.mxu0 }
 0xe71   : > { %v5995_v40 = vadd.f32 %v7460_v47, %v5994_v3 }
 0xe73   : > { %v6011_v53 = vadd.f32 %v5995_v40, %v10752_v9 }
 0xe75   : > { %v6025_v24 = vsel %vm664_vm0, %v6011_v53, 0.0 }
 0xe76   : > { %6026 = vadd.xlane.f32.xlu1 %v6025_v24 }
 0xe78   : > { %v5996_v36 = vpop.f32.mrf.mxu0 }
 0xe79   : > { %v5997_v46 = vadd.f32 %v7460_v47, %v5996_v36  ;;  %v7063_v36 = vld [vmem:[%s10652_s11 + $0x18] sm:$0xff] }
 0xe7a   : > { %6254 = vmatpush.bf16.msrb.mxu1 %v7063_v36 }
 0xe7b   : > { %v6012_v6 = vadd.f32 %v5997_v46, %v10753_v56 }
 0xe7d   : > { %v6028_v28 = vsel %vm664_vm0, %v6012_v6, 0.0 }
 0xe7e   : > { %6029 = vadd.xlane.f32.xlu2 %v6028_v28 }
 0xe80   : > { %v5999_v21 = vpop.f32.mrf.mxu0 }
 0xe81   : > { %v6000_v19 = vadd.f32 %v7460_v47, %v5999_v21  ;;  %v7062_v21 = vld [vmem:[%s10652_s11 + $0x10] sm:$0xff] }
 0xe82   : > { %6255 = vmatpush.bf16.msrb.mxu1 %v7062_v21 }
 0xe83   : > { %v6013_v13 = vadd.f32 %v6000_v19, %v10754_v16 }
 0xe85   : > { %v6031_v43 = vsel %vm664_vm0, %v6013_v13, 0.0 }
 0xe86   : > { %6032 = vadd.xlane.f32.xlu0 %v6031_v43 }
 0xe88   : > { %v6001_v4 = vpop.f32.mrf.mxu0 }
 0xe89   : > { %v6002_v50 = vadd.f32 %v7460_v47, %v6001_v4 }
 0xe8b   : > { %v6014_v44 = vadd.f32 %v6002_v50, %v10755_v63 }
 0xe8d   : > { %v6034_v7 = vsel %vm664_vm0, %v6014_v44, 0.0 }
 0xe8e   : > { %6035 = vadd.xlane.f32.xlu1 %v6034_v7 }
 0xe90   : > { %v6004_v55 = vpop.f32.mrf.mxu0 }
 0xe91   : > { %v6005_v41 = vadd.f32 %v7460_v47, %v6004_v55 }
 0xe93   : > { %v6015_v20 = vadd.f32 %v6005_v41, %v10756_v58 }
 0xe95   : > { %v6037_v25 = vsel %vm664_vm0, %v6015_v20, 0.0 }
 0xe96   : > { %6038 = vadd.xlane.f32.xlu1 %v6037_v25 }
 0xe98   : > { %v6006_v33 = vpop.f32.mrf.mxu0 }
 0xe99   : > { %v6007_v37 = vadd.f32 %v7460_v47, %v6006_v33 }
 0xe9b   : > { %v6016_v17 = vadd.f32 %v6007_v37, %v10758_v57  ;;  %v10410_v57 = vld [vmem:[%s10650_s9 + $0x1] ss:$0 sm:$0xff] }
 0xe9d   : > { %v6040_v12 = vsel %vm664_vm0, %v6016_v17, 0.0 }
 0xed9   : > { %v6021_v32 = vpop.xlane.xlu2 %6020 }
 0xeda   : > { %v6043_v35 = vmul.f32 %v6021_v32, %v10757_v8 }
 0xedc   : > { %v10348_v5 = vsub.f32 %v6009_v11, %v6043_v35 }
 0xede   : > { %v6059_v15 = vmul.f32 %v10348_v5, %v10348_v5 }
 0xee0   : > { %v6067_v39 = vsel %vm664_vm0, %v6059_v15, 0.0 }
 0xee1   : > { %v6024_v14 = vpop.xlane.xlu0 %6023  ;;  %6068 = vadd.xlane.f32.xlu2 %v6067_v39 }
 0xee2   : > { %v6044_v51 = vmul.f32 %v6024_v14, %v10757_v8 }
 0xee4   : > { %v10355_v45 = vsub.f32 %v6010_v60, %v6044_v51 }
 0xee6   : > { %v6060_v26 = vmul.f32 %v10355_v45, %v10355_v45 }
 0xee8   : > { %v6070_v54 = vsel %vm664_vm0, %v6060_v26, 0.0 }
 0xee9   : > { %v6027_v62 = vpop.xlane.xlu1 %6026  ;;  %6071 = vadd.xlane.f32.xlu0 %v6070_v54  ;;  %6041 = vadd.xlane.f32.xlu2 %v6040_v12 }
 0xeea   : > { %v6045_v0 = vmul.f32 %v6027_v62, %v10757_v8 }
 0xeec   : > { %v10362_v38 = vsub.f32 %v6011_v53, %v6045_v0 }
 0xeee   : > { %v6061_v48 = vmul.f32 %v10362_v38, %v10362_v38 }
 0xef0   : > { %v6073_v52 = vsel %vm664_vm0, %v6061_v48, 0.0  ;;  %v10416_v48 = vld [vmem:[%s10651_s10 + $0x1] ss:$0 sm:$0xff] }
 0xef1   : > { %6074 = vadd.xlane.f32.xlu0 %v6073_v52  ;;  %v6030_v61 = vpop.xlane.xlu2 %6029 }
 0xef2   : > { %v6046_v29 = vmul.f32 %v6030_v61, %v10757_v8 }
 0xef4   : > { %v10368_v1 = vsub.f32 %v6012_v6, %v6046_v29 }
 0xef6   : > { %v6062_v31 = vmul.f32 %v10368_v1, %v10368_v1 }
 0xef8   : > { %v6076_v34 = vsel %vm664_vm0, %v6062_v31, 0.0 }
 0xef9   : > { %v6033_v18 = vpop.xlane.xlu0 %6032  ;;  %6077 = vadd.xlane.f32.xlu1 %v6076_v34 }
 0xefa   : > { %v6047_v22 = vmul.f32 %v6033_v18, %v10757_v8 }
 0xefc   : > { %v10374_v47 = vsub.f32 %v6013_v13, %v6047_v22 }
 0xefe   : > { %v6063_v42 = vmul.f32 %v10374_v47, %v10374_v47 }
 0xf00   : > { %v6079_v49 = vsel %vm664_vm0, %v6063_v42, 0.0 }
 0xf01   : > { %v6036_v23 = vpop.xlane.xlu1 %6035  ;;  %6080 = vadd.xlane.f32.xlu2 %v6079_v49 }
 0xf02   : > { %v6048_v11 = vmul.f32 %v6036_v23, %v10757_v8 }
 0xf04   : > { %v10380_v27 = vsub.f32 %v6014_v44, %v6048_v11 }
 0xf06   : > { %v6064_v2 = vmul.f32 %v10380_v27, %v10380_v27 }
 0xf08   : > { %v6082_v59 = vsel %vm664_vm0, %v6064_v2, 0.0 }
 0xf09   : > { %v6039_v10 = vpop.xlane.xlu1 %6038  ;;  %6083 = vadd.xlane.f32.xlu0 %v6082_v59 }
 0xf0a   : > { %v6049_v60 = vmul.f32 %v6039_v10, %v10757_v8 }
 0xf0c   : > { %v10386_v30 = vsub.f32 %v6015_v20, %v6049_v60 }
 0xf0e   : > { %v6065_v3 = vmul.f32 %v10386_v30, %v10386_v30 }
 0xf10   : > { %v6085_v40 = vsel %vm664_vm0, %v6065_v3, 0.0 }
 0xf11   : > { %6086 = vadd.xlane.f32.xlu1 %v6085_v40 }
 0xf54   : > { %v6069_v9 = vpop.xlane.xlu2 %6068 }
 0xf55   : > { %v6091_v53 = vmul.f32 %v6069_v9, %v10757_v8 }
 0xf57   : > { %v6099_v24 = vadd.f32 1e-08, %v6091_v53 }
 0xf59   : > { %7773 = vrsqrt.f32 %v6099_v24  ;;  %vm6113_vm15 = vweird.f32 %v6099_v24 }
 0xf5c   : > { %v6072_v46 = vpop.xlane.xlu0 %6071  ;;  %v6042_v56 = vpop.xlane.xlu2 %6041 }
 0xf5d   : > { %v6092_v6 = vmul.f32 %v6072_v46, %v10757_v8  ;;  %v6050_v28 = vmul.f32 %v6042_v56, %v10757_v8 }
 0xf5f   : > { %v7774_v19 = vpop.eup %7773  ;;  %v6100_v16 = vadd.f32 1e-08, %v6092_v6  ;;  %v10400_v13 = vsub.f32 %v6016_v17, %v6050_v28 }
 0xf60   : > { %v6108_v43 = vmul.f32 %v7774_v19, %v6099_v24  ;;  %vm6114_vm13 = vweird.f32 %v7774_v19 }
 0xf61   : > { %7775 = vrsqrt.f32 %v6100_v16  ;;  %v6066_v4 = vmul.f32 %v10400_v13, %v10400_v13  ;;  %vm6115_vm5 = vmor %vm6113_vm15, %vm6114_vm13  ;;  %vm6123_vm7 = vweird.f32 %v6100_v16 }
 0xf62   : > { %v6109_v50 = vmul.f32 %v7774_v19, %v6108_v43 }
 0xf63   : > { %v6088_v63 = vsel %vm664_vm0, %v6066_v4, 0.0 }
 0xf64   : > { %v6110_v44 = vmul.f32 0.5, %v6109_v50  ;;  %v6075_v7 = vpop.xlane.xlu0 %6074  ;;  %6089 = vadd.xlane.f32.xlu2 %v6088_v63 }
 0xf65   : > { %v6093_v55 = vmul.f32 %v6075_v7, %v10757_v8 }
 0xf66   : > { %v6111_v41 = vsub.f32 1.5, %v6110_v44 }
 0xf67   : > { %v7776_v58 = vpop.eup %7775  ;;  %v6101_v20 = vadd.f32 1e-08, %v6093_v55 }
 0xf68   : > { %v6112_v25 = vmul.f32 %v7774_v19, %v6111_v41  ;;  %v6118_v32 = vmul.f32 %v7776_v58, %v6100_v16  ;;  %vm6124_vm6 = vweird.f32 %v7776_v58 }
 0xf69   : > { %7777 = vrsqrt.f32 %v6101_v20  ;;  %vm6125_vm9 = vmor %vm6123_vm7, %vm6124_vm6  ;;  %vm6133_vm11 = vweird.f32 %v6101_v20 }
 0xf6a   : > { %v6119_v35 = vmul.f32 %v7776_v58, %v6118_v32  ;;  %v6116_v33 = vsel %vm6115_vm5, %v7774_v19, %v6112_v25 }
 0xf6b   : > { %v6187_v17 = vmul.f32 %v6116_v33, %v10348_v5 }
 0xf6c   : > { %v6120_v15 = vmul.f32 0.5, %v6119_v35  ;;  %v6078_v37 = vpop.xlane.xlu1 %6077 }
 0xf6d   : > { %v6094_v39 = vmul.f32 %v6078_v37, %v10757_v8  ;;  %v6196_v52 = vmul.f32 %v10410_v57, %v6187_v17 }
 0xf6e   : > { %v6121_v14 = vsub.f32 1.5, %v6120_v15 }
 0xf6f   : > { %v7778_v51 = vpop.eup %7777  ;;  %v6102_v26 = vadd.f32 1e-08, %v6094_v39  ;;  %v6205_v42 = vadd.f32 %v10416_v48, %v6196_v52 }
 0xf70   : > { %v6122_v54 = vmul.f32 %v7776_v58, %v6121_v14  ;;  %v6128_v12 = vmul.f32 %v7778_v51, %v6101_v20  ;;  %vm6134_vm10 = vweird.f32 %v7778_v51 }
 0xf71   : > { %7779 = vrsqrt.f32 %v6102_v26  ;;  %vm6135_vm12 = vmor %vm6133_vm11, %vm6134_vm10  ;;  %vm6143_vm2 = vweird.f32 %v6102_v26 }
 0xf72   : > { %v6126_v62 = vsel %vm6125_vm9, %v7776_v58, %v6122_v54  ;;  %v6129_v0 = vmul.f32 %v7778_v51, %v6128_v12 }
 0xf73   : > { %v6188_v61 = vmul.f32 %v6126_v62, %v10355_v45 }
 0xf74   : > { %v6130_v29 = vmul.f32 0.5, %v6129_v0  ;;  %v6081_v31 = vpop.xlane.xlu2 %6080 }
 0xf75   : > { %v6197_v5 = vmul.f32 %v10410_v57, %v6188_v61  ;;  %v6095_v34 = vmul.f32 %v6081_v31, %v10757_v8 }
 0xf76   : > { %v6131_v18 = vsub.f32 1.5, %v6130_v29 }
 0xf77   : > { %v7780_v22 = vpop.eup %7779  ;;  %v6206_v49 = vadd.f32 %v10416_v48, %v6197_v5  ;;  %v6103_v23 = vadd.f32 1e-08, %v6095_v34 }
 0xf78   : > { %v6132_v11 = vmul.f32 %v7778_v51, %v6131_v18  ;;  %v6138_v2 = vmul.f32 %v7780_v22, %v6102_v26  ;;  %vm6144_vm1 = vweird.f32 %v7780_v22 }
 0xf79   : > { %v6213_v59 = vpack.c.bf16 %v6206_v49, %v6205_v42  ;;  %7781 = vrsqrt.f32 %v6103_v23  ;;  %vm6145_vm3 = vmor %vm6143_vm2, %vm6144_vm1  ;;  %vm6153_vm13 = vweird.f32 %v6103_v23 }
 0xf7a   : > { %v6139_v45 = vmul.f32 %v7780_v22, %v6138_v2  ;;  %v6136_v10 = vsel %vm6135_vm12, %v7778_v51, %v6132_v11 }
 0xf7b   : > { %7024 = vmatmul.msk.bf16.vlgmr.msrb.gmra.mxu1 %vm664_vm0, %v6213_v59  ;;  %v6189_v24 = vmul.f32 %v6136_v10, %v10362_v38 }
 0xf7c   : > { %v6140_v60 = vmul.f32 0.5, %v6139_v45  ;;  %v6084_v3 = vpop.xlane.xlu0 %6083 }
 0xf7d   : > { %v6096_v40 = vmul.f32 %v6084_v3, %v10757_v8  ;;  %v6198_v19 = vmul.f32 %v10410_v57, %v6189_v24 }
 0xf7e   : > { %v6141_v9 = vsub.f32 1.5, %v6140_v60 }
 0xf7f   : > { %v7782_v53 = vpop.eup %7781  ;;  %v6104_v36 = vadd.f32 1e-08, %v6096_v40  ;;  %v6207_v63 = vadd.f32 %v10416_v48, %v6198_v19 }
 0xf80   : > { %v6142_v46 = vmul.f32 %v7780_v22, %v6141_v9  ;;  %v6148_v56 = vmul.f32 %v7782_v53, %v6103_v23  ;;  %vm6154_vm4 = vweird.f32 %v7782_v53  ;;  %v7064_v23 = vld [vmem:[%s10654_s13 + $0x10] sm:$0xff] }
 0xf81   : > { %7783 = vrsqrt.f32 %v6104_v36  ;;  %vm6155_vm15 = vmor %vm6153_vm13, %vm6154_vm4  ;;  %vm6163_vm6 = vweird.f32 %v6104_v36 }
 0xf82   : > { %v6146_v6 = vsel %vm6145_vm3, %v7780_v22, %v6142_v46  ;;  %v6149_v28 = vmul.f32 %v7782_v53, %v6148_v56  ;;  %v7065_v22 = vld [vmem:[%s10654_s13 + $0x18] sm:$0xff] }
 0xf83   : > { %v6190_v21 = vmul.f32 %v6146_v6, %v10368_v1  ;;  %6326 = vmatpush.bf16.msrb.mxu2 %v7065_v22 }
 0xf84   : > { %v6150_v16 = vmul.f32 0.5, %v6149_v28  ;;  %v6087_v17 = vpop.xlane.xlu1 %6086 }
 0xf85   : > { %v6199_v43 = vmul.f32 %v10410_v57, %v6190_v21 }
 0xf86   : > { %v6151_v4 = vsub.f32 1.5, %v6150_v16 }
 0xf87   : > { %v7784_v50 = vpop.eup %7783  ;;  %v6208_v38 = vadd.f32 %v10416_v48, %v6199_v43  ;;  %6327 = vmatpush.bf16.msrb.mxu2 %v7064_v23 }
 0xf88   : > { %v6152_v44 = vmul.f32 %v7782_v53, %v6151_v4  ;;  %v6158_v7 = vmul.f32 %v7784_v50, %v6104_v36  ;;  %vm6164_vm5 = vweird.f32 %v7784_v50 }
 0xf89   : > { %v6214_v55 = vpack.c.bf16 %v6208_v38, %v6207_v63  ;;  %vm6165_vm7 = vmor %vm6163_vm6, %vm6164_vm5 }
 0xf8a   : > { %v6159_v41 = vmul.f32 %v7784_v50, %v6158_v7  ;;  %v6156_v1 = vsel %vm6155_vm15, %v7782_v53, %v6152_v44 }
 0xf8b   : > { %7025 = vmatmul.msk.bf16.gmra.mxu1 %vm664_vm0, %v6214_v55  ;;  %v6191_v25 = vmul.f32 %v6156_v1, %v10374_v47  ;;  %v6097_v47 = vmul.f32 %v6087_v17, %v10757_v8 }
 0xf8c   : > { %v6160_v58 = vmul.f32 0.5, %v6159_v41 }
 0xf8d   : > { %v6200_v15 = vmul.f32 %v10410_v57, %v6191_v25  ;;  %v6105_v26 = vadd.f32 1e-08, %v6097_v47 }
 0xf8e   : > { %v6161_v20 = vsub.f32 1.5, %v6160_v58 }
 0xf8f   : > { %v6209_v39 = vadd.f32 %v10416_v48, %v6200_v15  ;;  %7785 = vrsqrt.f32 %v6105_v26  ;;  %vm6173_vm10 = vweird.f32 %v6105_v26  ;;  %v7464_v15 = vld [vmem:[%s10655_s14 + $0x1] ss:$0 sm:$0xff] }
 0xf90   : > { %v6162_v32 = vmul.f32 %v7784_v50, %v6161_v20 }
 0xf92   : > { %v6166_v35 = vsel %vm6165_vm7, %v7784_v50, %v6162_v32 }
 0xf93   : > { %v6192_v33 = vmul.f32 %v6166_v35, %v10380_v27 }
 0xf95   : > { %v6201_v37 = vmul.f32 %v10410_v57, %v6192_v33  ;;  %v7786_v54 = vpop.eup %7785 }
 0xf96   : > { %v6168_v12 = vmul.f32 %v7786_v54, %v6105_v26  ;;  %vm6174_vm9 = vweird.f32 %v7786_v54 }
 0xf97   : > { %v6210_v14 = vadd.f32 %v10416_v48, %v6201_v37  ;;  %vm6175_vm11 = vmor %vm6173_vm10, %vm6174_vm9 }
 0xf98   : > { %v6169_v62 = vmul.f32 %v7786_v54, %v6168_v12 }
 0xf99   : > { %v6215_v51 = vpack.c.bf16 %v6210_v14, %v6209_v39 }
 0xf9a   : > { %v6170_v61 = vmul.f32 0.5, %v6169_v62 }
 0xf9b   : > { %7026 = vmatmul.msk.bf16.gmra.mxu1 %vm664_vm0, %v6215_v51 }
 0xf9c   : > { %v6171_v29 = vsub.f32 1.5, %v6170_v61 }
 0xf9e   : > { %v6172_v5 = vmul.f32 %v7786_v54, %v6171_v29 }
 0xfa0   : > { %v6176_v42 = vsel %vm6175_vm11, %v7786_v54, %v6172_v5 }
 0xfa1   : > { %v6193_v2 = vmul.f32 %v6176_v42, %v10386_v30  ;;  %v7463_v30 = vld [vmem:[%s10653_s12 + $0x1] ss:$0 sm:$0xff] }
 0xfa3   : > { %v6202_v60 = vmul.f32 %v10410_v57, %v6193_v2 }
 0xfa5   : > { %v6211_v40 = vadd.f32 %v10416_v48, %v6202_v60 }
 0xfd7   : > { %v6090_v27 = vpop.xlane.xlu2 %6089 }
 0xfd8   : > { %v6098_v0 = vmul.f32 %v6090_v27, %v10757_v8 }
 0xfda   : > { %v6106_v52 = vadd.f32 1e-08, %v6098_v0 }
 0xfdc   : > { %7787 = vrsqrt.f32 %v6106_v52  ;;  %vm6183_vm1 = vweird.f32 %v6106_v52 }
 0xfe2   : > { %v7788_v31 = vpop.eup %7787 }
 0xfe3   : > { %v6178_v34 = vmul.f32 %v7788_v31, %v6106_v52  ;;  %vm6184_vm12 = vweird.f32 %v7788_v31 }
 0xfe4   : > { %vm6185_vm2 = vmor %vm6183_vm1, %vm6184_vm12 }
 0xfe5   : > { %v6179_v18 = vmul.f32 %v7788_v31, %v6178_v34 }
 0xfe7   : > { %v6180_v49 = vmul.f32 0.5, %v6179_v18 }
 0xfe9   : > { %v6181_v11 = vsub.f32 1.5, %v6180_v49 }
 0xfeb   : > { %v6182_v59 = vmul.f32 %v7788_v31, %v6181_v11 }
 0xfed   : > { %v6186_v45 = vsel %vm6185_vm2, %v7788_v31, %v6182_v59 }
 0xfee   : > { %v6194_v10 = vmul.f32 %v6186_v45, %v10400_v13 }
 0xff0   : > { %v6203_v3 = vmul.f32 %v10410_v57, %v6194_v10 }
 0xff2   : > { %v6212_v9 = vadd.f32 %v10416_v48, %v6203_v3 }
 0xff4   : > { %v6216_v53 = vpack.c.bf16 %v6212_v9, %v6211_v40 }
 0xff6   : > { %7027 = vmatmul.msk.bf16.gmra.mxu1 %vm664_vm0, %v6216_v53 }
 0xff8   : > { %v6257_v24 = vpop.f32.mrf.mxu1 }
 0xff9   : > { %v6258_v36 = vadd.f32 %v7463_v30, %v6257_v24 }
 0xffb   : > { %v6277_v13 = vmax.f32 %v6258_v36, 0.0 }
0x1000   : > { %v6259_v46 = vpop.f32.mrf.mxu1 }
0x1001   : > { %v6260_v56 = vadd.f32 %v7463_v30, %v6259_v46 }
0x1003   : > { %v6278_v6 = vmax.f32 %v6260_v56, 0.0 }
0x1005   : > { %v6285_v28 = vpack.c.bf16 %v6278_v6, %v6277_v13 }
0x1007   : > { %7040 = vmatmul.msk.bf16.vlgmr.msrb.gmra.mxu2 %vm664_vm0, %v6285_v28 }
0x1008   : > { %v6262_v57 = vpop.f32.mrf.mxu1 }
0x1009   : > { %v6263_v21 = vadd.f32 %v7463_v30, %v6262_v57 }
0x100b   : > { %v6279_v16 = vmax.f32 %v6263_v21, 0.0 }
0x1010   : > { %v6264_v19 = vpop.f32.mrf.mxu1 }
0x1011   : > { %v6265_v48 = vadd.f32 %v7463_v30, %v6264_v19 }
0x1013   : > { %v6280_v43 = vmax.f32 %v6265_v48, 0.0 }
0x1015   : > { %v6286_v4 = vpack.c.bf16 %v6280_v43, %v6279_v16 }
0x1017   : > { %7041 = vmatmul.msk.bf16.gmra.mxu2 %vm664_vm0, %v6286_v4 }
0x1018   : > { %v6267_v50 = vpop.f32.mrf.mxu1 }
0x1019   : > { %v6268_v63 = vadd.f32 %v7463_v30, %v6267_v50 }
0x101b   : > { %v6281_v7 = vmax.f32 %v6268_v63, 0.0 }
0x1020   : > { %v6269_v38 = vpop.f32.mrf.mxu1 }
0x1021   : > { %v6270_v44 = vadd.f32 %v7463_v30, %v6269_v38 }
0x1023   : > { %v6282_v55 = vmax.f32 %v6270_v44, 0.0 }
0x1025   : > { %v6287_v41 = vpack.c.bf16 %v6282_v55, %v6281_v7 }
0x1027   : > { %7042 = vmatmul.msk.bf16.gmra.mxu2 %vm664_vm0, %v6287_v41 }
0x1073   : > { %v6272_v1 = vpop.f32.mrf.mxu1 }
0x1074   : > { %v6273_v58 = vadd.f32 %v7463_v30, %v6272_v1 }
0x1076   : > { %v6283_v32 = vmax.f32 %v6273_v58, 0.0 }
0x107b   : > { %v6274_v20 = vpop.f32.mrf.mxu1 }
0x107c   : > { %v6275_v25 = vadd.f32 %v7463_v30, %v6274_v20 }
0x107e   : > { %v6284_v35 = vmax.f32 %v6275_v25, 0.0 }
0x1080   : > { %v6288_v33 = vpack.c.bf16 %v6284_v35, %v6283_v32 }
0x1082   : > { %7043 = vmatmul.msk.bf16.gmra.mxu2 %vm664_vm0, %v6288_v33 }
0x108a   : > { %v6329_v37 = vpop.f32.mrf.mxu2 }
0x108b   : > { %v6330_v39 = vadd.f32 %v7464_v15, %v6329_v37 }
0x108d   : > { %v6351_v14 = vsel %vm664_vm0, %v6330_v39, 0.0 }
0x108e   : > { %6352 = vadd.xlane.f32.xlu0 %v6351_v14 }
0x1092   : > { %v6331_v51 = vpop.f32.mrf.mxu2 }
0x1093   : > { %v6332_v17 = vadd.f32 %v7464_v15, %v6331_v51 }
0x1095   : > { %v6354_v47 = vsel %vm664_vm0, %v6332_v17, 0.0 }
0x1096   : > { %6355 = vadd.xlane.f32.xlu1 %v6354_v47 }
0x109a   : > { %v6334_v26 = vpop.f32.mrf.mxu2 }
0x109b   : > { %v6335_v54 = vadd.f32 %v7464_v15, %v6334_v26 }
0x109d   : > { %v6357_v12 = vsel %vm664_vm0, %v6335_v54, 0.0 }
0x109e   : > { %6358 = vadd.xlane.f32.xlu2 %v6357_v12 }
0x10a2   : > { %v6336_v62 = vpop.f32.mrf.mxu2 }
0x10a3   : > { %v6337_v27 = vadd.f32 %v7464_v15, %v6336_v62 }
0x10a5   : > { %v6360_v0 = vsel %vm664_vm0, %v6337_v27, 0.0 }
0x10a6   : > { %6361 = vadd.xlane.f32.xlu0 %v6360_v0 }
0x10aa   : > { %v6339_v52 = vpop.f32.mrf.mxu2 }
0x10ab   : > { %v6340_v61 = vadd.f32 %v7464_v15, %v6339_v52 }
0x10ad   : > { %v6363_v29 = vsel %vm664_vm0, %v6340_v61, 0.0 }
0x10ae   : > { %6364 = vadd.xlane.f32.xlu1 %v6363_v29 }
0x10b2   : > { %v6341_v31 = vpop.f32.mrf.mxu2 }
0x10b3   : > { %v6342_v5 = vadd.f32 %v7464_v15, %v6341_v31 }
0x10b5   : > { %v6366_v34 = vsel %vm664_vm0, %v6342_v5, 0.0 }
0x10b6   : > { %6367 = vadd.xlane.f32.xlu2 %v6366_v34 }
0x1101   : > { %v6353_v18 = vpop.xlane.xlu0 %6352 }
0x1102   : > { %v6375_v22 = vmul.f32 %v6353_v18, %v10757_v8  ;;  %v10527_v18 = vld [vmem:[%s10656_s15] ss:$0 sm:$0xff] }
0x1104   : > { %v10472_v42 = vsub.f32 %v6330_v39, %v6375_v22 }
0x1105   : > { %v6344_v49 = vpop.f32.mrf.mxu2 }
0x1106   : > { %v6345_v23 = vadd.f32 %v7464_v15, %v6344_v49  ;;  %v6391_v11 = vmul.f32 %v10472_v42, %v10472_v42 }
0x1108   : > { %v6399_v2 = vsel %vm664_vm0, %v6391_v11, 0.0  ;;  %v6369_v59 = vsel %vm664_vm0, %v6345_v23, 0.0  ;;  %v10539_v11 = vld [vmem:[%s10657_s16] ss:$0 sm:$0xff] }
0x1109   : > { %v6356_v45 = vpop.xlane.xlu1 %6355  ;;  %6400 = vadd.xlane.f32.xlu2 %v6399_v2  ;;  %6370 = vadd.xlane.f32.xlu0 %v6369_v59 }
0x110a   : > { %v6376_v10 = vmul.f32 %v6356_v45, %v10757_v8 }
0x110c   : > { %v10479_v60 = vsub.f32 %v6332_v17, %v6376_v10 }
0x110d   : > { %v6346_v3 = vpop.f32.mrf.mxu2 }
0x110e   : > { %v6347_v40 = vadd.f32 %v7464_v15, %v6346_v3  ;;  %v6392_v9 = vmul.f32 %v10479_v60, %v10479_v60 }
0x1110   : > { %v6372_v53 = vsel %vm664_vm0, %v6347_v40, 0.0  ;;  %v6402_v24 = vsel %vm664_vm0, %v6392_v9, 0.0 }
0x1111   : > { %6373 = vadd.xlane.f32.xlu1 %v6372_v53  ;;  %6403 = vadd.xlane.f32.xlu0 %v6402_v24  ;;  %v6359_v30 = vpop.xlane.xlu2 %6358 }
0x1112   : > { %v6377_v36 = vmul.f32 %v6359_v30, %v10757_v8 }
0x1114   : > { %v10486_v46 = vsub.f32 %v6335_v54, %v6377_v36 }
0x1116   : > { %v6393_v56 = vmul.f32 %v10486_v46, %v10486_v46 }
0x1118   : > { %v6405_v13 = vsel %vm664_vm0, %v6393_v56, 0.0 }
0x1119   : > { %v6362_v6 = vpop.xlane.xlu0 %6361  ;;  %6406 = vadd.xlane.f32.xlu1 %v6405_v13 }
0x111a   : > { %v6378_v28 = vmul.f32 %v6362_v6, %v10757_v8 }
0x111c   : > { %v10492_v57 = vsub.f32 %v6337_v27, %v6378_v28 }
0x111e   : > { %v6394_v21 = vmul.f32 %v10492_v57, %v10492_v57 }
0x1120   : > { %v6408_v19 = vsel %vm664_vm0, %v6394_v21, 0.0 }
0x1121   : > { %6409 = vadd.xlane.f32.xlu2 %v6408_v19  ;;  %v6365_v48 = vpop.xlane.xlu1 %6364 }
0x1122   : > { %v6379_v16 = vmul.f32 %v6365_v48, %v10757_v8 }
0x1124   : > { %v10498_v43 = vsub.f32 %v6340_v61, %v6379_v16 }
0x1126   : > { %v6395_v4 = vmul.f32 %v10498_v43, %v10498_v43 }
0x1128   : > { %v6411_v50 = vsel %vm664_vm0, %v6395_v4, 0.0 }
0x1129   : > { %6412 = vadd.xlane.f32.xlu0 %v6411_v50  ;;  %v6368_v63 = vpop.xlane.xlu2 %6367 }
0x112a   : > { %v6380_v38 = vmul.f32 %v6368_v63, %v10757_v8 }
0x112c   : > { %v10504_v44 = vsub.f32 %v6342_v5, %v6380_v38 }
0x112e   : > { %v6396_v7 = vmul.f32 %v10504_v44, %v10504_v44 }
0x1130   : > { %v6414_v55 = vsel %vm664_vm0, %v6396_v7, 0.0  ;;  %v6550_v7 = vld [vmem:[%s10545_s25 + $0x8] sm:$0xff] }
0x1131   : > { %6415 = vadd.xlane.f32.xlu1 %v6414_v55  ;;  %v6590_v55 = vld [vmem:[%s10533_s1 + $0x8] sm:$0xff] }
0x117c   : > { %v6371_v41 = vpop.xlane.xlu0 %6370  ;;  %v6401_v1 = vpop.xlane.xlu2 %6400 }
0x117d   : > { %v6381_v58 = vmul.f32 %v6371_v41, %v10757_v8  ;;  %v6423_v20 = vmul.f32 %v6401_v1, %v10757_v8 }
0x117f   : > { %v10511_v25 = vsub.f32 %v6345_v23, %v6381_v58  ;;  %v6431_v32 = vadd.f32 1e-08, %v6423_v20 }
0x1181   : > { %7789 = vrsqrt.f32 %v6431_v32  ;;  %v6397_v35 = vmul.f32 %v10511_v25, %v10511_v25  ;;  %vm6445_vm4 = vweird.f32 %v6431_v32 }
0x1183   : > { %v6417_v33 = vsel %vm664_vm0, %v6397_v35, 0.0 }
0x1184   : > { %v6374_v15 = vpop.xlane.xlu1 %6373  ;;  %6418 = vadd.xlane.f32.xlu2 %v6417_v33  ;;  %v6404_v37 = vpop.xlane.xlu0 %6403 }
0x1185   : > { %v6382_v39 = vmul.f32 %v6374_v15, %v10757_v8  ;;  %v6424_v14 = vmul.f32 %v6404_v37, %v10757_v8 }
0x1187   : > { %v7790_v51 = vpop.eup %7789  ;;  %v10518_v17 = vsub.f32 %v6347_v40, %v6382_v39  ;;  %v6432_v47 = vadd.f32 1e-08, %v6424_v14  ;;  %v6549_v40 = vld [vmem:[%s10545_s25] sm:$0xff] }
0x1188   : > { %v6440_v26 = vmul.f32 %v7790_v51, %v6431_v32  ;;  %vm6446_vm3 = vweird.f32 %v7790_v51 }
0x1189   : > { %7791 = vrsqrt.f32 %v6432_v47  ;;  %v6398_v54 = vmul.f32 %v10518_v17, %v10518_v17  ;;  %vm6447_vm13 = vmor %vm6445_vm4, %vm6446_vm3  ;;  %vm6455_vm5 = vweird.f32 %v6432_v47 }
0x118a   : > { %v6441_v12 = vmul.f32 %v7790_v51, %v6440_v26 }
0x118b   : > { %v6420_v62 = vsel %vm664_vm0, %v6398_v54, 0.0 }
0x118c   : > { %v6442_v27 = vmul.f32 0.5, %v6441_v12  ;;  %6421 = vadd.xlane.f32.xlu0 %v6420_v62  ;;  %v6407_v0 = vpop.xlane.xlu1 %6406  ;;  %v6551_v62 = vld [vmem:[%s10545_s25 + $0x10] sm:$0xff] }
0x118d   : > { %v6425_v52 = vmul.f32 %v6407_v0, %v10757_v8 }
0x118e   : > { %v6443_v61 = vsub.f32 1.5, %v6442_v27  ;;  %v6591_v27 = vld [vmem:[%s10533_s1 + $0x10] sm:$0xff] }
0x118f   : > { %v7792_v29 = vpop.eup %7791  ;;  %v6433_v31 = vadd.f32 1e-08, %v6425_v52 }
0x1190   : > { %v6444_v5 = vmul.f32 %v7790_v51, %v6443_v61  ;;  %v6450_v34 = vmul.f32 %v7792_v29, %v6432_v47  ;;  %vm6456_vm15 = vweird.f32 %v7792_v29 }
0x1191   : > { %7793 = vrsqrt.f32 %v6433_v31  ;;  %vm6457_vm6 = vmor %vm6455_vm5, %vm6456_vm15  ;;  %vm6465_vm9 = vweird.f32 %v6433_v31 }
0x1192   : > { %v6448_v22 = vsel %vm6447_vm13, %v7790_v51, %v6444_v5  ;;  %v6451_v49 = vmul.f32 %v7792_v29, %v6450_v34 }
0x1193   : > { %v6519_v23 = vmul.f32 %v6448_v22, %v10472_v42  ;;  %v6589_v42 = vld [vmem:[%s10533_s1] sm:$0xff] }
0x1194   : > { %v6452_v2 = vmul.f32 0.5, %v6451_v49  ;;  %v6410_v59 = vpop.xlane.xlu2 %6409 }
0x1195   : > { %v6426_v45 = vmul.f32 %v6410_v59, %v10757_v8  ;;  %v6530_v10 = vmul.f32 %v10527_v18, %v6519_v23 }
0x1196   : > { %v6453_v3 = vsub.f32 1.5, %v6452_v2 }
0x1197   : > { %v7794_v9 = vpop.eup %7793  ;;  %v6434_v53 = vadd.f32 1e-08, %v6426_v45  ;;  %v6541_v24 = vadd.f32 %v10539_v11, %v6530_v10 }
0x1198   : > { %v6454_v30 = vmul.f32 %v7792_v29, %v6453_v3  ;;  %v6460_v36 = vmul.f32 %v7794_v9, %v6433_v31  ;;  %vm6466_vm7 = vweird.f32 %v7794_v9  ;;  %v6592_v3 = vld [vmem:[%s10533_s1 + $0x18] sm:$0xff] }
0x1199   : > { %7795 = vrsqrt.f32 %v6434_v53  ;;  %v6597_v56 = vmul.f32 %v6589_v42, %v6541_v24  ;;  %v6557_v13 = vmul.f32 %v6549_v40, %v6541_v24  ;;  %vm6467_vm10 = vmor %vm6465_vm9, %vm6466_vm7  ;;  %vm6475_vm12 = vweird.f32 %v6434_v53  ;;  %v6552_v42 = vld [vmem:[%s10545_s25 + $0x18] sm:$0xff] }
0x119a   : > { %v6458_v6 = vsel %vm6457_vm6, %v7792_v29, %v6454_v30  ;;  %v6461_v28 = vmul.f32 %v7794_v9, %v6460_v36 }
0x119b   : > { %v6605_v21 = vsel %vm664_vm0, %v6597_v56, 0.0  ;;  %v6565_v19 = vsel %vm664_vm0, %v6557_v13, 0.0  ;;  %v6520_v48 = vmul.f32 %v6458_v6, %v10479_v60 }
0x119c   : > { %v6462_v16 = vmul.f32 0.5, %v6461_v28  ;;  %v6413_v4 = vpop.xlane.xlu0 %6412  ;;  %6606 = vadd.xlane.f32.xlu0 %v6605_v21  ;;  %6566 = vadd.xlane.f32.xlu1 %v6565_v19 }
0x119d   : > { %v6427_v50 = vmul.f32 %v6413_v4, %v10757_v8  ;;  %v6531_v63 = vmul.f32 %v10527_v18, %v6520_v48  ;;  %v6593_v4 = vld [vmem:[%s10533_s1 + $0x20] sm:$0xff] }
0x119e   : > { %v6463_v38 = vsub.f32 1.5, %v6462_v16  ;;  %v6553_v16 = vld [vmem:[%s10545_s25 + $0x20] sm:$0xff] }
0x119f   : > { %v7796_v41 = vpop.eup %7795  ;;  %v6435_v1 = vadd.f32 1e-08, %v6427_v50  ;;  %v6542_v58 = vadd.f32 %v10539_v11, %v6531_v63 }
0x11a0   : > { %v6464_v20 = vmul.f32 %v7794_v9, %v6463_v38  ;;  %v6470_v32 = vmul.f32 %v7796_v41, %v6434_v53  ;;  %vm6476_vm11 = vweird.f32 %v7796_v41 }
0x11a1   : > { %7797 = vrsqrt.f32 %v6435_v1  ;;  %v6558_v60 = vmul.f32 %v6550_v7, %v6542_v58  ;;  %v6598_v35 = vmul.f32 %v6590_v55, %v6542_v58  ;;  %vm6477_vm1 = vmor %vm6475_vm12, %vm6476_vm11  ;;  %vm6485_vm3 = vweird.f32 %v6435_v1 }
0x11a2   : > { %v6468_v33 = vsel %vm6467_vm10, %v7794_v9, %v6464_v20  ;;  %v6471_v15 = vmul.f32 %v7796_v41, %v6470_v32  ;;  %v6594_v20 = vld [vmem:[%s10533_s1 + $0x28] sm:$0xff] }
0x11a3   : > { %v6568_v37 = vsel %vm664_vm0, %v6558_v60, 0.0  ;;  %v6608_v39 = vsel %vm664_vm0, %v6598_v35, 0.0  ;;  %v6521_v14 = vmul.f32 %v6468_v33, %v10486_v46  ;;  %v6554_v32 = vld [vmem:[%s10545_s25 + $0x28] sm:$0xff] }
0x11a4   : > { %v6472_v51 = vmul.f32 0.5, %v6471_v15  ;;  %6569 = vadd.xlane.f32.xlu2 %v6568_v37  ;;  %v6416_v47 = vpop.xlane.xlu1 %6415  ;;  %6609 = vadd.xlane.f32.xlu1 %v6608_v39 }
0x11a5   : > { %v6428_v26 = vmul.f32 %v6416_v47, %v10757_v8  ;;  %v6532_v54 = vmul.f32 %v10527_v18, %v6521_v14 }
0x11a6   : > { %v6473_v12 = vsub.f32 1.5, %v6472_v51 }
0x11a7   : > { %v7798_v0 = vpop.eup %7797  ;;  %v6436_v52 = vadd.f32 1e-08, %v6428_v26  ;;  %v6543_v61 = vadd.f32 %v10539_v11, %v6532_v54 }
0x11a8   : > { %v6474_v29 = vmul.f32 %v7796_v41, %v6473_v12  ;;  %v6480_v31 = vmul.f32 %v7798_v0, %v6435_v1  ;;  %vm6486_vm2 = vweird.f32 %v7798_v0 }
0x11a9   : > { %7799 = vrsqrt.f32 %v6436_v52  ;;  %v6559_v46 = vmul.f32 %v6551_v62, %v6543_v61  ;;  %v6599_v5 = vmul.f32 %v6591_v27, %v6543_v61  ;;  %vm6487_vm4 = vmor %vm6485_vm3, %vm6486_vm2  ;;  %vm6495_vm15 = vweird.f32 %v6436_v52 }
0x11aa   : > { %v6478_v34 = vsel %vm6477_vm1, %v7796_v41, %v6474_v29  ;;  %v6481_v22 = vmul.f32 %v7798_v0, %v6480_v31  ;;  %vm6647_vm1 = vcmask 1042434   ;;  %vm6649_vm2 = vcmask 1043459  }
0x11ab   : > { %v6571_v49 = vsel %vm664_vm0, %v6559_v46, 0.0  ;;  %v6611_v23 = vsel %vm664_vm0, %v6599_v5, 0.0  ;;  %v6522_v2 = vmul.f32 %v6478_v34, %v10492_v57  ;;  %vm6651_vm3 = vcmask 1044484  }
0x11ac   : > { %v6482_v59 = vmul.f32 0.5, %v6481_v22  ;;  %6572 = vadd.xlane.f32.xlu2 %v6571_v49  ;;  %6612 = vadd.xlane.f32.xlu0 %v6611_v23  ;;  %v6595_v49 = vld [vmem:[%s10533_s1 + $0x30] sm:$0xff] }
0x11ad   : > { %v6533_v45 = vmul.f32 %v10527_v18, %v6522_v2  ;;  %v6555_v23 = vld [vmem:[%s10545_s25 + $0x30] sm:$0xff] }
0x11ae   : > { %v6483_v10 = vsub.f32 1.5, %v6482_v59 }
0x11af   : > { %v7800_v40 = vpop.eup %7799  ;;  %v6544_v9 = vadd.f32 %v10539_v11, %v6533_v45 }
0x11b0   : > { %v6484_v53 = vmul.f32 %v7798_v0, %v6483_v10  ;;  %v6490_v24 = vmul.f32 %v7800_v40, %v6436_v52  ;;  %vm6496_vm13 = vweird.f32 %v7800_v40 }
0x11b1   : > { %v6600_v30 = vmul.f32 %v6592_v3, %v6544_v9  ;;  %v6560_v57 = vmul.f32 %v6552_v42, %v6544_v9  ;;  %vm6497_vm5 = vmor %vm6495_vm15, %vm6496_vm13  ;;  %vm6655_vm13 = vcmask 1046534   ;;  %vm6657_vm15 = vcmask 1047559  }
0x11b2   : > { %v6488_v36 = vsel %vm6487_vm4, %v7798_v0, %v6484_v53  ;;  %v6491_v56 = vmul.f32 %v7800_v40, %v6490_v24  ;;  %v6556_v53 = vld [vmem:[%s10545_s25 + $0x38] sm:$0xff]  ;;  %vm6653_vm4 = vcmask 1045509  }
0x11b3   : > { %v6614_v13 = vsel %vm664_vm0, %v6600_v30, 0.0  ;;  %v6574_v6 = vsel %vm664_vm0, %v6560_v57, 0.0  ;;  %v6523_v28 = vmul.f32 %v6488_v36, %v10498_v43  ;;  %v6596_v24 = vld [vmem:[%s10533_s1 + $0x38] sm:$0xff] }
0x11b4   : > { %v6492_v21 = vmul.f32 0.5, %v6491_v56  ;;  %6615 = vadd.xlane.f32.xlu2 %v6614_v13  ;;  %6575 = vadd.xlane.f32.xlu1 %v6574_v6 }
0x11b5   : > { %v6534_v19 = vmul.f32 %v10527_v18, %v6523_v28 }
0x11b6   : > { %v6493_v48 = vsub.f32 1.5, %v6492_v21 }
0x11b7   : > { %v6545_v50 = vadd.f32 %v10539_v11, %v6534_v19 }
0x11b8   : > { %v6494_v63 = vmul.f32 %v7800_v40, %v6493_v48 }
0x11b9   : > { %v6561_v38 = vmul.f32 %v6553_v16, %v6545_v50  ;;  %v6601_v7 = vmul.f32 %v6593_v4, %v6545_v50 }
0x11ba   : > { %v6498_v55 = vsel %vm6497_vm5, %v7800_v40, %v6494_v63  ;;  %v10759_v63 = vld [vmem:[#allocation11_spill] sm:$0xff] }
0x11bb   : > { %v6577_v43 = vsel %vm664_vm0, %v6561_v38, 0.0  ;;  %v6617_v41 = vsel %vm664_vm0, %v6601_v7, 0.0  ;;  %v6524_v1 = vmul.f32 %v6498_v55, %v10504_v44  ;;  %v6668_v38 = vadd.s32 4294967288, %v10759_v63 }
0x11bc   : > { %6578 = vadd.xlane.f32.xlu0 %v6577_v43  ;;  %6618 = vadd.xlane.f32.xlu1 %v6617_v41 }
0x11bd   : > { %v6535_v58 = vmul.f32 %v10527_v18, %v6524_v1 }
0x11bf   : > { %v6546_v60 = vadd.f32 %v10539_v11, %v6535_v58 }
0x11c1   : > { %v6602_v35 = vmul.f32 %v6594_v20, %v6546_v60  ;;  %v6562_v33 = vmul.f32 %v6554_v32, %v6546_v60 }
0x11c3   : > { %v6620_v15 = vsel %vm664_vm0, %v6602_v35, 0.0  ;;  %v6580_v37 = vsel %vm664_vm0, %v6562_v33, 0.0 }
0x11c4   : > { %6621 = vadd.xlane.f32.xlu0 %v6620_v15  ;;  %6581 = vadd.xlane.f32.xlu2 %v6580_v37 }
0x11f7   : > { %v6419_v39 = vpop.xlane.xlu2 %6418 }
0x11f8   : > { %v6429_v14 = vmul.f32 %v6419_v39, %v10757_v8 }
0x11fa   : > { %v6437_v44 = vadd.f32 1e-08, %v6429_v14 }
0x11fc   : > { %7801 = vrsqrt.f32 %v6437_v44  ;;  %vm6505_vm7 = vweird.f32 %v6437_v44 }
0x11ff   : > { %v6422_v51 = vpop.xlane.xlu0 %6421 }
0x1200   : > { %v6430_v47 = vmul.f32 %v6422_v51, %v10757_v8 }
0x1202   : > { %v7802_v26 = vpop.eup %7801  ;;  %v6438_v54 = vadd.f32 1e-08, %v6430_v47 }
0x1203   : > { %v6500_v12 = vmul.f32 %v7802_v26, %v6437_v44  ;;  %vm6506_vm6 = vweird.f32 %v7802_v26 }
0x1204   : > { %7803 = vrsqrt.f32 %v6438_v54  ;;  %vm6507_vm9 = vmor %vm6505_vm7, %vm6506_vm6  ;;  %vm6515_vm11 = vweird.f32 %v6438_v54 }
0x1205   : > { %v6501_v62 = vmul.f32 %v7802_v26, %v6500_v12 }
0x1207   : > { %v6502_v27 = vmul.f32 0.5, %v6501_v62 }
0x1209   : > { %v6503_v0 = vsub.f32 1.5, %v6502_v27 }
0x120a   : > { %v7804_v52 = vpop.eup %7803 }
0x120b   : > { %v6504_v61 = vmul.f32 %v7802_v26, %v6503_v0  ;;  %v6510_v29 = vmul.f32 %v7804_v52, %v6438_v54  ;;  %vm6516_vm10 = vweird.f32 %v7804_v52 }
0x120c   : > { %vm6517_vm12 = vmor %vm6515_vm11, %vm6516_vm10 }
0x120d   : > { %v6508_v31 = vsel %vm6507_vm9, %v7802_v26, %v6504_v61  ;;  %v6511_v46 = vmul.f32 %v7804_v52, %v6510_v29 }
0x120e   : > { %v6525_v5 = vmul.f32 %v6508_v31, %v10511_v25 }
0x120f   : > { %v6512_v8 = vmul.f32 0.5, %v6511_v46  ;;  %v6567_v6 = vpop.xlane.xlu1 %6566 }
0x1210   : > { %v6536_v34 = vmul.f32 %v10527_v18, %v6525_v5  ;;  %v6637_v32 = vperm.slane %v6567_v6, %v10759_v63 }
0x1211   : > { %v6513_v22 = vsub.f32 1.5, %v6512_v8 }
0x1212   : > { %v6547_v2 = vadd.f32 %v10539_v11, %v6536_v34 }
0x1213   : > { %v6514_v59 = vmul.f32 %v7804_v52, %v6513_v22 }
0x1214   : > { %v6603_v45 = vmul.f32 %v6595_v49, %v6547_v2  ;;  %v6563_v10 = vmul.f32 %v6555_v23, %v6547_v2 }
0x1215   : > { %v6518_v3 = vsel %vm6517_vm12, %v7804_v52, %v6514_v59 }
0x1216   : > { %v6623_v42 = vsel %vm664_vm0, %v6603_v45, 0.0  ;;  %v6583_v25 = vsel %vm664_vm0, %v6563_v10, 0.0  ;;  %v6526_v40 = vmul.f32 %v6518_v3, %v10518_v17  ;;  %v6607_v17 = vpop.xlane.xlu0 %6606 }
0x1217   : > { %6624 = vadd.xlane.f32.xlu2 %v6623_v42  ;;  %6584 = vadd.xlane.f32.xlu1 %v6583_v25  ;;  %v6570_v28 = vpop.xlane.xlu2 %6569  ;;  %v6610_v21 = vpop.xlane.xlu1 %6609  ;;  %v6669_v20 = vperm.slane %v6607_v17, %v6668_v38 }
0x1218   : > { %v6537_v9 = vmul.f32 %v10527_v18, %v6526_v40  ;;  %v6670_v43 = vperm.slane %v6610_v21, %v6668_v38  ;;  %v6638_v41 = vperm.slane %v6570_v28, %v10759_v63 }
0x121a   : > { %v6548_v30 = vadd.f32 %v10539_v11, %v6537_v9 }
0x121c   : > { %v6564_v57 = vmul.f32 %v6556_v53, %v6548_v30  ;;  %v6604_v36 = vmul.f32 %v6596_v24, %v6548_v30 }
0x121e   : > { %v6586_v56 = vsel %vm664_vm0, %v6564_v57, 0.0  ;;  %v6626_v13 = vsel %vm664_vm0, %v6604_v36, 0.0  ;;  %vm6645_vm0 = vcmask 1041409  }
0x121f   : > { %6587 = vadd.xlane.f32.xlu0 %v6586_v56  ;;  %6627 = vadd.xlane.f32.xlu1 %v6626_v13  ;;  %v6573_v19 = vpop.xlane.xlu2 %6572  ;;  %v6613_v48 = vpop.xlane.xlu0 %6612  ;;  %v6677_v39 = vsel %vm6645_vm0, %v6670_v43, %v6669_v20  ;;  %v6646_v14 = vsel %vm6645_vm0, %v6638_v41, %v6637_v32 }
0x1220   : > { %v6671_v1 = vperm.slane %v6613_v48, %v6668_v38  ;;  %v6639_v58 = vperm.slane %v6573_v19, %v10759_v63 }
0x1222   : > { %v6678_v47 = vsel %vm6647_vm1, %v6671_v1, %v6677_v39  ;;  %v6648_v26 = vsel %vm6647_vm1, %v6639_v58, %v6646_v14 }
0x1227   : > { %v6576_v18 = vpop.xlane.xlu1 %6575  ;;  %v6616_v16 = vpop.xlane.xlu2 %6615 }
0x1228   : > { %v6640_v60 = vperm.slane %v6576_v18, %v10759_v63  ;;  %v6672_v35 = vperm.slane %v6616_v16, %v6668_v38 }
0x122a   : > { %v6650_v62 = vsel %vm6649_vm2, %v6640_v60, %v6648_v26  ;;  %v6679_v27 = vsel %vm6649_vm2, %v6672_v35, %v6678_v47 }
0x122f   : > { %v6579_v4 = vpop.xlane.xlu0 %6578  ;;  %v6619_v50 = vpop.xlane.xlu1 %6618 }
0x1230   : > { %v6641_v15 = vperm.slane %v6579_v4, %v10759_v63  ;;  %v6673_v37 = vperm.slane %v6619_v50, %v6668_v38 }
0x1232   : > { %v6652_v0 = vsel %vm6651_vm3, %v6641_v15, %v6650_v62  ;;  %v6680_v52 = vsel %vm6651_vm3, %v6673_v37, %v6679_v27 }
0x1237   : > { %v6582_v11 = vpop.xlane.xlu2 %6581  ;;  %v6622_v7 = vpop.xlane.xlu0 %6621 }
0x1238   : > { %v6674_v44 = vperm.slane %v6622_v7, %v6668_v38  ;;  %v6642_v51 = vperm.slane %v6582_v11, %v10759_v63 }
0x123a   : > { %v6681_v31 = vsel %vm6653_vm4, %v6674_v44, %v6680_v52  ;;  %v6654_v46 = vsel %vm6653_vm4, %v6642_v51, %v6652_v0 }
0x128a   : > { %v6585_v55 = vpop.xlane.xlu1 %6584  ;;  %v6625_v33 = vpop.xlane.xlu2 %6624 }
0x128b   : > { %v6643_v54 = vperm.slane %v6585_v55, %v10759_v63  ;;  %v6675_v12 = vperm.slane %v6625_v33, %v6668_v38 }
0x128d   : > { %v6656_v34 = vsel %vm6655_vm13, %v6643_v54, %v6654_v46  ;;  %v6682_v22 = vsel %vm6655_vm13, %v6675_v12, %v6681_v31 }
0x1292   : > { %v6588_v61 = vpop.xlane.xlu0 %6587  ;;  %v6628_v29 = vpop.xlane.xlu1 %6627 }
0x1293   : > { %v6644_v5 = vperm.slane %v6588_v61, %v10759_v63  ;;  %v6676_v8 = vperm.slane %v6628_v29, %v6668_v38 }
0x1295   : > { %v6658_v49 = vsel %vm6657_vm15, %v6644_v5, %v6656_v34  ;;  %v6683_v23 = vsel %vm6657_vm15, %v6676_v8, %v6682_v22 }
0x1296   : > { %v6685_v2 = vsel %vm1224_vm8, %v6658_v49, %v6683_v23 }
0x1297   : > { %6686 = vst.msk [vmem:[%s646_s30] sm:$0xff] %vm3090_vm14, %v6685_v2 }
0x1298 PF: > { %s29_s0 = sadd.s32 1, %s7811_s0  }
0x1299   : > { %p26_p5 = scmp.ge.s32.totalorder %s29_s0, 4  }
0x129b   :  { %28 = sbr.rel (!%p26_p5) target bundleno = 5 (0x5), region = 137 }

</bundles_post_ra>
